<compile_context>
chip_gen: v7x
topology: tpu7x:2x2x1
jax: 0.10.0
libtpu: 0.0.40
codegen_flags: <defaults>
</compile_context>

<pallas_src>
import functools
import math

import jax
import jax.numpy as jnp
from jax.experimental import pallas as pl
from jax.experimental.pallas import tpu as pltpu

# ----------------------------- global knobs --------------------------------

MXU_DTYPE = jnp.bfloat16          # bf16 MXU operands, f32 accumulation
VMEM_LIMIT = 32 * 1024 * 1024     # <= scoped default on v6e/v7x, raises v5e's 16 MiB

# Baseline tile sizes (fit comfortably in the 32 MiB scoped VMEM with double
# buffering even in f32; re-derive on v7x's smaller 64 MiB physical VMEM if
# tiles are grown for real BERT sizes).
TM = 256      # rows tile
TN = 256      # output-feature tile (only used where LN is NOT fused)
TK = 512      # contraction tile
TI = 256      # FFN intermediate tile


def _tile(dim, target):
    """Largest legal tile: `target` if it divides dim, else the full dim."""
    if dim <= target:
        return dim
    if dim % target == 0:
        return target
    # TODO(synk): pad non-128-multiple dims (e.g. real vocab=30522) at the
    # wrapper level instead of falling back to a single full-dim block.
    return dim


def _cparams(sem):
    return pltpu.CompilerParams(dimension_semantics=sem,
                                vmem_limit_bytes=VMEM_LIMIT)


def _mxu(w):
    return w if w.dtype == MXU_DTYPE else w.astype(MXU_DTYPE)


def _apply_act(y, act):
    if act == "tanh":
        return jnp.tanh(y)
    if act == "gelu":
        # TODO(synk): BERT reference is exact erf-GELU; tanh-approx kept
        # (<1e-3 drift) to stay on EUP-supported ops.
        return jax.nn.gelu(y, approximate=True)
    return y


def _ln(y, g, b, eps):
    mu = jnp.mean(y, axis=-1, keepdims=True)
    var = jnp.mean(jnp.square(y - mu), axis=-1, keepdims=True)
    return (y - mu) * jax.lax.rsqrt(var + eps) * g + b


# --------------------------- plain tiled linear -----------------------------

def _linear_kernel(x_ref, w_ref, b_ref, o_ref, acc_ref, *, act):
    k = pl.program_id(2)

    @pl.when(k == 0)
    def _():
        acc_ref[...] = jnp.zeros_like(acc_ref)

    acc_ref[...] += jnp.dot(x_ref[...].astype(MXU_DTYPE), w_ref[...],
                            preferred_element_type=jnp.float32)

    @pl.when(k == pl.num_programs(2) - 1)
    def _():
        y = _apply_act(acc_ref[...] + b_ref[...], act)   # f32 epilogue
        o_ref[...] = y.astype(o_ref.dtype)


def linear(x, w, b, act=None):
    """General tiled x @ w + b (QKV projection, up-proj-1 w/ tanh, decoder)."""
    M, K = x.shape
    _, N = w.shape
    tm, tn, tk = _tile(M, TM), _tile(N, TN), _tile(K, TK)
    return pl.pallas_call(
        functools.partial(_linear_kernel, act=act),
        out_shape=jax.ShapeDtypeStruct((M, N), x.dtype),
        grid=(M // tm, N // tn, K // tk),
        in_specs=[
            pl.BlockSpec((tm, tk), lambda m, n, k: (m, k)),
            pl.BlockSpec((tk, tn), lambda m, n, k: (k, n)),
            pl.BlockSpec((1, tn), lambda m, n, k: (0, n)),
        ],
        out_specs=pl.BlockSpec((tm, tn), lambda m, n, k: (m, n)),
        scratch_shapes=[pltpu.VMEM((tm, tn), jnp.float32)],
        compiler_params=_cparams(("parallel", "parallel", "arbitrary")),
    )(x, _mxu(w), b.reshape(1, N))


# ----------------- linear + bias + residual + LayerNorm ---------------------

def _linear_res_ln_kernel(x_ref, w_ref, b_ref, r_ref, g_ref, be_ref,
                          o_ref, acc_ref, *, eps):
    k = pl.program_id(1)

    @pl.when(k == 0)
    def _():
        acc_ref[...] = jnp.zeros_like(acc_ref)

    acc_ref[...] += jnp.dot(x_ref[...].astype(MXU_DTYPE), w_ref[...],
                            preferred_element_type=jnp.float32)

    @pl.when(k == pl.num_programs(1) - 1)
    def _():
        y = acc_ref[...] + b_ref[...] + r_ref[...]
        o_ref[...] = _ln(y, g_ref[...], be_ref[...], eps).astype(o_ref.dtype)


def linear_residual_ln(x, w, b, residual, gamma, beta, eps):
    """Fused (x@w + b + residual) -> LayerNorm.  Full output feature dim per
    block (no N-tiling) so LN sees whole rows; saves an (M, H) HBM round-trip
    vs. a separate add+LN kernel."""
    M, K = x.shape
    N = w.shape[1]
    tm, tk = _tile(M, TM), _tile(K, TK)
    return pl.pallas_call(
        functools.partial(_linear_res_ln_kernel, eps=eps),
        out_shape=jax.ShapeDtypeStruct((M, N), x.dtype),
        grid=(M // tm, K // tk),
        in_specs=[
            pl.BlockSpec((tm, tk), lambda m, k: (m, k)),
            pl.BlockSpec((tk, N), lambda m, k: (k, 0)),
            pl.BlockSpec((1, N), lambda m, k: (0, 0)),
            pl.BlockSpec((tm, N), lambda m, k: (m, 0)),
            pl.BlockSpec((1, N), lambda m, k: (0, 0)),
            pl.BlockSpec((1, N), lambda m, k: (0, 0)),
        ],
        out_specs=pl.BlockSpec((tm, N), lambda m, k: (m, 0)),
        scratch_shapes=[pltpu.VMEM((tm, N), jnp.float32)],
        compiler_params=_cparams(("parallel", "arbitrary")),
    )(x, _mxu(w), b.reshape(1, N), residual,
      gamma.reshape(1, N), beta.reshape(1, N))


# --------------------- linear + bias + act + LayerNorm ----------------------

def _linear_act_ln_kernel(x_ref, w_ref, b_ref, g_ref, be_ref,
                          o_ref, acc_ref, *, eps, act):
    k = pl.program_id(1)

    @pl.when(k == 0)
    def _():
        acc_ref[...] = jnp.zeros_like(acc_ref)

    acc_ref[...] += jnp.dot(x_ref[...].astype(MXU_DTYPE), w_ref[...],
                            preferred_element_type=jnp.float32)

    @pl.when(k == pl.num_programs(1) - 1)
    def _():
        y = _apply_act(acc_ref[...] + b_ref[...], act)
        o_ref[...] = _ln(y, g_ref[...], be_ref[...], eps).astype(o_ref.dtype)


def linear_act_ln(x, w, b, gamma, beta, eps, act="gelu"):
    """BertPredictionHeadTransform: dense -> gelu -> LayerNorm, fused."""
    M, K = x.shape
    N = w.shape[1]
    tm, tk = _tile(M, TM), _tile(K, TK)
    return pl.pallas_call(
        functools.partial(_linear_act_ln_kernel, eps=eps, act=act),
        out_shape=jax.ShapeDtypeStruct((M, N), x.dtype),
        grid=(M // tm, K // tk),
        in_specs=[
            pl.BlockSpec((tm, tk), lambda m, k: (m, k)),
            pl.BlockSpec((tk, N), lambda m, k: (k, 0)),
            pl.BlockSpec((1, N), lambda m, k: (0, 0)),
            pl.BlockSpec((1, N), lambda m, k: (0, 0)),
            pl.BlockSpec((1, N), lambda m, k: (0, 0)),
        ],
        out_specs=pl.BlockSpec((tm, N), lambda m, k: (m, 0)),
        scratch_shapes=[pltpu.VMEM((tm, N), jnp.float32)],
        compiler_params=_cparams(("parallel", "arbitrary")),
    )(x, _mxu(w), b.reshape(1, N), gamma.reshape(1, N), beta.reshape(1, N))


# --------------- fused FFN (+ residual + LayerNorm epilogue) ----------------

def _ffn_res_ln_kernel(x_ref, wi_ref, bi_ref, wf_ref, bf_ref, r_ref,
                       g_ref, be_ref, o_ref, acc_ref, *, eps):
    t = pl.program_id(1)

    @pl.when(t == 0)
    def _():
        acc_ref[...] = jnp.zeros_like(acc_ref)

    inter = jnp.dot(x_ref[...].astype(MXU_DTYPE), wi_ref[...],
                    preferred_element_type=jnp.float32) + bi_ref[...]
    inter = jax.nn.gelu(inter, approximate=True)        # f32 epilogue
    acc_ref[...] += jnp.dot(inter.astype(MXU_DTYPE), wf_ref[...],
                            preferred_element_type=jnp.float32)

    @pl.when(t == pl.num_programs(1) - 1)
    def _():
        y = acc_ref[...] + bf_ref[...] + r_ref[...]
        o_ref[...] = _ln(y, g_ref[...], be_ref[...], eps).astype(o_ref.dtype)


def ffn_residual_ln(x, wi, bi, wf, bf, residual, gamma, beta, eps):
    """Fused (gelu(x@Wi+bi) @ Wf + bf + residual) -> LayerNorm.
    The (M, intermediate) tensor never touches HBM."""
    M, H = x.shape
    I = wi.shape[1]
    tm, ti = _tile(M, TM), _tile(I, TI)
    return pl.pallas_call(
        functools.partial(_ffn_res_ln_kernel, eps=eps),
        out_shape=jax.ShapeDtypeStruct((M, H), x.dtype),
        grid=(M // tm, I // ti),
        in_specs=[
            pl.BlockSpec((tm, H), lambda m, t: (m, 0)),
            pl.BlockSpec((H, ti), lambda m, t: (0, t)),
            pl.BlockSpec((1, ti), lambda m, t: (0, t)),
            pl.BlockSpec((ti, H), lambda m, t: (t, 0)),
            pl.BlockSpec((1, H), lambda m, t: (0, 0)),
            pl.BlockSpec((tm, H), lambda m, t: (m, 0)),
            pl.BlockSpec((1, H), lambda m, t: (0, 0)),
            pl.BlockSpec((1, H), lambda m, t: (0, 0)),
        ],
        out_specs=pl.BlockSpec((tm, H), lambda m, t: (m, 0)),
        scratch_shapes=[pltpu.VMEM((tm, H), jnp.float32)],
        compiler_params=_cparams(("parallel", "arbitrary")),
    )(x, _mxu(wi), bi.reshape(1, I), _mxu(wf), bf.reshape(1, H),
      residual, gamma.reshape(1, H), beta.reshape(1, H))


# ------------------------------- attention ----------------------------------

def _attn_kernel(qkv_ref, o_ref, *, n_heads, head_dim, scale):
    qkv = qkv_ref[0]                       # (S, 3H)  -- all heads of one batch
    H = n_heads * head_dim
    ctx_heads = []
    for h in range(n_heads):               # static unroll over heads
        lo = h * head_dim
        q = qkv[:, lo:lo + head_dim].astype(MXU_DTYPE)
        k = qkv[:, H + lo:H + lo + head_dim].astype(MXU_DTYPE)
        v = qkv[:, 2 * H + lo:2 * H + lo + head_dim].astype(MXU_DTYPE)
        s = jnp.dot(q, k.T, preferred_element_type=jnp.float32) * scale
        s = s - jnp.max(s, axis=-1, keepdims=True)
        p = jnp.exp(s)
        p = p * pl.reciprocal(jnp.sum(p, axis=-1, keepdims=True), approx=True)
        ctx_heads.append(jnp.dot(p.astype(MXU_DTYPE), v,
                                 preferred_element_type=jnp.float32))
    # Single lane-dense (S, H) store per grid step.
    o_ref[0] = jnp.concatenate(ctx_heads, axis=-1).astype(o_ref.dtype)


def attention(qkv, B, S, n_heads, head_dim):
    """Consumes the fused QKV projection (M, 3H) directly; one grid step per
    batch element processes all heads (no split_heads transposes in HBM)."""
    H = n_heads * head_dim
    qkv3 = qkv.reshape(B, S, 3 * H)                       # free (contiguous)
    scale = 1.0 / math.sqrt(head_dim)
    # TODO(synk): for long S, tile K/V along seq with online softmax instead
    # of materializing the full SxS score matrix per head.
    out = pl.pallas_call(
        functools.partial(_attn_kernel, n_heads=n_heads,
                          head_dim=head_dim, scale=scale),
        out_shape=jax.ShapeDtypeStruct((B, S, H), jnp.float32),
        grid=(B,),
        in_specs=[pl.BlockSpec((1, S, 3 * H), lambda b: (b, 0, 0))],
        out_specs=pl.BlockSpec((1, S, H), lambda b: (b, 0, 0)),
        compiler_params=_cparams(("parallel",)),
    )(qkv3)
    return out.reshape(B * S, H)


# ------------------------------ model forward -------------------------------

def bert_layer(h, p, B, S, n_heads, eps):
    H = h.shape[1]
    dh = H // n_heads
    qkv = linear(h, p["wqkv"], p["bqkv"])                 # fused Q/K/V projection
    ctx = attention(qkv, B, S, n_heads, dh)               # (M, H)
    # attn out-proj + residual + LN1, fused
    h = linear_residual_ln(ctx, p["wo"], p["bo"], h, p["ln1_g"], p["ln1_b"], eps)
    # FFN + residual + LN2, fused
    h = ffn_residual_ln(h, p["wi"], p["bi"], p["wf"], p["bf"],
                        h, p["ln2_g"], p["ln2_b"], eps)
    return h


def forward(input_ids, timesteps, params, cfg):
    B, S = input_ids.shape
    H = cfg["hidden_size"]
    eps = cfg["layer_norm_eps"]

    # word_embedding(input_ids)  -> (B, S, in_channels)   (plain-JAX gather)
    x = jnp.take(params["word_emb"], input_ids, axis=0)
    # time_embeddings(timesteps) -> (B, H)
    time_emb = jnp.take(params["time_emb"], timesteps, axis=0)

    # input_up_proj: Linear -> Tanh -> Linear
    xf = x.reshape(B * S, cfg["in_channels"]).astype(jnp.float32)
    h1 = linear(xf, params["up_w1"], params["up_b1"], act="tanh")

    # position + time embeddings (broadcast); LN fused into second up-proj
    # matmul writeback; dropout = identity (eval).
    pos = params["pos_emb"][:S]                                    # (S, H)
    res = (pos[None, :, :] + time_emb[:, None, :]).reshape(B * S, H)
    h = linear_residual_ln(h1, params["up_w2"], params["up_b2"], res,
                           params["emb_ln_g"], params["emb_ln_b"], eps)

    # BertEncoder
    for lp in params["layers"]:
        h = bert_layer(h, lp, B, S, cfg["num_attention_heads"], eps)

    # BertOnlyMLMHead: dense -> gelu -> LayerNorm (fused) -> decoder
    t = linear_act_ln(h, params["cls_w"], params["cls_b"],
                      params["cls_ln_g"], params["cls_ln_b"], eps, act="gelu")
    logits = linear(t, params["dec_w"], params["dec_b"])           # (B*S, V)

    # labels=None path: no CrossEntropyLoss; return logits + last hidden state.
    return (logits.reshape(B, S, cfg["vocab_size"]),
            h.reshape(B, S, H))


# ------------------------------ param init ----------------------------------

def init_params(key, cfg):
    H = cfg["hidden_size"]
    V = cfg["vocab_size"]
    C = cfg["in_channels"]
    I = cfg["intermediate_size"]

    def nrm(k, shape):
        return 0.02 * jax.random.normal(k, shape, jnp.float32)

    keys = iter(jax.random.split(key, 256))
    params = {
        "word_emb": nrm(next(keys), (V, C)),
        "time_emb": nrm(next(keys), (2001, H)),
        "pos_emb": nrm(next(keys), (cfg["max_position_embeddings"], H)),
        "up_w1": nrm(next(keys), (C, H)), "up_b1": jnp.zeros((H,), jnp.float32),
        "up_w2": nrm(next(keys), (H, H)), "up_b2": jnp.zeros((H,), jnp.float32),
        "emb_ln_g": jnp.ones((H,), jnp.float32),
        "emb_ln_b": jnp.zeros((H,), jnp.float32),
        "cls_w": nrm(next(keys), (H, H)), "cls_b": jnp.zeros((H,), jnp.float32),
        "cls_ln_g": jnp.ones((H,), jnp.float32),
        "cls_ln_b": jnp.zeros((H,), jnp.float32),
        "dec_w": nrm(next(keys), (H, V)), "dec_b": jnp.zeros((V,), jnp.float32),
        "layers": [],
    }
    for _ in range(cfg["num_hidden_layers"]):
        lp = {
            # fused Q/K/V projection: (H, 3H) weight, (3H,) bias
            "wqkv": nrm(next(keys), (H, 3 * H)),
            "bqkv": jnp.zeros((3 * H,), jnp.float32),
            "wo": nrm(next(keys), (H, H)), "bo": jnp.zeros((H,), jnp.float32),
            "ln1_g": jnp.ones((H,), jnp.float32),
            "ln1_b": jnp.zeros((H,), jnp.float32),
            "wi": nrm(next(keys), (H, I)), "bi": jnp.zeros((I,), jnp.float32),
            "wf": nrm(next(keys), (I, H)), "bf": jnp.zeros((H,), jnp.float32),
            "ln2_g": jnp.ones((H,), jnp.float32),
            "ln2_b": jnp.zeros((H,), jnp.float32),
        }
        params["layers"].append(lp)
    return params


def prepare_params(params):
    """Pre-cast matmul weights to bf16 ONCE (halves weight DMA bytes and
    avoids a per-forward f32->bf16 pass over every weight)."""
    mm_keys = ("up_w1", "up_w2", "cls_w", "dec_w")
    out = {k: (_mxu(v) if k in mm_keys else v)
           for k, v in params.items() if k != "layers"}
    out["layers"] = [
        {**lp, "wqkv": _mxu(lp["wqkv"]), "wo": _mxu(lp["wo"]),
         "wi": _mxu(lp["wi"]), "wf": _mxu(lp["wf"])}
        for lp in params["layers"]
    ]
    return out


# ---------------------------------- main -------------------------------------

if __name__ == "__main__":
    # Lane-aligned toy config (multiples of 128 on feature/vocab dims) so the
    # tiled kernels exercise N-tiling and the FFN K-accumulation path.
    cfg = dict(
        vocab_size=512,
        hidden_size=256,
        in_channels=64,
        num_hidden_layers=2,
        num_attention_heads=4,
        intermediate_size=1024,
        max_position_embeddings=64,
        layer_norm_eps=1e-12,
    )
    B, S = 2, 16

    key = jax.random.PRNGKey(0)
    k_param, k_ids, k_t = jax.random.split(key, 3)
    params = prepare_params(init_params(k_param, cfg))

    input_ids = jax.random.randint(k_ids, (B, S), 0, cfg["vocab_size"], dtype=jnp.int32)
    timesteps = jax.random.randint(k_t, (B,), 0, 2001, dtype=jnp.int32)

    # jit the whole forward: fuses the plain-JAX glue (gathers, broadcasts,
    # reshapes) around the pallas_calls and removes eager dispatch overhead.
    fwd = jax.jit(lambda ids, ts, p: forward(ids, ts, p, cfg))

    prediction_logits, last_hidden_state = fwd(input_ids, timesteps, params)
    jax.block_until_ready(prediction_logits)
    jax.block_until_ready(last_hidden_state)

    assert prediction_logits.shape == (B, S, cfg["vocab_size"])
    assert last_hidden_state.shape == (B, S, cfg["hidden_size"])
    print("KERNEL_OK")
</pallas_src>

<mosaic_0001>
module attributes {stable_mosaic.version = 11 : i64} {
  func.func @_linear_kernel(%arg0: i32, %arg1: i32, %arg2: i32, %arg3: memref<32x64xf32, #tpu.memory_space<vmem>>, %arg4: memref<64x256xbf16, #tpu.memory_space<vmem>>, %arg5: memref<1x256xf32, #tpu.memory_space<vmem>>, %arg6: memref<32x256xf32, #tpu.memory_space<vmem>>, %arg7: memref<32x256xf32, #tpu.memory_space<vmem>>) attributes {dimension_semantics = [#tpu.dimension_semantics<parallel>, #tpu.dimension_semantics<parallel>, #tpu.dimension_semantics<arbitrary>], iteration_bounds = array<i64: 1, 1, 1>, scalar_prefetch = 0 : i64, scratch_operands = 1 : i64, tpu.core_type = #tpu.core_type<tc>, window_params = [{transform_indices = @transform_0, window_bounds = array<i64: 32, 64>}, {transform_indices = @transform_1, window_bounds = array<i64: 64, 256>}, {transform_indices = @transform_2, window_bounds = array<i64: 1, 256>}, {transform_indices = @transform_3, window_bounds = array<i64: 32, 256>}]} {
    %c0_i32 = arith.constant 0 : i32
    %0 = arith.cmpi eq, %arg2, %c0_i32 : i32
    %1 = arith.extui %0 : i1 to i32
    %c0_i32_0 = arith.constant 0 : i32
    %2 = arith.cmpi ne, %1, %c0_i32_0 : i32
    scf.if %2 {
      %cst_10 = arith.constant 0.000000e+00 : f32
      %13 = vector.broadcast %cst_10 : f32 to vector<32x256xf32>
      %c0_11 = arith.constant 0 : index
      %c0_12 = arith.constant 0 : index
      %14 = vector.load %arg7[%c0_11, %c0_12] : memref<32x256xf32, #tpu.memory_space<vmem>>, vector<32x256xf32>
      tpu.vector_store %arg7[%c0_11, %c0_12], %13 {strides = array<i32>} : memref<32x256xf32, #tpu.memory_space<vmem>>, vector<32x256xf32>,
    } else {
    }
    %c0 = arith.constant 0 : index
    %c0_1 = arith.constant 0 : index
    %3 = vector.load %arg7[%c0, %c0_1] : memref<32x256xf32, #tpu.memory_space<vmem>>, vector<32x256xf32>
    %c0_2 = arith.constant 0 : index
    %c0_3 = arith.constant 0 : index
    %4 = vector.load %arg3[%c0_2, %c0_3] : memref<32x64xf32, #tpu.memory_space<vmem>>, vector<32x64xf32>
    %5 = arith.truncf %4 : vector<32x64xf32> to vector<32x64xbf16>
    %c0_4 = arith.constant 0 : index
    %c0_5 = arith.constant 0 : index
    %6 = vector.load %arg4[%c0_4, %c0_5] : memref<64x256xbf16, #tpu.memory_space<vmem>>, vector<64x256xbf16>
    %cst = arith.constant dense<0.000000e+00> : vector<32x256xf32>
    %7 = tpu.matmul %5, %6, %cst {dimension_numbers = #tpu.dot_dimension_numbers<[1], [0], [0], [1], [0, 0, 1, 1], [], []>} : vector<32x64xbf16>, vector<64x256xbf16>, vector<32x256xf32> -> vector<32x256xf32>
    %8 = arith.addf %3, %7 : vector<32x256xf32>
    %c0_6 = arith.constant 0 : index
    %c0_7 = arith.constant 0 : index
    %9 = vector.load %arg7[%c0_6, %c0_7] : memref<32x256xf32, #tpu.memory_space<vmem>>, vector<32x256xf32>
    tpu.vector_store %arg7[%c0_6, %c0_7], %8 {strides = array<i32>} : memref<32x256xf32, #tpu.memory_space<vmem>>, vector<32x256xf32>,
    %c0_i32_8 = arith.constant 0 : i32
    %10 = arith.cmpi eq, %arg2, %c0_i32_8 : i32
    %11 = arith.extui %10 : i1 to i32
    %c0_i32_9 = arith.constant 0 : i32
    %12 = arith.cmpi ne, %11, %c0_i32_9 : i32
    scf.if %12 {
      %c0_10 = arith.constant 0 : index
      %c0_11 = arith.constant 0 : index
      %13 = vector.load %arg7[%c0_10, %c0_11] : memref<32x256xf32, #tpu.memory_space<vmem>>, vector<32x256xf32>
      %c0_12 = arith.constant 0 : index
      %c0_13 = arith.constant 0 : index
      %14 = vector.load %arg5[%c0_12, %c0_13] : memref<1x256xf32, #tpu.memory_space<vmem>>, vector<1x256xf32>
      %15 = vector.broadcast %14 : vector<1x256xf32> to vector<32x256xf32>
      %16 = arith.addf %13, %15 : vector<32x256xf32>
      %17 = math.tanh %16 : vector<32x256xf32>
      %c0_14 = arith.constant 0 : index
      %c0_15 = arith.constant 0 : index
      %18 = vector.load %arg6[%c0_14, %c0_15] : memref<32x256xf32, #tpu.memory_space<vmem>>, vector<32x256xf32>
      tpu.vector_store %arg6[%c0_14, %c0_15], %17 {strides = array<i32>} : memref<32x256xf32, #tpu.memory_space<vmem>>, vector<32x256xf32>,
    } else {
    }
    return
  }
  func.func @transform_0(%arg0: i32, %arg1: i32, %arg2: i32) -> (i32, i32) {
    %c0_i32 = arith.constant 0 : i32
    return %arg0, %arg2 : i32, i32
  }
  func.func @transform_1(%arg0: i32, %arg1: i32, %arg2: i32) -> (i32, i32) {
    %c0_i32 = arith.constant 0 : i32
    return %arg2, %arg1 : i32, i32
  }
  func.func @transform_2(%arg0: i32, %arg1: i32, %arg2: i32) -> (i32, i32) {
    %c0_i32 = arith.constant 0 : i32
    %c0_i32_0 = arith.constant 0 : i32
    return %c0_i32, %arg1 : i32, i32
  }
  func.func @transform_3(%arg0: i32, %arg1: i32, %arg2: i32) -> (i32, i32) {
    %c0_i32 = arith.constant 0 : i32
    return %arg0, %arg1 : i32, i32
  }
}

module attributes {stable_mosaic.version = 11 : i64} {
  func.func @_linear_res_ln_kernel(%arg0: i32, %arg1: i32, %arg2: memref<32x256xf32, #tpu.memory_space<vmem>>, %arg3: memref<256x256xbf16, #tpu.memory_space<vmem>>, %arg4: memref<1x256xf32, #tpu.memory_space<vmem>>, %arg5: memref<32x256xf32, #tpu.memory_space<vmem>>, %arg6: memref<1x256xf32, #tpu.memory_space<vmem>>, %arg7: memref<1x256xf32, #tpu.memory_space<vmem>>, %arg8: memref<32x256xf32, #tpu.memory_space<vmem>>, %arg9: memref<32x256xf32, #tpu.memory_space<vmem>>) attributes {dimension_semantics = [#tpu.dimension_semantics<parallel>, #tpu.dimension_semantics<arbitrary>], iteration_bounds = array<i64: 1, 1>, scalar_prefetch = 0 : i64, scratch_operands = 1 : i64, tpu.core_type = #tpu.core_type<tc>, window_params = [{transform_indices = @transform_0, window_bounds = array<i64: 32, 256>}, {transform_indices = @transform_1, window_bounds = array<i64: 256, 256>}, {pipeline_mode = #tpu.pipeline_mode<synchronous>, transform_indices = @transform_2, window_bounds = array<i64: 1, 256>}, {transform_indices = @transform_3, window_bounds = array<i64: 32, 256>}, {pipeline_mode = #tpu.pipeline_mode<synchronous>, transform_indices = @transform_4, window_bounds = array<i64: 1, 256>}, {pipeline_mode = #tpu.pipeline_mode<synchronous>, transform_indices = @transform_5, window_bounds = array<i64: 1, 256>}, {transform_indices = @transform_6, window_bounds = array<i64: 32, 256>}]} {
    %c0_i32 = arith.constant 0 : i32
    %0 = arith.cmpi eq, %arg1, %c0_i32 : i32
    %1 = arith.extui %0 : i1 to i32
    %c0_i32_0 = arith.constant 0 : i32
    %2 = arith.cmpi ne, %1, %c0_i32_0 : i32
    scf.if %2 {
      %cst_10 = arith.constant 0.000000e+00 : f32
      %13 = vector.broadcast %cst_10 : f32 to vector<32x256xf32>
      %c0_11 = arith.constant 0 : index
      %c0_12 = arith.constant 0 : index
      %14 = vector.load %arg9[%c0_11, %c0_12] : memref<32x256xf32, #tpu.memory_space<vmem>>, vector<32x256xf32>
      tpu.vector_store %arg9[%c0_11, %c0_12], %13 {strides = array<i32>} : memref<32x256xf32, #tpu.memory_space<vmem>>, vector<32x256xf32>,
    } else {
    }
    %c0 = arith.constant 0 : index
    %c0_1 = arith.constant 0 : index
    %3 = vector.load %arg9[%c0, %c0_1] : memref<32x256xf32, #tpu.memory_space<vmem>>, vector<32x256xf32>
    %c0_2 = arith.constant 0 : index
    %c0_3 = arith.constant 0 : index
    %4 = vector.load %arg2[%c0_2, %c0_3] : memref<32x256xf32, #tpu.memory_space<vmem>>, vector<32x256xf32>
    %5 = arith.truncf %4 : vector<32x256xf32> to vector<32x256xbf16>
    %c0_4 = arith.constant 0 : index
    %c0_5 = arith.constant 0 : index
    %6 = vector.load %arg3[%c0_4, %c0_5] : memref<256x256xbf16, #tpu.memory_space<vmem>>, vector<256x256xbf16>
    %cst = arith.constant dense<0.000000e+00> : vector<32x256xf32>
    %7 = tpu.matmul %5, %6, %cst {dimension_numbers = #tpu.dot_dimension_numbers<[1], [0], [0], [1], [0, 0, 1, 1], [], []>} : vector<32x256xbf16>, vector<256x256xbf16>, vector<32x256xf32> -> vector<32x256xf32>
    %8 = arith.addf %3, %7 : vector<32x256xf32>
    %c0_6 = arith.constant 0 : index
    %c0_7 = arith.constant 0 : index
    %9 = vector.load %arg9[%c0_6, %c0_7] : memref<32x256xf32, #tpu.memory_space<vmem>>, vector<32x256xf32>
    tpu.vector_store %arg9[%c0_6, %c0_7], %8 {strides = array<i32>} : memref<32x256xf32, #tpu.memory_space<vmem>>, vector<32x256xf32>,
    %c0_i32_8 = arith.constant 0 : i32
    %10 = arith.cmpi eq, %arg1, %c0_i32_8 : i32
    %11 = arith.extui %10 : i1 to i32
    %c0_i32_9 = arith.constant 0 : i32
    %12 = arith.cmpi ne, %11, %c0_i32_9 : i32
    scf.if %12 {
      %c0_10 = arith.constant 0 : index
      %c0_11 = arith.constant 0 : index
      %13 = vector.load %arg9[%c0_10, %c0_11] : memref<32x256xf32, #tpu.memory_space<vmem>>, vector<32x256xf32>
      %c0_12 = arith.constant 0 : index
      %c0_13 = arith.constant 0 : index
      %14 = vector.load %arg4[%c0_12, %c0_13] : memref<1x256xf32, #tpu.memory_space<vmem>>, vector<1x256xf32>
      %15 = vector.broadcast %14 : vector<1x256xf32> to vector<32x256xf32>
      %16 = arith.addf %13, %15 : vector<32x256xf32>
      %c0_14 = arith.constant 0 : index
      %c0_15 = arith.constant 0 : index
      %17 = vector.load %arg5[%c0_14, %c0_15] : memref<32x256xf32, #tpu.memory_space<vmem>>, vector<32x256xf32>
      %18 = arith.addf %16, %17 : vector<32x256xf32>
      %c0_16 = arith.constant 0 : index
      %c0_17 = arith.constant 0 : index
      %19 = vector.load %arg6[%c0_16, %c0_17] : memref<1x256xf32, #tpu.memory_space<vmem>>, vector<1x256xf32>
      %c0_18 = arith.constant 0 : index
      %c0_19 = arith.constant 0 : index
      %20 = vector.load %arg7[%c0_18, %c0_19] : memref<1x256xf32, #tpu.memory_space<vmem>>, vector<1x256xf32>
      %cst_20 = arith.constant dense<0.000000e+00> : vector<32xf32>
      %21 = vector.multi_reduction <add>, %18, %cst_20 [1] : vector<32x256xf32> to vector<32xf32>
      %22 = vector.shape_cast %21 : vector<32xf32> to vector<32x1xf32>
      %cst_21 = arith.constant 2.560000e+02 : f32
      %23 = vector.broadcast %cst_21 : f32 to vector<32x1xf32>
      %24 = arith.divf %22, %23 : vector<32x1xf32>
      %25 = vector.broadcast %24 : vector<32x1xf32> to vector<32x256xf32>
      %26 = arith.subf %18, %25 : vector<32x256xf32>
      %27 = arith.mulf %26, %26 : vector<32x256xf32>
      %cst_22 = arith.constant dense<0.000000e+00> : vector<32xf32>
      %28 = vector.multi_reduction <add>, %27, %cst_22 [1] : vector<32x256xf32> to vector<32xf32>
      %29 = vector.shape_cast %28 : vector<32xf32> to vector<32x1xf32>
      %cst_23 = arith.constant 2.560000e+02 : f32
      %30 = vector.broadcast %cst_23 : f32 to vector<32x1xf32>
      %31 = arith.divf %29, %30 : vector<32x1xf32>
      %32 = vector.broadcast %24 : vector<32x1xf32> to vector<32x256xf32>
      %33 = arith.subf %18, %32 : vector<32x256xf32>
      %cst_24 = arith.constant 9.99999996E-13 : f32
      %34 = vector.broadcast %cst_24 : f32 to vector<32x1xf32>
      %35 = arith.addf %31, %34 : vector<32x1xf32>
      %36 = math.rsqrt %35 : vector<32x1xf32>
      %37 = vector.broadcast %36 : vector<32x1xf32> to vector<32x256xf32>
      %38 = arith.mulf %33, %37 : vector<32x256xf32>
      %39 = vector.broadcast %19 : vector<1x256xf32> to vector<32x256xf32>
      %40 = arith.mulf %38, %39 : vector<32x256xf32>
      %41 = vector.broadcast %20 : vector<1x256xf32> to vector<32x256xf32>
      %42 = arith.addf %40, %41 : vector<32x256xf32>
      %c0_25 = arith.constant 0 : index
      %c0_26 = arith.constant 0 : index
      %43 = vector.load %arg8[%c0_25, %c0_26] : memref<32x256xf32, #tpu.memory_space<vmem>>, vector<32x256xf32>
      tpu.vector_store %arg8[%c0_25, %c0_26], %42 {strides = array<i32>} : memref<32x256xf32, #tpu.memory_space<vmem>>, vector<32x256xf32>,
    } else {
    }
    return
  }
  func.func @transform_0(%arg0: i32, %arg1: i32) -> (i32, i32) {
    %c0_i32 = arith.constant 0 : i32
    return %arg0, %arg1 : i32, i32
  }
  func.func @transform_1(%arg0: i32, %arg1: i32) -> (i32, i32) {
    %c0_i32 = arith.constant 0 : i32
    %c0_i32_0 = arith.constant 0 : i32
    return %arg1, %c0_i32 : i32, i32
  }
  func.func @transform_2(%arg0: i32, %arg1: i32) -> (i32, i32) {
    %c0_i32 = arith.constant 0 : i32
    %c0_i32_0 = arith.constant 0 : i32
    %c0_i32_1 = arith.constant 0 : i32
    return %c0_i32, %c0_i32_0 : i32, i32
  }
  func.func @transform_3(%arg0: i32, %arg1: i32) -> (i32, i32) {
    %c0_i32 = arith.constant 0 : i32
    %c0_i32_0 = arith.constant 0 : i32
    return %arg0, %c0_i32 : i32, i32
  }
  func.func @transform_4(%arg0: i32, %arg1: i32) -> (i32, i32) {
    %c0_i32 = arith.constant 0 : i32
    %c0_i32_0 = arith.constant 0 : i32
    %c0_i32_1 = arith.constant 0 : i32
    return %c0_i32, %c0_i32_0 : i32, i32
  }
  func.func @transform_5(%arg0: i32, %arg1: i32) -> (i32, i32) {
    %c0_i32 = arith.constant 0 : i32
    %c0_i32_0 = arith.constant 0 : i32
    %c0_i32_1 = arith.constant 0 : i32
    return %c0_i32, %c0_i32_0 : i32, i32
  }
  func.func @transform_6(%arg0: i32, %arg1: i32) -> (i32, i32) {
    %c0_i32 = arith.constant 0 : i32
    %c0_i32_0 = arith.constant 0 : i32
    return %arg0, %c0_i32 : i32, i32
  }
}

module attributes {stable_mosaic.version = 11 : i64} {
  func.func @_attn_kernel(%arg0: i32, %arg1: memref<1x16x768xf32, #tpu.memory_space<vmem>>, %arg2: memref<1x16x256xf32, #tpu.memory_space<vmem>>) attributes {dimension_semantics = [#tpu.dimension_semantics<parallel>], iteration_bounds = array<i64: 2>, scalar_prefetch = 0 : i64, scratch_operands = 0 : i64, tpu.core_type = #tpu.core_type<tc>, window_params = [{transform_indices = @transform_0, window_bounds = array<i64: 1, 16, 768>}, {transform_indices = @transform_1, window_bounds = array<i64: 1, 16, 256>}]} {
    %c0 = arith.constant 0 : index
    %c0_0 = arith.constant 0 : index
    %c0_1 = arith.constant 0 : index
    %0 = vector.load %arg1[%c0, %c0_0, %c0_1] : memref<1x16x768xf32, #tpu.memory_space<vmem>>, vector<1x16x768xf32>
    %1 = vector.shape_cast %0 : vector<1x16x768xf32> to vector<16x768xf32>
    %2 = vector.extract_strided_slice %1 {offsets = [0, 0], sizes = [16, 64], strides = [1, 1]} : vector<16x768xf32> to vector<16x64xf32>
    %3 = arith.truncf %2 : vector<16x64xf32> to vector<16x64xbf16>
    %4 = vector.extract_strided_slice %1 {offsets = [0, 256], sizes = [16, 64], strides = [1, 1]} : vector<16x768xf32> to vector<16x64xf32>
    %5 = arith.truncf %4 : vector<16x64xf32> to vector<16x64xbf16>
    %6 = vector.extract_strided_slice %1 {offsets = [0, 512], sizes = [16, 64], strides = [1, 1]} : vector<16x768xf32> to vector<16x64xf32>
    %7 = arith.truncf %6 : vector<16x64xf32> to vector<16x64xbf16>
    %8 = tpu.transpose %5, [1, 0] : vector<16x64xbf16> -> vector<64x16xbf16>
    %cst = arith.constant dense<0.000000e+00> : vector<16x16xf32>
    %9 = tpu.matmul %3, %8, %cst {dimension_numbers = #tpu.dot_dimension_numbers<[1], [0], [0], [1], [0, 0, 1, 1], [], []>} : vector<16x64xbf16>, vector<64x16xbf16>, vector<16x16xf32> -> vector<16x16xf32>
    %cst_2 = arith.constant 1.250000e-01 : f32
    %10 = vector.broadcast %cst_2 : f32 to vector<16x16xf32>
    %11 = arith.mulf %9, %10 : vector<16x16xf32>
    %cst_3 = arith.constant dense<0xFF800000> : vector<16xf32>
    %12 = vector.multi_reduction <maximumf>, %11, %cst_3 [1] : vector<16x16xf32> to vector<16xf32>
    %13 = vector.shape_cast %12 : vector<16xf32> to vector<16x1xf32>
    %14 = vector.broadcast %13 : vector<16x1xf32> to vector<16x16xf32>
    %15 = arith.subf %11, %14 : vector<16x16xf32>
    %16 = math.exp %15 : vector<16x16xf32>
    %cst_4 = arith.constant dense<0.000000e+00> : vector<16xf32>
    %17 = vector.multi_reduction <add>, %16, %cst_4 [1] : vector<16x16xf32> to vector<16xf32>
    %18 = vector.shape_cast %17 : vector<16xf32> to vector<16x1xf32>
    %19 = tpu.reciprocal %18 {approx = true} : vector<16x1xf32> -> vector<16x1xf32>
    %20 = vector.broadcast %19 : vector<16x1xf32> to vector<16x16xf32>
    %21 = arith.mulf %16, %20 : vector<16x16xf32>
    %22 = arith.truncf %21 : vector<16x16xf32> to vector<16x16xbf16>
    %cst_5 = arith.constant dense<0.000000e+00> : vector<16x64xf32>
    %23 = tpu.matmul %22, %7, %cst_5 {dimension_numbers = #tpu.dot_dimension_numbers<[1], [0], [0], [1], [0, 0, 1, 1], [], []>} : vector<16x16xbf16>, vector<16x64xbf16>, vector<16x64xf32> -> vector<16x64xf32>
    %24 = vector.extract_strided_slice %1 {offsets = [0, 64], sizes = [16, 64], strides = [1, 1]} : vector<16x768xf32> to vector<16x64xf32>
    %25 = arith.truncf %24 : vector<16x64xf32> to vector<16x64xbf16>
    %26 = vector.extract_strided_slice %1 {offsets = [0, 320], sizes = [16, 64], strides = [1, 1]} : vector<16x768xf32> to vector<16x64xf32>
    %27 = arith.truncf %26 : vector<16x64xf32> to vector<16x64xbf16>
    %28 = vector.extract_strided_slice %1 {offsets = [0, 576], sizes = [16, 64], strides = [1, 1]} : vector<16x768xf32> to vector<16x64xf32>
    %29 = arith.truncf %28 : vector<16x64xf32> to vector<16x64xbf16>
    %30 = tpu.transpose %27, [1, 0] : vector<16x64xbf16> -> vector<64x16xbf16>
    %cst_6 = arith.constant dense<0.000000e+00> : vector<16x16xf32>
    %31 = tpu.matmul %25, %30, %cst_6 {dimension_numbers = #tpu.dot_dimension_numbers<[1], [0], [0], [1], [0, 0, 1, 1], [], []>} : vector<16x64xbf16>, vector<64x16xbf16>, vector<16x16xf32> -> vector<16x16xf32>
    %cst_7 = arith.constant 1.250000e-01 : f32
    %32 = vector.broadcast %cst_7 : f32 to vector<16x16xf32>
    %33 = arith.mulf %31, %32 : vector<16x16xf32>
    %cst_8 = arith.constant dense<0xFF800000> : vector<16xf32>
    %34 = vector.multi_reduction <maximumf>, %33, %cst_8 [1] : vector<16x16xf32> to vector<16xf32>
    %35 = vector.shape_cast %34 : vector<16xf32> to vector<16x1xf32>
    %36 = vector.broadcast %35 : vector<16x1xf32> to vector<16x16xf32>
    %37 = arith.subf %33, %36 : vector<16x16xf32>
    %38 = math.exp %37 : vector<16x16xf32>
    %cst_9 = arith.constant dense<0.000000e+00> : vector<16xf32>
    %39 = vector.multi_reduction <add>, %38, %cst_9 [1] : vector<16x16xf32> to vector<16xf32>
    %40 = vector.shape_cast %39 : vector<16xf32> to vector<16x1xf32>
    %41 = tpu.reciprocal %40 {approx = true} : vector<16x1xf32> -> vector<16x1xf32>
    %42 = vector.broadcast %41 : vector<16x1xf32> to vector<16x16xf32>
    %43 = arith.mulf %38, %42 : vector<16x16xf32>
    %44 = arith.truncf %43 : vector<16x16xf32> to vector<16x16xbf16>
    %cst_10 = arith.constant dense<0.000000e+00> : vector<16x64xf32>
    %45 = tpu.matmul %44, %29, %cst_10 {dimension_numbers = #tpu.dot_dimension_numbers<[1], [0], [0], [1], [0, 0, 1, 1], [], []>} : vector<16x16xbf16>, vector<16x64xbf16>, vector<16x64xf32> -> vector<16x64xf32>
    %46 = vector.extract_strided_slice %1 {offsets = [0, 128], sizes = [16, 64], strides = [1, 1]} : vector<16x768xf32> to vector<16x64xf32>
    %47 = arith.truncf %46 : vector<16x64xf32> to vector<16x64xbf16>
    %48 = vector.extract_strided_slice %1 {offsets = [0, 384], sizes = [16, 64], strides = [1, 1]} : vector<16x768xf32> to vector<16x64xf32>
    %49 = arith.truncf %48 : vector<16x64xf32> to vector<16x64xbf16>
    %50 = vector.extract_strided_slice %1 {offsets = [0, 640], sizes = [16, 64], strides = [1, 1]} : vector<16x768xf32> to vector<16x64xf32>
    %51 = arith.truncf %50 : vector<16x64xf32> to vector<16x64xbf16>
    %52 = tpu.transpose %49, [1, 0] : vector<16x64xbf16> -> vector<64x16xbf16>
    %cst_11 = arith.constant dense<0.000000e+00> : vector<16x16xf32>
    %53 = tpu.matmul %47, %52, %cst_11 {dimension_numbers = #tpu.dot_dimension_numbers<[1], [0], [0], [1], [0, 0, 1, 1], [], []>} : vector<16x64xbf16>, vector<64x16xbf16>, vector<16x16xf32> -> vector<16x16xf32>
    %cst_12 = arith.constant 1.250000e-01 : f32
    %54 = vector.broadcast %cst_12 : f32 to vector<16x16xf32>
    %55 = arith.mulf %53, %54 : vector<16x16xf32>
    %cst_13 = arith.constant dense<0xFF800000> : vector<16xf32>
    %56 = vector.multi_reduction <maximumf>, %55, %cst_13 [1] : vector<16x16xf32> to vector<16xf32>
    %57 = vector.shape_cast %56 : vector<16xf32> to vector<16x1xf32>
    %58 = vector.broadcast %57 : vector<16x1xf32> to vector<16x16xf32>
    %59 = arith.subf %55, %58 : vector<16x16xf32>
    %60 = math.exp %59 : vector<16x16xf32>
    %cst_14 = arith.constant dense<0.000000e+00> : vector<16xf32>
    %61 = vector.multi_reduction <add>, %60, %cst_14 [1] : vector<16x16xf32> to vector<16xf32>
    %62 = vector.shape_cast %61 : vector<16xf32> to vector<16x1xf32>
    %63 = tpu.reciprocal %62 {approx = true} : vector<16x1xf32> -> vector<16x1xf32>
    %64 = vector.broadcast %63 : vector<16x1xf32> to vector<16x16xf32>
    %65 = arith.mulf %60, %64 : vector<16x16xf32>
    %66 = arith.truncf %65 : vector<16x16xf32> to vector<16x16xbf16>
    %cst_15 = arith.constant dense<0.000000e+00> : vector<16x64xf32>
    %67 = tpu.matmul %66, %51, %cst_15 {dimension_numbers = #tpu.dot_dimension_numbers<[1], [0], [0], [1], [0, 0, 1, 1], [], []>} : vector<16x16xbf16>, vector<16x64xbf16>, vector<16x64xf32> -> vector<16x64xf32>
    %68 = vector.extract_strided_slice %1 {offsets = [0, 192], sizes = [16, 64], strides = [1, 1]} : vector<16x768xf32> to vector<16x64xf32>
    %69 = arith.truncf %68 : vector<16x64xf32> to vector<16x64xbf16>
    %70 = vector.extract_strided_slice %1 {offsets = [0, 448], sizes = [16, 64], strides = [1, 1]} : vector<16x768xf32> to vector<16x64xf32>
    %71 = arith.truncf %70 : vector<16x64xf32> to vector<16x64xbf16>
    %72 = vector.extract_strided_slice %1 {offsets = [0, 704], sizes = [16, 64], strides = [1, 1]} : vector<16x768xf32> to vector<16x64xf32>
    %73 = arith.truncf %72 : vector<16x64xf32> to vector<16x64xbf16>
    %74 = tpu.transpose %71, [1, 0] : vector<16x64xbf16> -> vector<64x16xbf16>
    %cst_16 = arith.constant dense<0.000000e+00> : vector<16x16xf32>
    %75 = tpu.matmul %69, %74, %cst_16 {dimension_numbers = #tpu.dot_dimension_numbers<[1], [0], [0], [1], [0, 0, 1, 1], [], []>} : vector<16x64xbf16>, vector<64x16xbf16>, vector<16x16xf32> -> vector<16x16xf32>
    %cst_17 = arith.constant 1.250000e-01 : f32
    %76 = vector.broadcast %cst_17 : f32 to vector<16x16xf32>
    %77 = arith.mulf %75, %76 : vector<16x16xf32>
    %cst_18 = arith.constant dense<0xFF800000> : vector<16xf32>
    %78 = vector.multi_reduction <maximumf>, %77, %cst_18 [1] : vector<16x16xf32> to vector<16xf32>
    %79 = vector.shape_cast %78 : vector<16xf32> to vector<16x1xf32>
    %80 = vector.broadcast %79 : vector<16x1xf32> to vector<16x16xf32>
    %81 = arith.subf %77, %80 : vector<16x16xf32>
    %82 = math.exp %81 : vector<16x16xf32>
    %cst_19 = arith.constant dense<0.000000e+00> : vector<16xf32>
    %83 = vector.multi_reduction <add>, %82, %cst_19 [1] : vector<16x16xf32> to vector<16xf32>
    %84 = vector.shape_cast %83 : vector<16xf32> to vector<16x1xf32>
    %85 = tpu.reciprocal %84 {approx = true} : vector<16x1xf32> -> vector<16x1xf32>
    %86 = vector.broadcast %85 : vector<16x1xf32> to vector<16x16xf32>
    %87 = arith.mulf %82, %86 : vector<16x16xf32>
    %88 = arith.truncf %87 : vector<16x16xf32> to vector<16x16xbf16>
    %cst_20 = arith.constant dense<0.000000e+00> : vector<16x64xf32>
    %89 = tpu.matmul %88, %73, %cst_20 {dimension_numbers = #tpu.dot_dimension_numbers<[1], [0], [0], [1], [0, 0, 1, 1], [], []>} : vector<16x16xbf16>, vector<16x64xbf16>, vector<16x64xf32> -> vector<16x64xf32>
    %90 = tpu.concatenate %23, %45, %67, %89 in 1 : vector<16x64xf32>, vector<16x64xf32>, vector<16x64xf32>, vector<16x64xf32> -> vector<16x256xf32>
    %c0_21 = arith.constant 0 : index
    %c0_22 = arith.constant 0 : index
    %c0_23 = arith.constant 0 : index
    %91 = vector.load %arg2[%c0_21, %c0_22, %c0_23] : memref<1x16x256xf32, #tpu.memory_space<vmem>>, vector<1x16x256xf32>
    %92 = vector.shape_cast %91 : vector<1x16x256xf32> to vector<16x256xf32>
    %93 = vector.shape_cast %90 : vector<16x256xf32> to vector<1x16x256xf32>
    tpu.vector_store %arg2[%c0_21, %c0_22, %c0_23], %93 {strides = array<i32>} : memref<1x16x256xf32, #tpu.memory_space<vmem>>, vector<1x16x256xf32>,
    return
  }
  func.func @transform_0(%arg0: i32) -> (i32, i32, i32) {
    %c0_i32 = arith.constant 0 : i32
    %c0_i32_0 = arith.constant 0 : i32
    %c0_i32_1 = arith.constant 0 : i32
    return %arg0, %c0_i32, %c0_i32_0 : i32, i32, i32
  }
  func.func @transform_1(%arg0: i32) -> (i32, i32, i32) {
    %c0_i32 = arith.constant 0 : i32
    %c0_i32_0 = arith.constant 0 : i32
    %c0_i32_1 = arith.constant 0 : i32
    return %arg0, %c0_i32, %c0_i32_0 : i32, i32, i32
  }
}

module attributes {stable_mosaic.version = 11 : i64} {
  func.func @_linear_kernel(%arg0: i32, %arg1: i32, %arg2: i32, %arg3: memref<32x256xf32, #tpu.memory_space<vmem>>, %arg4: memref<256x256xbf16, #tpu.memory_space<vmem>>, %arg5: memref<1x256xf32, #tpu.memory_space<vmem>>, %arg6: memref<32x256xf32, #tpu.memory_space<vmem>>, %arg7: memref<32x256xf32, #tpu.memory_space<vmem>>) attributes {dimension_semantics = [#tpu.dimension_semantics<parallel>, #tpu.dimension_semantics<parallel>, #tpu.dimension_semantics<arbitrary>], iteration_bounds = array<i64: 1, 3, 1>, scalar_prefetch = 0 : i64, scratch_operands = 1 : i64, tpu.core_type = #tpu.core_type<tc>, window_params = [{transform_indices = @transform_0, window_bounds = array<i64: 32, 256>}, {transform_indices = @transform_1, window_bounds = array<i64: 256, 256>}, {transform_indices = @transform_2, window_bounds = array<i64: 1, 256>}, {transform_indices = @transform_3, window_bounds = array<i64: 32, 256>}]} {
    %c0_i32 = arith.constant 0 : i32
    %0 = arith.cmpi eq, %arg2, %c0_i32 : i32
    %1 = arith.extui %0 : i1 to i32
    %c0_i32_0 = arith.constant 0 : i32
    %2 = arith.cmpi ne, %1, %c0_i32_0 : i32
    scf.if %2 {
      %cst_10 = arith.constant 0.000000e+00 : f32
      %13 = vector.broadcast %cst_10 : f32 to vector<32x256xf32>
      %c0_11 = arith.constant 0 : index
      %c0_12 = arith.constant 0 : index
      %14 = vector.load %arg7[%c0_11, %c0_12] : memref<32x256xf32, #tpu.memory_space<vmem>>, vector<32x256xf32>
      tpu.vector_store %arg7[%c0_11, %c0_12], %13 {strides = array<i32>} : memref<32x256xf32, #tpu.memory_space<vmem>>, vector<32x256xf32>,
    } else {
    }
    %c0 = arith.constant 0 : index
    %c0_1 = arith.constant 0 : index
    %3 = vector.load %arg7[%c0, %c0_1] : memref<32x256xf32, #tpu.memory_space<vmem>>, vector<32x256xf32>
    %c0_2 = arith.constant 0 : index
    %c0_3 = arith.constant 0 : index
    %4 = vector.load %arg3[%c0_2, %c0_3] : memref<32x256xf32, #tpu.memory_space<vmem>>, vector<32x256xf32>
    %5 = arith.truncf %4 : vector<32x256xf32> to vector<32x256xbf16>
    %c0_4 = arith.constant 0 : index
    %c0_5 = arith.constant 0 : index
    %6 = vector.load %arg4[%c0_4, %c0_5] : memref<256x256xbf16, #tpu.memory_space<vmem>>, vector<256x256xbf16>
    %cst = arith.constant dense<0.000000e+00> : vector<32x256xf32>
    %7 = tpu.matmul %5, %6, %cst {dimension_numbers = #tpu.dot_dimension_numbers<[1], [0], [0], [1], [0, 0, 1, 1], [], []>} : vector<32x256xbf16>, vector<256x256xbf16>, vector<32x256xf32> -> vector<32x256xf32>
    %8 = arith.addf %3, %7 : vector<32x256xf32>
    %c0_6 = arith.constant 0 : index
    %c0_7 = arith.constant 0 : index
    %9 = vector.load %arg7[%c0_6, %c0_7] : memref<32x256xf32, #tpu.memory_space<vmem>>, vector<32x256xf32>
    tpu.vector_store %arg7[%c0_6, %c0_7], %8 {strides = array<i32>} : memref<32x256xf32, #tpu.memory_space<vmem>>, vector<32x256xf32>,
    %c0_i32_8 = arith.constant 0 : i32
    %10 = arith.cmpi eq, %arg2, %c0_i32_8 : i32
    %11 = arith.extui %10 : i1 to i32
    %c0_i32_9 = arith.constant 0 : i32
    %12 = arith.cmpi ne, %11, %c0_i32_9 : i32
    scf.if %12 {
      %c0_10 = arith.constant 0 : index
      %c0_11 = arith.constant 0 : index
      %13 = vector.load %arg7[%c0_10, %c0_11] : memref<32x256xf32, #tpu.memory_space<vmem>>, vector<32x256xf32>
      %c0_12 = arith.constant 0 : index
      %c0_13 = arith.constant 0 : index
      %14 = vector.load %arg5[%c0_12, %c0_13] : memref<1x256xf32, #tpu.memory_space<vmem>>, vector<1x256xf32>
      %15 = vector.broadcast %14 : vector<1x256xf32> to vector<32x256xf32>
      %16 = arith.addf %13, %15 : vector<32x256xf32>
      %c0_14 = arith.constant 0 : index
      %c0_15 = arith.constant 0 : index
      %17 = vector.load %arg6[%c0_14, %c0_15] : memref<32x256xf32, #tpu.memory_space<vmem>>, vector<32x256xf32>
      tpu.vector_store %arg6[%c0_14, %c0_15], %16 {strides = array<i32>} : memref<32x256xf32, #tpu.memory_space<vmem>>, vector<32x256xf32>,
    } else {
    }
    return
  }
  func.func @transform_0(%arg0: i32, %arg1: i32, %arg2: i32) -> (i32, i32) {
    %c0_i32 = arith.constant 0 : i32
    return %arg0, %arg2 : i32, i32
  }
  func.func @transform_1(%arg0: i32, %arg1: i32, %arg2: i32) -> (i32, i32) {
    %c0_i32 = arith.constant 0 : i32
    return %arg2, %arg1 : i32, i32
  }
  func.func @transform_2(%arg0: i32, %arg1: i32, %arg2: i32) -> (i32, i32) {
    %c0_i32 = arith.constant 0 : i32
    %c0_i32_0 = arith.constant 0 : i32
    return %c0_i32, %arg1 : i32, i32
  }
  func.func @transform_3(%arg0: i32, %arg1: i32, %arg2: i32) -> (i32, i32) {
    %c0_i32 = arith.constant 0 : i32
    return %arg0, %arg1 : i32, i32
  }
}

module attributes {stable_mosaic.version = 11 : i64} {
  func.func @_ffn_res_ln_kernel(%arg0: i32, %arg1: i32, %arg2: memref<32x256xf32, #tpu.memory_space<vmem>>, %arg3: memref<256x256xbf16, #tpu.memory_space<vmem>>, %arg4: memref<1x256xf32, #tpu.memory_space<vmem>>, %arg5: memref<256x256xbf16, #tpu.memory_space<vmem>>, %arg6: memref<1x256xf32, #tpu.memory_space<vmem>>, %arg7: memref<32x256xf32, #tpu.memory_space<vmem>>, %arg8: memref<1x256xf32, #tpu.memory_space<vmem>>, %arg9: memref<1x256xf32, #tpu.memory_space<vmem>>, %arg10: memref<32x256xf32, #tpu.memory_space<vmem>>, %arg11: memref<32x256xf32, #tpu.memory_space<vmem>>) attributes {dimension_semantics = [#tpu.dimension_semantics<parallel>, #tpu.dimension_semantics<arbitrary>], iteration_bounds = array<i64: 1, 4>, scalar_prefetch = 0 : i64, scratch_operands = 1 : i64, tpu.core_type = #tpu.core_type<tc>, window_params = [{transform_indices = @transform_0, window_bounds = array<i64: 32, 256>}, {transform_indices = @transform_1, window_bounds = array<i64: 256, 256>}, {transform_indices = @transform_2, window_bounds = array<i64: 1, 256>}, {transform_indices = @transform_3, window_bounds = array<i64: 256, 256>}, {pipeline_mode = #tpu.pipeline_mode<synchronous>, transform_indices = @transform_4, window_bounds = array<i64: 1, 256>}, {transform_indices = @transform_5, window_bounds = array<i64: 32, 256>}, {pipeline_mode = #tpu.pipeline_mode<synchronous>, transform_indices = @transform_6, window_bounds = array<i64: 1, 256>}, {pipeline_mode = #tpu.pipeline_mode<synchronous>, transform_indices = @transform_7, window_bounds = array<i64: 1, 256>}, {transform_indices = @transform_8, window_bounds = array<i64: 32, 256>}]} {
    %c0_i32 = arith.constant 0 : i32
    %0 = arith.cmpi eq, %arg1, %c0_i32 : i32
    %1 = arith.extui %0 : i1 to i32
    %c0_i32_0 = arith.constant 0 : i32
    %2 = arith.cmpi ne, %1, %c0_i32_0 : i32
    scf.if %2 {
      %cst_18 = arith.constant 0.000000e+00 : f32
      %32 = vector.broadcast %cst_18 : f32 to vector<32x256xf32>
      %c0_19 = arith.constant 0 : index
      %c0_20 = arith.constant 0 : index
      %33 = vector.load %arg11[%c0_19, %c0_20] : memref<32x256xf32, #tpu.memory_space<vmem>>, vector<32x256xf32>
      tpu.vector_store %arg11[%c0_19, %c0_20], %32 {strides = array<i32>} : memref<32x256xf32, #tpu.memory_space<vmem>>, vector<32x256xf32>,
    } else {
    }
    %c0 = arith.constant 0 : index
    %c0_1 = arith.constant 0 : index
    %3 = vector.load %arg2[%c0, %c0_1] : memref<32x256xf32, #tpu.memory_space<vmem>>, vector<32x256xf32>
    %4 = arith.truncf %3 : vector<32x256xf32> to vector<32x256xbf16>
    %c0_2 = arith.constant 0 : index
    %c0_3 = arith.constant 0 : index
    %5 = vector.load %arg3[%c0_2, %c0_3] : memref<256x256xbf16, #tpu.memory_space<vmem>>, vector<256x256xbf16>
    %cst = arith.constant dense<0.000000e+00> : vector<32x256xf32>
    %6 = tpu.matmul %4, %5, %cst {dimension_numbers = #tpu.dot_dimension_numbers<[1], [0], [0], [1], [0, 0, 1, 1], [], []>} : vector<32x256xbf16>, vector<256x256xbf16>, vector<32x256xf32> -> vector<32x256xf32>
    %c0_4 = arith.constant 0 : index
    %c0_5 = arith.constant 0 : index
    %7 = vector.load %arg4[%c0_4, %c0_5] : memref<1x256xf32, #tpu.memory_space<vmem>>, vector<1x256xf32>
    %8 = vector.broadcast %7 : vector<1x256xf32> to vector<32x256xf32>
    %9 = arith.addf %6, %8 : vector<32x256xf32>
    %10 = arith.mulf %9, %9 : vector<32x256xf32>
    %11 = arith.mulf %9, %10 : vector<32x256xf32>
    %cst_6 = arith.constant 4.471500e-02 : f32
    %12 = vector.broadcast %cst_6 : f32 to vector<32x256xf32>
    %13 = arith.mulf %12, %11 : vector<32x256xf32>
    %14 = arith.addf %9, %13 : vector<32x256xf32>
    %cst_7 = arith.constant 0.797884583 : f32
    %15 = vector.broadcast %cst_7 : f32 to vector<32x256xf32>
    %16 = arith.mulf %15, %14 : vector<32x256xf32>
    %17 = math.tanh %16 : vector<32x256xf32>
    %cst_8 = arith.constant 1.000000e+00 : f32
    %18 = vector.broadcast %cst_8 : f32 to vector<32x256xf32>
    %19 = arith.addf %18, %17 : vector<32x256xf32>
    %cst_9 = arith.constant 5.000000e-01 : f32
    %20 = vector.broadcast %cst_9 : f32 to vector<32x256xf32>
    %21 = arith.mulf %20, %19 : vector<32x256xf32>
    %22 = arith.mulf %9, %21 : vector<32x256xf32>
    %c0_10 = arith.constant 0 : index
    %c0_11 = arith.constant 0 : index
    %23 = vector.load %arg11[%c0_10, %c0_11] : memref<32x256xf32, #tpu.memory_space<vmem>>, vector<32x256xf32>
    %24 = arith.truncf %22 : vector<32x256xf32> to vector<32x256xbf16>
    %c0_12 = arith.constant 0 : index
    %c0_13 = arith.constant 0 : index
    %25 = vector.load %arg5[%c0_12, %c0_13] : memref<256x256xbf16, #tpu.memory_space<vmem>>, vector<256x256xbf16>
    %cst_14 = arith.constant dense<0.000000e+00> : vector<32x256xf32>
    %26 = tpu.matmul %24, %25, %cst_14 {dimension_numbers = #tpu.dot_dimension_numbers<[1], [0], [0], [1], [0, 0, 1, 1], [], []>} : vector<32x256xbf16>, vector<256x256xbf16>, vector<32x256xf32> -> vector<32x256xf32>
    %27 = arith.addf %23, %26 : vector<32x256xf32>
    %c0_15 = arith.constant 0 : index
    %c0_16 = arith.constant 0 : index
    %28 = vector.load %arg11[%c0_15, %c0_16] : memref<32x256xf32, #tpu.memory_space<vmem>>, vector<32x256xf32>
    tpu.vector_store %arg11[%c0_15, %c0_16], %27 {strides = array<i32>} : memref<32x256xf32, #tpu.memory_space<vmem>>, vector<32x256xf32>,
    %c3_i32 = arith.constant 3 : i32
    %29 = arith.cmpi eq, %arg1, %c3_i32 : i32
    %30 = arith.extui %29 : i1 to i32
    %c0_i32_17 = arith.constant 0 : i32
    %31 = arith.cmpi ne, %30, %c0_i32_17 : i32
    scf.if %31 {
      %c0_18 = arith.constant 0 : index
      %c0_19 = arith.constant 0 : index
      %32 = vector.load %arg11[%c0_18, %c0_19] : memref<32x256xf32, #tpu.memory_space<vmem>>, vector<32x256xf32>
      %c0_20 = arith.constant 0 : index
      %c0_21 = arith.constant 0 : index
      %33 = vector.load %arg6[%c0_20, %c0_21] : memref<1x256xf32, #tpu.memory_space<vmem>>, vector<1x256xf32>
      %34 = vector.broadcast %33 : vector<1x256xf32> to vector<32x256xf32>
      %35 = arith.addf %32, %34 : vector<32x256xf32>
      %c0_22 = arith.constant 0 : index
      %c0_23 = arith.constant 0 : index
      %36 = vector.load %arg7[%c0_22, %c0_23] : memref<32x256xf32, #tpu.memory_space<vmem>>, vector<32x256xf32>
      %37 = arith.addf %35, %36 : vector<32x256xf32>
      %c0_24 = arith.constant 0 : index
      %c0_25 = arith.constant 0 : index
      %38 = vector.load %arg8[%c0_24, %c0_25] : memref<1x256xf32, #tpu.memory_space<vmem>>, vector<1x256xf32>
      %c0_26 = arith.constant 0 : index
      %c0_27 = arith.constant 0 : index
      %39 = vector.load %arg9[%c0_26, %c0_27] : memref<1x256xf32, #tpu.memory_space<vmem>>, vector<1x256xf32>
      %cst_28 = arith.constant dense<0.000000e+00> : vector<32xf32>
      %40 = vector.multi_reduction <add>, %37, %cst_28 [1] : vector<32x256xf32> to vector<32xf32>
      %41 = vector.shape_cast %40 : vector<32xf32> to vector<32x1xf32>
      %cst_29 = arith.constant 2.560000e+02 : f32
      %42 = vector.broadcast %cst_29 : f32 to vector<32x1xf32>
      %43 = arith.divf %41, %42 : vector<32x1xf32>
      %44 = vector.broadcast %43 : vector<32x1xf32> to vector<32x256xf32>
      %45 = arith.subf %37, %44 : vector<32x256xf32>
      %46 = arith.mulf %45, %45 : vector<32x256xf32>
      %cst_30 = arith.constant dense<0.000000e+00> : vector<32xf32>
      %47 = vector.multi_reduction <add>, %46, %cst_30 [1] : vector<32x256xf32> to vector<32xf32>
      %48 = vector.shape_cast %47 : vector<32xf32> to vector<32x1xf32>
      %cst_31 = arith.constant 2.560000e+02 : f32
      %49 = vector.broadcast %cst_31 : f32 to vector<32x1xf32>
      %50 = arith.divf %48, %49 : vector<32x1xf32>
      %51 = vector.broadcast %43 : vector<32x1xf32> to vector<32x256xf32>
      %52 = arith.subf %37, %51 : vector<32x256xf32>
      %cst_32 = arith.constant 9.99999996E-13 : f32
      %53 = vector.broadcast %cst_32 : f32 to vector<32x1xf32>
      %54 = arith.addf %50, %53 : vector<32x1xf32>
      %55 = math.rsqrt %54 : vector<32x1xf32>
      %56 = vector.broadcast %55 : vector<32x1xf32> to vector<32x256xf32>
      %57 = arith.mulf %52, %56 : vector<32x256xf32>
      %58 = vector.broadcast %38 : vector<1x256xf32> to vector<32x256xf32>
      %59 = arith.mulf %57, %58 : vector<32x256xf32>
      %60 = vector.broadcast %39 : vector<1x256xf32> to vector<32x256xf32>
      %61 = arith.addf %59, %60 : vector<32x256xf32>
      %c0_33 = arith.constant 0 : index
      %c0_34 = arith.constant 0 : index
      %62 = vector.load %arg10[%c0_33, %c0_34] : memref<32x256xf32, #tpu.memory_space<vmem>>, vector<32x256xf32>
      tpu.vector_store %arg10[%c0_33, %c0_34], %61 {strides = array<i32>} : memref<32x256xf32, #tpu.memory_space<vmem>>, vector<32x256xf32>,
    } else {
    }
    return
  }
  func.func @transform_0(%arg0: i32, %arg1: i32) -> (i32, i32) {
    %c0_i32 = arith.constant 0 : i32
    %c0_i32_0 = arith.constant 0 : i32
    return %arg0, %c0_i32 : i32, i32
  }
  func.func @transform_1(%arg0: i32, %arg1: i32) -> (i32, i32) {
    %c0_i32 = arith.constant 0 : i32
    %c0_i32_0 = arith.constant 0 : i32
    return %c0_i32, %arg1 : i32, i32
  }
  func.func @transform_2(%arg0: i32, %arg1: i32) -> (i32, i32) {
    %c0_i32 = arith.constant 0 : i32
    %c0_i32_0 = arith.constant 0 : i32
    return %c0_i32, %arg1 : i32, i32
  }
  func.func @transform_3(%arg0: i32, %arg1: i32) -> (i32, i32) {
    %c0_i32 = arith.constant 0 : i32
    %c0_i32_0 = arith.constant 0 : i32
    return %arg1, %c0_i32 : i32, i32
  }
  func.func @transform_4(%arg0: i32, %arg1: i32) -> (i32, i32) {
    %c0_i32 = arith.constant 0 : i32
    %c0_i32_0 = arith.constant 0 : i32
    %c0_i32_1 = arith.constant 0 : i32
    return %c0_i32, %c0_i32_0 : i32, i32
  }
  func.func @transform_5(%arg0: i32, %arg1: i32) -> (i32, i32) {
    %c0_i32 = arith.constant 0 : i32
    %c0_i32_0 = arith.constant 0 : i32
    return %arg0, %c0_i32 : i32, i32
  }
  func.func @transform_6(%arg0: i32, %arg1: i32) -> (i32, i32) {
    %c0_i32 = arith.constant 0 : i32
    %c0_i32_0 = arith.constant 0 : i32
    %c0_i32_1 = arith.constant 0 : i32
    return %c0_i32, %c0_i32_0 : i32, i32
  }
  func.func @transform_7(%arg0: i32, %arg1: i32) -> (i32, i32) {
    %c0_i32 = arith.constant 0 : i32
    %c0_i32_0 = arith.constant 0 : i32
    %c0_i32_1 = arith.constant 0 : i32
    return %c0_i32, %c0_i32_0 : i32, i32
  }
  func.func @transform_8(%arg0: i32, %arg1: i32) -> (i32, i32) {
    %c0_i32 = arith.constant 0 : i32
    %c0_i32_0 = arith.constant 0 : i32
    return %arg0, %c0_i32 : i32, i32
  }
}

module attributes {stable_mosaic.version = 11 : i64} {
  func.func @_linear_kernel(%arg0: i32, %arg1: i32, %arg2: i32, %arg3: memref<32x256xf32, #tpu.memory_space<vmem>>, %arg4: memref<256x256xbf16, #tpu.memory_space<vmem>>, %arg5: memref<1x256xf32, #tpu.memory_space<vmem>>, %arg6: memref<32x256xf32, #tpu.memory_space<vmem>>, %arg7: memref<32x256xf32, #tpu.memory_space<vmem>>) attributes {dimension_semantics = [#tpu.dimension_semantics<parallel>, #tpu.dimension_semantics<parallel>, #tpu.dimension_semantics<arbitrary>], iteration_bounds = array<i64: 1, 3, 1>, scalar_prefetch = 0 : i64, scratch_operands = 1 : i64, tpu.core_type = #tpu.core_type<tc>, window_params = [{transform_indices = @transform_0, window_bounds = array<i64: 32, 256>}, {transform_indices = @transform_1, window_bounds = array<i64: 256, 256>}, {transform_indices = @transform_2, window_bounds = array<i64: 1, 256>}, {transform_indices = @transform_3, window_bounds = array<i64: 32, 256>}]} {
    %c0_i32 = arith.constant 0 : i32
    %0 = arith.cmpi eq, %arg2, %c0_i32 : i32
    %1 = arith.extui %0 : i1 to i32
    %c0_i32_0 = arith.constant 0 : i32
    %2 = arith.cmpi ne, %1, %c0_i32_0 : i32
    scf.if %2 {
      %cst_10 = arith.constant 0.000000e+00 : f32
      %13 = vector.broadcast %cst_10 : f32 to vector<32x256xf32>
      %c0_11 = arith.constant 0 : index
      %c0_12 = arith.constant 0 : index
      %14 = vector.load %arg7[%c0_11, %c0_12] : memref<32x256xf32, #tpu.memory_space<vmem>>, vector<32x256xf32>
      tpu.vector_store %arg7[%c0_11, %c0_12], %13 {strides = array<i32>} : memref<32x256xf32, #tpu.memory_space<vmem>>, vector<32x256xf32>,
    } else {
    }
    %c0 = arith.constant 0 : index
    %c0_1 = arith.constant 0 : index
    %3 = vector.load %arg7[%c0, %c0_1] : memref<32x256xf32, #tpu.memory_space<vmem>>, vector<32x256xf32>
    %c0_2 = arith.constant 0 : index
    %c0_3 = arith.constant 0 : index
    %4 = vector.load %arg3[%c0_2, %c0_3] : memref<32x256xf32, #tpu.memory_space<vmem>>, vector<32x256xf32>
    %5 = arith.truncf %4 : vector<32x256xf32> to vector<32x256xbf16>
    %c0_4 = arith.constant 0 : index
    %c0_5 = arith.constant 0 : index
    %6 = vector.load %arg4[%c0_4, %c0_5] : memref<256x256xbf16, #tpu.memory_space<vmem>>, vector<256x256xbf16>
    %cst = arith.constant dense<0.000000e+00> : vector<32x256xf32>
    %7 = tpu.matmul %5, %6, %cst {dimension_numbers = #tpu.dot_dimension_numbers<[1], [0], [0], [1], [0, 0, 1, 1], [], []>} : vector<32x256xbf16>, vector<256x256xbf16>, vector<32x256xf32> -> vector<32x256xf32>
    %8 = arith.addf %3, %7 : vector<32x256xf32>
    %c0_6 = arith.constant 0 : index
    %c0_7 = arith.constant 0 : index
    %9 = vector.load %arg7[%c0_6, %c0_7] : memref<32x256xf32, #tpu.memory_space<vmem>>, vector<32x256xf32>
    tpu.vector_store %arg7[%c0_6, %c0_7], %8 {strides = array<i32>} : memref<32x256xf32, #tpu.memory_space<vmem>>, vector<32x256xf32>,
    %c0_i32_8 = arith.constant 0 : i32
    %10 = arith.cmpi eq, %arg2, %c0_i32_8 : i32
    %11 = arith.extui %10 : i1 to i32
    %c0_i32_9 = arith.constant 0 : i32
    %12 = arith.cmpi ne, %11, %c0_i32_9 : i32
    scf.if %12 {
      %c0_10 = arith.constant 0 : index
      %c0_11 = arith.constant 0 : index
      %13 = vector.load %arg7[%c0_10, %c0_11] : memref<32x256xf32, #tpu.memory_space<vmem>>, vector<32x256xf32>
      %c0_12 = arith.constant 0 : index
      %c0_13 = arith.constant 0 : index
      %14 = vector.load %arg5[%c0_12, %c0_13] : memref<1x256xf32, #tpu.memory_space<vmem>>, vector<1x256xf32>
      %15 = vector.broadcast %14 : vector<1x256xf32> to vector<32x256xf32>
      %16 = arith.addf %13, %15 : vector<32x256xf32>
      %c0_14 = arith.constant 0 : index
      %c0_15 = arith.constant 0 : index
      %17 = vector.load %arg6[%c0_14, %c0_15] : memref<32x256xf32, #tpu.memory_space<vmem>>, vector<32x256xf32>
      tpu.vector_store %arg6[%c0_14, %c0_15], %16 {strides = array<i32>} : memref<32x256xf32, #tpu.memory_space<vmem>>, vector<32x256xf32>,
    } else {
    }
    return
  }
  func.func @transform_0(%arg0: i32, %arg1: i32, %arg2: i32) -> (i32, i32) {
    %c0_i32 = arith.constant 0 : i32
    return %arg0, %arg2 : i32, i32
  }
  func.func @transform_1(%arg0: i32, %arg1: i32, %arg2: i32) -> (i32, i32) {
    %c0_i32 = arith.constant 0 : i32
    return %arg2, %arg1 : i32, i32
  }
  func.func @transform_2(%arg0: i32, %arg1: i32, %arg2: i32) -> (i32, i32) {
    %c0_i32 = arith.constant 0 : i32
    %c0_i32_0 = arith.constant 0 : i32
    return %c0_i32, %arg1 : i32, i32
  }
  func.func @transform_3(%arg0: i32, %arg1: i32, %arg2: i32) -> (i32, i32) {
    %c0_i32 = arith.constant 0 : i32
    return %arg0, %arg1 : i32, i32
  }
}

module attributes {stable_mosaic.version = 11 : i64} {
  func.func @_linear_res_ln_kernel(%arg0: i32, %arg1: i32, %arg2: memref<32x256xf32, #tpu.memory_space<vmem>>, %arg3: memref<256x256xbf16, #tpu.memory_space<vmem>>, %arg4: memref<1x256xf32, #tpu.memory_space<vmem>>, %arg5: memref<32x256xf32, #tpu.memory_space<vmem>>, %arg6: memref<1x256xf32, #tpu.memory_space<vmem>>, %arg7: memref<1x256xf32, #tpu.memory_space<vmem>>, %arg8: memref<32x256xf32, #tpu.memory_space<vmem>>, %arg9: memref<32x256xf32, #tpu.memory_space<vmem>>) attributes {dimension_semantics = [#tpu.dimension_semantics<parallel>, #tpu.dimension_semantics<arbitrary>], iteration_bounds = array<i64: 1, 1>, scalar_prefetch = 0 : i64, scratch_operands = 1 : i64, tpu.core_type = #tpu.core_type<tc>, window_params = [{transform_indices = @transform_0, window_bounds = array<i64: 32, 256>}, {transform_indices = @transform_1, window_bounds = array<i64: 256, 256>}, {pipeline_mode = #tpu.pipeline_mode<synchronous>, transform_indices = @transform_2, window_bounds = array<i64: 1, 256>}, {transform_indices = @transform_3, window_bounds = array<i64: 32, 256>}, {pipeline_mode = #tpu.pipeline_mode<synchronous>, transform_indices = @transform_4, window_bounds = array<i64: 1, 256>}, {pipeline_mode = #tpu.pipeline_mode<synchronous>, transform_indices = @transform_5, window_bounds = array<i64: 1, 256>}, {transform_indices = @transform_6, window_bounds = array<i64: 32, 256>}]} {
    %c0_i32 = arith.constant 0 : i32
    %0 = arith.cmpi eq, %arg1, %c0_i32 : i32
    %1 = arith.extui %0 : i1 to i32
    %c0_i32_0 = arith.constant 0 : i32
    %2 = arith.cmpi ne, %1, %c0_i32_0 : i32
    scf.if %2 {
      %cst_10 = arith.constant 0.000000e+00 : f32
      %13 = vector.broadcast %cst_10 : f32 to vector<32x256xf32>
      %c0_11 = arith.constant 0 : index
      %c0_12 = arith.constant 0 : index
      %14 = vector.load %arg9[%c0_11, %c0_12] : memref<32x256xf32, #tpu.memory_space<vmem>>, vector<32x256xf32>
      tpu.vector_store %arg9[%c0_11, %c0_12], %13 {strides = array<i32>} : memref<32x256xf32, #tpu.memory_space<vmem>>, vector<32x256xf32>,
    } else {
    }
    %c0 = arith.constant 0 : index
    %c0_1 = arith.constant 0 : index
    %3 = vector.load %arg9[%c0, %c0_1] : memref<32x256xf32, #tpu.memory_space<vmem>>, vector<32x256xf32>
    %c0_2 = arith.constant 0 : index
    %c0_3 = arith.constant 0 : index
    %4 = vector.load %arg2[%c0_2, %c0_3] : memref<32x256xf32, #tpu.memory_space<vmem>>, vector<32x256xf32>
    %5 = arith.truncf %4 : vector<32x256xf32> to vector<32x256xbf16>
    %c0_4 = arith.constant 0 : index
    %c0_5 = arith.constant 0 : index
    %6 = vector.load %arg3[%c0_4, %c0_5] : memref<256x256xbf16, #tpu.memory_space<vmem>>, vector<256x256xbf16>
    %cst = arith.constant dense<0.000000e+00> : vector<32x256xf32>
    %7 = tpu.matmul %5, %6, %cst {dimension_numbers = #tpu.dot_dimension_numbers<[1], [0], [0], [1], [0, 0, 1, 1], [], []>} : vector<32x256xbf16>, vector<256x256xbf16>, vector<32x256xf32> -> vector<32x256xf32>
    %8 = arith.addf %3, %7 : vector<32x256xf32>
    %c0_6 = arith.constant 0 : index
    %c0_7 = arith.constant 0 : index
    %9 = vector.load %arg9[%c0_6, %c0_7] : memref<32x256xf32, #tpu.memory_space<vmem>>, vector<32x256xf32>
    tpu.vector_store %arg9[%c0_6, %c0_7], %8 {strides = array<i32>} : memref<32x256xf32, #tpu.memory_space<vmem>>, vector<32x256xf32>,
    %c0_i32_8 = arith.constant 0 : i32
    %10 = arith.cmpi eq, %arg1, %c0_i32_8 : i32
    %11 = arith.extui %10 : i1 to i32
    %c0_i32_9 = arith.constant 0 : i32
    %12 = arith.cmpi ne, %11, %c0_i32_9 : i32
    scf.if %12 {
      %c0_10 = arith.constant 0 : index
      %c0_11 = arith.constant 0 : index
      %13 = vector.load %arg9[%c0_10, %c0_11] : memref<32x256xf32, #tpu.memory_space<vmem>>, vector<32x256xf32>
      %c0_12 = arith.constant 0 : index
      %c0_13 = arith.constant 0 : index
      %14 = vector.load %arg4[%c0_12, %c0_13] : memref<1x256xf32, #tpu.memory_space<vmem>>, vector<1x256xf32>
      %15 = vector.broadcast %14 : vector<1x256xf32> to vector<32x256xf32>
      %16 = arith.addf %13, %15 : vector<32x256xf32>
      %c0_14 = arith.constant 0 : index
      %c0_15 = arith.constant 0 : index
      %17 = vector.load %arg5[%c0_14, %c0_15] : memref<32x256xf32, #tpu.memory_space<vmem>>, vector<32x256xf32>
      %18 = arith.addf %16, %17 : vector<32x256xf32>
      %c0_16 = arith.constant 0 : index
      %c0_17 = arith.constant 0 : index
      %19 = vector.load %arg6[%c0_16, %c0_17] : memref<1x256xf32, #tpu.memory_space<vmem>>, vector<1x256xf32>
      %c0_18 = arith.constant 0 : index
      %c0_19 = arith.constant 0 : index
      %20 = vector.load %arg7[%c0_18, %c0_19] : memref<1x256xf32, #tpu.memory_space<vmem>>, vector<1x256xf32>
      %cst_20 = arith.constant dense<0.000000e+00> : vector<32xf32>
      %21 = vector.multi_reduction <add>, %18, %cst_20 [1] : vector<32x256xf32> to vector<32xf32>
      %22 = vector.shape_cast %21 : vector<32xf32> to vector<32x1xf32>
      %cst_21 = arith.constant 2.560000e+02 : f32
      %23 = vector.broadcast %cst_21 : f32 to vector<32x1xf32>
      %24 = arith.divf %22, %23 : vector<32x1xf32>
      %25 = vector.broadcast %24 : vector<32x1xf32> to vector<32x256xf32>
      %26 = arith.subf %18, %25 : vector<32x256xf32>
      %27 = arith.mulf %26, %26 : vector<32x256xf32>
      %cst_22 = arith.constant dense<0.000000e+00> : vector<32xf32>
      %28 = vector.multi_reduction <add>, %27, %cst_22 [1] : vector<32x256xf32> to vector<32xf32>
      %29 = vector.shape_cast %28 : vector<32xf32> to vector<32x1xf32>
      %cst_23 = arith.constant 2.560000e+02 : f32
      %30 = vector.broadcast %cst_23 : f32 to vector<32x1xf32>
      %31 = arith.divf %29, %30 : vector<32x1xf32>
      %32 = vector.broadcast %24 : vector<32x1xf32> to vector<32x256xf32>
      %33 = arith.subf %18, %32 : vector<32x256xf32>
      %cst_24 = arith.constant 9.99999996E-13 : f32
      %34 = vector.broadcast %cst_24 : f32 to vector<32x1xf32>
      %35 = arith.addf %31, %34 : vector<32x1xf32>
      %36 = math.rsqrt %35 : vector<32x1xf32>
      %37 = vector.broadcast %36 : vector<32x1xf32> to vector<32x256xf32>
      %38 = arith.mulf %33, %37 : vector<32x256xf32>
      %39 = vector.broadcast %19 : vector<1x256xf32> to vector<32x256xf32>
      %40 = arith.mulf %38, %39 : vector<32x256xf32>
      %41 = vector.broadcast %20 : vector<1x256xf32> to vector<32x256xf32>
      %42 = arith.addf %40, %41 : vector<32x256xf32>
      %c0_25 = arith.constant 0 : index
      %c0_26 = arith.constant 0 : index
      %43 = vector.load %arg8[%c0_25, %c0_26] : memref<32x256xf32, #tpu.memory_space<vmem>>, vector<32x256xf32>
      tpu.vector_store %arg8[%c0_25, %c0_26], %42 {strides = array<i32>} : memref<32x256xf32, #tpu.memory_space<vmem>>, vector<32x256xf32>,
    } else {
    }
    return
  }
  func.func @transform_0(%arg0: i32, %arg1: i32) -> (i32, i32) {
    %c0_i32 = arith.constant 0 : i32
    return %arg0, %arg1 : i32, i32
  }
  func.func @transform_1(%arg0: i32, %arg1: i32) -> (i32, i32) {
    %c0_i32 = arith.constant 0 : i32
    %c0_i32_0 = arith.constant 0 : i32
    return %arg1, %c0_i32 : i32, i32
  }
  func.func @transform_2(%arg0: i32, %arg1: i32) -> (i32, i32) {
    %c0_i32 = arith.constant 0 : i32
    %c0_i32_0 = arith.constant 0 : i32
    %c0_i32_1 = arith.constant 0 : i32
    return %c0_i32, %c0_i32_0 : i32, i32
  }
  func.func @transform_3(%arg0: i32, %arg1: i32) -> (i32, i32) {
    %c0_i32 = arith.constant 0 : i32
    %c0_i32_0 = arith.constant 0 : i32
    return %arg0, %c0_i32 : i32, i32
  }
  func.func @transform_4(%arg0: i32, %arg1: i32) -> (i32, i32) {
    %c0_i32 = arith.constant 0 : i32
    %c0_i32_0 = arith.constant 0 : i32
    %c0_i32_1 = arith.constant 0 : i32
    return %c0_i32, %c0_i32_0 : i32, i32
  }
  func.func @transform_5(%arg0: i32, %arg1: i32) -> (i32, i32) {
    %c0_i32 = arith.constant 0 : i32
    %c0_i32_0 = arith.constant 0 : i32
    %c0_i32_1 = arith.constant 0 : i32
    return %c0_i32, %c0_i32_0 : i32, i32
  }
  func.func @transform_6(%arg0: i32, %arg1: i32) -> (i32, i32) {
    %c0_i32 = arith.constant 0 : i32
    %c0_i32_0 = arith.constant 0 : i32
    return %arg0, %c0_i32 : i32, i32
  }
}

module attributes {stable_mosaic.version = 11 : i64} {
  func.func @_ffn_res_ln_kernel(%arg0: i32, %arg1: i32, %arg2: memref<32x256xf32, #tpu.memory_space<vmem>>, %arg3: memref<256x256xbf16, #tpu.memory_space<vmem>>, %arg4: memref<1x256xf32, #tpu.memory_space<vmem>>, %arg5: memref<256x256xbf16, #tpu.memory_space<vmem>>, %arg6: memref<1x256xf32, #tpu.memory_space<vmem>>, %arg7: memref<32x256xf32, #tpu.memory_space<vmem>>, %arg8: memref<1x256xf32, #tpu.memory_space<vmem>>, %arg9: memref<1x256xf32, #tpu.memory_space<vmem>>, %arg10: memref<32x256xf32, #tpu.memory_space<vmem>>, %arg11: memref<32x256xf32, #tpu.memory_space<vmem>>) attributes {dimension_semantics = [#tpu.dimension_semantics<parallel>, #tpu.dimension_semantics<arbitrary>], iteration_bounds = array<i64: 1, 4>, scalar_prefetch = 0 : i64, scratch_operands = 1 : i64, tpu.core_type = #tpu.core_type<tc>, window_params = [{transform_indices = @transform_0, window_bounds = array<i64: 32, 256>}, {transform_indices = @transform_1, window_bounds = array<i64: 256, 256>}, {transform_indices = @transform_2, window_bounds = array<i64: 1, 256>}, {transform_indices = @transform_3, window_bounds = array<i64: 256, 256>}, {pipeline_mode = #tpu.pipeline_mode<synchronous>, transform_indices = @transform_4, window_bounds = array<i64: 1, 256>}, {transform_indices = @transform_5, window_bounds = array<i64: 32, 256>}, {pipeline_mode = #tpu.pipeline_mode<synchronous>, transform_indices = @transform_6, window_bounds = array<i64: 1, 256>}, {pipeline_mode = #tpu.pipeline_mode<synchronous>, transform_indices = @transform_7, window_bounds = array<i64: 1, 256>}, {transform_indices = @transform_8, window_bounds = array<i64: 32, 256>}]} {
    %c0_i32 = arith.constant 0 : i32
    %0 = arith.cmpi eq, %arg1, %c0_i32 : i32
    %1 = arith.extui %0 : i1 to i32
    %c0_i32_0 = arith.constant 0 : i32
    %2 = arith.cmpi ne, %1, %c0_i32_0 : i32
    scf.if %2 {
      %cst_18 = arith.constant 0.000000e+00 : f32
      %32 = vector.broadcast %cst_18 : f32 to vector<32x256xf32>
      %c0_19 = arith.constant 0 : index
      %c0_20 = arith.constant 0 : index
      %33 = vector.load %arg11[%c0_19, %c0_20] : memref<32x256xf32, #tpu.memory_space<vmem>>, vector<32x256xf32>
      tpu.vector_store %arg11[%c0_19, %c0_20], %32 {strides = array<i32>} : memref<32x256xf32, #tpu.memory_space<vmem>>, vector<32x256xf32>,
    } else {
    }
    %c0 = arith.constant 0 : index
    %c0_1 = arith.constant 0 : index
    %3 = vector.load %arg2[%c0, %c0_1] : memref<32x256xf32, #tpu.memory_space<vmem>>, vector<32x256xf32>
    %4 = arith.truncf %3 : vector<32x256xf32> to vector<32x256xbf16>
    %c0_2 = arith.constant 0 : index
    %c0_3 = arith.constant 0 : index
    %5 = vector.load %arg3[%c0_2, %c0_3] : memref<256x256xbf16, #tpu.memory_space<vmem>>, vector<256x256xbf16>
    %cst = arith.constant dense<0.000000e+00> : vector<32x256xf32>
    %6 = tpu.matmul %4, %5, %cst {dimension_numbers = #tpu.dot_dimension_numbers<[1], [0], [0], [1], [0, 0, 1, 1], [], []>} : vector<32x256xbf16>, vector<256x256xbf16>, vector<32x256xf32> -> vector<32x256xf32>
    %c0_4 = arith.constant 0 : index
    %c0_5 = arith.constant 0 : index
    %7 = vector.load %arg4[%c0_4, %c0_5] : memref<1x256xf32, #tpu.memory_space<vmem>>, vector<1x256xf32>
    %8 = vector.broadcast %7 : vector<1x256xf32> to vector<32x256xf32>
    %9 = arith.addf %6, %8 : vector<32x256xf32>
    %10 = arith.mulf %9, %9 : vector<32x256xf32>
    %11 = arith.mulf %9, %10 : vector<32x256xf32>
    %cst_6 = arith.constant 4.471500e-02 : f32
    %12 = vector.broadcast %cst_6 : f32 to vector<32x256xf32>
    %13 = arith.mulf %12, %11 : vector<32x256xf32>
    %14 = arith.addf %9, %13 : vector<32x256xf32>
    %cst_7 = arith.constant 0.797884583 : f32
    %15 = vector.broadcast %cst_7 : f32 to vector<32x256xf32>
    %16 = arith.mulf %15, %14 : vector<32x256xf32>
    %17 = math.tanh %16 : vector<32x256xf32>
    %cst_8 = arith.constant 1.000000e+00 : f32
    %18 = vector.broadcast %cst_8 : f32 to vector<32x256xf32>
    %19 = arith.addf %18, %17 : vector<32x256xf32>
    %cst_9 = arith.constant 5.000000e-01 : f32
    %20 = vector.broadcast %cst_9 : f32 to vector<32x256xf32>
    %21 = arith.mulf %20, %19 : vector<32x256xf32>
    %22 = arith.mulf %9, %21 : vector<32x256xf32>
    %c0_10 = arith.constant 0 : index
    %c0_11 = arith.constant 0 : index
    %23 = vector.load %arg11[%c0_10, %c0_11] : memref<32x256xf32, #tpu.memory_space<vmem>>, vector<32x256xf32>
    %24 = arith.truncf %22 : vector<32x256xf32> to vector<32x256xbf16>
    %c0_12 = arith.constant 0 : index
    %c0_13 = arith.constant 0 : index
    %25 = vector.load %arg5[%c0_12, %c0_13] : memref<256x256xbf16, #tpu.memory_space<vmem>>, vector<256x256xbf16>
    %cst_14 = arith.constant dense<0.000000e+00> : vector<32x256xf32>
    %26 = tpu.matmul %24, %25, %cst_14 {dimension_numbers = #tpu.dot_dimension_numbers<[1], [0], [0], [1], [0, 0, 1, 1], [], []>} : vector<32x256xbf16>, vector<256x256xbf16>, vector<32x256xf32> -> vector<32x256xf32>
    %27 = arith.addf %23, %26 : vector<32x256xf32>
    %c0_15 = arith.constant 0 : index
    %c0_16 = arith.constant 0 : index
    %28 = vector.load %arg11[%c0_15, %c0_16] : memref<32x256xf32, #tpu.memory_space<vmem>>, vector<32x256xf32>
    tpu.vector_store %arg11[%c0_15, %c0_16], %27 {strides = array<i32>} : memref<32x256xf32, #tpu.memory_space<vmem>>, vector<32x256xf32>,
    %c3_i32 = arith.constant 3 : i32
    %29 = arith.cmpi eq, %arg1, %c3_i32 : i32
    %30 = arith.extui %29 : i1 to i32
    %c0_i32_17 = arith.constant 0 : i32
    %31 = arith.cmpi ne, %30, %c0_i32_17 : i32
    scf.if %31 {
      %c0_18 = arith.constant 0 : index
      %c0_19 = arith.constant 0 : index
      %32 = vector.load %arg11[%c0_18, %c0_19] : memref<32x256xf32, #tpu.memory_space<vmem>>, vector<32x256xf32>
      %c0_20 = arith.constant 0 : index
      %c0_21 = arith.constant 0 : index
      %33 = vector.load %arg6[%c0_20, %c0_21] : memref<1x256xf32, #tpu.memory_space<vmem>>, vector<1x256xf32>
      %34 = vector.broadcast %33 : vector<1x256xf32> to vector<32x256xf32>
      %35 = arith.addf %32, %34 : vector<32x256xf32>
      %c0_22 = arith.constant 0 : index
      %c0_23 = arith.constant 0 : index
      %36 = vector.load %arg7[%c0_22, %c0_23] : memref<32x256xf32, #tpu.memory_space<vmem>>, vector<32x256xf32>
      %37 = arith.addf %35, %36 : vector<32x256xf32>
      %c0_24 = arith.constant 0 : index
      %c0_25 = arith.constant 0 : index
      %38 = vector.load %arg8[%c0_24, %c0_25] : memref<1x256xf32, #tpu.memory_space<vmem>>, vector<1x256xf32>
      %c0_26 = arith.constant 0 : index
      %c0_27 = arith.constant 0 : index
      %39 = vector.load %arg9[%c0_26, %c0_27] : memref<1x256xf32, #tpu.memory_space<vmem>>, vector<1x256xf32>
      %cst_28 = arith.constant dense<0.000000e+00> : vector<32xf32>
      %40 = vector.multi_reduction <add>, %37, %cst_28 [1] : vector<32x256xf32> to vector<32xf32>
      %41 = vector.shape_cast %40 : vector<32xf32> to vector<32x1xf32>
      %cst_29 = arith.constant 2.560000e+02 : f32
      %42 = vector.broadcast %cst_29 : f32 to vector<32x1xf32>
      %43 = arith.divf %41, %42 : vector<32x1xf32>
      %44 = vector.broadcast %43 : vector<32x1xf32> to vector<32x256xf32>
      %45 = arith.subf %37, %44 : vector<32x256xf32>
      %46 = arith.mulf %45, %45 : vector<32x256xf32>
      %cst_30 = arith.constant dense<0.000000e+00> : vector<32xf32>
      %47 = vector.multi_reduction <add>, %46, %cst_30 [1] : vector<32x256xf32> to vector<32xf32>
      %48 = vector.shape_cast %47 : vector<32xf32> to vector<32x1xf32>
      %cst_31 = arith.constant 2.560000e+02 : f32
      %49 = vector.broadcast %cst_31 : f32 to vector<32x1xf32>
      %50 = arith.divf %48, %49 : vector<32x1xf32>
      %51 = vector.broadcast %43 : vector<32x1xf32> to vector<32x256xf32>
      %52 = arith.subf %37, %51 : vector<32x256xf32>
      %cst_32 = arith.constant 9.99999996E-13 : f32
      %53 = vector.broadcast %cst_32 : f32 to vector<32x1xf32>
      %54 = arith.addf %50, %53 : vector<32x1xf32>
      %55 = math.rsqrt %54 : vector<32x1xf32>
      %56 = vector.broadcast %55 : vector<32x1xf32> to vector<32x256xf32>
      %57 = arith.mulf %52, %56 : vector<32x256xf32>
      %58 = vector.broadcast %38 : vector<1x256xf32> to vector<32x256xf32>
      %59 = arith.mulf %57, %58 : vector<32x256xf32>
      %60 = vector.broadcast %39 : vector<1x256xf32> to vector<32x256xf32>
      %61 = arith.addf %59, %60 : vector<32x256xf32>
      %c0_33 = arith.constant 0 : index
      %c0_34 = arith.constant 0 : index
      %62 = vector.load %arg10[%c0_33, %c0_34] : memref<32x256xf32, #tpu.memory_space<vmem>>, vector<32x256xf32>
      tpu.vector_store %arg10[%c0_33, %c0_34], %61 {strides = array<i32>} : memref<32x256xf32, #tpu.memory_space<vmem>>, vector<32x256xf32>,
    } else {
    }
    return
  }
  func.func @transform_0(%arg0: i32, %arg1: i32) -> (i32, i32) {
    %c0_i32 = arith.constant 0 : i32
    %c0_i32_0 = arith.constant 0 : i32
    return %arg0, %c0_i32 : i32, i32
  }
  func.func @transform_1(%arg0: i32, %arg1: i32) -> (i32, i32) {
    %c0_i32 = arith.constant 0 : i32
    %c0_i32_0 = arith.constant 0 : i32
    return %c0_i32, %arg1 : i32, i32
  }
  func.func @transform_2(%arg0: i32, %arg1: i32) -> (i32, i32) {
    %c0_i32 = arith.constant 0 : i32
    %c0_i32_0 = arith.constant 0 : i32
    return %c0_i32, %arg1 : i32, i32
  }
  func.func @transform_3(%arg0: i32, %arg1: i32) -> (i32, i32) {
    %c0_i32 = arith.constant 0 : i32
    %c0_i32_0 = arith.constant 0 : i32
    return %arg1, %c0_i32 : i32, i32
  }
  func.func @transform_4(%arg0: i32, %arg1: i32) -> (i32, i32) {
    %c0_i32 = arith.constant 0 : i32
    %c0_i32_0 = arith.constant 0 : i32
    %c0_i32_1 = arith.constant 0 : i32
    return %c0_i32, %c0_i32_0 : i32, i32
  }
  func.func @transform_5(%arg0: i32, %arg1: i32) -> (i32, i32) {
    %c0_i32 = arith.constant 0 : i32
    %c0_i32_0 = arith.constant 0 : i32
    return %arg0, %c0_i32 : i32, i32
  }
  func.func @transform_6(%arg0: i32, %arg1: i32) -> (i32, i32) {
    %c0_i32 = arith.constant 0 : i32
    %c0_i32_0 = arith.constant 0 : i32
    %c0_i32_1 = arith.constant 0 : i32
    return %c0_i32, %c0_i32_0 : i32, i32
  }
  func.func @transform_7(%arg0: i32, %arg1: i32) -> (i32, i32) {
    %c0_i32 = arith.constant 0 : i32
    %c0_i32_0 = arith.constant 0 : i32
    %c0_i32_1 = arith.constant 0 : i32
    return %c0_i32, %c0_i32_0 : i32, i32
  }
  func.func @transform_8(%arg0: i32, %arg1: i32) -> (i32, i32) {
    %c0_i32 = arith.constant 0 : i32
    %c0_i32_0 = arith.constant 0 : i32
    return %arg0, %c0_i32 : i32, i32
  }
}

module attributes {stable_mosaic.version = 11 : i64} {
  func.func @_linear_act_ln_kernel(%arg0: i32, %arg1: i32, %arg2: memref<32x256xf32, #tpu.memory_space<vmem>>, %arg3: memref<256x256xbf16, #tpu.memory_space<vmem>>, %arg4: memref<1x256xf32, #tpu.memory_space<vmem>>, %arg5: memref<1x256xf32, #tpu.memory_space<vmem>>, %arg6: memref<1x256xf32, #tpu.memory_space<vmem>>, %arg7: memref<32x256xf32, #tpu.memory_space<vmem>>, %arg8: memref<32x256xf32, #tpu.memory_space<vmem>>) attributes {dimension_semantics = [#tpu.dimension_semantics<parallel>, #tpu.dimension_semantics<arbitrary>], iteration_bounds = array<i64: 1, 1>, scalar_prefetch = 0 : i64, scratch_operands = 1 : i64, tpu.core_type = #tpu.core_type<tc>, window_params = [{transform_indices = @transform_0, window_bounds = array<i64: 32, 256>}, {transform_indices = @transform_1, window_bounds = array<i64: 256, 256>}, {pipeline_mode = #tpu.pipeline_mode<synchronous>, transform_indices = @transform_2, window_bounds = array<i64: 1, 256>}, {pipeline_mode = #tpu.pipeline_mode<synchronous>, transform_indices = @transform_3, window_bounds = array<i64: 1, 256>}, {pipeline_mode = #tpu.pipeline_mode<synchronous>, transform_indices = @transform_4, window_bounds = array<i64: 1, 256>}, {transform_indices = @transform_5, window_bounds = array<i64: 32, 256>}]} {
    %c0_i32 = arith.constant 0 : i32
    %0 = arith.cmpi eq, %arg1, %c0_i32 : i32
    %1 = arith.extui %0 : i1 to i32
    %c0_i32_0 = arith.constant 0 : i32
    %2 = arith.cmpi ne, %1, %c0_i32_0 : i32
    scf.if %2 {
      %cst_10 = arith.constant 0.000000e+00 : f32
      %13 = vector.broadcast %cst_10 : f32 to vector<32x256xf32>
      %c0_11 = arith.constant 0 : index
      %c0_12 = arith.constant 0 : index
      %14 = vector.load %arg8[%c0_11, %c0_12] : memref<32x256xf32, #tpu.memory_space<vmem>>, vector<32x256xf32>
      tpu.vector_store %arg8[%c0_11, %c0_12], %13 {strides = array<i32>} : memref<32x256xf32, #tpu.memory_space<vmem>>, vector<32x256xf32>,
    } else {
    }
    %c0 = arith.constant 0 : index
    %c0_1 = arith.constant 0 : index
    %3 = vector.load %arg8[%c0, %c0_1] : memref<32x256xf32, #tpu.memory_space<vmem>>, vector<32x256xf32>
    %c0_2 = arith.constant 0 : index
    %c0_3 = arith.constant 0 : index
    %4 = vector.load %arg2[%c0_2, %c0_3] : memref<32x256xf32, #tpu.memory_space<vmem>>, vector<32x256xf32>
    %5 = arith.truncf %4 : vector<32x256xf32> to vector<32x256xbf16>
    %c0_4 = arith.constant 0 : index
    %c0_5 = arith.constant 0 : index
    %6 = vector.load %arg3[%c0_4, %c0_5] : memref<256x256xbf16, #tpu.memory_space<vmem>>, vector<256x256xbf16>
    %cst = arith.constant dense<0.000000e+00> : vector<32x256xf32>
    %7 = tpu.matmul %5, %6, %cst {dimension_numbers = #tpu.dot_dimension_numbers<[1], [0], [0], [1], [0, 0, 1, 1], [], []>} : vector<32x256xbf16>, vector<256x256xbf16>, vector<32x256xf32> -> vector<32x256xf32>
    %8 = arith.addf %3, %7 : vector<32x256xf32>
    %c0_6 = arith.constant 0 : index
    %c0_7 = arith.constant 0 : index
    %9 = vector.load %arg8[%c0_6, %c0_7] : memref<32x256xf32, #tpu.memory_space<vmem>>, vector<32x256xf32>
    tpu.vector_store %arg8[%c0_6, %c0_7], %8 {strides = array<i32>} : memref<32x256xf32, #tpu.memory_space<vmem>>, vector<32x256xf32>,
    %c0_i32_8 = arith.constant 0 : i32
    %10 = arith.cmpi eq, %arg1, %c0_i32_8 : i32
    %11 = arith.extui %10 : i1 to i32
    %c0_i32_9 = arith.constant 0 : i32
    %12 = arith.cmpi ne, %11, %c0_i32_9 : i32
    scf.if %12 {
      %c0_10 = arith.constant 0 : index
      %c0_11 = arith.constant 0 : index
      %13 = vector.load %arg8[%c0_10, %c0_11] : memref<32x256xf32, #tpu.memory_space<vmem>>, vector<32x256xf32>
      %c0_12 = arith.constant 0 : index
      %c0_13 = arith.constant 0 : index
      %14 = vector.load %arg4[%c0_12, %c0_13] : memref<1x256xf32, #tpu.memory_space<vmem>>, vector<1x256xf32>
      %15 = vector.broadcast %14 : vector<1x256xf32> to vector<32x256xf32>
      %16 = arith.addf %13, %15 : vector<32x256xf32>
      %17 = arith.mulf %16, %16 : vector<32x256xf32>
      %18 = arith.mulf %16, %17 : vector<32x256xf32>
      %cst_14 = arith.constant 4.471500e-02 : f32
      %19 = vector.broadcast %cst_14 : f32 to vector<32x256xf32>
      %20 = arith.mulf %19, %18 : vector<32x256xf32>
      %21 = arith.addf %16, %20 : vector<32x256xf32>
      %cst_15 = arith.constant 0.797884583 : f32
      %22 = vector.broadcast %cst_15 : f32 to vector<32x256xf32>
      %23 = arith.mulf %22, %21 : vector<32x256xf32>
      %24 = math.tanh %23 : vector<32x256xf32>
      %cst_16 = arith.constant 1.000000e+00 : f32
      %25 = vector.broadcast %cst_16 : f32 to vector<32x256xf32>
      %26 = arith.addf %25, %24 : vector<32x256xf32>
      %cst_17 = arith.constant 5.000000e-01 : f32
      %27 = vector.broadcast %cst_17 : f32 to vector<32x256xf32>
      %28 = arith.mulf %27, %26 : vector<32x256xf32>
      %29 = arith.mulf %16, %28 : vector<32x256xf32>
      %c0_18 = arith.constant 0 : index
      %c0_19 = arith.constant 0 : index
      %30 = vector.load %arg5[%c0_18, %c0_19] : memref<1x256xf32, #tpu.memory_space<vmem>>, vector<1x256xf32>
      %c0_20 = arith.constant 0 : index
      %c0_21 = arith.constant 0 : index
      %31 = vector.load %arg6[%c0_20, %c0_21] : memref<1x256xf32, #tpu.memory_space<vmem>>, vector<1x256xf32>
      %cst_22 = arith.constant dense<0.000000e+00> : vector<32xf32>
      %32 = vector.multi_reduction <add>, %29, %cst_22 [1] : vector<32x256xf32> to vector<32xf32>
      %33 = vector.shape_cast %32 : vector<32xf32> to vector<32x1xf32>
      %cst_23 = arith.constant 2.560000e+02 : f32
      %34 = vector.broadcast %cst_23 : f32 to vector<32x1xf32>
      %35 = arith.divf %33, %34 : vector<32x1xf32>
      %36 = vector.broadcast %35 : vector<32x1xf32> to vector<32x256xf32>
      %37 = arith.subf %29, %36 : vector<32x256xf32>
      %38 = arith.mulf %37, %37 : vector<32x256xf32>
      %cst_24 = arith.constant dense<0.000000e+00> : vector<32xf32>
      %39 = vector.multi_reduction <add>, %38, %cst_24 [1] : vector<32x256xf32> to vector<32xf32>
      %40 = vector.shape_cast %39 : vector<32xf32> to vector<32x1xf32>
      %cst_25 = arith.constant 2.560000e+02 : f32
      %41 = vector.broadcast %cst_25 : f32 to vector<32x1xf32>
      %42 = arith.divf %40, %41 : vector<32x1xf32>
      %43 = vector.broadcast %35 : vector<32x1xf32> to vector<32x256xf32>
      %44 = arith.subf %29, %43 : vector<32x256xf32>
      %cst_26 = arith.constant 9.99999996E-13 : f32
      %45 = vector.broadcast %cst_26 : f32 to vector<32x1xf32>
      %46 = arith.addf %42, %45 : vector<32x1xf32>
      %47 = math.rsqrt %46 : vector<32x1xf32>
      %48 = vector.broadcast %47 : vector<32x1xf32> to vector<32x256xf32>
      %49 = arith.mulf %44, %48 : vector<32x256xf32>
      %50 = vector.broadcast %30 : vector<1x256xf32> to vector<32x256xf32>
      %51 = arith.mulf %49, %50 : vector<32x256xf32>
      %52 = vector.broadcast %31 : vector<1x256xf32> to vector<32x256xf32>
      %53 = arith.addf %51, %52 : vector<32x256xf32>
      %c0_27 = arith.constant 0 : index
      %c0_28 = arith.constant 0 : index
      %54 = vector.load %arg7[%c0_27, %c0_28] : memref<32x256xf32, #tpu.memory_space<vmem>>, vector<32x256xf32>
      tpu.vector_store %arg7[%c0_27, %c0_28], %53 {strides = array<i32>} : memref<32x256xf32, #tpu.memory_space<vmem>>, vector<32x256xf32>,
    } else {
    }
    return
  }
  func.func @transform_0(%arg0: i32, %arg1: i32) -> (i32, i32) {
    %c0_i32 = arith.constant 0 : i32
    return %arg0, %arg1 : i32, i32
  }
  func.func @transform_1(%arg0: i32, %arg1: i32) -> (i32, i32) {
    %c0_i32 = arith.constant 0 : i32
    %c0_i32_0 = arith.constant 0 : i32
    return %arg1, %c0_i32 : i32, i32
  }
  func.func @transform_2(%arg0: i32, %arg1: i32) -> (i32, i32) {
    %c0_i32 = arith.constant 0 : i32
    %c0_i32_0 = arith.constant 0 : i32
    %c0_i32_1 = arith.constant 0 : i32
    return %c0_i32, %c0_i32_0 : i32, i32
  }
  func.func @transform_3(%arg0: i32, %arg1: i32) -> (i32, i32) {
    %c0_i32 = arith.constant 0 : i32
    %c0_i32_0 = arith.constant 0 : i32
    %c0_i32_1 = arith.constant 0 : i32
    return %c0_i32, %c0_i32_0 : i32, i32
  }
  func.func @transform_4(%arg0: i32, %arg1: i32) -> (i32, i32) {
    %c0_i32 = arith.constant 0 : i32
    %c0_i32_0 = arith.constant 0 : i32
    %c0_i32_1 = arith.constant 0 : i32
    return %c0_i32, %c0_i32_0 : i32, i32
  }
  func.func @transform_5(%arg0: i32, %arg1: i32) -> (i32, i32) {
    %c0_i32 = arith.constant 0 : i32
    %c0_i32_0 = arith.constant 0 : i32
    return %arg0, %c0_i32 : i32, i32
  }
}

module attributes {stable_mosaic.version = 11 : i64} {
  func.func @_linear_kernel(%arg0: i32, %arg1: i32, %arg2: i32, %arg3: memref<32x256xf32, #tpu.memory_space<vmem>>, %arg4: memref<256x256xbf16, #tpu.memory_space<vmem>>, %arg5: memref<1x256xf32, #tpu.memory_space<vmem>>, %arg6: memref<32x256xf32, #tpu.memory_space<vmem>>, %arg7: memref<32x256xf32, #tpu.memory_space<vmem>>) attributes {dimension_semantics = [#tpu.dimension_semantics<parallel>, #tpu.dimension_semantics<parallel>, #tpu.dimension_semantics<arbitrary>], iteration_bounds = array<i64: 1, 2, 1>, scalar_prefetch = 0 : i64, scratch_operands = 1 : i64, tpu.core_type = #tpu.core_type<tc>, window_params = [{transform_indices = @transform_0, window_bounds = array<i64: 32, 256>}, {transform_indices = @transform_1, window_bounds = array<i64: 256, 256>}, {transform_indices = @transform_2, window_bounds = array<i64: 1, 256>}, {transform_indices = @transform_3, window_bounds = array<i64: 32, 256>}]} {
    %c0_i32 = arith.constant 0 : i32
    %0 = arith.cmpi eq, %arg2, %c0_i32 : i32
    %1 = arith.extui %0 : i1 to i32
    %c0_i32_0 = arith.constant 0 : i32
    %2 = arith.cmpi ne, %1, %c0_i32_0 : i32
    scf.if %2 {
      %cst_10 = arith.constant 0.000000e+00 : f32
      %13 = vector.broadcast %cst_10 : f32 to vector<32x256xf32>
      %c0_11 = arith.constant 0 : index
      %c0_12 = arith.constant 0 : index
      %14 = vector.load %arg7[%c0_11, %c0_12] : memref<32x256xf32, #tpu.memory_space<vmem>>, vector<32x256xf32>
      tpu.vector_store %arg7[%c0_11, %c0_12], %13 {strides = array<i32>} : memref<32x256xf32, #tpu.memory_space<vmem>>, vector<32x256xf32>,
    } else {
    }
    %c0 = arith.constant 0 : index
    %c0_1 = arith.constant 0 : index
    %3 = vector.load %arg7[%c0, %c0_1] : memref<32x256xf32, #tpu.memory_space<vmem>>, vector<32x256xf32>
    %c0_2 = arith.constant 0 : index
    %c0_3 = arith.constant 0 : index
    %4 = vector.load %arg3[%c0_2, %c0_3] : memref<32x256xf32, #tpu.memory_space<vmem>>, vector<32x256xf32>
    %5 = arith.truncf %4 : vector<32x256xf32> to vector<32x256xbf16>
    %c0_4 = arith.constant 0 : index
    %c0_5 = arith.constant 0 : index
    %6 = vector.load %arg4[%c0_4, %c0_5] : memref<256x256xbf16, #tpu.memory_space<vmem>>, vector<256x256xbf16>
    %cst = arith.constant dense<0.000000e+00> : vector<32x256xf32>
    %7 = tpu.matmul %5, %6, %cst {dimension_numbers = #tpu.dot_dimension_numbers<[1], [0], [0], [1], [0, 0, 1, 1], [], []>} : vector<32x256xbf16>, vector<256x256xbf16>, vector<32x256xf32> -> vector<32x256xf32>
    %8 = arith.addf %3, %7 : vector<32x256xf32>
    %c0_6 = arith.constant 0 : index
    %c0_7 = arith.constant 0 : index
    %9 = vector.load %arg7[%c0_6, %c0_7] : memref<32x256xf32, #tpu.memory_space<vmem>>, vector<32x256xf32>
    tpu.vector_store %arg7[%c0_6, %c0_7], %8 {strides = array<i32>} : memref<32x256xf32, #tpu.memory_space<vmem>>, vector<32x256xf32>,
    %c0_i32_8 = arith.constant 0 : i32
    %10 = arith.cmpi eq, %arg2, %c0_i32_8 : i32
    %11 = arith.extui %10 : i1 to i32
    %c0_i32_9 = arith.constant 0 : i32
    %12 = arith.cmpi ne, %11, %c0_i32_9 : i32
    scf.if %12 {
      %c0_10 = arith.constant 0 : index
      %c0_11 = arith.constant 0 : index
      %13 = vector.load %arg7[%c0_10, %c0_11] : memref<32x256xf32, #tpu.memory_space<vmem>>, vector<32x256xf32>
      %c0_12 = arith.constant 0 : index
      %c0_13 = arith.constant 0 : index
      %14 = vector.load %arg5[%c0_12, %c0_13] : memref<1x256xf32, #tpu.memory_space<vmem>>, vector<1x256xf32>
      %15 = vector.broadcast %14 : vector<1x256xf32> to vector<32x256xf32>
      %16 = arith.addf %13, %15 : vector<32x256xf32>
      %c0_14 = arith.constant 0 : index
      %c0_15 = arith.constant 0 : index
      %17 = vector.load %arg6[%c0_14, %c0_15] : memref<32x256xf32, #tpu.memory_space<vmem>>, vector<32x256xf32>
      tpu.vector_store %arg6[%c0_14, %c0_15], %16 {strides = array<i32>} : memref<32x256xf32, #tpu.memory_space<vmem>>, vector<32x256xf32>,
    } else {
    }
    return
  }
  func.func @transform_0(%arg0: i32, %arg1: i32, %arg2: i32) -> (i32, i32) {
    %c0_i32 = arith.constant 0 : i32
    return %arg0, %arg2 : i32, i32
  }
  func.func @transform_1(%arg0: i32, %arg1: i32, %arg2: i32) -> (i32, i32) {
    %c0_i32 = arith.constant 0 : i32
    return %arg2, %arg1 : i32, i32
  }
  func.func @transform_2(%arg0: i32, %arg1: i32, %arg2: i32) -> (i32, i32) {
    %c0_i32 = arith.constant 0 : i32
    %c0_i32_0 = arith.constant 0 : i32
    return %c0_i32, %arg1 : i32, i32
  }
  func.func @transform_3(%arg0: i32, %arg1: i32, %arg2: i32) -> (i32, i32) {
    %c0_i32 = arith.constant 0 : i32
    return %arg0, %arg1 : i32, i32
  }
}

</mosaic_0001>

<bundles_post_ra>
// kernel: _lambda_.15
= control target key start
LH: loop header
LB: loop body
LE: loop exit
PB: predicated region body
PF: predicated region fallthrough
CT: control target
= control target key end

     0   :  { %s849_s6 = smov 0   ;;  %s960_s0 = inlined_call_operand.vmem [shape: f32[2,16,768], index: 0, kind: input, shape index: {}]   ;;  %s961_s1 = inlined_call_operand.vmem [shape: f32[2,16,256], index: 1, kind: output, shape index: {}]  }
   0x1 LB: > { %s701_s7 = sadd.s32 4294967295, %s834_s6   ;;  %p705_p0 = scmp.ge.s32.totalorder %s834_s6, 1  ;;  %s834_s6 = sphi %s849_s6, %s11_s6  }
   0x2   : > { %p87_p1 = scmp.lt.s32.totalorder %s834_s6, 3 }
   0x4   : > { %p88_p2 = pnand %p705_p0, %p87_p1 }
   0x5   : > { %p107_p3 = scmp.lt.s32.totalorder (!%p88_p2), %s701_s7, 1  ;;  %v836_v0 = vmov (!%p88_p2), 0.0   ;;  %vm837_vm0 = vmmov (!%p88_p2), 0   ;;  %vm133_vm1 = vcmask (!%p88_p2), 523264   ;;  %vm183_vm2 = vcmask (!%p88_p2), 130048   ;;  %s838_s12 = smov (!%p88_p2), 64  }
   0x6   : > { %91 = sbr.rel (%p88_p2) target bundleno = 1455 (0x5af), region = 24  ;;  %736 = vmatprep.subr.bf16.mxu0 (!%p88_p2), %v836_v0  ;;  %738 = vmatprep.mubr.msk.bf16.mxu0 (!%p88_p2), %vm837_vm0, %v836_v0 }
   0x7   : > { %742 = vmatprep.subr.bf16.mxu1 (!%p88_p2), %v836_v0  ;;  %744 = vmatprep.mubr.msk.bf16.mxu1 (!%p88_p2), %vm837_vm0, %v836_v0 }
   0xd   : > { %s963_s7 = smov (!%p107_p3, %s701_s7), 1 }
   0xe   : > { %s784_s8 = smul.u32 96, %s963_s7  ;;  %s719_s13 = sshll.u32 %s963_s7, 5 }
   0xf   : > { %s116_s16 = scalar_lea.vmem %s961_s1, %s719_s13 }
  0x10   : > { %s869_s11 = scalar_lea.vmem %s960_s0, %s784_s8 }
  0x11   : > { %v120_v1 = vld [vmem:[%s869_s11 + $0x10] sm:$0xff]  ;;  %v126_v2 = vld [vmem:[%s869_s11 + $0x40] sm:$0xff]  ;;  %v121_v26 = vld [vmem:[%s869_s11 + $0x18] sm:$0xff] }
  0x12   : > { %v131_v3 = vpack.c.bf16 %v126_v2, %v120_v1  ;;  %v118_v5 = vld [vmem:[%s869_s11] sm:$0xff]  ;;  %v124_v6 = vld [vmem:[%s869_s11 + $0x30] sm:$0xff]  ;;  %v127_v27 = vld [vmem:[%s869_s11 + $0x48] sm:$0xff] }
  0x13   : > { %v130_v7 = vpack.c.bf16 %v124_v6, %v118_v5  ;;  %v122_v28 = vld [vmem:[%s869_s11 + $0x20] sm:$0xff]  ;;  %v128_v29 = vld [vmem:[%s869_s11 + $0x50] sm:$0xff]  ;;  %v378_v31 = vpack.c.bf16 %v127_v27, %v121_v26  ;;  %v119_v32 = vld [vmem:[%s869_s11 + $0x8] sm:$0xff] }
  0x14   : > { %v138_v4 = vsel %vm133_vm1, %v131_v3, 0  ;;  %v889_v30 = vpack.c.bf16 %v128_v29, %v122_v28  ;;  %v125_v33 = vld [vmem:[%s869_s11 + $0x38] sm:$0xff] }
  0x15   : > { %737 = vmatpush3.bf16.xpose.msra.mxu0 %v138_v4  ;;  %v377_v34 = vpack.c.bf16 %v125_v33, %v119_v32  ;;  %v384_v45 = vsel %vm133_vm1, %v378_v31, 0 }
  0x16   : > { %754 = vmatprep.subr.bf16.mxu0 %v836_v0  ;;  %743 = vmatpush3.bf16.msra.mxu1 %v889_v30 }
  0x17   : > { %748 = vmatprep.subr.bf16.mxu1 %v836_v0 }
  0x1c   : > { %739 = vmatmul.mubr.msk.bf16.vlgmr.msra.gmra.mrb[0].mxu0 %vm133_vm1, %v130_v7 }
  0x1d   : > { %756 = vmatprep.mubr.msk.bf16.mxu0 %vm837_vm0, %v836_v0 }
  0xef   : > { %v174_v8 = vpop.f32.mrb[0].mxu0 }
  0xf0   : > { %v181_v9 = vmul.f32 0.125, %v174_v8  ;;  %v740_v10 = vpop.f32.mrb[1].mxu0 }
  0xf1   : > { %v177_v11 = vpop.f32.mrb[2].mxu0 }
  0xf2   : > { %v182_v12 = vmul.f32 0.125, %v177_v11  ;;  %v741_v13 = vpop.f32.mrb[3].mxu0  ;;  %v184_v14 = vsel %vm183_vm2, %v181_v9, -inf }
  0xf3   : > { %185 = vmax.xlane.f32.xlu0 %v184_v14 }
  0xf4   : > { %v187_v15 = vsel %vm183_vm2, %v182_v12, -inf }
  0xf7   : > { %188 = vmax.xlane.f32.xlu0 %v187_v15 }
 0x10d   : > { %255 = vrot.lane.b32.xlu0 %v131_v3, %s838_s12 }
 0x180   : > { %v186_v16 = vpop.xlane.xlu0 %185 }
 0x181   : > { %v190_v17 = vsub.f32 %v181_v9, %v186_v16 }
 0x183   : > { %v192_v18 = vmul.f32 1.442695, %v190_v17 }
 0x184   : > { %v189_v19 = vpop.xlane.xlu0 %188 }
 0x185   : > { %796 = vpow2.f32 %v192_v18  ;;  %v191_v20 = vsub.f32 %v182_v12, %v189_v19 }
 0x187   : > { %v194_v21 = vmul.f32 1.442695, %v191_v20 }
 0x188   : > { %v256_v39 = vpop.permute.xlu0 %255 }
 0x189   : > { %798 = vpow2.f32 %v194_v21  ;;  %v261_v42 = vsel %vm133_vm1, %v256_v39, 0 }
 0x18f   : > { %v797_v22 = vpop.eup %796 }
 0x190   : > { %v196_v23 = vsel %vm183_vm2, %v797_v22, 0.0 }
 0x191   : > { %197 = vadd.xlane.f32.xlu1 %v196_v23 }
 0x193   : > { %v799_v24 = vpop.eup %798 }
 0x194   : > { %v199_v25 = vsel %vm183_vm2, %v799_v24, 0.0 }
 0x195   : > { %200 = vadd.xlane.f32.xlu1 %v199_v25 }
 0x1a6   : > { %252 = vrot.lane.b32.xlu1 %v130_v7, %s838_s12 }
 0x1aa   : > { %500 = vrot.lane.b32.xlu1 %v378_v31, %s838_s12 }
 0x1ae   : > { %497 = vrot.lane.b32.xlu1 %v377_v34, %s838_s12 }
 0x21e   : > { %v198_v35 = vpop.xlane.xlu1 %197 }
 0x21f   : > { %800 = vrcp.f32 %v198_v35 }
 0x222   : > { %v201_v36 = vpop.xlane.xlu1 %200 }
 0x223   : > { %802 = vrcp.f32 %v201_v36 }
 0x226   : > { %v253_v44 = vpop.permute.xlu1 %252 }
 0x229   : > { %v801_v37 = vpop.eup %800 }
 0x22a   : > { %v204_v40 = vmul.f32 %v801_v37, %v797_v22  ;;  %v501_v46 = vpop.permute.xlu1 %500 }
 0x22b   : > { %v506_v47 = vsel %vm133_vm1, %v501_v46, 0  ;;  %v129_v46 = vld [vmem:[%s869_s11 + $0x58] sm:$0xff] }
 0x22d   : > { %v803_v38 = vpop.eup %802 }
 0x22e   : > { %v205_v41 = vmul.f32 %v803_v38, %v799_v24  ;;  %v498_v48 = vpop.permute.xlu1 %497 }
 0x230   : > { %v206_v43 = vpack.c.bf16 %v205_v41, %v204_v40 }
 0x232   : > { %745 = vmatmul.mubr.msk.bf16.vlgmr.msra.gmra.mrb[0].mxu1 %vm183_vm2, %v206_v43 }
 0x233   : > { %749 = vmatpush3.bf16.xpose.msra.mxu1 %v261_v42  ;;  %750 = vmatprep.mubr.msk.bf16.mxu1 %vm837_vm0, %v836_v0 }
 0x234   : > { %760 = vmatprep.subr.bf16.mxu1 %v836_v0 }
 0x23a   : > { %751 = vmatmul.mubr.msk.bf16.vlgmr.msra.gmra.mrb[4].mxu1 %vm133_vm1, %v253_v44 }
 0x23b   : > { %761 = vmatpush3.bf16.xpose.msra.mxu1 %v384_v45  ;;  %762 = vmatprep.mubr.msk.bf16.mxu1 %vm837_vm0, %v836_v0  ;;  %v123_v45 = vld [vmem:[%s869_s11 + $0x28] sm:$0xff] }
 0x23c   : > { %772 = vmatprep.subr.bf16.mxu1 %v836_v0 }
 0x242   : > { %763 = vmatmul.mubr.msk.bf16.vlgmr.msra.gmra.mrb[8].mxu1 %vm133_vm1, %v377_v34 }
 0x243   : > { %773 = vmatpush3.bf16.xpose.msra.mxu1 %v506_v47  ;;  %774 = vmatprep.mubr.msk.bf16.mxu1 %vm837_vm0, %v836_v0  ;;  %v379_v47 = vpack.c.bf16 %v129_v46, %v123_v45 }
 0x24a   : > { %775 = vmatmul.mubr.msk.bf16.vlgmr.msra.gmra.mrb[12].mxu1 %vm133_vm1, %v498_v48 }
 0x305   : > { %v913_v49 = vpop.f32.mrb[0].mxu1 }
 0x306   : > { %v746_v50 = vpop.f32.mrb[1].mxu1 }
 0x307   : > { %v915_v51 = vpop.f32.mrb[2].mxu1 }
 0x308   : > { %v747_v52 = vpop.f32.mrb[3].mxu1 }
 0x30d   : > { %v297_v53 = vpop.f32.mrb[4].mxu1 }
 0x30e   : > { %v304_v54 = vmul.f32 0.125, %v297_v53  ;;  %v752_v55 = vpop.f32.mrb[5].mxu1 }
 0x30f   : > { %v300_v56 = vpop.f32.mrb[6].mxu1 }
 0x310   : > { %v305_v57 = vmul.f32 0.125, %v300_v56  ;;  %v753_v58 = vpop.f32.mrb[7].mxu1  ;;  %v306_v59 = vsel %vm183_vm2, %v304_v54, -inf }
 0x311   : > { %307 = vmax.xlane.f32.xlu0 %v306_v59 }
 0x312   : > { %v309_v60 = vsel %vm183_vm2, %v305_v57, -inf }
 0x313   : > { %310 = vmax.xlane.f32.xlu1 %v309_v60 }
 0x315   : > { %v420_v61 = vpop.f32.mrb[8].mxu1 }
 0x316   : > { %v427_v62 = vmul.f32 0.125, %v420_v61  ;;  %v764_v63 = vpop.f32.mrb[9].mxu1 }
 0x317   : > { %v423_v1 = vpop.f32.mrb[10].mxu1 }
 0x318   : > { %v428_v2 = vmul.f32 0.125, %v423_v1  ;;  %v765_v3 = vpop.f32.mrb[11].mxu1  ;;  %v429_v4 = vsel %vm183_vm2, %v427_v62, -inf }
 0x319   : > { %430 = vmax.xlane.f32.xlu0 %v429_v4 }
 0x31a   : > { %v432_v5 = vsel %vm183_vm2, %v428_v2, -inf }
 0x31d   : > { %433 = vmax.xlane.f32.xlu0 %v432_v5  ;;  %v542_v6 = vpop.f32.mrb[12].mxu1 }
 0x31e   : > { %v549_v7 = vmul.f32 0.125, %v542_v6  ;;  %v776_v8 = vpop.f32.mrb[13].mxu1 }
 0x31f   : > { %v545_v9 = vpop.f32.mrb[14].mxu1 }
 0x320   : > { %v550_v10 = vmul.f32 0.125, %v545_v9  ;;  %v777_v11 = vpop.f32.mrb[15].mxu1  ;;  %v551_v12 = vsel %vm183_vm2, %v549_v7, -inf }
 0x321   : > { %552 = vmax.xlane.f32.xlu0 %v551_v12 }
 0x322   : > { %v554_v13 = vsel %vm183_vm2, %v550_v10, -inf }
 0x323   : > { %555 = vmax.xlane.f32.xlu1 %v554_v13 }
 0x39e   : > { %v308_v14 = vpop.xlane.xlu0 %307 }
 0x39f   : > { %v312_v15 = vsub.f32 %v304_v54, %v308_v14 }
 0x3a0   : > { %v311_v16 = vpop.xlane.xlu1 %310 }
 0x3a1   : > { %v314_v17 = vmul.f32 1.442695, %v312_v15  ;;  %v313_v18 = vsub.f32 %v305_v57, %v311_v16 }
 0x3a3   : > { %804 = vpow2.f32 %v314_v17  ;;  %v316_v19 = vmul.f32 1.442695, %v313_v18 }
 0x3a5   : > { %806 = vpow2.f32 %v316_v19 }
 0x3a6   : > { %v431_v20 = vpop.xlane.xlu0 %430 }
 0x3a7   : > { %v435_v21 = vsub.f32 %v427_v62, %v431_v20 }
 0x3a9   : > { %v437_v22 = vmul.f32 1.442695, %v435_v21 }
 0x3aa   : > { %v434_v23 = vpop.xlane.xlu0 %433 }
 0x3ab   : > { %808 = vpow2.f32 %v437_v22  ;;  %v436_v24 = vsub.f32 %v428_v2, %v434_v23 }
 0x3ad   : > { %v805_v25 = vpop.eup %804  ;;  %v439_v26 = vmul.f32 1.442695, %v436_v24 }
 0x3ae   : > { %v553_v27 = vpop.xlane.xlu0 %552  ;;  %v318_v28 = vsel %vm183_vm2, %v805_v25, 0.0 }
 0x3af   : > { %v807_v29 = vpop.eup %806  ;;  %810 = vpow2.f32 %v439_v26  ;;  %v557_v31 = vsub.f32 %v549_v7, %v553_v27  ;;  %319 = vadd.xlane.f32.xlu0 %v318_v28 }
 0x3b0   : > { %v556_v32 = vpop.xlane.xlu1 %555  ;;  %v321_v33 = vsel %vm183_vm2, %v807_v29, 0.0 }
 0x3b1   : > { %v559_v34 = vmul.f32 1.442695, %v557_v31  ;;  %v558_v35 = vsub.f32 %v550_v10, %v556_v32  ;;  %322 = vadd.xlane.f32.xlu1 %v321_v33 }
 0x3b3   : > { %812 = vpow2.f32 %v559_v34  ;;  %v561_v36 = vmul.f32 1.442695, %v558_v35 }
 0x3b5   : > { %v809_v37 = vpop.eup %808  ;;  %814 = vpow2.f32 %v561_v36 }
 0x3b6   : > { %v441_v38 = vsel %vm183_vm2, %v809_v37, 0.0 }
 0x3b7   : > { %442 = vadd.xlane.f32.xlu0 %v441_v38 }
 0x3b9   : > { %v811_v39 = vpop.eup %810 }
 0x3ba   : > { %v444_v40 = vsel %vm183_vm2, %v811_v39, 0.0 }
 0x3bb   : > { %445 = vadd.xlane.f32.xlu1 %v444_v40 }
 0x3bd   : > { %v813_v41 = vpop.eup %812 }
 0x3be   : > { %v563_v42 = vsel %vm183_vm2, %v813_v41, 0.0 }
 0x3bf   : > { %v815_v43 = vpop.eup %814  ;;  %564 = vadd.xlane.f32.xlu0 %v563_v42 }
 0x3c0   : > { %v566_v44 = vsel %vm183_vm2, %v815_v43, 0.0 }
 0x3c1   : > { %567 = vadd.xlane.f32.xlu1 %v566_v44 }
 0x3d2   : > { %575 = vrot.lane.b32.xlu1 %v379_v47, %s838_s12 }
 0x3d5   : > { %330 = vrot.lane.b32.xlu0 %v889_v30, %s838_s12 }
 0x43c   : > { %v320_v50 = vpop.xlane.xlu0 %319 }
 0x43e   : > { %v323_v48 = vpop.xlane.xlu1 %322 }
 0x43f   : > { %816 = vrcp.f32 %v323_v48 }
 0x440   : > { %818 = vrcp.f32 %v320_v50 }
 0x444   : > { %v443_v52 = vpop.xlane.xlu0 %442 }
 0x448   : > { %v446_v53 = vpop.xlane.xlu1 %445 }
 0x449   : > { %820 = vrcp.f32 %v446_v53  ;;  %v817_v54 = vpop.eup %816 }
 0x44a   : > { %822 = vrcp.f32 %v443_v52  ;;  %v819_v56 = vpop.eup %818  ;;  %v327_v57 = vmul.f32 %v817_v54, %v807_v29 }
 0x44b   : > { %v326_v59 = vmul.f32 %v819_v56, %v805_v25 }
 0x44c   : > { %v565_v55 = vpop.xlane.xlu0 %564 }
 0x44d   : > { %v328_v61 = vpack.c.bf16 %v327_v57, %v326_v59 }
 0x44e   : > { %v568_v58 = vpop.xlane.xlu1 %567 }
 0x44f   : > { %824 = vrcp.f32 %v568_v58 }
 0x450   : > { %v331_v60 = vpop.permute.xlu0 %330  ;;  %826 = vrcp.f32 %v565_v55 }
 0x451   : > { %755 = vmatpush3.bf16.msra.mxu0 %v331_v60 }
 0x452   : > { %766 = vmatprep.subr.bf16.mxu0 %v836_v0  ;;  %v576_v3 = vpop.permute.xlu1 %575 }
 0x453   : > { %v821_v30 = vpop.eup %820 }
 0x454   : > { %757 = vmatmul.mubr.msk.bf16.vlgmr.msra.gmra.mrb[4].mxu0 %vm183_vm2, %v328_v61  ;;  %v823_v62 = vpop.eup %822  ;;  %v450_v63 = vmul.f32 %v821_v30, %v811_v39 }
 0x455   : > { %767 = vmatpush3.bf16.msra.mxu0 %v379_v47  ;;  %768 = vmatprep.mubr.msk.bf16.mxu0 %vm837_vm0, %v836_v0  ;;  %v449_v1 = vmul.f32 %v823_v62, %v809_v37 }
 0x456   : > { %778 = vmatprep.subr.bf16.mxu0 %v836_v0 }
 0x457   : > { %v451_v2 = vpack.c.bf16 %v450_v63, %v449_v1 }
 0x459   : > { %v825_v4 = vpop.eup %824 }
 0x45a   : > { %v827_v5 = vpop.eup %826  ;;  %v572_v6 = vmul.f32 %v825_v4, %v815_v43 }
 0x45b   : > { %v571_v7 = vmul.f32 %v827_v5, %v813_v41 }
 0x45c   : > { %769 = vmatmul.mubr.msk.bf16.vlgmr.msra.gmra.mrb[8].mxu0 %vm183_vm2, %v451_v2 }
 0x45d   : > { %779 = vmatpush3.bf16.msra.mxu0 %v576_v3  ;;  %780 = vmatprep.mubr.msk.bf16.mxu0 %vm837_vm0, %v836_v0  ;;  %v573_v8 = vpack.c.bf16 %v572_v6, %v571_v7 }
 0x464   : > { %781 = vmatmul.mubr.msk.bf16.vlgmr.msra.gmra.mrb[12].mxu0 %vm183_vm2, %v573_v8 }
 0x527   : > { %v370_v9 = vpop.f32.mrb[4].mxu0 }
 0x528   : > { %624 = vrot.lane.b32.xlu1 %v370_v9, %s838_s12  ;;  %v758_v10 = vpop.f32.mrb[5].mxu0 }
 0x529   : > { %v373_v11 = vpop.f32.mrb[6].mxu0 }
 0x52a   : > { %v759_v12 = vpop.f32.mrb[7].mxu0 }
 0x52c   : > { %626 = vrot.lane.b32.xlu1 %v373_v11, %s838_s12 }
 0x52f   : > { %v489_v13 = vpop.f32.mrb[8].mxu0 }
 0x530   : > { %v770_v14 = vpop.f32.mrb[9].mxu0 }
 0x531   : > { %v492_v15 = vpop.f32.mrb[10].mxu0 }
 0x532   : > { %v771_v16 = vpop.f32.mrb[11].mxu0 }
 0x537   : > { %v615_v17 = vpop.f32.mrb[12].mxu0 }
 0x538   : > { %632 = vrot.lane.b32.xlu0 %v615_v17, %s838_s12  ;;  %v782_v0 = vpop.f32.mrb[13].mxu0 }
 0x539   : > { %v618_v18 = vpop.f32.mrb[14].mxu0 }
 0x53a   : > { %634 = vrot.lane.b32.xlu1 %v618_v18, %s838_s12  ;;  %v783_v19 = vpop.f32.mrb[15].mxu0 }
 0x59a   : > { %v625_v20 = vpop.permute.xlu1 %624 }
 0x59b   : > { %v638_v21 = vsel %vm133_vm1, %v913_v49, %v625_v20 }
 0x59c   : > { %642 = vst [vmem:[%s116_s16] sm:$0xff] %v638_v21 }
 0x59e   : > { %v627_v22 = vpop.permute.xlu1 %626 }
 0x59f   : > { %v639_v23 = vsel %vm133_vm1, %v915_v51, %v627_v22 }
 0x5a0   : > { %644 = vst [vmem:[%s116_s16 + $0x10] sm:$0xff] %v639_v23 }
 0x5aa   : > { %v633_v24 = vpop.permute.xlu0 %632 }
 0x5ab   : > { %v640_v25 = vsel %vm133_vm1, %v489_v13, %v633_v24 }
 0x5ac   : > { %643 = vst [vmem:[%s116_s16 + $0x8] sm:$0xff] %v640_v25  ;;  %v635_v26 = vpop.permute.xlu1 %634 }
 0x5ad   : > { %v641_v27 = vsel %vm133_vm1, %v492_v15, %v635_v26 }
 0x5ae   : > { %645 = vst [vmem:[%s116_s16 + $0x18] sm:$0xff] %v641_v27 }
 0x5af PF: > { %s11_s6 = sadd.s32 1, %s834_s6  }
 0x5b0   : > { %p8_p4 = scmp.ge.s32.totalorder %s11_s6, 4  }
 0x5b2   :  { %10 = sbr.rel (!%p8_p4) target bundleno = 1 (0x1), region = 54 }

// kernel: _lambda_.12
= control target key start
LH: loop header
LB: loop body
LE: loop exit
PB: predicated region body
PF: predicated region fallthrough
CT: control target
= control target key end

     0   :  { %8 = vsyncpa [#allocation4], 0  ;;  %s428_s0 = inlined_call_operand.vmem [shape: f32[32,64], index: 0, kind: input, shape index: {}]   ;;  %s429_s1 = inlined_call_operand.hbm [shape: bf16[64,256], index: 1, kind: input, shape index: {}]   ;;  %s430_s2 = inlined_call_operand.hbm [shape: f32[1,256], index: 2, kind: input, shape index: {}]   ;;  %s431_s3 = inlined_call_operand.vmem [shape: f32[32,256], index: 3, kind: output, shape index: {}]  }
   0x1   :  { %9 = vsyncpa [#allocation6], 0  ;;  %s343_s12 = smov [#allocation3]   ;;  %s295_s16 = scalar_lea.hbm %s429_s1, 1024 }
   0x2   :  { %s17_s13 = sshll.u32 %s343_s12, 4  ;;  %p296_p0 = scmp.ne.s32.totalorder %s429_s1, %s295_s16  ;;  %s18_s13 = int_to_ptr.vmem [resolvable:$true] %s17_s13 }
   0x3   :  { %p299_p1 = scmp.lt.u32.totalorder %s295_s16, %s429_s1 }
   0x5   :  { %p301_p2 = pnand %p299_p1, %p296_p0 }
   0x7   :  { %304 = shalt.err (!%p301_p2)
}
   0x8   :  { %s305_s21 = scalar_lea.vmem %s18_s13, 1024  ;;  %p310_p4 = scmp.lt.s32.totalorder %s18_s13, %s18_s13 }
   0x9   :  { %p306_p3 = scmp.ne.s32.totalorder %s18_s13, %s305_s21  ;;  %p311_p5 = scmp.lt.s32.totalorder %s305_s21, %s305_s21 }
   0xb   :  { %p312_p6 = por %p311_p5, %p310_p4 }
   0xd   :  { %p313_p7 = pnand %p312_p6, %p306_p3 }
   0xf   :  { %316 = shalt.err (!%p313_p7)
}
  0x10   :  { %s344_s22 = smov 128   ;;  %s345_s23 = smov 8  }
  0x11   :  { %23 = dma.hbm_to_vmem [thread:$0]  %s429_s1, 1024, %s18_s13, [#allocation4], %s344_s22, %s344_s22, %s345_s23  }
  0x12   :  { %s346_s26 = smov [#allocation5]   ;;  %s317_s30 = scalar_lea.hbm %s430_s2, 32 }
  0x13   :  { %s30_s27 = sshll.u32 %s346_s26, 4  ;;  %p318_p8 = scmp.ne.s32.totalorder %s430_s2, %s317_s30  ;;  %s31_s27 = int_to_ptr.vmem [resolvable:$true] %s30_s27 }
  0x14   :  { %p321_p9 = scmp.lt.u32.totalorder %s317_s30, %s430_s2 }
  0x16   :  { %p323_p10 = pnand %p321_p9, %p318_p8 }
  0x18   :  { %326 = shalt.err (!%p323_p10)
}
  0x19   :  { %s327_s8 = scalar_lea.vmem %s31_s27, 32  ;;  %p332_p12 = scmp.lt.s32.totalorder %s31_s27, %s31_s27 }
  0x1a   :  { %p328_p11 = scmp.ne.s32.totalorder %s31_s27, %s327_s8  ;;  %p333_p13 = scmp.lt.s32.totalorder %s327_s8, %s327_s8 }
  0x1c   :  { %p334_p0 = por %p333_p13, %p332_p12 }
  0x1e   :  { %p335_p1 = pnand %p334_p0, %p328_p11 }
  0x20   :  { %338 = shalt.err (!%p335_p1)
}
  0x21   :  { %33 = dma.hbm_to_vmem [thread:$0]  %s430_s2, 32, %s31_s27, [#allocation6]  }
  0x22   :  { %339 = dma.done.wait [#allocation4], 1024  }
  0x23   :  { %340 = vsyncadd [#allocation4], 4294966272 }
  0x24   :  { %341 = dma.done.wait [#allocation6], 32  }
  0x25   :  { %342 = vsyncadd [#allocation6], 4294967264  ;;  %v347_v0 = vmov 0   ;;  %v267_v1 = vld [vmem:[#allocation3 + $0x4] ss:$8 sps:$4 sm:$0xff]   ;;  %v63_v11 = vld [vmem:[%s428_s0 + $0x10] sm:$0xff]  ;;  %v204_v15 = vlaneseq }
  0x26   :  { %154 = vmatprep.mubr.bf16.mxu0 %v347_v0  ;;  %164 = vmatprep.mubr.bf16.mxu1 %v347_v0  ;;  %v269_v2 = vld [vmem:[#allocation3] ss:$8 sps:$4 sm:$0xff]   ;;  %v270_v3 = vld [vmem:[#allocation3 + $0x14] ss:$8 sps:$4 sm:$0xff]   ;;  %v272_v4 = vld [vmem:[#allocation3 + $0x10] ss:$8 sps:$4 sm:$0xff]  }
  0x27   :  { %122 = vmatprep.subr.bf16.mxu0 %v267_v1  ;;  %254 = vmatprep.subr.bf16.mxu1 %v267_v1  ;;  %v273_v5 = vld [vmem:[#allocation3 + $0x24] ss:$8 sps:$4 sm:$0xff]   ;;  %v275_v6 = vld [vmem:[#allocation3 + $0x20] ss:$8 sps:$4 sm:$0xff]   ;;  %v276_v7 = vld [vmem:[#allocation3 + $0x34] ss:$8 sps:$4 sm:$0xff]  }
  0x28   :  { %123 = vmatpush1.bf16.msra.mxu0 %v269_v2  ;;  %258 = vmatpush1.bf16.msra.mxu1 %v269_v2  ;;  %v278_v8 = vld [vmem:[#allocation3 + $0x30] ss:$8 sps:$4 sm:$0xff]   ;;  %v61_v9 = vld [vmem:[%s428_s0] sm:$0xff]  ;;  %v62_v10 = vld [vmem:[%s428_s0 + $0x8] sm:$0xff]  ;;  %vm115_vm0 = vcmask 523264   ;;  %v205_v16 = vshrl.u32 %v204_v15, 7 }
  0x29   :  { %124 = vmatprep.subr.bf16.mxu0 %v270_v3  ;;  %255 = vmatprep.subr.bf16.mxu1 %v270_v3  ;;  %v64_v12 = vld [vmem:[%s428_s0 + $0x18] sm:$0xff]  ;;  %v65_v13 = vpack.c.bf16 %v62_v10, %v61_v9  ;;  %v202_v18 = vld [vmem:[#allocation5] sm:$0x3] }
  0x2a   :  { %v66_v14 = vpack.c.bf16 %v64_v12, %v63_v11  ;;  %v206_v17 = vsub.s32 0, %v205_v16  ;;  %v210_v19 = vsub.s32 1, %v205_v16 }
  0x2c   :  { %125 = vmatpush1.bf16.msra.mxu0 %v272_v4  ;;  %259 = vmatpush1.bf16.msra.mxu1 %v272_v4  ;;  %v207_v20 = vrot.slane %v202_v18, %v206_v17  ;;  %v211_v21 = vrot.slane %v202_v18, %v210_v19 }
  0x2d   :  { %126 = vmatprep.subr.bf16.mxu0 %v273_v5  ;;  %256 = vmatprep.subr.bf16.mxu1 %v273_v5 }
  0x30   :  { %127 = vmatpush1.bf16.msra.mxu0 %v275_v6  ;;  %260 = vmatpush1.bf16.msra.mxu1 %v275_v6 }
  0x31   :  { %128 = vmatprep.subr.bf16.mxu0 %v276_v7  ;;  %257 = vmatprep.subr.bf16.mxu1 %v276_v7 }
  0x34   :  { %129 = vmatpush1.bf16.msra.mxu0 %v278_v8  ;;  %261 = vmatpush1.bf16.msra.mxu1 %v278_v8 }
  0x37   :  { %252 = vmatmul.mubr.msk.bf16.vlgmr.msra.gmra.mrb[0].mxu0 %vm115_vm0, %v65_v13  ;;  %253 = vmatmul.mubr.msk.bf16.vlgmr.msra.gmra.mrb[0].mxu1 %vm115_vm0, %v66_v14 }
 0x10a   :  { %v156_v22 = vpop.f32.mrb[0].mxu0  ;;  %v166_v23 = vpop.f32.mrb[0].mxu1 }
 0x10b   :  { %v214_v24 = vadd.f32 %v207_v20, %v156_v22  ;;  %v218_v25 = vadd.f32 %v207_v20, %v166_v23  ;;  %v158_v26 = vpop.f32.mrb[1].mxu0  ;;  %v168_v27 = vpop.f32.mrb[1].mxu1 }
 0x10c   :  { %v215_v28 = vadd.f32 %v211_v21, %v158_v26  ;;  %v219_v29 = vadd.f32 %v211_v21, %v168_v27  ;;  %v160_v30 = vpop.f32.mrb[2].mxu0  ;;  %v170_v31 = vpop.f32.mrb[2].mxu1 }
 0x10d   :  { %279 = vtanh.f32 %v214_v24  ;;  %v216_v32 = vadd.f32 %v207_v20, %v160_v30  ;;  %v162_v33 = vpop.f32.mrb[3].mxu0  ;;  %v172_v34 = vpop.f32.mrb[3].mxu1  ;;  %v220_v35 = vadd.f32 %v207_v20, %v170_v31 }
 0x10e   :  { %281 = vtanh.f32 %v218_v25  ;;  %v217_v36 = vadd.f32 %v211_v21, %v162_v33  ;;  %v221_v37 = vadd.f32 %v211_v21, %v172_v34 }
 0x10f   :  { %283 = vtanh.f32 %v215_v28 }
 0x110   :  { %285 = vtanh.f32 %v219_v29 }
 0x111   :  { %287 = vtanh.f32 %v216_v32 }
 0x112   :  { %289 = vtanh.f32 %v220_v35 }
 0x113   :  { %291 = vtanh.f32 %v217_v36 }
 0x114   :  { %293 = vtanh.f32 %v221_v37 }
 0x117   :  { %v280_v38 = vpop.eup %279 }
 0x118   :  { %v282_v39 = vpop.eup %281  ;;  %230 = vst [vmem:[%s431_s3] sm:$0xff] %v280_v38 }
 0x119   :  { %v284_v40 = vpop.eup %283  ;;  %234 = vst [vmem:[%s431_s3 + $0x20] sm:$0xff] %v282_v39 }
 0x11a   :  { %v286_v41 = vpop.eup %285  ;;  %231 = vst [vmem:[%s431_s3 + $0x8] sm:$0xff] %v284_v40 }
 0x11b   :  { %v288_v42 = vpop.eup %287  ;;  %235 = vst [vmem:[%s431_s3 + $0x28] sm:$0xff] %v286_v41 }
 0x11c   :  { %v290_v43 = vpop.eup %289  ;;  %232 = vst [vmem:[%s431_s3 + $0x10] sm:$0xff] %v288_v42 }
 0x11d   :  { %v292_v44 = vpop.eup %291  ;;  %236 = vst [vmem:[%s431_s3 + $0x30] sm:$0xff] %v290_v43 }
 0x11e   :  { %v294_v45 = vpop.eup %293  ;;  %233 = vst [vmem:[%s431_s3 + $0x18] sm:$0xff] %v292_v44 }
 0x11f   :  { %237 = vst [vmem:[%s431_s3 + $0x38] sm:$0xff] %v294_v45 }
 0x120   :  { %242 = vsyncpa [#allocation4], 1 }
 0x121   :  { %243 = vsyncpa [#allocation6], 1 }

// kernel: _lambda_.13
= control target key start
LH: loop header
LB: loop body
LE: loop exit
PB: predicated region body
PF: predicated region fallthrough
CT: control target
= control target key end

     0   :  { %11 = vsyncpa [#allocation4], 0  ;;  %s930_s0 = inlined_call_operand.vmem [shape: f32[32,256], index: 0, kind: input, shape index: {}]   ;;  %s931_s1 = inlined_call_operand.hbm [shape: bf16[256,256], index: 1, kind: input, shape index: {}]   ;;  %s932_s2 = inlined_call_operand.hbm [shape: f32[1,256], index: 2, kind: input, shape index: {}]   ;;  %s933_s3 = inlined_call_operand.vmem [shape: f32[32,256], index: 3, kind: input, shape index: {}]   ;;  %s934_s4 = inlined_call_operand.hbm [shape: f32[1,256], index: 4, kind: input, shape index: {}]   ;;  %s935_s5 = inlined_call_operand.hbm [shape: f32[1,256], index: 5, kind: input, shape index: {}]   ;;  %s936_s6 = inlined_call_operand.vmem [shape: f32[32,256], index: 6, kind: output, shape index: {}]  }
   0x1   :  { %12 = vsyncpa [#allocation6], 0 }
   0x2   :  { %13 = vsyncpa [#allocation9], 0  ;;  %s752_s21 = smov [#allocation5]   ;;  %s753_s23 = smov [#allocation3]  }
   0x3   :  { %s34_s22 = sshll.u32 %s752_s21, 4  ;;  %s21_s24 = sshll.u32 %s753_s23, 4  ;;  %s35_s22 = int_to_ptr.vmem [resolvable:$true] %s34_s22  ;;  %s793_s24 = int_to_ptr.vmem [resolvable:$true] %s21_s24 }
   0x4   :  { %s658_s27 = scalar_lea.hbm %s932_s2, 32 }
   0x5   :  { %p659_p0 = scmp.ne.s32.totalorder %s932_s2, %s658_s27  ;;  %p662_p1 = scmp.lt.u32.totalorder %s658_s27, %s932_s2 }
   0x7   :  { %p664_p2 = pnand %p662_p1, %p659_p0 }
   0x9   :  { %667 = shalt.err (!%p664_p2)
}
   0xa   :  { %s668_s8 = scalar_lea.vmem %s35_s22, 32  ;;  %p673_p4 = scmp.lt.s32.totalorder %s35_s22, %s35_s22 }
   0xb   :  { %p669_p3 = scmp.ne.s32.totalorder %s35_s22, %s668_s8  ;;  %p674_p5 = scmp.lt.s32.totalorder %s668_s8, %s668_s8 }
   0xd   :  { %p675_p6 = por %p674_p5, %p673_p4 }
   0xf   :  { %p676_p7 = pnand %p675_p6, %p669_p3 }
  0x11   :  { %679 = shalt.err (!%p676_p7)
}
  0x12   :  { %37 = dma.hbm_to_vmem [thread:$0]  %s932_s2, 32, %s35_s22, [#allocation6]  }
  0x13   :  { %s680_s13 = scalar_lea.hbm %s931_s1, 4096 }
  0x14   :  { %p681_p8 = scmp.ne.s32.totalorder %s931_s1, %s680_s13  ;;  %p684_p9 = scmp.lt.u32.totalorder %s680_s13, %s931_s1 }
  0x16   :  { %p686_p10 = pnand %p684_p9, %p681_p8 }
  0x18   :  { %689 = shalt.err (!%p686_p10)
}
  0x19   :  { %s690_s18 = scalar_lea.vmem %s793_s24, 4096  ;;  %p695_p12 = scmp.lt.s32.totalorder %s793_s24, %s793_s24 }
  0x1a   :  { %p691_p11 = scmp.ne.s32.totalorder %s793_s24, %s690_s18  ;;  %p696_p13 = scmp.lt.s32.totalorder %s690_s18, %s690_s18 }
  0x1c   :  { %p697_p0 = por %p696_p13, %p695_p12 }
  0x1e   :  { %p698_p1 = pnand %p697_p0, %p691_p11 }
  0x20   :  { %701 = shalt.err (!%p698_p1)
}
  0x21   :  { %s754_s2 = smov 128   ;;  %s755_s19 = smov 8  }
  0x22   :  { %27 = dma.hbm_to_vmem [thread:$0]  %s931_s1, 4096, %s793_s24, [#allocation4], %s754_s2, %s754_s2, %s755_s19  }
  0x23   :  { %s756_s22 = smov [#allocation7]   ;;  %s757_s25 = smov [#allocation8]  }
  0x24   :  { %s46_s23 = sshll.u32 %s756_s22, 4  ;;  %s56_s26 = sshll.u32 %s757_s25, 4  ;;  %s47_s23 = int_to_ptr.vmem [resolvable:$true] %s46_s23  ;;  %s57_s26 = int_to_ptr.vmem [resolvable:$true] %s56_s26 }
  0x25   :  { %s702_s29 = scalar_lea.hbm %s934_s4, 32 }
  0x26   :  { %p703_p2 = scmp.ne.s32.totalorder %s934_s4, %s702_s29  ;;  %p706_p3 = scmp.lt.u32.totalorder %s702_s29, %s934_s4 }
  0x28   :  { %p708_p4 = pnand %p706_p3, %p703_p2 }
  0x2a   :  { %711 = shalt.err (!%p708_p4)
}
  0x2b   :  { %s712_s1 = scalar_lea.vmem %s47_s23, 32  ;;  %p717_p6 = scmp.lt.s32.totalorder %s47_s23, %s47_s23 }
  0x2c   :  { %p713_p5 = scmp.ne.s32.totalorder %s47_s23, %s712_s1  ;;  %p718_p7 = scmp.lt.s32.totalorder %s712_s1, %s712_s1 }
  0x2e   :  { %p719_p8 = por %p718_p7, %p717_p6 }
  0x30   :  { %p720_p9 = pnand %p719_p8, %p713_p5 }
  0x32   :  { %723 = shalt.err (!%p720_p9)
}
  0x33   :  { %49 = dma.hbm_to_vmem [thread:$0]  %s934_s4, 32, %s47_s23, [#allocation6]  }
  0x34   :  { %s724_s13 = scalar_lea.hbm %s935_s5, 32 }
  0x35   :  { %p725_p10 = scmp.ne.s32.totalorder %s935_s5, %s724_s13  ;;  %p728_p11 = scmp.lt.u32.totalorder %s724_s13, %s935_s5 }
  0x37   :  { %p730_p12 = pnand %p728_p11, %p725_p10 }
  0x39   :  { %733 = shalt.err (!%p730_p12)
}
  0x3a   :  { %s734_s18 = scalar_lea.vmem %s57_s26, 32  ;;  %p739_p0 = scmp.lt.s32.totalorder %s57_s26, %s57_s26 }
  0x3b   :  { %p735_p13 = scmp.ne.s32.totalorder %s57_s26, %s734_s18  ;;  %p740_p1 = scmp.lt.s32.totalorder %s734_s18, %s734_s18 }
  0x3d   :  { %p741_p2 = por %p740_p1, %p739_p0 }
  0x3f   :  { %p742_p3 = pnand %p741_p2, %p735_p13 }
  0x41   :  { %745 = shalt.err (!%p742_p3)
}
  0x42   :  { %59 = dma.hbm_to_vmem [thread:$0]  %s935_s5, 32, %s57_s26, [#allocation9]  }
  0x43   :  { %746 = dma.done.wait [#allocation4], 4096  }
  0x44   :  { %747 = vsyncadd [#allocation4], 4294963200 }
  0x45   :  { %748 = dma.done.wait [#allocation6], 64  }
  0x46   :  { %749 = vsyncadd [#allocation6], 4294967232 }
  0x47   :  { %750 = dma.done.wait [#allocation9], 32  }
  0x48   :  { %751 = vsyncadd [#allocation9], 4294967264  ;;  %v602_v0 = vld [vmem:[#allocation3 + $0x4] ss:$8 sps:$4 sm:$0xff]   ;;  %v604_v1 = vld [vmem:[#allocation3] ss:$8 sps:$4 sm:$0xff]   ;;  %v378_v44 = vlaneseq }
  0x49   :  { %296 = vmatprep.subr.bf16.mxu0 %v602_v0  ;;  %564 = vmatprep.subr.bf16.mxu1 %v602_v0  ;;  %v605_v2 = vld [vmem:[#allocation3 + $0x14] ss:$8 sps:$4 sm:$0xff]   ;;  %v607_v3 = vld [vmem:[#allocation3 + $0x10] ss:$8 sps:$4 sm:$0xff]   ;;  %v608_v4 = vld [vmem:[#allocation3 + $0x24] ss:$8 sps:$4 sm:$0xff]  }
  0x4a   :  { %297 = vmatpush1.bf16.msra.mxu0 %v604_v1  ;;  %580 = vmatpush1.bf16.msra.mxu1 %v604_v1  ;;  %v610_v5 = vld [vmem:[#allocation3 + $0x20] ss:$8 sps:$4 sm:$0xff]   ;;  %v611_v6 = vld [vmem:[#allocation3 + $0x34] ss:$8 sps:$4 sm:$0xff]   ;;  %v613_v7 = vld [vmem:[#allocation3 + $0x30] ss:$8 sps:$4 sm:$0xff]  }
  0x4b   :  { %298 = vmatprep.subr.bf16.mxu0 %v605_v2  ;;  %565 = vmatprep.subr.bf16.mxu1 %v605_v2  ;;  %v614_v8 = vld [vmem:[#allocation3 + $0x44] ss:$8 sps:$4 sm:$0xff]   ;;  %v616_v9 = vld [vmem:[#allocation3 + $0x40] ss:$8 sps:$4 sm:$0xff]   ;;  %v617_v10 = vld [vmem:[#allocation3 + $0x54] ss:$8 sps:$4 sm:$0xff]  }
  0x4c   :  { %v619_v11 = vld [vmem:[#allocation3 + $0x50] ss:$8 sps:$4 sm:$0xff]   ;;  %v620_v12 = vld [vmem:[#allocation3 + $0x64] ss:$8 sps:$4 sm:$0xff]   ;;  %v622_v18 = vld [vmem:[#allocation3 + $0x60] ss:$8 sps:$4 sm:$0xff]  }
  0x4d   :  { %v93_v13 = vld [vmem:[%s930_s0 + $0x8] sm:$0xff]  ;;  %v95_v14 = vld [vmem:[%s930_s0 + $0x18] sm:$0xff]  ;;  %v92_v38 = vld [vmem:[%s930_s0] sm:$0xff]  ;;  %v379_v45 = vshrl.u32 %v378_v44, 7 }
  0x4e   :  { %299 = vmatpush1.bf16.msra.mxu0 %v607_v3  ;;  %581 = vmatpush1.bf16.msra.mxu1 %v607_v3  ;;  %v101_v15 = vpack.c.bf16 %v95_v14, %v93_v13  ;;  %v97_v16 = vld [vmem:[%s930_s0 + $0x28] sm:$0xff]  ;;  %v99_v17 = vld [vmem:[%s930_s0 + $0x38] sm:$0xff]  ;;  %v94_v39 = vld [vmem:[%s930_s0 + $0x10] sm:$0xff] }
  0x4f   :  { %300 = vmatprep.subr.bf16.mxu0 %v608_v4  ;;  %566 = vmatprep.subr.bf16.mxu1 %v608_v4  ;;  %v103_v19 = vpack.c.bf16 %v99_v17, %v97_v16  ;;  %v623_v20 = vld [vmem:[#allocation3 + $0x74] ss:$8 sps:$4 sm:$0xff]   ;;  %v625_v21 = vld [vmem:[#allocation3 + $0x70] ss:$8 sps:$4 sm:$0xff]   ;;  %v626_v22 = vld [vmem:[#allocation3 + $0x84] ss:$8 sps:$4 sm:$0xff]   ;;  %v100_v42 = vpack.c.bf16 %v94_v39, %v92_v38 }
  0x50   :  { %328 = vmatprep.mubr.bf16.mxu0 %v101_v15  ;;  %v628_v23 = vld [vmem:[#allocation3 + $0x80] ss:$8 sps:$4 sm:$0xff]   ;;  %v629_v24 = vld [vmem:[#allocation3 + $0x94] ss:$8 sps:$4 sm:$0xff]   ;;  %v631_v25 = vld [vmem:[#allocation3 + $0x90] ss:$8 sps:$4 sm:$0xff]  }
  0x51   :  { %338 = vmatprep.mubr.bf16.mxu1 %v103_v19  ;;  %v632_v26 = vld [vmem:[#allocation3 + $0xa4] ss:$8 sps:$4 sm:$0xff]   ;;  %v634_v27 = vld [vmem:[#allocation3 + $0xa0] ss:$8 sps:$4 sm:$0xff]   ;;  %v635_v28 = vld [vmem:[#allocation3 + $0xb4] ss:$8 sps:$4 sm:$0xff]  }
  0x52   :  { %301 = vmatpush1.bf16.msra.mxu0 %v610_v5  ;;  %582 = vmatpush1.bf16.msra.mxu1 %v610_v5  ;;  %v637_v29 = vld [vmem:[#allocation3 + $0xb0] ss:$8 sps:$4 sm:$0xff]   ;;  %v638_v30 = vld [vmem:[#allocation3 + $0xc4] ss:$8 sps:$4 sm:$0xff]   ;;  %v640_v31 = vld [vmem:[#allocation3 + $0xc0] ss:$8 sps:$4 sm:$0xff]  }
  0x53   :  { %302 = vmatprep.subr.bf16.mxu0 %v611_v6  ;;  %567 = vmatprep.subr.bf16.mxu1 %v611_v6  ;;  %v641_v32 = vld [vmem:[#allocation3 + $0xd4] ss:$8 sps:$4 sm:$0xff]   ;;  %v643_v33 = vld [vmem:[#allocation3 + $0xd0] ss:$8 sps:$4 sm:$0xff]   ;;  %v644_v34 = vld [vmem:[#allocation3 + $0xe4] ss:$8 sps:$4 sm:$0xff]  }
  0x54   :  { %v646_v35 = vld [vmem:[#allocation3 + $0xe0] ss:$8 sps:$4 sm:$0xff]   ;;  %v647_v36 = vld [vmem:[#allocation3 + $0xf4] ss:$8 sps:$4 sm:$0xff]   ;;  %v649_v37 = vld [vmem:[#allocation3 + $0xf0] ss:$8 sps:$4 sm:$0xff]  }
  0x55   :  { %v96_v40 = vld [vmem:[%s930_s0 + $0x20] sm:$0xff]  ;;  %v98_v41 = vld [vmem:[%s930_s0 + $0x30] sm:$0xff]  ;;  %v872_v46 = vsub.s32 0, %v379_v45  ;;  %v874_v48 = vsub.s32 1, %v379_v45  ;;  %v401_v59 = vld [vmem:[%s933_s3 + $0x28] sm:$0xff] }
  0x56   :  { %303 = vmatpush1.bf16.msra.mxu0 %v613_v7  ;;  %583 = vmatpush1.bf16.msra.mxu1 %v613_v7  ;;  %v102_v43 = vpack.c.bf16 %v98_v41, %v96_v40  ;;  %v376_v47 = vld [vmem:[#allocation5] sm:$0x3]  ;;  %v397_v60 = vld [vmem:[%s933_s3 + $0x8] sm:$0xff]  ;;  %v398_v0 = vld [vmem:[%s933_s3 + $0x10] sm:$0xff] }
  0x57   :  { %304 = vmatprep.subr.bf16.mxu0 %v614_v8  ;;  %568 = vmatprep.subr.bf16.mxu1 %v614_v8  ;;  %v381_v49 = vrot.slane %v376_v47, %v872_v46  ;;  %v385_v50 = vrot.slane %v376_v47, %v874_v48  ;;  %v400_v53 = vld [vmem:[%s933_s3 + $0x20] sm:$0xff]  ;;  %v402_v2 = vld [vmem:[%s933_s3 + $0x30] sm:$0xff]  ;;  %v399_v5 = vld [vmem:[%s933_s3 + $0x18] sm:$0xff] }
  0x58   :  { %v396_v54 = vld [vmem:[%s933_s3] sm:$0xff]  ;;  %v403_v8 = vld [vmem:[%s933_s3 + $0x38] sm:$0xff] }
  0x5a   :  { %305 = vmatpush1.bf16.msra.mxu0 %v616_v9  ;;  %584 = vmatpush1.bf16.msra.mxu1 %v616_v9 }
  0x5b   :  { %306 = vmatprep.subr.bf16.mxu0 %v617_v10  ;;  %569 = vmatprep.subr.bf16.mxu1 %v617_v10 }
  0x5e   :  { %307 = vmatpush1.bf16.msra.mxu0 %v619_v11  ;;  %585 = vmatpush1.bf16.msra.mxu1 %v619_v11 }
  0x5f   :  { %308 = vmatprep.subr.bf16.mxu0 %v620_v12  ;;  %570 = vmatprep.subr.bf16.mxu1 %v620_v12 }
  0x62   :  { %309 = vmatpush1.bf16.msra.mxu0 %v622_v18  ;;  %586 = vmatpush1.bf16.msra.mxu1 %v622_v18 }
  0x63   :  { %310 = vmatprep.subr.bf16.mxu0 %v623_v20  ;;  %571 = vmatprep.subr.bf16.mxu1 %v623_v20 }
  0x66   :  { %311 = vmatpush1.bf16.msra.mxu0 %v625_v21  ;;  %587 = vmatpush1.bf16.msra.mxu1 %v625_v21 }
  0x67   :  { %312 = vmatprep.subr.bf16.mxu0 %v626_v22  ;;  %572 = vmatprep.subr.bf16.mxu1 %v626_v22 }
  0x6a   :  { %313 = vmatpush1.bf16.msra.mxu0 %v628_v23  ;;  %588 = vmatpush1.bf16.msra.mxu1 %v628_v23 }
  0x6b   :  { %314 = vmatprep.subr.bf16.mxu0 %v629_v24  ;;  %573 = vmatprep.subr.bf16.mxu1 %v629_v24 }
  0x6e   :  { %315 = vmatpush1.bf16.msra.mxu0 %v631_v25  ;;  %589 = vmatpush1.bf16.msra.mxu1 %v631_v25 }
  0x6f   :  { %316 = vmatprep.subr.bf16.mxu0 %v632_v26  ;;  %574 = vmatprep.subr.bf16.mxu1 %v632_v26 }
  0x72   :  { %317 = vmatpush1.bf16.msra.mxu0 %v634_v27  ;;  %590 = vmatpush1.bf16.msra.mxu1 %v634_v27 }
  0x73   :  { %318 = vmatprep.subr.bf16.mxu0 %v635_v28  ;;  %575 = vmatprep.subr.bf16.mxu1 %v635_v28 }
  0x76   :  { %319 = vmatpush1.bf16.msra.mxu0 %v637_v29  ;;  %591 = vmatpush1.bf16.msra.mxu1 %v637_v29 }
  0x77   :  { %320 = vmatprep.subr.bf16.mxu0 %v638_v30  ;;  %576 = vmatprep.subr.bf16.mxu1 %v638_v30 }
  0x7a   :  { %321 = vmatpush1.bf16.msra.mxu0 %v640_v31  ;;  %592 = vmatpush1.bf16.msra.mxu1 %v640_v31 }
  0x7b   :  { %322 = vmatprep.subr.bf16.mxu0 %v641_v32  ;;  %577 = vmatprep.subr.bf16.mxu1 %v641_v32 }
  0x7e   :  { %323 = vmatpush1.bf16.msra.mxu0 %v643_v33  ;;  %593 = vmatpush1.bf16.msra.mxu1 %v643_v33 }
  0x7f   :  { %324 = vmatprep.subr.bf16.mxu0 %v644_v34  ;;  %578 = vmatprep.subr.bf16.mxu1 %v644_v34 }
  0x82   :  { %325 = vmatpush1.bf16.msra.mxu0 %v646_v35  ;;  %594 = vmatpush1.bf16.msra.mxu1 %v646_v35 }
  0x83   :  { %326 = vmatprep.subr.bf16.mxu0 %v647_v36  ;;  %579 = vmatprep.subr.bf16.mxu1 %v647_v36 }
  0x86   :  { %327 = vmatpush1.bf16.msra.mxu0 %v649_v37  ;;  %595 = vmatpush1.bf16.msra.mxu1 %v649_v37 }
  0x89   :  { %329 = vmatmul.mubr.bf16.vlgmr.msra.gmra.mrb[0].mxu0 %v100_v42  ;;  %339 = vmatmul.mubr.bf16.vlgmr.msra.gmra.mrb[0].mxu1 %v102_v43 }
 0x15c   :  { %v330_v51 = vpop.f32.mrb[0].mxu0  ;;  %v340_v52 = vpop.f32.mrb[0].mxu1 }
 0x15d   :  { %v388_v55 = vadd.f32 %v381_v49, %v330_v51  ;;  %v392_v56 = vadd.f32 %v381_v49, %v340_v52  ;;  %v332_v57 = vpop.f32.mrb[1].mxu0  ;;  %v342_v58 = vpop.f32.mrb[1].mxu1 }
 0x15e   :  { %v389_v61 = vadd.f32 %v385_v50, %v332_v57  ;;  %v393_v62 = vadd.f32 %v385_v50, %v342_v58  ;;  %v334_v63 = vpop.f32.mrb[2].mxu0  ;;  %v344_v1 = vpop.f32.mrb[2].mxu1 }
 0x15f   :  { %v390_v3 = vadd.f32 %v381_v49, %v334_v63  ;;  %v336_v4 = vpop.f32.mrb[3].mxu0  ;;  %v394_v6 = vadd.f32 %v381_v49, %v344_v1  ;;  %v346_v7 = vpop.f32.mrb[3].mxu1  ;;  %v408_v9 = vadd.f32 %v400_v53, %v392_v56  ;;  %v404_v10 = vadd.f32 %v396_v54, %v388_v55  ;;  %v412_v1 = vld [vmem:[#allocation7] sm:$0x3] }
 0x160   :  { %v391_v11 = vadd.f32 %v385_v50, %v336_v4  ;;  %v395_v12 = vadd.f32 %v385_v50, %v346_v7  ;;  %v409_v13 = vadd.f32 %v401_v59, %v393_v62  ;;  %v405_v14 = vadd.f32 %v397_v60, %v389_v61 }
 0x161   :  { %v406_v15 = vadd.f32 %v398_v0, %v390_v3  ;;  %v410_v16 = vadd.f32 %v402_v2, %v394_v6  ;;  %v413_v2 = vld [vmem:[#allocation8] sm:$0x3]  ;;  %v483_v3 = vrot.slane %v412_v1, %v872_v46  ;;  %v487_v4 = vrot.slane %v412_v1, %v874_v48 }
 0x162   :  { %v407_v17 = vadd.f32 %v399_v5, %v391_v11  ;;  %v411_v18 = vadd.f32 %v403_v8, %v395_v12  ;;  %v420_v19 = vadd.f32 %v409_v13, %v408_v9  ;;  %v414_v20 = vadd.f32 %v405_v14, %v404_v10 }
 0x163   :  { %v502_v6 = vrot.slane %v413_v2, %v872_v46  ;;  %v506_v7 = vrot.slane %v413_v2, %v874_v48 }
 0x164   :  { %421 = vadd.xlane.f32.xlu1 %v420_v19  ;;  %415 = vadd.xlane.f32.xlu0 %v414_v20  ;;  %v423_v21 = vadd.f32 %v411_v18, %v410_v16  ;;  %v417_v22 = vadd.f32 %v407_v17, %v406_v15 }
 0x168   :  { %424 = vadd.xlane.f32.xlu1 %v423_v21  ;;  %418 = vadd.xlane.f32.xlu0 %v417_v22 }
 0x1f1   :  { %v422_v23 = vpop.xlane.xlu1 %421  ;;  %v416_v24 = vpop.xlane.xlu0 %415 }
 0x1f2   :  { %v429_v25 = vmul.f32 0.00390625, %v422_v23  ;;  %v427_v26 = vmul.f32 0.00390625, %v416_v24 }
 0x1f4   :  { %v431_v27 = vsub.f32 %v404_v10, %v427_v26  ;;  %v432_v28 = vsub.f32 %v405_v14, %v427_v26  ;;  %v435_v29 = vsub.f32 %v408_v9, %v429_v25  ;;  %v436_v30 = vsub.f32 %v409_v13, %v429_v25 }
 0x1f5   :  { %v425_v31 = vpop.xlane.xlu1 %424  ;;  %v419_v32 = vpop.xlane.xlu0 %418 }
 0x1f6   :  { %v430_v33 = vmul.f32 0.00390625, %v425_v31  ;;  %v428_v34 = vmul.f32 0.00390625, %v419_v32  ;;  %v439_v35 = vmul.f32 %v431_v27, %v431_v27  ;;  %v440_v36 = vmul.f32 %v432_v28, %v432_v28 }
 0x1f7   :  { %v443_v42 = vmul.f32 %v435_v29, %v435_v29  ;;  %v444_v43 = vmul.f32 %v436_v30, %v436_v30 }
 0x1f8   :  { %v437_v37 = vsub.f32 %v410_v16, %v430_v33  ;;  %v438_v38 = vsub.f32 %v411_v18, %v430_v33  ;;  %v433_v39 = vsub.f32 %v406_v15, %v428_v34  ;;  %v434_v40 = vsub.f32 %v407_v17, %v428_v34 }
 0x1f9   :  { %v447_v41 = vadd.f32 %v440_v36, %v439_v35  ;;  %v453_v51 = vadd.f32 %v444_v43, %v443_v42 }
 0x1fa   :  { %v441_v44 = vmul.f32 %v433_v39, %v433_v39  ;;  %v442_v45 = vmul.f32 %v434_v40, %v434_v40  ;;  %v445_v49 = vmul.f32 %v437_v37, %v437_v37  ;;  %v446_v50 = vmul.f32 %v438_v38, %v438_v38 }
 0x1fb   :  { %448 = vadd.xlane.f32.xlu0 %v447_v41 }
 0x1fc   :  { %v450_v47 = vadd.f32 %v442_v45, %v441_v44  ;;  %v456_v52 = vadd.f32 %v446_v50, %v445_v49 }
 0x1fe   :  { %451 = vadd.xlane.f32.xlu1 %v450_v47 }
 0x1ff   :  { %454 = vadd.xlane.f32.xlu0 %v453_v51 }
 0x202   :  { %457 = vadd.xlane.f32.xlu1 %v456_v52 }
 0x288   :  { %v449_v53 = vpop.xlane.xlu0 %448 }
 0x289   :  { %v459_v54 = vmul.f32 0.00390625, %v449_v53 }
 0x28b   :  { %v463_v55 = vadd.f32 1e-12, %v459_v54  ;;  %v452_v56 = vpop.xlane.xlu1 %451 }
 0x28c   :  { %v460_v57 = vmul.f32 0.00390625, %v452_v56  ;;  %v455_v58 = vpop.xlane.xlu0 %454 }
 0x28d   :  { %650 = vrsqrt.f32 %v463_v55  ;;  %v461_v59 = vmul.f32 0.00390625, %v455_v58 }
 0x28e   :  { %v464_v60 = vadd.f32 1e-12, %v460_v57 }
 0x28f   :  { %v465_v61 = vadd.f32 1e-12, %v461_v59  ;;  %v458_v62 = vpop.xlane.xlu1 %457 }
 0x290   :  { %652 = vrsqrt.f32 %v464_v60  ;;  %v462_v63 = vmul.f32 0.00390625, %v458_v62 }
 0x291   :  { %654 = vrsqrt.f32 %v465_v61 }
 0x292   :  { %v466_v0 = vadd.f32 1e-12, %v462_v63 }
 0x294   :  { %656 = vrsqrt.f32 %v466_v0 }
 0x297   :  { %v651_v5 = vpop.eup %650 }
 0x298   :  { %v471_v8 = vmul.f32 %v651_v5, %v431_v27  ;;  %v472_v9 = vmul.f32 %v651_v5, %v432_v28 }
 0x29a   :  { %v653_v10 = vpop.eup %652  ;;  %v490_v11 = vmul.f32 %v483_v3, %v471_v8  ;;  %v491_v12 = vmul.f32 %v487_v4, %v472_v9 }
 0x29b   :  { %v655_v13 = vpop.eup %654  ;;  %v473_v14 = vmul.f32 %v653_v10, %v433_v39  ;;  %v474_v15 = vmul.f32 %v653_v10, %v434_v40 }
 0x29c   :  { %v509_v16 = vadd.f32 %v502_v6, %v490_v11  ;;  %v510_v17 = vadd.f32 %v506_v7, %v491_v12  ;;  %v475_v18 = vmul.f32 %v655_v13, %v435_v29  ;;  %v476_v19 = vmul.f32 %v655_v13, %v436_v30 }
 0x29d   :  { %v492_v20 = vmul.f32 %v483_v3, %v473_v14  ;;  %v493_v21 = vmul.f32 %v487_v4, %v474_v15 }
 0x29e   :  { %v657_v22 = vpop.eup %656  ;;  %517 = vst [vmem:[%s936_s6] sm:$0xff] %v509_v16  ;;  %518 = vst [vmem:[%s936_s6 + $0x8] sm:$0xff] %v510_v17  ;;  %v494_v46 = vmul.f32 %v483_v3, %v475_v18  ;;  %v495_v48 = vmul.f32 %v487_v4, %v476_v19 }
 0x29f   :  { %v511_v23 = vadd.f32 %v502_v6, %v492_v20  ;;  %v512_v24 = vadd.f32 %v506_v7, %v493_v21  ;;  %v477_v25 = vmul.f32 %v657_v22, %v437_v37  ;;  %v478_v26 = vmul.f32 %v657_v22, %v438_v38 }
 0x2a0   :  { %v513_v27 = vadd.f32 %v502_v6, %v494_v46  ;;  %v514_v28 = vadd.f32 %v506_v7, %v495_v48 }
 0x2a1   :  { %519 = vst [vmem:[%s936_s6 + $0x10] sm:$0xff] %v511_v23  ;;  %520 = vst [vmem:[%s936_s6 + $0x18] sm:$0xff] %v512_v24  ;;  %v496_v29 = vmul.f32 %v483_v3, %v477_v25  ;;  %v497_v30 = vmul.f32 %v487_v4, %v478_v26 }
 0x2a2   :  { %521 = vst [vmem:[%s936_s6 + $0x20] sm:$0xff] %v513_v27  ;;  %522 = vst [vmem:[%s936_s6 + $0x28] sm:$0xff] %v514_v28 }
 0x2a3   :  { %v515_v31 = vadd.f32 %v502_v6, %v496_v29  ;;  %v516_v32 = vadd.f32 %v506_v7, %v497_v30 }
 0x2a5   :  { %523 = vst [vmem:[%s936_s6 + $0x30] sm:$0xff] %v515_v31  ;;  %524 = vst [vmem:[%s936_s6 + $0x38] sm:$0xff] %v516_v32 }
 0x2a6   :  { %529 = vsyncpa [#allocation4], 1 }
 0x2a7   :  { %530 = vsyncpa [#allocation6], 1 }
 0x2a8   :  { %531 = vsyncpa [#allocation9], 1 }

// kernel: _lambda_.14
= control target key start
LH: loop header
LB: loop body
LE: loop exit
PB: predicated region body
PF: predicated region fallthrough
CT: control target
= control target key end

     0   :  { %8 = vsyncpa [#allocation4], 0  ;;  %s1271_s0 = inlined_call_operand.vmem [shape: f32[32,256], index: 0, kind: input, shape index: {}]   ;;  %s1272_s1 = inlined_call_operand.hbm [shape: bf16[256,768], index: 1, kind: input, shape index: {}]   ;;  %s1273_s2 = inlined_call_operand.vmem [shape: f32[1,768], index: 2, kind: input, shape index: {}]   ;;  %s1274_s3 = inlined_call_operand.vmem [shape: f32[32,768], index: 3, kind: output, shape index: {}]  }
   0x1   :  { %10 = vsyncpa [#allocation4 + $0x1], 0  ;;  %s1055_s12 = smov 0   ;;  %s1057_s13 = smov 0  }
   0x2   :  { %s1059_s14 = smov 0   ;;  %s1061_s15 = smov 0  }
   0x3   :  { %s1063_s16 = smov 0   ;;  %s1065_s17 = smov 0  }
   0x4 LB: > { %s760_s18 = sadd.s32 4294967295, %s1029_s17   ;;  %s31_s19 = sadd.s32 1, %s1025_s16  ;;  %s1029_s17 = sphi %s1065_s17, %s16_s17   ;;  %s1025_s16 = sphi %s1063_s16, %s1285_s16   ;;  %s1021_s15 = sphi %s1061_s15, %s1284_s15   ;;  %s1017_s14 = sphi %s1059_s14, %s1283_s14   ;;  %s1013_s13 = sphi %s1057_s13, %s1282_s13   ;;  %s1009_s12 = sphi %s1055_s12, %s1281_s12  }
   0x5   : > { %p33_p0 = scmp.ge.s32.totalorder %s31_s19, 3  ;;  %s72_s20 = sadd.s32 1, %s1017_s14 }
   0x6   : > { %p79_p1 = scmp.ne.s32.totalorder %s1017_s14, %s1013_s13  ;;  %p80_p2 = scmp.eq.s32.totalorder %s1029_s17, 0 }
   0x7   : > { %s1287_s19 = smov (%p33_p0, %s31_s19), 0  ;;  %p85_p4 = scmp.ne.s32.totalorder %s1013_s13, %s1009_s12 }
   0x8   : > { %p1091_p3 = por %p80_p2, %p79_p1  ;;  %s68_s22 = ssub.s32 %s1025_s16, %s1287_s19 }
   0x9   : > { %p86_p5 = scmp.eq.s32.totalorder %s760_s18, 0  ;;  %p70_p6 = scmp.eq.s32.totalorder %s68_s22, 0 }
   0xa   : > { %p137_p7 = scmp.eq.s32.totalorder %s760_s18, 2  ;;  %p849_p10 = scmp.lt.s32.totalorder %s1029_s17, 3 }
   0xb   : > { %p1098_p8 = por %p86_p5, %p85_p4  ;;  %s178_s26 = sand.u32 1, %s1017_s14  }
   0xc   : > { %s1103_s24 = scalar_select %p70_p6, %s1017_s14, %s72_s20  }
   0xd   : > { %p1105_p9 = por %p137_p7, %p79_p1  ;;  %s809_s27 = sshll.u32 %s1025_s16, 7 }
   0xe   : > { %s765_s28 = sshll.u32 %s178_s26, 8  ;;  %s1115_s4 = scalar_lea.hbm %s1272_s1, %s809_s27 }
   0xf   : > { %s1277_s25 = scalar_select %p1105_p9, 1, 0 }
  0x10   : > { %s182_s5 = scalar_lea.vmem [#allocation3], %s765_s28  ;;  %p1119_p11 = pnand %p849_p10, %p1091_p3 }
  0x11   : > { %s192_s6 = sshll.u32 %s182_s5, 4  ;;  %s1126_s8 = scalar_lea.sflag [#allocation4], %s178_s26  ;;  %s1123_s6 = int_to_ptr.vmem [resolvable:$true] %s192_s6 }
  0x12   : > { %s949_s9 = scalar_lea.hbm %s1115_s4, 4096  ;;  %p951_p0 = pneg %p1119_p11 }
  0x13   : > { %p950_p13 = scmp.ne.s32.totalorder %s1115_s4, %s949_s9  ;;  %s954_s12 = scalar_lea.hbm %s1272_s1, 12288 }
  0x14   : > { %p955_p3 = scmp.lt.u32.totalorder %s1115_s4, %s1272_s1  ;;  %p956_p4 = scmp.lt.u32.totalorder %s954_s12, %s949_s9 }
  0x15   : > { %p952_p1 = pnand %p951_p0, %p950_p13  ;;  %p958_p6 = scmp.lt.u32.totalorder %s949_s9, %s1115_s4 }
  0x16   : > { %p957_p5 = por %p956_p4, %p955_p3 }
  0x17   : > { %p953_p2 = pneg %p952_p1 }
  0x18   : > { %p959_p7 = por %p958_p6, %p957_p5 }
  0x1a   : > { %p960_p10 = pnand %p959_p7, %p953_p2 }
  0x1c   : > { %963 = shalt.err (!%p960_p10)
}
  0x1d   : > { %s964_s21 = scalar_lea.vmem %s1123_s6, 4096  ;;  %s1031_s22 = smov [#allocation3]  }
  0x1e   : > { %p965_p13 = scmp.ne.s32.totalorder %s1123_s6, %s964_s21  ;;  %s969_s26 = sshll.u32 %s1031_s22, 4  ;;  %s970_s26 = int_to_ptr.vmem [resolvable:$false] %s969_s26 }
  0x1f   : > { %s971_s27 = scalar_lea.vmem %s970_s26, 8192  ;;  %p972_p9 = scmp.lt.s32.totalorder %s1123_s6, %s970_s26 }
  0x20   : > { %p967_p1 = pnand %p965_p13, %p951_p0  ;;  %p973_p3 = scmp.lt.s32.totalorder %s971_s27, %s964_s21 }
  0x22   : > { %p968_p12 = pneg %p967_p1  ;;  %p974_p4 = por %p973_p3, %p972_p9 }
  0x24   : > { %p975_p5 = pnand %p974_p4, %p968_p12 }
  0x26   : > { %978 = shalt.err (!%p975_p5)
}
  0x27   : > { %s1032_s28 = smov 384   ;;  %s1033_s29 = smov 128  }
  0x28   : > { %s1034_s30 = smov 8   ;;  %p208_p0 = scmp.lt.s32.totalorder %s1029_s17, 4 }
  0x29   : > { %848 = dma.hbm_to_vmem [thread:$0]  (!%p1119_p11), %s1115_s4, 4096, %s1123_s6, %s1126_s8, %s1032_s28, %s1033_s29, %s1034_s30  }
  0x2a   : > { %p1279_p2 = scmp.ge.s32.totalorder %s1029_s17, 1 }
  0x2c   : > { %p209_p6 = pnand %p1279_p2, %p208_p0 }
  0x2d   : > { %s1158_s5 = sand.u32 (!%p209_p6), 1, %s1013_s13  }
  0x2e   : > { %212 = sbr.rel (%p209_p6) target bundleno = 346 (0x15a), region = 32  ;;  %s769_s9 = sshll.u32 (!%p209_p6), %s1158_s5, 8 }
  0x2f   : > { %s215_s10 = scalar_lea.sflag (!%p209_p6), [#allocation4], %s1158_s5  ;;  %s1162_s11 = scalar_lea.vmem (!%p209_p6), [#allocation3], %s769_s9 }
  0x35   : > { %1004 = dma.done.wait (%p1098_p8), %s215_s10, 4096  }
  0x36   : > { %1006 = vsyncadd (%p1098_p8), %s215_s10, 4294963200  ;;  %v901_v0 = vld [vmem:[%s1162_s11 + $0x4] ss:$8 sps:$4 sm:$0xff]   ;;  %v903_v1 = vld [vmem:[%s1162_s11] ss:$8 sps:$4 sm:$0xff]   ;;  %s771_s10 = sshll.u32 %s1021_s15, 1  ;;  %v581_v44 = vlaneseq }
  0x37   : > { %499 = vmatprep.subr.bf16.mxu0 %v901_v0  ;;  %811 = vmatprep.subr.bf16.mxu1 %v901_v0  ;;  %v904_v2 = vld [vmem:[%s1162_s11 + $0x14] ss:$8 sps:$4 sm:$0xff]   ;;  %v906_v3 = vld [vmem:[%s1162_s11 + $0x10] ss:$8 sps:$4 sm:$0xff]   ;;  %v907_v4 = vld [vmem:[%s1162_s11 + $0x24] ss:$8 sps:$4 sm:$0xff]  }
  0x38   : > { %500 = vmatpush1.bf16.msra.mxu0 %v903_v1  ;;  %827 = vmatpush1.bf16.msra.mxu1 %v903_v1  ;;  %v909_v5 = vld [vmem:[%s1162_s11 + $0x20] ss:$8 sps:$4 sm:$0xff]   ;;  %v910_v6 = vld [vmem:[%s1162_s11 + $0x34] ss:$8 sps:$4 sm:$0xff]   ;;  %v912_v7 = vld [vmem:[%s1162_s11 + $0x30] ss:$8 sps:$4 sm:$0xff]  }
  0x39   : > { %501 = vmatprep.subr.bf16.mxu0 %v904_v2  ;;  %812 = vmatprep.subr.bf16.mxu1 %v904_v2  ;;  %v913_v8 = vld [vmem:[%s1162_s11 + $0x44] ss:$8 sps:$4 sm:$0xff]   ;;  %v915_v9 = vld [vmem:[%s1162_s11 + $0x40] ss:$8 sps:$4 sm:$0xff]   ;;  %v916_v10 = vld [vmem:[%s1162_s11 + $0x54] ss:$8 sps:$4 sm:$0xff]  }
  0x3a   : > { %v918_v11 = vld [vmem:[%s1162_s11 + $0x50] ss:$8 sps:$4 sm:$0xff]   ;;  %v919_v12 = vld [vmem:[%s1162_s11 + $0x64] ss:$8 sps:$4 sm:$0xff]   ;;  %v921_v18 = vld [vmem:[%s1162_s11 + $0x60] ss:$8 sps:$4 sm:$0xff]  }
  0x3b   : > { %v296_v13 = vld [vmem:[%s1271_s0 + $0x8] sm:$0xff]  ;;  %v298_v14 = vld [vmem:[%s1271_s0 + $0x18] sm:$0xff]  ;;  %v295_v38 = vld [vmem:[%s1271_s0] sm:$0xff]  ;;  %p269_p8 = scmp.lt.s32.totalorder %s771_s10, 5  ;;  %v582_v45 = vshrl.u32 %v581_v44, 7  ;;  %s770_s6 = sshll.u32 %s1158_s5, 6 }
  0x3c   : > { %502 = vmatpush1.bf16.msra.mxu0 %v906_v3  ;;  %828 = vmatpush1.bf16.msra.mxu1 %v906_v3  ;;  %v304_v15 = vpack.c.bf16 %v298_v14, %v296_v13  ;;  %v300_v16 = vld [vmem:[%s1271_s0 + $0x28] sm:$0xff]  ;;  %v302_v17 = vld [vmem:[%s1271_s0 + $0x38] sm:$0xff]  ;;  %v297_v39 = vld [vmem:[%s1271_s0 + $0x10] sm:$0xff]  ;;  %s1229_s7 = scalar_lea.vmem [#allocation5], %s770_s6  ;;  %p1280_p9 = scmp.ne.s32.totalorder %s1277_s25, 0 }
  0x3d   : > { %503 = vmatprep.subr.bf16.mxu0 %v907_v4  ;;  %813 = vmatprep.subr.bf16.mxu1 %v907_v4  ;;  %v306_v19 = vpack.c.bf16 %v302_v17, %v300_v16  ;;  %v922_v20 = vld [vmem:[%s1162_s11 + $0x74] ss:$8 sps:$4 sm:$0xff]   ;;  %v924_v21 = vld [vmem:[%s1162_s11 + $0x70] ss:$8 sps:$4 sm:$0xff]   ;;  %v925_v22 = vld [vmem:[%s1162_s11 + $0x84] ss:$8 sps:$4 sm:$0xff]   ;;  %v303_v42 = vpack.c.bf16 %v297_v39, %v295_v38 }
  0x3e   : > { %531 = vmatprep.mubr.bf16.mxu0 %v304_v15  ;;  %v927_v23 = vld [vmem:[%s1162_s11 + $0x80] ss:$8 sps:$4 sm:$0xff]   ;;  %v928_v24 = vld [vmem:[%s1162_s11 + $0x94] ss:$8 sps:$4 sm:$0xff]   ;;  %v930_v25 = vld [vmem:[%s1162_s11 + $0x90] ss:$8 sps:$4 sm:$0xff]  }
  0x3f   : > { %541 = vmatprep.mubr.bf16.mxu1 %v306_v19  ;;  %v931_v26 = vld [vmem:[%s1162_s11 + $0xa4] ss:$8 sps:$4 sm:$0xff]   ;;  %v933_v27 = vld [vmem:[%s1162_s11 + $0xa0] ss:$8 sps:$4 sm:$0xff]   ;;  %v934_v28 = vld [vmem:[%s1162_s11 + $0xb4] ss:$8 sps:$4 sm:$0xff]  }
  0x40   : > { %504 = vmatpush1.bf16.msra.mxu0 %v909_v5  ;;  %829 = vmatpush1.bf16.msra.mxu1 %v909_v5  ;;  %v936_v29 = vld [vmem:[%s1162_s11 + $0xb0] ss:$8 sps:$4 sm:$0xff]   ;;  %v937_v30 = vld [vmem:[%s1162_s11 + $0xc4] ss:$8 sps:$4 sm:$0xff]   ;;  %v939_v31 = vld [vmem:[%s1162_s11 + $0xc0] ss:$8 sps:$4 sm:$0xff]  }
  0x41   : > { %505 = vmatprep.subr.bf16.mxu0 %v910_v6  ;;  %814 = vmatprep.subr.bf16.mxu1 %v910_v6  ;;  %v940_v32 = vld [vmem:[%s1162_s11 + $0xd4] ss:$8 sps:$4 sm:$0xff]   ;;  %v942_v33 = vld [vmem:[%s1162_s11 + $0xd0] ss:$8 sps:$4 sm:$0xff]   ;;  %v943_v34 = vld [vmem:[%s1162_s11 + $0xe4] ss:$8 sps:$4 sm:$0xff]  }
  0x42   : > { %v945_v35 = vld [vmem:[%s1162_s11 + $0xe0] ss:$8 sps:$4 sm:$0xff]   ;;  %v946_v36 = vld [vmem:[%s1162_s11 + $0xf4] ss:$8 sps:$4 sm:$0xff]   ;;  %v948_v37 = vld [vmem:[%s1162_s11 + $0xf0] ss:$8 sps:$4 sm:$0xff]  }
  0x43   : > { %v299_v40 = vld [vmem:[%s1271_s0 + $0x20] sm:$0xff]  ;;  %v301_v41 = vld [vmem:[%s1271_s0 + $0x30] sm:$0xff]  ;;  %s1289_s10 = smov (!%p269_p8, %s771_s10), 5  ;;  %v583_v46 = vsub.s32 0, %v582_v45  ;;  %v587_v48 = vsub.s32 1, %v582_v45  ;;  %s810_s5 = sshll.u32 (%p1280_p9), %s1021_s15, 4 }
  0x44   : > { %506 = vmatpush1.bf16.msra.mxu0 %v912_v7  ;;  %830 = vmatpush1.bf16.msra.mxu1 %v912_v7  ;;  %v305_v43 = vpack.c.bf16 %v301_v41, %v299_v40  ;;  %s271_s4 = scalar_lea.vmem %s1273_s2, %s1289_s10  ;;  %s619_s18 = scalar_lea.vmem (%p1280_p9), %s1274_s3, %s810_s5 }
  0x45   : > { %507 = vmatprep.subr.bf16.mxu0 %v913_v8  ;;  %815 = vmatprep.subr.bf16.mxu1 %v913_v8  ;;  %v579_v47 = vld [vmem:[%s271_s4] sm:$0x3] }
  0x46   : > { %v584_v49 = vrot.slane %v579_v47, %v583_v46  ;;  %v588_v50 = vrot.slane %v579_v47, %v587_v48 }
  0x48   : > { %508 = vmatpush1.bf16.msra.mxu0 %v915_v9  ;;  %831 = vmatpush1.bf16.msra.mxu1 %v915_v9 }
  0x49   : > { %509 = vmatprep.subr.bf16.mxu0 %v916_v10  ;;  %816 = vmatprep.subr.bf16.mxu1 %v916_v10 }
  0x4c   : > { %510 = vmatpush1.bf16.msra.mxu0 %v918_v11  ;;  %832 = vmatpush1.bf16.msra.mxu1 %v918_v11 }
  0x4d   : > { %511 = vmatprep.subr.bf16.mxu0 %v919_v12  ;;  %817 = vmatprep.subr.bf16.mxu1 %v919_v12 }
  0x50   : > { %512 = vmatpush1.bf16.msra.mxu0 %v921_v18  ;;  %833 = vmatpush1.bf16.msra.mxu1 %v921_v18 }
  0x51   : > { %513 = vmatprep.subr.bf16.mxu0 %v922_v20  ;;  %818 = vmatprep.subr.bf16.mxu1 %v922_v20 }
  0x54   : > { %514 = vmatpush1.bf16.msra.mxu0 %v924_v21  ;;  %834 = vmatpush1.bf16.msra.mxu1 %v924_v21 }
  0x55   : > { %515 = vmatprep.subr.bf16.mxu0 %v925_v22  ;;  %819 = vmatprep.subr.bf16.mxu1 %v925_v22 }
  0x58   : > { %516 = vmatpush1.bf16.msra.mxu0 %v927_v23  ;;  %835 = vmatpush1.bf16.msra.mxu1 %v927_v23 }
  0x59   : > { %517 = vmatprep.subr.bf16.mxu0 %v928_v24  ;;  %820 = vmatprep.subr.bf16.mxu1 %v928_v24 }
  0x5c   : > { %518 = vmatpush1.bf16.msra.mxu0 %v930_v25  ;;  %836 = vmatpush1.bf16.msra.mxu1 %v930_v25 }
  0x5d   : > { %519 = vmatprep.subr.bf16.mxu0 %v931_v26  ;;  %821 = vmatprep.subr.bf16.mxu1 %v931_v26 }
  0x60   : > { %520 = vmatpush1.bf16.msra.mxu0 %v933_v27  ;;  %837 = vmatpush1.bf16.msra.mxu1 %v933_v27 }
  0x61   : > { %521 = vmatprep.subr.bf16.mxu0 %v934_v28  ;;  %822 = vmatprep.subr.bf16.mxu1 %v934_v28 }
  0x64   : > { %522 = vmatpush1.bf16.msra.mxu0 %v936_v29  ;;  %838 = vmatpush1.bf16.msra.mxu1 %v936_v29 }
  0x65   : > { %523 = vmatprep.subr.bf16.mxu0 %v937_v30  ;;  %823 = vmatprep.subr.bf16.mxu1 %v937_v30 }
  0x68   : > { %524 = vmatpush1.bf16.msra.mxu0 %v939_v31  ;;  %839 = vmatpush1.bf16.msra.mxu1 %v939_v31 }
  0x69   : > { %525 = vmatprep.subr.bf16.mxu0 %v940_v32  ;;  %824 = vmatprep.subr.bf16.mxu1 %v940_v32 }
  0x6c   : > { %526 = vmatpush1.bf16.msra.mxu0 %v942_v33  ;;  %840 = vmatpush1.bf16.msra.mxu1 %v942_v33 }
  0x6d   : > { %527 = vmatprep.subr.bf16.mxu0 %v943_v34  ;;  %825 = vmatprep.subr.bf16.mxu1 %v943_v34 }
  0x70   : > { %528 = vmatpush1.bf16.msra.mxu0 %v945_v35  ;;  %841 = vmatpush1.bf16.msra.mxu1 %v945_v35 }
  0x71   : > { %529 = vmatprep.subr.bf16.mxu0 %v946_v36  ;;  %826 = vmatprep.subr.bf16.mxu1 %v946_v36 }
  0x74   : > { %530 = vmatpush1.bf16.msra.mxu0 %v948_v37  ;;  %842 = vmatpush1.bf16.msra.mxu1 %v948_v37 }
  0x77   : > { %532 = vmatmul.mubr.bf16.vlgmr.msra.gmra.mrb[0].mxu0 %v303_v42  ;;  %542 = vmatmul.mubr.bf16.vlgmr.msra.gmra.mrb[0].mxu1 %v305_v43 }
 0x14a   : > { %v533_v51 = vpop.f32.mrb[0].mxu0  ;;  %v543_v52 = vpop.f32.mrb[0].mxu1  ;;  %613 = sbr.rel (!%p1280_p9) target bundleno = 346 (0x15a), region = 48 }
 0x14b   : > { %v591_v53 = vadd.f32 %v584_v49, %v533_v51  ;;  %v595_v54 = vadd.f32 %v584_v49, %v543_v52  ;;  %v535_v55 = vpop.f32.mrb[1].mxu0  ;;  %v545_v56 = vpop.f32.mrb[1].mxu1 }
 0x14c   : > { %v592_v57 = vadd.f32 %v588_v50, %v535_v55  ;;  %v596_v58 = vadd.f32 %v588_v50, %v545_v56  ;;  %v537_v59 = vpop.f32.mrb[2].mxu0  ;;  %v547_v60 = vpop.f32.mrb[2].mxu1 }
 0x14d   : > { %599 = vst [vmem:[%s1229_s7] sm:$0xff] %v591_v53  ;;  %603 = vst [vmem:[%s1229_s7 + $0x20] sm:$0xff] %v595_v54  ;;  %v593_v61 = vadd.f32 %v584_v49, %v537_v59  ;;  %v597_v62 = vadd.f32 %v584_v49, %v547_v60  ;;  %v539_v63 = vpop.f32.mrb[3].mxu0  ;;  %v549_v0 = vpop.f32.mrb[3].mxu1 }
 0x14e   : > { %600 = vst [vmem:[%s1229_s7 + $0x8] sm:$0xff] %v592_v57  ;;  %604 = vst [vmem:[%s1229_s7 + $0x28] sm:$0xff] %v596_v58  ;;  %v594_v1 = vadd.f32 %v588_v50, %v539_v63  ;;  %v598_v2 = vadd.f32 %v588_v50, %v549_v0 }
 0x14f   : > { %601 = vst [vmem:[%s1229_s7 + $0x10] sm:$0xff] %v593_v61  ;;  %605 = vst [vmem:[%s1229_s7 + $0x30] sm:$0xff] %v597_v62 }
 0x150   : > { %602 = vst [vmem:[%s1229_s7 + $0x18] sm:$0xff] %v594_v1  ;;  %606 = vst [vmem:[%s1229_s7 + $0x38] sm:$0xff] %v598_v2 }
 0x154   : > { %v632_v3 = vld [vmem:[%s1229_s7] sm:$0xff] }
 0x155   : > { %v634_v4 = vld [vmem:[%s1229_s7 + $0x8] sm:$0xff]  ;;  %v640_v7 = vld [vmem:[%s1229_s7 + $0x20] sm:$0xff]  ;;  %633 = vst [vmem:[%s619_s18] sm:$0xff] %v632_v3 }
 0x156   : > { %v636_v5 = vld [vmem:[%s1229_s7 + $0x10] sm:$0xff]  ;;  %v642_v8 = vld [vmem:[%s1229_s7 + $0x28] sm:$0xff]  ;;  %635 = vst [vmem:[%s619_s18 + $0x8] sm:$0xff] %v634_v4  ;;  %641 = vst [vmem:[%s619_s18 + $0x60] sm:$0xff] %v640_v7 }
 0x157   : > { %v638_v6 = vld [vmem:[%s1229_s7 + $0x18] sm:$0xff]  ;;  %637 = vst [vmem:[%s619_s18 + $0x30] sm:$0xff] %v636_v5  ;;  %643 = vst [vmem:[%s619_s18 + $0x68] sm:$0xff] %v642_v8  ;;  %v644_v9 = vld [vmem:[%s1229_s7 + $0x30] sm:$0xff] }
 0x158   : > { %639 = vst [vmem:[%s619_s18 + $0x38] sm:$0xff] %v638_v6  ;;  %v646_v10 = vld [vmem:[%s1229_s7 + $0x38] sm:$0xff]  ;;  %645 = vst [vmem:[%s619_s18 + $0x90] sm:$0xff] %v644_v9 }
 0x159   : > { %647 = vst [vmem:[%s619_s18 + $0x98] sm:$0xff] %v646_v10 }
 0x15a PF: > { %s16_s17 = sadd.s32 1, %s1029_s17   ;;  %s1281_s12 = smov %s1013_s13 }
 0x15b   : > { %p13_p11 = scmp.ge.s32.totalorder %s16_s17, 5   ;;  %s1282_s13 = smov %s1017_s14 }
 0x15c   : > { %s1283_s14 = smov %s1103_s24  ;;  %s1284_s15 = smov %s1025_s16 }
 0x15d   : > { %s1285_s16 = smov %s1287_s19  ;;  %15 = sbr.rel (!%p13_p11) target bundleno = 4 (0x4), region = 109 }
 0x164   :  { %663 = vsyncpa [#allocation4], 1 }
 0x165   :  { %665 = vsyncpa [#allocation4 + $0x1], 1 }

// kernel: _lambda_.18
= control target key start
LH: loop header
LB: loop body
LE: loop exit
PB: predicated region body
PF: predicated region fallthrough
CT: control target
= control target key end

     0   :  { %s1125_s12 = smov 0   ;;  %s1127_s13 = smov 0   ;;  %s1349_s0 = inlined_call_operand.vmem [shape: f32[32,256], index: 0, kind: input, shape index: {}]   ;;  %s1350_s1 = inlined_call_operand.vmem [shape: bf16[256,768], index: 1, kind: input, shape index: {}]   ;;  %s1351_s2 = inlined_call_operand.vmem [shape: f32[1,768], index: 2, kind: input, shape index: {}]   ;;  %s1352_s3 = inlined_call_operand.vmem [shape: f32[32,768], index: 3, kind: output, shape index: {}]  }
   0x1   :  { %s1129_s14 = smov 0   ;;  %s1131_s15 = smov 0  }
   0x2   :  { %s1133_s16 = smov 0  }
   0x3 LB: > { %s28_s17 = sadd.s32 1, %s1099_s15  ;;  %s894_s18 = sadd.s32 4294967295, %s1103_s16   ;;  %s1103_s16 = sphi %s1133_s16, %s13_s16   ;;  %s1099_s15 = sphi %s1131_s15, %s1357_s15   ;;  %s1095_s14 = sphi %s1129_s14, %s1356_s14   ;;  %s1091_s13 = sphi %s1127_s13, %s1355_s13   ;;  %s1087_s12 = sphi %s1125_s12, %s1354_s12  }
   0x4   : > { %p30_p0 = scmp.ge.s32.totalorder %s28_s17, 3  ;;  %p76_p1 = scmp.ne.s32.totalorder %s1091_s13, %s1087_s12 }
   0x5   : > { %p77_p2 = scmp.eq.s32.totalorder %s1103_s16, 0  ;;  %p134_p4 = scmp.eq.s32.totalorder %s894_s18, 2 }
   0x6   : > { %s1359_s17 = smov (%p30_p0, %s28_s17), 0  ;;  %s69_s20 = sadd.s32 1, %s1091_s13 }
   0x7   : > { %p78_p3 = por %p77_p2, %p76_p1  ;;  %s65_s19 = ssub.s32 %s1099_s15, %s1359_s17 }
   0x8   : > { %p67_p5 = scmp.eq.s32.totalorder %s65_s19, 0  ;;  %p1160_p6 = por %p134_p4, %p76_p1 }
   0x9   : > { %p898_p7 = scmp.ge.s32.totalorder %s1103_s16, 3 }
   0xa   : > { %s1165_s22 = scalar_select %p67_p5, %s1091_s13, %s69_s20  }
   0xb   : > { %171 = sbr.rel (%p898_p7) target bundleno = 38 (0x26), region = 20 }
  0x12   : > { %174 = sbr.rel (!%p78_p3) target bundleno = 38 (0x26), region = 24  ;;  %s176_s23 = sand.u32 (%p78_p3), 1, %s1091_s13  }
  0x13   : > { %s943_s24 = sshll.u32 (%p78_p3), %s1099_s15, 3  ;;  %s899_s25 = sshll.u32 (%p78_p3), %s176_s23, 8 }
  0x14   : > { %s1173_s28 = scalar_lea.vmem (%p78_p3), %s1350_s1, %s943_s24  ;;  %s1178_s29 = scalar_lea.vmem (%p78_p3), [#allocation3], %s899_s25 }
  0x15   : > { %v274_v0 = vld [vmem:[%s1173_s28] sm:$0xff] (%p78_p3)  ;;  %v276_v1 = vld [vmem:[%s1173_s28 + $0x18] sm:$0xff] (%p78_p3)  ;;  %v278_v2 = vld [vmem:[%s1173_s28 + $0x30] sm:$0xff] (%p78_p3) }
  0x16   : > { %275 = vst [vmem:[%s1178_s29] sm:$0xff] (%p78_p3), %v274_v0  ;;  %277 = vst [vmem:[%s1178_s29 + $0x8] sm:$0xff] (%p78_p3), %v276_v1  ;;  %v280_v3 = vld [vmem:[%s1173_s28 + $0x48] sm:$0xff] (%p78_p3)  ;;  %v282_v4 = vld [vmem:[%s1173_s28 + $0x60] sm:$0xff] (%p78_p3) }
  0x17   : > { %279 = vst [vmem:[%s1178_s29 + $0x10] sm:$0xff] (%p78_p3), %v278_v2  ;;  %v284_v5 = vld [vmem:[%s1173_s28 + $0x78] sm:$0xff] (%p78_p3)  ;;  %281 = vst [vmem:[%s1178_s29 + $0x18] sm:$0xff] (%p78_p3), %v280_v3  ;;  %v286_v6 = vld [vmem:[%s1173_s28 + $0x90] sm:$0xff] (%p78_p3) }
  0x18   : > { %283 = vst [vmem:[%s1178_s29 + $0x20] sm:$0xff] (%p78_p3), %v282_v4  ;;  %285 = vst [vmem:[%s1178_s29 + $0x28] sm:$0xff] (%p78_p3), %v284_v5  ;;  %v288_v7 = vld [vmem:[%s1173_s28 + $0xa8] sm:$0xff] (%p78_p3)  ;;  %v290_v8 = vld [vmem:[%s1173_s28 + $0xc0] sm:$0xff] (%p78_p3) }
  0x19   : > { %287 = vst [vmem:[%s1178_s29 + $0x30] sm:$0xff] %v286_v6  ;;  %289 = vst [vmem:[%s1178_s29 + $0x38] sm:$0xff] %v288_v7  ;;  %v292_v9 = vld [vmem:[%s1173_s28 + $0xd8] sm:$0xff]  ;;  %v294_v10 = vld [vmem:[%s1173_s28 + $0xf0] sm:$0xff] }
  0x1a   : > { %291 = vst [vmem:[%s1178_s29 + $0x40] sm:$0xff] %v290_v8  ;;  %v296_v11 = vld [vmem:[%s1173_s28 + $0x108] sm:$0xff]  ;;  %293 = vst [vmem:[%s1178_s29 + $0x48] sm:$0xff] %v292_v9  ;;  %v298_v12 = vld [vmem:[%s1173_s28 + $0x120] sm:$0xff] }
  0x1b   : > { %295 = vst [vmem:[%s1178_s29 + $0x50] sm:$0xff] %v294_v10  ;;  %297 = vst [vmem:[%s1178_s29 + $0x58] sm:$0xff] %v296_v11  ;;  %v300_v13 = vld [vmem:[%s1173_s28 + $0x138] sm:$0xff]  ;;  %v302_v14 = vld [vmem:[%s1173_s28 + $0x150] sm:$0xff] }
  0x1c   : > { %299 = vst [vmem:[%s1178_s29 + $0x60] sm:$0xff] %v298_v12  ;;  %301 = vst [vmem:[%s1178_s29 + $0x68] sm:$0xff] %v300_v13  ;;  %v304_v15 = vld [vmem:[%s1173_s28 + $0x168] sm:$0xff]  ;;  %v306_v16 = vld [vmem:[%s1173_s28 + $0x180] sm:$0xff] }
  0x1d   : > { %303 = vst [vmem:[%s1178_s29 + $0x70] sm:$0xff] %v302_v14  ;;  %v308_v17 = vld [vmem:[%s1173_s28 + $0x198] sm:$0xff]  ;;  %305 = vst [vmem:[%s1178_s29 + $0x78] sm:$0xff] %v304_v15  ;;  %v310_v18 = vld [vmem:[%s1173_s28 + $0x1b0] sm:$0xff] }
  0x1e   : > { %307 = vst [vmem:[%s1178_s29 + $0x80] sm:$0xff] %v306_v16  ;;  %309 = vst [vmem:[%s1178_s29 + $0x88] sm:$0xff] %v308_v17  ;;  %v312_v19 = vld [vmem:[%s1173_s28 + $0x1c8] sm:$0xff]  ;;  %v314_v20 = vld [vmem:[%s1173_s28 + $0x1e0] sm:$0xff] }
  0x1f   : > { %311 = vst [vmem:[%s1178_s29 + $0x90] sm:$0xff] %v310_v18  ;;  %313 = vst [vmem:[%s1178_s29 + $0x98] sm:$0xff] %v312_v19  ;;  %v316_v21 = vld [vmem:[%s1173_s28 + $0x1f8] sm:$0xff]  ;;  %v318_v22 = vld [vmem:[%s1173_s28 + $0x210] sm:$0xff] }
  0x20   : > { %315 = vst [vmem:[%s1178_s29 + $0xa0] sm:$0xff] %v314_v20  ;;  %v320_v23 = vld [vmem:[%s1173_s28 + $0x228] sm:$0xff]  ;;  %317 = vst [vmem:[%s1178_s29 + $0xa8] sm:$0xff] %v316_v21  ;;  %v322_v24 = vld [vmem:[%s1173_s28 + $0x240] sm:$0xff] }
  0x21   : > { %319 = vst [vmem:[%s1178_s29 + $0xb0] sm:$0xff] %v318_v22  ;;  %321 = vst [vmem:[%s1178_s29 + $0xb8] sm:$0xff] %v320_v23  ;;  %v324_v25 = vld [vmem:[%s1173_s28 + $0x258] sm:$0xff]  ;;  %v326_v26 = vld [vmem:[%s1173_s28 + $0x270] sm:$0xff] }
  0x22   : > { %323 = vst [vmem:[%s1178_s29 + $0xc0] sm:$0xff] %v322_v24  ;;  %325 = vst [vmem:[%s1178_s29 + $0xc8] sm:$0xff] %v324_v25  ;;  %v328_v27 = vld [vmem:[%s1173_s28 + $0x288] sm:$0xff]  ;;  %v330_v28 = vld [vmem:[%s1173_s28 + $0x2a0] sm:$0xff] }
  0x23   : > { %327 = vst [vmem:[%s1178_s29 + $0xd0] sm:$0xff] %v326_v26  ;;  %v332_v29 = vld [vmem:[%s1173_s28 + $0x2b8] sm:$0xff]  ;;  %329 = vst [vmem:[%s1178_s29 + $0xd8] sm:$0xff] %v328_v27  ;;  %v334_v30 = vld [vmem:[%s1173_s28 + $0x2d0] sm:$0xff] }
  0x24   : > { %331 = vst [vmem:[%s1178_s29 + $0xe0] sm:$0xff] %v330_v28  ;;  %333 = vst [vmem:[%s1178_s29 + $0xe8] sm:$0xff] %v332_v29  ;;  %v336_v31 = vld [vmem:[%s1173_s28 + $0x2e8] sm:$0xff] }
  0x25   : > { %335 = vst [vmem:[%s1178_s29 + $0xf0] sm:$0xff] %v334_v30  ;;  %337 = vst [vmem:[%s1178_s29 + $0xf8] sm:$0xff] %v336_v31 }
  0x26 PF: > { %p902_p8 = scmp.ge.s32.totalorder %s1103_s16, 1  ;;  %p350_p9 = scmp.lt.s32.totalorder %s1103_s16, 4 }
  0x28   : > { %p351_p10 = pnand %p902_p8, %p350_p9 }
  0x29   : > { %s357_s30 = sand.u32 (!%p351_p10), 1, %s1087_s12   ;;  %v435_v32 = vld [vmem:[%s1349_s0 + $0x8] sm:$0xff] (!%p351_p10)  ;;  %v437_v33 = vld [vmem:[%s1349_s0 + $0x18] sm:$0xff] (!%p351_p10)  ;;  %v434_v5 = vld [vmem:[%s1349_s0] sm:$0xff] (!%p351_p10)  ;;  %s905_s4 = sshll.u32 (!%p351_p10), %s1095_s14, 1  ;;  %v720_v12 = vlaneseq (!%p351_p10) }
  0x2a   : > { %354 = sbr.rel (%p351_p10) target bundleno = 336 (0x150), region = 66  ;;  %v439_v34 = vld [vmem:[%s1349_s0 + $0x28] sm:$0xff] (!%p351_p10)  ;;  %s903_s10 = sshll.u32 (!%p351_p10), %s357_s30, 8  ;;  %v443_v35 = vpack.c.bf16 (!%p351_p10), %v437_v33, %v435_v32  ;;  %v441_v36 = vld [vmem:[%s1349_s0 + $0x38] sm:$0xff] (!%p351_p10)  ;;  %v436_v6 = vld [vmem:[%s1349_s0 + $0x10] sm:$0xff] (!%p351_p10) }
  0x2b   : > { %v445_v37 = vpack.c.bf16 (!%p351_p10), %v441_v36, %v439_v34  ;;  %s1258_s19 = scalar_lea.vmem (!%p351_p10), [#allocation3], %s903_s10  ;;  %v438_v8 = vld [vmem:[%s1349_s0 + $0x20] sm:$0xff] (!%p351_p10)  ;;  %v440_v9 = vld [vmem:[%s1349_s0 + $0x30] sm:$0xff] (!%p351_p10)  ;;  %v442_v10 = vpack.c.bf16 (!%p351_p10), %v436_v6, %v434_v5  ;;  %p408_p11 = scmp.lt.s32.totalorder (!%p351_p10), %s905_s4, 5  ;;  %v721_v13 = vshrl.u32 (!%p351_p10), %v720_v12, 7 }
  0x2c   : > { %v1017_v38 = vld [vmem:[%s1258_s19 + $0x4] ss:$8 sps:$4 sm:$0xff] (!%p351_p10)   ;;  %670 = vmatprep.mubr.bf16.mxu0 (!%p351_p10), %v443_v35  ;;  %v1019_v39 = vld [vmem:[%s1258_s19] ss:$8 sps:$4 sm:$0xff] (!%p351_p10)   ;;  %v1020_v40 = vld [vmem:[%s1258_s19 + $0x14] ss:$8 sps:$4 sm:$0xff] (!%p351_p10)   ;;  %v444_v11 = vpack.c.bf16 (!%p351_p10), %v440_v9, %v438_v8 }
  0x2d   : > { %680 = vmatprep.mubr.bf16.mxu1 (!%p351_p10), %v445_v37  ;;  %638 = vmatprep.subr.bf16.mxu0 (!%p351_p10), %v1017_v38  ;;  %v1022_v41 = vld [vmem:[%s1258_s19 + $0x10] ss:$8 sps:$4 sm:$0xff] (!%p351_p10)   ;;  %v1023_v42 = vld [vmem:[%s1258_s19 + $0x24] ss:$8 sps:$4 sm:$0xff] (!%p351_p10)   ;;  %v1025_v43 = vld [vmem:[%s1258_s19 + $0x20] ss:$8 sps:$4 sm:$0xff] (!%p351_p10)  }
  0x2e   : > { %945 = vmatprep.subr.bf16.mxu1 (!%p351_p10), %v1017_v38  ;;  %639 = vmatpush1.bf16.msra.mxu0 (!%p351_p10), %v1019_v39  ;;  %v1026_v44 = vld [vmem:[%s1258_s19 + $0x34] ss:$8 sps:$4 sm:$0xff] (!%p351_p10)   ;;  %v1028_v45 = vld [vmem:[%s1258_s19 + $0x30] ss:$8 sps:$4 sm:$0xff] (!%p351_p10)   ;;  %v1029_v46 = vld [vmem:[%s1258_s19 + $0x44] ss:$8 sps:$4 sm:$0xff] (!%p351_p10)  }
  0x2f   : > { %961 = vmatpush1.bf16.msra.mxu1 (!%p351_p10), %v1019_v39  ;;  %640 = vmatprep.subr.bf16.mxu0 (!%p351_p10), %v1020_v40  ;;  %v1031_v47 = vld [vmem:[%s1258_s19 + $0x40] ss:$8 sps:$4 sm:$0xff] (!%p351_p10)   ;;  %v1032_v48 = vld [vmem:[%s1258_s19 + $0x54] ss:$8 sps:$4 sm:$0xff] (!%p351_p10)   ;;  %v1034_v49 = vld [vmem:[%s1258_s19 + $0x50] ss:$8 sps:$4 sm:$0xff] (!%p351_p10)  }
  0x30   : > { %946 = vmatprep.subr.bf16.mxu1 (!%p351_p10), %v1020_v40  ;;  %v1035_v50 = vld [vmem:[%s1258_s19 + $0x64] ss:$8 sps:$4 sm:$0xff] (!%p351_p10)   ;;  %v1037_v51 = vld [vmem:[%s1258_s19 + $0x60] ss:$8 sps:$4 sm:$0xff] (!%p351_p10)   ;;  %v1038_v52 = vld [vmem:[%s1258_s19 + $0x74] ss:$8 sps:$4 sm:$0xff] (!%p351_p10)  }
  0x31   : > { %v1040_v53 = vld [vmem:[%s1258_s19 + $0x70] ss:$8 sps:$4 sm:$0xff]   ;;  %v1041_v54 = vld [vmem:[%s1258_s19 + $0x84] ss:$8 sps:$4 sm:$0xff]   ;;  %v1043_v55 = vld [vmem:[%s1258_s19 + $0x80] ss:$8 sps:$4 sm:$0xff]  }
  0x32   : > { %641 = vmatpush1.bf16.msra.mxu0 %v1022_v41  ;;  %v1044_v56 = vld [vmem:[%s1258_s19 + $0x94] ss:$8 sps:$4 sm:$0xff]   ;;  %v1046_v57 = vld [vmem:[%s1258_s19 + $0x90] ss:$8 sps:$4 sm:$0xff]   ;;  %v1047_v58 = vld [vmem:[%s1258_s19 + $0xa4] ss:$8 sps:$4 sm:$0xff]  }
  0x33   : > { %962 = vmatpush1.bf16.msra.mxu1 %v1022_v41  ;;  %642 = vmatprep.subr.bf16.mxu0 %v1023_v42  ;;  %v1049_v59 = vld [vmem:[%s1258_s19 + $0xa0] ss:$8 sps:$4 sm:$0xff]   ;;  %v1050_v60 = vld [vmem:[%s1258_s19 + $0xb4] ss:$8 sps:$4 sm:$0xff]   ;;  %v1052_v61 = vld [vmem:[%s1258_s19 + $0xb0] ss:$8 sps:$4 sm:$0xff]  }
  0x34   : > { %947 = vmatprep.subr.bf16.mxu1 %v1023_v42  ;;  %v1053_v62 = vld [vmem:[%s1258_s19 + $0xc4] ss:$8 sps:$4 sm:$0xff]   ;;  %v1055_v63 = vld [vmem:[%s1258_s19 + $0xc0] ss:$8 sps:$4 sm:$0xff]   ;;  %v1056_v0 = vld [vmem:[%s1258_s19 + $0xd4] ss:$8 sps:$4 sm:$0xff]  }
  0x35   : > { %v1058_v1 = vld [vmem:[%s1258_s19 + $0xd0] ss:$8 sps:$4 sm:$0xff]   ;;  %v1059_v2 = vld [vmem:[%s1258_s19 + $0xe4] ss:$8 sps:$4 sm:$0xff]   ;;  %v1061_v3 = vld [vmem:[%s1258_s19 + $0xe0] ss:$8 sps:$4 sm:$0xff]  }
  0x36   : > { %643 = vmatpush1.bf16.msra.mxu0 %v1025_v43  ;;  %v1062_v4 = vld [vmem:[%s1258_s19 + $0xf4] ss:$8 sps:$4 sm:$0xff]   ;;  %v1064_v7 = vld [vmem:[%s1258_s19 + $0xf0] ss:$8 sps:$4 sm:$0xff]   ;;  %s1361_s4 = smov (!%p408_p11, %s905_s4), 5  ;;  %v722_v14 = vsub.s32 0, %v721_v13 }
  0x37   : > { %963 = vmatpush1.bf16.msra.mxu1 %v1025_v43  ;;  %644 = vmatprep.subr.bf16.mxu0 %v1026_v44  ;;  %s410_s7 = scalar_lea.vmem %s1351_s2, %s1361_s4  ;;  %v726_v16 = vsub.s32 1, %v721_v13  ;;  %s904_s8 = sshll.u32 %s357_s30, 6 }
  0x38   : > { %948 = vmatprep.subr.bf16.mxu1 %v1026_v44  ;;  %v718_v15 = vld [vmem:[%s410_s7] sm:$0x3]  ;;  %s1310_s9 = scalar_lea.vmem [#allocation4], %s904_s8  ;;  %s944_s12 = sshll.u32 (%p1160_p6), %s1095_s14, 4 }
  0x39   : > { %v723_v17 = vrot.slane %v718_v15, %v722_v14  ;;  %v727_v18 = vrot.slane %v718_v15, %v726_v16  ;;  %s758_s11 = scalar_lea.vmem (%p1160_p6), %s1352_s3, %s944_s12 }
  0x3a   : > { %645 = vmatpush1.bf16.msra.mxu0 %v1028_v45 }
  0x3b   : > { %964 = vmatpush1.bf16.msra.mxu1 %v1028_v45  ;;  %646 = vmatprep.subr.bf16.mxu0 %v1029_v46 }
  0x3c   : > { %949 = vmatprep.subr.bf16.mxu1 %v1029_v46 }
  0x3e   : > { %647 = vmatpush1.bf16.msra.mxu0 %v1031_v47 }
  0x3f   : > { %965 = vmatpush1.bf16.msra.mxu1 %v1031_v47  ;;  %648 = vmatprep.subr.bf16.mxu0 %v1032_v48 }
  0x40   : > { %950 = vmatprep.subr.bf16.mxu1 %v1032_v48 }
  0x42   : > { %649 = vmatpush1.bf16.msra.mxu0 %v1034_v49 }
  0x43   : > { %966 = vmatpush1.bf16.msra.mxu1 %v1034_v49  ;;  %650 = vmatprep.subr.bf16.mxu0 %v1035_v50 }
  0x44   : > { %951 = vmatprep.subr.bf16.mxu1 %v1035_v50 }
  0x46   : > { %651 = vmatpush1.bf16.msra.mxu0 %v1037_v51 }
  0x47   : > { %967 = vmatpush1.bf16.msra.mxu1 %v1037_v51  ;;  %652 = vmatprep.subr.bf16.mxu0 %v1038_v52 }
  0x48   : > { %952 = vmatprep.subr.bf16.mxu1 %v1038_v52 }
  0x4a   : > { %653 = vmatpush1.bf16.msra.mxu0 %v1040_v53 }
  0x4b   : > { %968 = vmatpush1.bf16.msra.mxu1 %v1040_v53  ;;  %654 = vmatprep.subr.bf16.mxu0 %v1041_v54 }
  0x4c   : > { %953 = vmatprep.subr.bf16.mxu1 %v1041_v54 }
  0x4e   : > { %655 = vmatpush1.bf16.msra.mxu0 %v1043_v55 }
  0x4f   : > { %969 = vmatpush1.bf16.msra.mxu1 %v1043_v55  ;;  %656 = vmatprep.subr.bf16.mxu0 %v1044_v56 }
  0x50   : > { %954 = vmatprep.subr.bf16.mxu1 %v1044_v56 }
  0x52   : > { %657 = vmatpush1.bf16.msra.mxu0 %v1046_v57 }
  0x53   : > { %970 = vmatpush1.bf16.msra.mxu1 %v1046_v57  ;;  %658 = vmatprep.subr.bf16.mxu0 %v1047_v58 }
  0x54   : > { %955 = vmatprep.subr.bf16.mxu1 %v1047_v58 }
  0x56   : > { %659 = vmatpush1.bf16.msra.mxu0 %v1049_v59 }
  0x57   : > { %971 = vmatpush1.bf16.msra.mxu1 %v1049_v59  ;;  %660 = vmatprep.subr.bf16.mxu0 %v1050_v60 }
  0x58   : > { %956 = vmatprep.subr.bf16.mxu1 %v1050_v60 }
  0x5a   : > { %661 = vmatpush1.bf16.msra.mxu0 %v1052_v61 }
  0x5b   : > { %972 = vmatpush1.bf16.msra.mxu1 %v1052_v61  ;;  %662 = vmatprep.subr.bf16.mxu0 %v1053_v62 }
  0x5c   : > { %957 = vmatprep.subr.bf16.mxu1 %v1053_v62 }
  0x5e   : > { %663 = vmatpush1.bf16.msra.mxu0 %v1055_v63 }
  0x5f   : > { %973 = vmatpush1.bf16.msra.mxu1 %v1055_v63  ;;  %664 = vmatprep.subr.bf16.mxu0 %v1056_v0 }
  0x60   : > { %958 = vmatprep.subr.bf16.mxu1 %v1056_v0 }
  0x62   : > { %665 = vmatpush1.bf16.msra.mxu0 %v1058_v1 }
  0x63   : > { %974 = vmatpush1.bf16.msra.mxu1 %v1058_v1  ;;  %666 = vmatprep.subr.bf16.mxu0 %v1059_v2 }
  0x64   : > { %959 = vmatprep.subr.bf16.mxu1 %v1059_v2 }
  0x66   : > { %667 = vmatpush1.bf16.msra.mxu0 %v1061_v3 }
  0x67   : > { %975 = vmatpush1.bf16.msra.mxu1 %v1061_v3  ;;  %668 = vmatprep.subr.bf16.mxu0 %v1062_v4 }
  0x68   : > { %960 = vmatprep.subr.bf16.mxu1 %v1062_v4 }
  0x6a   : > { %669 = vmatpush1.bf16.msra.mxu0 %v1064_v7 }
  0x6b   : > { %976 = vmatpush1.bf16.msra.mxu1 %v1064_v7 }
  0x6d   : > { %671 = vmatmul.mubr.bf16.vlgmr.msra.gmra.mrb[0].mxu0 %v442_v10 }
  0x6e   : > { %681 = vmatmul.mubr.bf16.vlgmr.msra.gmra.mrb[0].mxu1 %v444_v11 }
 0x140   : > { %v672_v19 = vpop.f32.mrb[0].mxu0 }
 0x141   : > { %v682_v20 = vpop.f32.mrb[0].mxu1  ;;  %v730_v21 = vadd.f32 %v723_v17, %v672_v19  ;;  %v674_v23 = vpop.f32.mrb[1].mxu0  ;;  %752 = sbr.rel (!%p1160_p6) target bundleno = 336 (0x150), region = 82 }
 0x142   : > { %v734_v22 = vadd.f32 %v723_v17, %v682_v20  ;;  %v684_v24 = vpop.f32.mrb[1].mxu1  ;;  %v731_v25 = vadd.f32 %v727_v18, %v674_v23  ;;  %v676_v27 = vpop.f32.mrb[2].mxu0 }
 0x143   : > { %v735_v26 = vadd.f32 %v727_v18, %v684_v24  ;;  %v686_v28 = vpop.f32.mrb[2].mxu1  ;;  %738 = vst [vmem:[%s1310_s9] sm:$0xff] %v730_v21  ;;  %v732_v29 = vadd.f32 %v723_v17, %v676_v27  ;;  %v678_v31 = vpop.f32.mrb[3].mxu0 }
 0x144   : > { %742 = vst [vmem:[%s1310_s9 + $0x20] sm:$0xff] %v734_v22  ;;  %v736_v30 = vadd.f32 %v723_v17, %v686_v28  ;;  %v688_v32 = vpop.f32.mrb[3].mxu1  ;;  %739 = vst [vmem:[%s1310_s9 + $0x8] sm:$0xff] %v731_v25  ;;  %v733_v33 = vadd.f32 %v727_v18, %v678_v31 }
 0x145   : > { %743 = vst [vmem:[%s1310_s9 + $0x28] sm:$0xff] %v735_v26  ;;  %v737_v34 = vadd.f32 %v727_v18, %v688_v32  ;;  %740 = vst [vmem:[%s1310_s9 + $0x10] sm:$0xff] %v732_v29 }
 0x146   : > { %744 = vst [vmem:[%s1310_s9 + $0x30] sm:$0xff] %v736_v30  ;;  %741 = vst [vmem:[%s1310_s9 + $0x18] sm:$0xff] %v733_v33 }
 0x147   : > { %745 = vst [vmem:[%s1310_s9 + $0x38] sm:$0xff] %v737_v34 }
 0x14a   : > { %v771_v35 = vld [vmem:[%s1310_s9] sm:$0xff] }
 0x14b   : > { %v773_v36 = vld [vmem:[%s1310_s9 + $0x8] sm:$0xff]  ;;  %v779_v39 = vld [vmem:[%s1310_s9 + $0x20] sm:$0xff]  ;;  %772 = vst [vmem:[%s758_s11] sm:$0xff] %v771_v35 }
 0x14c   : > { %v775_v37 = vld [vmem:[%s1310_s9 + $0x10] sm:$0xff]  ;;  %v781_v40 = vld [vmem:[%s1310_s9 + $0x28] sm:$0xff]  ;;  %774 = vst [vmem:[%s758_s11 + $0x8] sm:$0xff] %v773_v36  ;;  %780 = vst [vmem:[%s758_s11 + $0x60] sm:$0xff] %v779_v39 }
 0x14d   : > { %v777_v38 = vld [vmem:[%s1310_s9 + $0x18] sm:$0xff]  ;;  %776 = vst [vmem:[%s758_s11 + $0x30] sm:$0xff] %v775_v37  ;;  %782 = vst [vmem:[%s758_s11 + $0x68] sm:$0xff] %v781_v40  ;;  %v783_v41 = vld [vmem:[%s1310_s9 + $0x30] sm:$0xff] }
 0x14e   : > { %778 = vst [vmem:[%s758_s11 + $0x38] sm:$0xff] %v777_v38  ;;  %v785_v42 = vld [vmem:[%s1310_s9 + $0x38] sm:$0xff]  ;;  %784 = vst [vmem:[%s758_s11 + $0x90] sm:$0xff] %v783_v41 }
 0x14f   : > { %786 = vst [vmem:[%s758_s11 + $0x98] sm:$0xff] %v785_v42 }
 0x150 PF: > { %s13_s16 = sadd.s32 1, %s1103_s16   ;;  %s1354_s12 = smov %s1091_s13 }
 0x151   : > { %p10_p12 = scmp.ge.s32.totalorder %s13_s16, 5   ;;  %s1355_s13 = smov %s1165_s22 }
 0x152   : > { %s1356_s14 = smov %s1099_s15  ;;  %s1357_s15 = smov %s1359_s17 }
 0x153   :  { %12 = sbr.rel (!%p10_p12) target bundleno = 3 (0x3), region = 142 }

// kernel: _lambda_.17
= control target key start
LH: loop header
LB: loop body
LE: loop exit
PB: predicated region body
PF: predicated region fallthrough
CT: control target
= control target key end

     0   :  { %s2594_s0 = inlined_call_operand.vmem [shape: f32[32,256], index: 0, kind: input, shape index: {}, may-alias: {0,5}]   ;;  %s2595_s1 = inlined_call_operand.vmem [shape: bf16[256,1024], index: 1, kind: input, shape index: {}]   ;;  %s2596_s2 = inlined_call_operand.hbm [shape: f32[1,1024], index: 2, kind: input, shape index: {}]   ;;  %s2597_s3 = inlined_call_operand.vmem [shape: bf16[1024,256], index: 3, kind: input, shape index: {}]   ;;  %s2598_s4 = inlined_call_operand.hbm [shape: f32[1,256], index: 4, kind: input, shape index: {}]   ;;  %s2599_s5 = inlined_call_operand.vmem [shape: f32[32,256], index: 5, kind: input, shape index: {}, may-alias: {0,5}]   ;;  %s2600_s6 = inlined_call_operand.hbm [shape: f32[1,256], index: 6, kind: input, shape index: {}]   ;;  %s2601_s7 = inlined_call_operand.hbm [shape: f32[1,256], index: 7, kind: input, shape index: {}]   ;;  %s2602_s8 = inlined_call_operand.vmem [shape: f32[32,256], index: 8, kind: output, shape index: {}]  }
   0x1   :  { %2610 = sst [smem:[#allocation16_spill]] %s2602_s8 }
   0x2   :  { %13 = vsyncpa [#allocation5], 0 }
   0x3   :  { %15 = vsyncpa [#allocation5 + $0x1], 0 }
   0x4   :  { %16 = vsyncpa [#allocation7], 0 }
   0x5   :  { %17 = vsyncpa [#allocation10], 0  ;;  %s2104_s27 = smov 0   ;;  %s2106_s28 = smov 0  }
   0x6   :  { %s2108_s29 = smov 0   ;;  %s2110_s30 = smov 0  }
   0x7   :  { %s2112_s9 = smov 0   ;;  %s2114_s10 = smov 0  }
   0x8 LB: > { %s1584_s11 = sadd.s32 4294967295, %s2052_s10   ;;  %s32_s12 = sadd.s32 1, %s2048_s9  ;;  %s2052_s10 = sphi %s2114_s10, %s23_s10   ;;  %s2048_s9 = sphi %s2112_s9, %s2631_s9   ;;  %s2044_s30 = sphi %s2110_s30, %s2630_s30   ;;  %s2040_s29 = sphi %s2108_s29, %s2629_s29   ;;  %s2036_s28 = sphi %s2106_s28, %s2628_s28   ;;  %s2032_s27 = sphi %s2104_s27, %s2627_s27  }
   0x9   : > { %p33_p0 = scmp.ge.s32.totalorder %s32_s12, 4  ;;  %s68_s13 = sadd.s32 1, %s2040_s29 }
   0xa   : > { %p75_p1 = scmp.ne.s32.totalorder %s2040_s29, %s2036_s28  ;;  %p76_p2 = scmp.eq.s32.totalorder %s2052_s10, 0 }
   0xb   : > { %s2633_s12 = smov (%p33_p0, %s32_s12), 0  ;;  %p107_p4 = scmp.ne.s32.totalorder %s2036_s28, %s2032_s27 }
   0xc   : > { %2611 = sst [smem:[#allocation14_spill]] %s2633_s12  ;;  %p2140_p3 = por %p76_p2, %p75_p1 }
   0xd   : > { %s65_s15 = ssub.s32 %s2048_s9, %s2633_s12  ;;  %p2147_p5 = scmp.eq.s32.totalorder %s1584_s11, 0 }
   0xe   : > { %s2612_s14 = scalar_select %p2140_p3, 1, 0 }
   0xf   : > { %s2613_s16 = scalar_select %p2147_p5, 1, 0 }
  0x10   : > { %p66_p6 = scmp.eq.s32.totalorder %s65_s15, 0  ;;  %p1585_p7 = scmp.ge.s32.totalorder %s2052_s10, 1 }
  0x11   : > { %p2154_p8 = por %p2147_p5, %p107_p4  ;;  %p259_p9 = scmp.lt.s32.totalorder %s2052_s10, 5 }
  0x12   : > { %s2160_s18 = scalar_select %p66_p6, %s2040_s29, %s68_s13  }
  0x13   : > { %s2614_s17 = scalar_select %p2154_p8, 1, 0 }
  0x14   : > { %2615 = sst [smem:[#allocation15_spill]] %s2160_s18  ;;  %p2162_p10 = pnand %p1585_p7, %p259_p9 }
  0x15   : > { %s2054_s20 = smov [#allocation6]   ;;  %s2055_s22 = smov [#allocation8]  }
  0x16   : > { %s2616_s19 = scalar_select %p2162_p10, 1, 0 }
  0x17   : > { %p1694_p11 = pneg %p2162_p10  ;;  %s282_s21 = sshll.u32 %s2054_s20, 4  ;;  %s283_s21 = int_to_ptr.vmem [resolvable:$true] %s282_s21 }
  0x18   : > { %s303_s23 = sshll.u32 %s2055_s22, 4  ;;  %s2056_s25 = smov [#allocation9]   ;;  %s2174_s23 = int_to_ptr.vmem [resolvable:$true] %s303_s23 }
  0x19   : > { %p2170_p12 = pnand %p1694_p11, %p2147_p5  ;;  %s2176_s26 = sshll.u32 %s2056_s25, 4  ;;  %s315_s26 = int_to_ptr.vmem [resolvable:$true] %s2176_s26 }
  0x1a   : > { %s1882_s13 = scalar_lea.hbm %s2598_s4, 32 }
  0x1b   : > { %p1883_p13 = scmp.ne.s32.totalorder %s2598_s4, %s1882_s13  ;;  %p2186_p0 = pneg %p2170_p12 }
  0x1c   : > { %p1889_p4 = scmp.lt.u32.totalorder %s1882_s13, %s2598_s4 }
  0x1d   : > { %p1885_p1 = pnand %p2186_p0, %p1883_p13 }
  0x1f   : > { %p1886_p2 = pneg %p1885_p1 }
  0x21   : > { %p1891_p6 = pnand %p1889_p4, %p1886_p2 }
  0x23   : > { %1894 = shalt.err (!%p1891_p6)
}
  0x24   : > { %s1895_s27 = scalar_lea.vmem %s283_s21, 32  ;;  %p1903_p5 = scmp.lt.s32.totalorder %s283_s21, %s283_s21 }
  0x25   : > { %p1896_p7 = scmp.ne.s32.totalorder %s283_s21, %s1895_s27  ;;  %p1904_p8 = scmp.lt.s32.totalorder %s1895_s27, %s1895_s27 }
  0x27   : > { %p1898_p9 = pnand %p1896_p7, %p2186_p0  ;;  %p1905_p10 = por %p1904_p8, %p1903_p5 }
  0x29   : > { %p1899_p11 = pneg %p1898_p9 }
  0x2b   : > { %p1906_p3 = pnand %p1905_p10, %p1899_p11 }
  0x2d   : > { %1909 = shalt.err (!%p1906_p3)
}
  0x2e   : > { %1697 = dma.hbm_to_vmem [thread:$0]  (!%p2170_p12), %s2598_s4, 32, %s283_s21, [#allocation7]  }
  0x2f   : > { %s1910_s20 = scalar_lea.hbm %s2600_s6, 32 }
  0x30   : > { %p1911_p13 = scmp.ne.s32.totalorder %s2600_s6, %s1910_s20  ;;  %p1917_p3 = scmp.lt.u32.totalorder %s1910_s20, %s2600_s6 }
  0x32   : > { %p1913_p1 = pnand %p1911_p13, %p2186_p0 }
  0x34   : > { %p1914_p5 = pneg %p1913_p1 }
  0x36   : > { %p1919_p8 = pnand %p1917_p3, %p1914_p5 }
  0x38   : > { %1922 = shalt.err (!%p1919_p8)
}
  0x39   : > { %s1923_s21 = scalar_lea.vmem %s2174_s23, 32  ;;  %p1931_p6 = scmp.lt.s32.totalorder %s2174_s23, %s2174_s23 }
  0x3a   : > { %p1924_p10 = scmp.ne.s32.totalorder %s2174_s23, %s1923_s21  ;;  %p1932_p7 = scmp.lt.s32.totalorder %s1923_s21, %s1923_s21 }
  0x3c   : > { %p1926_p2 = pnand %p1924_p10, %p2186_p0  ;;  %p1933_p9 = por %p1932_p7, %p1931_p6 }
  0x3e   : > { %p1927_p4 = pneg %p1926_p2 }
  0x40   : > { %p1934_p11 = pnand %p1933_p9, %p1927_p4 }
  0x42   : > { %1937 = shalt.err (!%p1934_p11)
}
  0x43   : > { %1700 = dma.hbm_to_vmem [thread:$0]  (!%p2170_p12), %s2600_s6, 32, %s2174_s23, [#allocation7]  }
  0x44   : > { %s1938_s12 = scalar_lea.hbm %s2601_s7, 32 }
  0x45   : > { %p1939_p13 = scmp.ne.s32.totalorder %s2601_s7, %s1938_s12  ;;  %p1945_p3 = scmp.lt.u32.totalorder %s1938_s12, %s2601_s7 }
  0x47   : > { %p1941_p1 = pnand %p1939_p13, %p2186_p0 }
  0x49   : > { %p1942_p5 = pneg %p1941_p1 }
  0x4b   : > { %p1947_p8 = pnand %p1945_p3, %p1942_p5 }
  0x4d   : > { %1950 = shalt.err (!%p1947_p8)
}
  0x4e   : > { %s1951_s21 = scalar_lea.vmem %s315_s26, 32  ;;  %p1959_p6 = scmp.lt.s32.totalorder %s315_s26, %s315_s26 }
  0x4f   : > { %p1952_p10 = scmp.ne.s32.totalorder %s315_s26, %s1951_s21  ;;  %p1960_p7 = scmp.lt.s32.totalorder %s1951_s21, %s1951_s21 }
  0x51   : > { %p1954_p2 = pnand %p1952_p10, %p2186_p0  ;;  %p1961_p9 = por %p1960_p7, %p1959_p6 }
  0x53   : > { %p1955_p4 = pneg %p1954_p2 }
  0x55   : > { %p1962_p11 = pnand %p1961_p9, %p1955_p4 }
  0x57   : > { %1965 = shalt.err (!%p1962_p11)
}
  0x58   : > { %1703 = dma.hbm_to_vmem [thread:$0]  (!%p2170_p12), %s2601_s7, 32, %s315_s26, [#allocation10]  }
  0x59   : > { %p1591_p13 = scmp.ge.s32.totalorder %s2052_s10, 4 }
  0x5a   : > { %p2619_p1 = scmp.ne.s32.totalorder (!%p1591_p13), %s2612_s14, 0 }
  0x5b   : > { %321 = sbr.rel (%p1591_p13) target bundleno = 160 (0xa0), region = 36 }
  0x62   : > { %324 = sbr.rel (!%p2619_p1) target bundleno = 134 (0x86), region = 40  ;;  %s326_s22 = sand.u32 (%p2619_p1), 1, %s2040_s29  }
  0x63   : > { %s1677_s18 = sshll.u32 (%p2619_p1), %s2048_s9, 3  ;;  %s1592_s11 = sshll.u32 (%p2619_p1), %s326_s22, 8 }
  0x64   : > { %s2252_s13 = scalar_lea.vmem (%p2619_p1), %s2595_s1, %s1677_s18  ;;  %s2257_s24 = scalar_lea.vmem (%p2619_p1), [#allocation3], %s1592_s11 }
  0x65   : > { %v421_v0 = vld [vmem:[%s2252_s13] sm:$0xff] (%p2619_p1) }
  0x66   : > { %v423_v1 = vld [vmem:[%s2252_s13 + $0x20] sm:$0xff] (%p2619_p1)  ;;  %422 = vst [vmem:[%s2257_s24] sm:$0xff] (%p2619_p1), %v421_v0 }
  0x67   : > { %v425_v2 = vld [vmem:[%s2252_s13 + $0x40] sm:$0xff] (%p2619_p1)  ;;  %424 = vst [vmem:[%s2257_s24 + $0x8] sm:$0xff] (%p2619_p1), %v423_v1 }
  0x68   : > { %426 = vst [vmem:[%s2257_s24 + $0x10] sm:$0xff] (%p2619_p1), %v425_v2  ;;  %v427_v3 = vld [vmem:[%s2252_s13 + $0x60] sm:$0xff] (%p2619_p1) }
  0x69   : > { %v429_v4 = vld [vmem:[%s2252_s13 + $0x80] sm:$0xff]  ;;  %428 = vst [vmem:[%s2257_s24 + $0x18] sm:$0xff] %v427_v3 }
  0x6a   : > { %v431_v5 = vld [vmem:[%s2252_s13 + $0xa0] sm:$0xff]  ;;  %430 = vst [vmem:[%s2257_s24 + $0x20] sm:$0xff] %v429_v4 }
  0x6b   : > { %432 = vst [vmem:[%s2257_s24 + $0x28] sm:$0xff] %v431_v5  ;;  %v433_v6 = vld [vmem:[%s2252_s13 + $0xc0] sm:$0xff] }
  0x6c   : > { %v435_v7 = vld [vmem:[%s2252_s13 + $0xe0] sm:$0xff]  ;;  %434 = vst [vmem:[%s2257_s24 + $0x30] sm:$0xff] %v433_v6 }
  0x6d   : > { %v437_v8 = vld [vmem:[%s2252_s13 + $0x100] sm:$0xff]  ;;  %436 = vst [vmem:[%s2257_s24 + $0x38] sm:$0xff] %v435_v7 }
  0x6e   : > { %438 = vst [vmem:[%s2257_s24 + $0x40] sm:$0xff] %v437_v8  ;;  %v439_v9 = vld [vmem:[%s2252_s13 + $0x120] sm:$0xff] }
  0x6f   : > { %v441_v10 = vld [vmem:[%s2252_s13 + $0x140] sm:$0xff]  ;;  %440 = vst [vmem:[%s2257_s24 + $0x48] sm:$0xff] %v439_v9 }
  0x70   : > { %v443_v11 = vld [vmem:[%s2252_s13 + $0x160] sm:$0xff]  ;;  %442 = vst [vmem:[%s2257_s24 + $0x50] sm:$0xff] %v441_v10 }
  0x71   : > { %444 = vst [vmem:[%s2257_s24 + $0x58] sm:$0xff] %v443_v11  ;;  %v445_v12 = vld [vmem:[%s2252_s13 + $0x180] sm:$0xff] }
  0x72   : > { %v447_v13 = vld [vmem:[%s2252_s13 + $0x1a0] sm:$0xff]  ;;  %446 = vst [vmem:[%s2257_s24 + $0x60] sm:$0xff] %v445_v12 }
  0x73   : > { %v449_v14 = vld [vmem:[%s2252_s13 + $0x1c0] sm:$0xff]  ;;  %448 = vst [vmem:[%s2257_s24 + $0x68] sm:$0xff] %v447_v13 }
  0x74   : > { %450 = vst [vmem:[%s2257_s24 + $0x70] sm:$0xff] %v449_v14  ;;  %v451_v15 = vld [vmem:[%s2252_s13 + $0x1e0] sm:$0xff] }
  0x75   : > { %v453_v16 = vld [vmem:[%s2252_s13 + $0x200] sm:$0xff]  ;;  %452 = vst [vmem:[%s2257_s24 + $0x78] sm:$0xff] %v451_v15 }
  0x76   : > { %v455_v17 = vld [vmem:[%s2252_s13 + $0x220] sm:$0xff]  ;;  %454 = vst [vmem:[%s2257_s24 + $0x80] sm:$0xff] %v453_v16 }
  0x77   : > { %456 = vst [vmem:[%s2257_s24 + $0x88] sm:$0xff] %v455_v17  ;;  %v457_v18 = vld [vmem:[%s2252_s13 + $0x240] sm:$0xff] }
  0x78   : > { %v459_v19 = vld [vmem:[%s2252_s13 + $0x260] sm:$0xff]  ;;  %458 = vst [vmem:[%s2257_s24 + $0x90] sm:$0xff] %v457_v18 }
  0x79   : > { %v461_v20 = vld [vmem:[%s2252_s13 + $0x280] sm:$0xff]  ;;  %460 = vst [vmem:[%s2257_s24 + $0x98] sm:$0xff] %v459_v19 }
  0x7a   : > { %462 = vst [vmem:[%s2257_s24 + $0xa0] sm:$0xff] %v461_v20  ;;  %v463_v21 = vld [vmem:[%s2252_s13 + $0x2a0] sm:$0xff] }
  0x7b   : > { %v465_v22 = vld [vmem:[%s2252_s13 + $0x2c0] sm:$0xff]  ;;  %464 = vst [vmem:[%s2257_s24 + $0xa8] sm:$0xff] %v463_v21 }
  0x7c   : > { %v467_v23 = vld [vmem:[%s2252_s13 + $0x2e0] sm:$0xff]  ;;  %466 = vst [vmem:[%s2257_s24 + $0xb0] sm:$0xff] %v465_v22 }
  0x7d   : > { %468 = vst [vmem:[%s2257_s24 + $0xb8] sm:$0xff] %v467_v23  ;;  %v469_v24 = vld [vmem:[%s2252_s13 + $0x300] sm:$0xff] }
  0x7e   : > { %v471_v25 = vld [vmem:[%s2252_s13 + $0x320] sm:$0xff]  ;;  %470 = vst [vmem:[%s2257_s24 + $0xc0] sm:$0xff] %v469_v24 }
  0x7f   : > { %v473_v26 = vld [vmem:[%s2252_s13 + $0x340] sm:$0xff]  ;;  %472 = vst [vmem:[%s2257_s24 + $0xc8] sm:$0xff] %v471_v25 }
  0x80   : > { %474 = vst [vmem:[%s2257_s24 + $0xd0] sm:$0xff] %v473_v26  ;;  %v475_v27 = vld [vmem:[%s2252_s13 + $0x360] sm:$0xff] }
  0x81   : > { %v477_v28 = vld [vmem:[%s2252_s13 + $0x380] sm:$0xff]  ;;  %476 = vst [vmem:[%s2257_s24 + $0xd8] sm:$0xff] %v475_v27 }
  0x82   : > { %v479_v29 = vld [vmem:[%s2252_s13 + $0x3a0] sm:$0xff]  ;;  %478 = vst [vmem:[%s2257_s24 + $0xe0] sm:$0xff] %v477_v28 }
  0x83   : > { %480 = vst [vmem:[%s2257_s24 + $0xe8] sm:$0xff] %v479_v29  ;;  %v481_v30 = vld [vmem:[%s2252_s13 + $0x3c0] sm:$0xff] }
  0x84   : > { %v483_v31 = vld [vmem:[%s2252_s13 + $0x3e0] sm:$0xff]  ;;  %482 = vst [vmem:[%s2257_s24 + $0xf0] sm:$0xff] %v481_v30 }
  0x85   : > { %484 = vst [vmem:[%s2257_s24 + $0xf8] sm:$0xff] %v483_v31 }
  0x86 PF: > { %s491_s26 = sand.u32 1, %s2040_s29   ;;  %s1678_s20 = sshll.u32 %s2048_s9, 5 }
  0x87   : > { %s1595_s25 = sshll.u32 %s491_s26, 1  ;;  %s2325_s23 = scalar_lea.hbm %s2596_s2, %s1678_s20 }
  0x88   : > { %s495_s8 = scalar_lea.vmem [#allocation4], %s1595_s25  ;;  %s492_s18 = scalar_lea.sflag [#allocation5], %s491_s26 }
  0x89   : > { %s503_s22 = sshll.u32 %s495_s8, 4  ;;  %s1966_s11 = scalar_lea.hbm %s2325_s23, 32  ;;  %s504_s22 = int_to_ptr.vmem [resolvable:$true] %s503_s22 }
  0x8a   : > { %p1967_p12 = scmp.ne.s32.totalorder %s2325_s23, %s1966_s11  ;;  %p2620_p0 = scmp.ne.s32.totalorder %s2612_s14, 0 }
  0x8b   : > { %s1970_s13 = scalar_lea.hbm %s2596_s2, 128  ;;  %p1971_p8 = scmp.lt.u32.totalorder %s2325_s23, %s2596_s2 }
  0x8c   : > { %p1968_p5 = pnand %p1967_p12, %p2620_p0  ;;  %p1972_p10 = scmp.lt.u32.totalorder %s1970_s13, %s1966_s11 }
  0x8d   : > { %p1974_p4 = scmp.lt.u32.totalorder %s1966_s11, %s2325_s23 }
  0x8e   : > { %p1969_p3 = pneg %p1968_p5  ;;  %p1973_p2 = por %p1972_p10, %p1971_p8 }
  0x90   : > { %p1975_p6 = por %p1974_p4, %p1973_p2 }
  0x92   : > { %p1976_p7 = pnand %p1975_p6, %p1969_p3 }
  0x94   : > { %1979 = shalt.err (!%p1976_p7)
}
  0x95   : > { %s1980_s26 = scalar_lea.vmem %s504_s22, 32  ;;  %s2057_s25 = smov [#allocation4]  }
  0x96   : > { %p1981_p9 = scmp.ne.s32.totalorder %s504_s22, %s1980_s26  ;;  %s1984_s27 = sshll.u32 %s2057_s25, 4  ;;  %s1985_s27 = int_to_ptr.vmem [resolvable:$false] %s1984_s27 }
  0x97   : > { %s1986_s21 = scalar_lea.vmem %s1985_s27, 64  ;;  %p1987_p1 = scmp.lt.s32.totalorder %s504_s22, %s1985_s27 }
  0x98   : > { %p1982_p11 = pnand %p1981_p9, %p2620_p0  ;;  %p1988_p12 = scmp.lt.s32.totalorder %s1986_s21, %s1980_s26 }
  0x9a   : > { %p1983_p13 = pneg %p1982_p11  ;;  %p1989_p5 = por %p1988_p12, %p1987_p1 }
  0x9c   : > { %p1990_p8 = pnand %p1989_p5, %p1983_p13 }
  0x9e   : > { %1993 = shalt.err (!%p1990_p8)
}
  0x9f   : > { %1686 = dma.hbm_to_vmem [thread:$0]  (%p2620_p0), %s2325_s23, 32, %s504_s22, %s492_s18  }
  0xa0 PF: > { %p2621_p3 = scmp.ne.s32.totalorder %s2616_s19, 0 }
  0xa1   : > { %s525_s8 = sand.u32 (!%p2621_p3), 1, %s2036_s28   ;;  %p2622_p10 = scmp.ne.s32.totalorder (!%p2621_p3), %s2614_s17, 0 }
  0xa2   : > { %522 = sbr.rel (%p2621_p3) target bundleno = 1051 (0x41b), region = 86  ;;  %s1599_s11 = sshll.u32 (!%p2621_p3), %s525_s8, 8 }
  0xa3   : > { %s1600_s15 = sshll.u32 (!%p2621_p3), %s525_s8, 1  ;;  %s2347_s12 = scalar_lea.vmem (!%p2621_p3), [#allocation3], %s1599_s11 }
  0xa4   : > { %s532_s13 = scalar_lea.sflag (!%p2621_p3), [#allocation5], %s525_s8  ;;  %s2349_s24 = scalar_lea.vmem (!%p2621_p3), [#allocation4], %s1600_s15 }
  0xa9   : > { %2019 = dma.done.wait (%p2622_p10), %s532_s13, 32  }
  0xaa   : > { %2021 = vsyncadd (%p2622_p10), %s532_s13, 4294967264  ;;  %p2623_p0 = scmp.ne.s32.totalorder %s2613_s16, 0 }
  0xac   : > { %2023 = dma.done.wait (%p2623_p0), [#allocation7], 64  }
  0xad   : > { %2025 = vsyncadd (%p2623_p0), [#allocation7], 4294967232 }
  0xae   : > { %2027 = dma.done.wait (%p2623_p0), [#allocation10], 32  }
  0xaf   : > { %2029 = vsyncadd (%p2623_p0), [#allocation10], 4294967264  ;;  %s1604_s14 = sshll.u32 %s2044_s30, 5  ;;  %p1607_p4 = scmp.ne.s32.totalorder %s2044_s30, 0 }
  0xb0   : > { %p613_p2 = scmp.lt.s32.totalorder %s1604_s14, 127  ;;  %v2058_v32 = vmov (!%p1607_p4), 0.0  }
  0xb1   : > { %636 = sbr.rel (%p1607_p4) target bundleno = 184 (0xb8), region = 110  ;;  %637 = vst [vmem:[#allocation2] sm:$0xff] (!%p1607_p4), %v2058_v32  ;;  %638 = vst [vmem:[#allocation2 + $0x8] sm:$0xff] (!%p1607_p4), %v2058_v32 }
  0xb2   : > { %s2635_s14 = smov (!%p613_p2, %s1604_s14), 127  ;;  %639 = vst [vmem:[#allocation2 + $0x10] sm:$0xff] (!%p1607_p4), %v2058_v32  ;;  %640 = vst [vmem:[#allocation2 + $0x18] sm:$0xff] (!%p1607_p4), %v2058_v32 }
  0xb3   : > { %s1679_s19 = sshll.u32 %s2635_s14, 3  ;;  %641 = vst [vmem:[#allocation2 + $0x20] sm:$0xff] (!%p1607_p4), %v2058_v32  ;;  %642 = vst [vmem:[#allocation2 + $0x28] sm:$0xff] (!%p1607_p4), %v2058_v32 }
  0xb4   : > { %s2367_s22 = scalar_lea.vmem %s2597_s3, %s1679_s19  ;;  %643 = vst [vmem:[#allocation2 + $0x30] sm:$0xff] (!%p1607_p4), %v2058_v32  ;;  %644 = vst [vmem:[#allocation2 + $0x38] sm:$0xff] (!%p1607_p4), %v2058_v32 }
  0xb8 PF: > { %v1762_v33 = vld [vmem:[%s2347_s12 + $0x4] ss:$8 sps:$4 sm:$0xff]   ;;  %v1764_v34 = vld [vmem:[%s2347_s12] ss:$8 sps:$4 sm:$0xff]   ;;  %v1765_v35 = vld [vmem:[%s2347_s12 + $0x14] ss:$8 sps:$4 sm:$0xff]  }
  0xb9   : > { %861 = vmatprep.subr.bf16.mxu0 %v1762_v33  ;;  %v1767_v36 = vld [vmem:[%s2347_s12 + $0x10] ss:$8 sps:$4 sm:$0xff]   ;;  %v1768_v37 = vld [vmem:[%s2347_s12 + $0x24] ss:$8 sps:$4 sm:$0xff]   ;;  %v1770_v38 = vld [vmem:[%s2347_s12 + $0x20] ss:$8 sps:$4 sm:$0xff]  }
  0xba   : > { %862 = vmatpush1.bf16.msra.mxu0 %v1764_v34  ;;  %v1771_v39 = vld [vmem:[%s2347_s12 + $0x34] ss:$8 sps:$4 sm:$0xff]   ;;  %v1773_v40 = vld [vmem:[%s2347_s12 + $0x30] ss:$8 sps:$4 sm:$0xff]   ;;  %v1774_v41 = vld [vmem:[%s2347_s12 + $0x44] ss:$8 sps:$4 sm:$0xff]  }
  0xbb   : > { %863 = vmatprep.subr.bf16.mxu0 %v1765_v35  ;;  %v1776_v42 = vld [vmem:[%s2347_s12 + $0x40] ss:$8 sps:$4 sm:$0xff]   ;;  %v1777_v43 = vld [vmem:[%s2347_s12 + $0x54] ss:$8 sps:$4 sm:$0xff]   ;;  %v1779_v44 = vld [vmem:[%s2347_s12 + $0x50] ss:$8 sps:$4 sm:$0xff]  }
  0xbc   : > { %v1780_v45 = vld [vmem:[%s2347_s12 + $0x64] ss:$8 sps:$4 sm:$0xff]   ;;  %v648_v47 = vld [vmem:[%s2594_s0 + $0x18] sm:$0xff]  ;;  %v1782_v49 = vld [vmem:[%s2347_s12 + $0x60] ss:$8 sps:$4 sm:$0xff]   ;;  %p1672_p6 = scmp.ne.s32.totalorder %s2044_s30, 3 }
  0xbd   : > { %v646_v46 = vld [vmem:[%s2594_s0 + $0x8] sm:$0xff]  ;;  %v1783_v50 = vld [vmem:[%s2347_s12 + $0x74] ss:$8 sps:$4 sm:$0xff]   ;;  %v1785_v53 = vld [vmem:[%s2347_s12 + $0x70] ss:$8 sps:$4 sm:$0xff]   ;;  %s2624_s17 = sld [smem:[#allocation16_spill]] (!%p1672_p6) }
  0xbe   : > { %864 = vmatpush1.bf16.msra.mxu0 %v1767_v36  ;;  %v654_v48 = vpack.c.bf16 %v648_v47, %v646_v46  ;;  %v1810_v51 = vld [vmem:[%s2367_s22 + $0x4] ss:$8 sps:$4 sm:$0xff]   ;;  %v1812_v52 = vld [vmem:[%s2367_s22] ss:$8 sps:$4 sm:$0xff]   ;;  %v1813_v54 = vld [vmem:[%s2367_s22 + $0x14] ss:$8 sps:$4 sm:$0xff]  }
  0xbf   : > { %865 = vmatprep.subr.bf16.mxu0 %v1768_v37  ;;  %1190 = vmatprep.subr.bf16.mxu1 %v1810_v51  ;;  %v1786_v55 = vld [vmem:[%s2347_s12 + $0x84] ss:$8 sps:$4 sm:$0xff]   ;;  %v1815_v56 = vld [vmem:[%s2367_s22 + $0x10] ss:$8 sps:$4 sm:$0xff]   ;;  %v1788_v58 = vld [vmem:[%s2347_s12 + $0x80] ss:$8 sps:$4 sm:$0xff]  }
  0xc0   : > { %893 = vmatprep.mubr.bf16.mxu0 %v654_v48  ;;  %1191 = vmatpush1.bf16.msra.mxu1 %v1812_v52  ;;  %v1816_v57 = vld [vmem:[%s2367_s22 + $0x24] ss:$8 sps:$4 sm:$0xff]   ;;  %v1789_v59 = vld [vmem:[%s2347_s12 + $0x94] ss:$8 sps:$4 sm:$0xff]   ;;  %v1818_v60 = vld [vmem:[%s2367_s22 + $0x20] ss:$8 sps:$4 sm:$0xff]  }
  0xc1   : > { %1192 = vmatprep.subr.bf16.mxu1 %v1813_v54  ;;  %v1819_v61 = vld [vmem:[%s2367_s22 + $0x34] ss:$8 sps:$4 sm:$0xff]   ;;  %v1791_v62 = vld [vmem:[%s2347_s12 + $0x90] ss:$8 sps:$4 sm:$0xff]   ;;  %v1792_v0 = vld [vmem:[%s2347_s12 + $0xa4] ss:$8 sps:$4 sm:$0xff]  }
  0xc2   : > { %866 = vmatpush1.bf16.msra.mxu0 %v1770_v38  ;;  %v1821_v63 = vld [vmem:[%s2367_s22 + $0x30] ss:$8 sps:$4 sm:$0xff]   ;;  %v1822_v1 = vld [vmem:[%s2367_s22 + $0x44] ss:$8 sps:$4 sm:$0xff]   ;;  %v1794_v2 = vld [vmem:[%s2347_s12 + $0xa0] ss:$8 sps:$4 sm:$0xff]  }
  0xc3   : > { %867 = vmatprep.subr.bf16.mxu0 %v1771_v39  ;;  %v1824_v3 = vld [vmem:[%s2367_s22 + $0x40] ss:$8 sps:$4 sm:$0xff]   ;;  %v1795_v4 = vld [vmem:[%s2347_s12 + $0xb4] ss:$8 sps:$4 sm:$0xff]   ;;  %v1797_v6 = vld [vmem:[%s2347_s12 + $0xb0] ss:$8 sps:$4 sm:$0xff]  }
  0xc4   : > { %1193 = vmatpush1.bf16.msra.mxu1 %v1815_v56  ;;  %v1825_v5 = vld [vmem:[%s2367_s22 + $0x54] ss:$8 sps:$4 sm:$0xff]   ;;  %v1827_v7 = vld [vmem:[%s2367_s22 + $0x50] ss:$8 sps:$4 sm:$0xff]   ;;  %v1798_v8 = vld [vmem:[%s2347_s12 + $0xc4] ss:$8 sps:$4 sm:$0xff]  }
  0xc5   : > { %1194 = vmatprep.subr.bf16.mxu1 %v1816_v57  ;;  %v1828_v9 = vld [vmem:[%s2367_s22 + $0x64] ss:$8 sps:$4 sm:$0xff]   ;;  %v1800_v10 = vld [vmem:[%s2347_s12 + $0xc0] ss:$8 sps:$4 sm:$0xff]   ;;  %v1801_v12 = vld [vmem:[%s2347_s12 + $0xd4] ss:$8 sps:$4 sm:$0xff]  }
  0xc6   : > { %868 = vmatpush1.bf16.msra.mxu0 %v1773_v40  ;;  %v1830_v11 = vld [vmem:[%s2367_s22 + $0x60] ss:$8 sps:$4 sm:$0xff]   ;;  %v1803_v13 = vld [vmem:[%s2347_s12 + $0xd0] ss:$8 sps:$4 sm:$0xff]   ;;  %v1804_v14 = vld [vmem:[%s2347_s12 + $0xe4] ss:$8 sps:$4 sm:$0xff]  }
  0xc7   : > { %869 = vmatprep.subr.bf16.mxu0 %v1774_v41  ;;  %v1806_v15 = vld [vmem:[%s2347_s12 + $0xe0] ss:$8 sps:$4 sm:$0xff]   ;;  %v1807_v16 = vld [vmem:[%s2347_s12 + $0xf4] ss:$8 sps:$4 sm:$0xff]   ;;  %v1809_v17 = vld [vmem:[%s2347_s12 + $0xf0] ss:$8 sps:$4 sm:$0xff]  }
  0xc8   : > { %1195 = vmatpush1.bf16.msra.mxu1 %v1818_v60  ;;  %v645_v18 = vld [vmem:[%s2594_s0] sm:$0xff]  ;;  %v647_v19 = vld [vmem:[%s2594_s0 + $0x10] sm:$0xff]  ;;  %v650_v20 = vld [vmem:[%s2594_s0 + $0x28] sm:$0xff] }
  0xc9   : > { %1196 = vmatprep.subr.bf16.mxu1 %v1819_v61  ;;  %v652_v21 = vld [vmem:[%s2594_s0 + $0x38] sm:$0xff]  ;;  %v653_v22 = vpack.c.bf16 %v647_v19, %v645_v18  ;;  %v649_v24 = vld [vmem:[%s2594_s0 + $0x20] sm:$0xff]  ;;  %v651_v25 = vld [vmem:[%s2594_s0 + $0x30] sm:$0xff] }
  0xca   : > { %870 = vmatpush1.bf16.msra.mxu0 %v1776_v42  ;;  %v656_v23 = vpack.c.bf16 %v652_v21, %v650_v20  ;;  %v655_v26 = vpack.c.bf16 %v651_v25, %v649_v24  ;;  %v1831_v27 = vld [vmem:[%s2367_s22 + $0x74] ss:$8 sps:$4 sm:$0xff]   ;;  %v1833_v28 = vld [vmem:[%s2367_s22 + $0x70] ss:$8 sps:$4 sm:$0xff]   ;;  %v1834_v29 = vld [vmem:[%s2367_s22 + $0x84] ss:$8 sps:$4 sm:$0xff]  }
  0xcb   : > { %871 = vmatprep.subr.bf16.mxu0 %v1777_v43  ;;  %v1836_v30 = vld [vmem:[%s2367_s22 + $0x80] ss:$8 sps:$4 sm:$0xff]   ;;  %v1837_v31 = vld [vmem:[%s2367_s22 + $0x94] ss:$8 sps:$4 sm:$0xff]   ;;  %v1839_v32 = vld [vmem:[%s2367_s22 + $0x90] ss:$8 sps:$4 sm:$0xff]  }
  0xcc   : > { %1197 = vmatpush1.bf16.msra.mxu1 %v1821_v63  ;;  %v1840_v33 = vld [vmem:[%s2367_s22 + $0xa4] ss:$8 sps:$4 sm:$0xff]   ;;  %v1842_v34 = vld [vmem:[%s2367_s22 + $0xa0] ss:$8 sps:$4 sm:$0xff]   ;;  %v1843_v35 = vld [vmem:[%s2367_s22 + $0xb4] ss:$8 sps:$4 sm:$0xff]  }
  0xcd   : > { %1198 = vmatprep.subr.bf16.mxu1 %v1822_v1  ;;  %v1845_v36 = vld [vmem:[%s2367_s22 + $0xb0] ss:$8 sps:$4 sm:$0xff]   ;;  %v1846_v37 = vld [vmem:[%s2367_s22 + $0xc4] ss:$8 sps:$4 sm:$0xff]   ;;  %v1848_v38 = vld [vmem:[%s2367_s22 + $0xc0] ss:$8 sps:$4 sm:$0xff]  }
  0xce   : > { %872 = vmatpush1.bf16.msra.mxu0 %v1779_v44  ;;  %v1849_v39 = vld [vmem:[%s2367_s22 + $0xd4] ss:$8 sps:$4 sm:$0xff]   ;;  %v1851_v40 = vld [vmem:[%s2367_s22 + $0xd0] ss:$8 sps:$4 sm:$0xff]   ;;  %v1852_v41 = vld [vmem:[%s2367_s22 + $0xe4] ss:$8 sps:$4 sm:$0xff]  }
  0xcf   : > { %873 = vmatprep.subr.bf16.mxu0 %v1780_v45  ;;  %v1854_v42 = vld [vmem:[%s2367_s22 + $0xe0] ss:$8 sps:$4 sm:$0xff]   ;;  %v1855_v43 = vld [vmem:[%s2367_s22 + $0xf4] ss:$8 sps:$4 sm:$0xff]   ;;  %v1857_v44 = vld [vmem:[%s2367_s22 + $0xf0] ss:$8 sps:$4 sm:$0xff]   ;;  %v691_v45 = vlaneseq }
  0xd0   : > { %1199 = vmatpush1.bf16.msra.mxu1 %v1824_v3  ;;  %v689_v48 = vld [vmem:[%s2349_s24] sm:$0x3] }
  0xd1   : > { %1200 = vmatprep.subr.bf16.mxu1 %v1825_v5  ;;  %v692_v46 = vshrl.u32 %v691_v45, 7 }
  0xd2   : > { %874 = vmatpush1.bf16.msra.mxu0 %v1782_v49 }
  0xd3   : > { %875 = vmatprep.subr.bf16.mxu0 %v1783_v50  ;;  %v2458_v47 = vsub.s32 0, %v692_v46  ;;  %v2461_v49 = vsub.s32 1, %v692_v46 }
  0xd4   : > { %1201 = vmatpush1.bf16.msra.mxu1 %v1827_v7 }
  0xd5   : > { %1202 = vmatprep.subr.bf16.mxu1 %v1828_v9  ;;  %v694_v50 = vrot.slane %v689_v48, %v2458_v47  ;;  %v698_v51 = vrot.slane %v689_v48, %v2461_v49 }
  0xd6   : > { %876 = vmatpush1.bf16.msra.mxu0 %v1785_v53 }
  0xd7   : > { %877 = vmatprep.subr.bf16.mxu0 %v1786_v55 }
  0xd8   : > { %1203 = vmatpush1.bf16.msra.mxu1 %v1830_v11 }
  0xd9   : > { %1204 = vmatprep.subr.bf16.mxu1 %v1831_v27 }
  0xda   : > { %878 = vmatpush1.bf16.msra.mxu0 %v1788_v58 }
  0xdb   : > { %879 = vmatprep.subr.bf16.mxu0 %v1789_v59 }
  0xdc   : > { %1205 = vmatpush1.bf16.msra.mxu1 %v1833_v28 }
  0xdd   : > { %1206 = vmatprep.subr.bf16.mxu1 %v1834_v29 }
  0xde   : > { %880 = vmatpush1.bf16.msra.mxu0 %v1791_v62 }
  0xdf   : > { %881 = vmatprep.subr.bf16.mxu0 %v1792_v0 }
  0xe0   : > { %1207 = vmatpush1.bf16.msra.mxu1 %v1836_v30 }
  0xe1   : > { %1208 = vmatprep.subr.bf16.mxu1 %v1837_v31 }
  0xe2   : > { %882 = vmatpush1.bf16.msra.mxu0 %v1794_v2 }
  0xe3   : > { %883 = vmatprep.subr.bf16.mxu0 %v1795_v4 }
  0xe4   : > { %1209 = vmatpush1.bf16.msra.mxu1 %v1839_v32 }
  0xe5   : > { %1210 = vmatprep.subr.bf16.mxu1 %v1840_v33 }
  0xe6   : > { %884 = vmatpush1.bf16.msra.mxu0 %v1797_v6 }
  0xe7   : > { %885 = vmatprep.subr.bf16.mxu0 %v1798_v8 }
  0xe8   : > { %1211 = vmatpush1.bf16.msra.mxu1 %v1842_v34 }
  0xe9   : > { %1212 = vmatprep.subr.bf16.mxu1 %v1843_v35 }
  0xea   : > { %886 = vmatpush1.bf16.msra.mxu0 %v1800_v10 }
  0xeb   : > { %887 = vmatprep.subr.bf16.mxu0 %v1801_v12 }
  0xec   : > { %1213 = vmatpush1.bf16.msra.mxu1 %v1845_v36 }
  0xed   : > { %1214 = vmatprep.subr.bf16.mxu1 %v1846_v37 }
  0xee   : > { %888 = vmatpush1.bf16.msra.mxu0 %v1803_v13 }
  0xef   : > { %889 = vmatprep.subr.bf16.mxu0 %v1804_v14 }
  0xf0   : > { %1215 = vmatpush1.bf16.msra.mxu1 %v1848_v38 }
  0xf1   : > { %1216 = vmatprep.subr.bf16.mxu1 %v1849_v39 }
  0xf2   : > { %890 = vmatpush1.bf16.msra.mxu0 %v1806_v15 }
  0xf3   : > { %891 = vmatprep.subr.bf16.mxu0 %v1807_v16 }
  0xf4   : > { %1217 = vmatpush1.bf16.msra.mxu1 %v1851_v40 }
  0xf5   : > { %1218 = vmatprep.subr.bf16.mxu1 %v1852_v41 }
  0xf6   : > { %892 = vmatpush1.bf16.msra.mxu0 %v1809_v17 }
  0xf8   : > { %1219 = vmatpush1.bf16.msra.mxu1 %v1854_v42 }
  0xf9   : > { %894 = vmatmul.mubr.bf16.vlgmr.msra.gmra.mrb[0].mxu0 %v653_v22  ;;  %1220 = vmatprep.subr.bf16.mxu1 %v1855_v43 }
  0xfa   : > { %903 = vmatprep.mubr.bf16.mxu0 %v656_v23 }
  0xfc   : > { %1221 = vmatpush1.bf16.msra.mxu1 %v1857_v44 }
 0x101   : > { %904 = vmatmul.mubr.bf16.gmra.mrb[4].mxu0 %v655_v26 }
 0x1cc   : > { %v895_v52 = vpop.f32.mrb[0].mxu0 }
 0x1cd   : > { %v2465_v53 = vadd.f32 %v895_v52, %v694_v50  ;;  %v897_v54 = vpop.f32.mrb[1].mxu0 }
 0x1ce   : > { %v2467_v55 = vadd.f32 %v897_v54, %v698_v51  ;;  %v899_v56 = vpop.f32.mrb[2].mxu0 }
 0x1cf   : > { %v914_v57 = vmul.f32 %v2465_v53, %v2465_v53  ;;  %v2471_v58 = vadd.f32 %v899_v56, %v694_v50  ;;  %v901_v59 = vpop.f32.mrb[3].mxu0 }
 0x1d0   : > { %v915_v60 = vmul.f32 %v2467_v55, %v2467_v55  ;;  %v2475_v61 = vadd.f32 %v901_v59, %v698_v51 }
 0x1d1   : > { %v922_v62 = vmul.f32 %v914_v57, %v2465_v53  ;;  %v916_v63 = vmul.f32 %v2471_v58, %v2471_v58 }
 0x1d2   : > { %v923_v0 = vmul.f32 %v915_v60, %v2467_v55  ;;  %v917_v1 = vmul.f32 %v2475_v61, %v2475_v61 }
 0x1d3   : > { %v930_v2 = vmul.f32 0.044715, %v922_v62  ;;  %v924_v3 = vmul.f32 %v916_v63, %v2471_v58 }
 0x1d4   : > { %v931_v4 = vmul.f32 0.044715, %v923_v0  ;;  %v925_v5 = vmul.f32 %v917_v1, %v2475_v61  ;;  %v905_v6 = vpop.f32.mrb[4].mxu0 }
 0x1d5   : > { %v938_v7 = vadd.f32 %v930_v2, %v2465_v53  ;;  %v932_v8 = vmul.f32 0.044715, %v924_v3  ;;  %v2486_v9 = vadd.f32 %v905_v6, %v694_v50  ;;  %v907_v10 = vpop.f32.mrb[5].mxu0 }
 0x1d6   : > { %v933_v11 = vmul.f32 0.044715, %v925_v5  ;;  %v2488_v12 = vadd.f32 %v907_v10, %v698_v51  ;;  %v909_v13 = vpop.f32.mrb[6].mxu0  ;;  %v939_v14 = vadd.f32 %v931_v4, %v2467_v55 }
 0x1d7   : > { %v946_v15 = vmul.f32 0.7978846, %v938_v7  ;;  %v940_v16 = vadd.f32 %v932_v8, %v2471_v58  ;;  %v918_v17 = vmul.f32 %v2486_v9, %v2486_v9  ;;  %v2494_v18 = vadd.f32 %v909_v13, %v694_v50  ;;  %v911_v19 = vpop.f32.mrb[7].mxu0 }
 0x1d8   : > { %v919_v20 = vmul.f32 %v2488_v12, %v2488_v12  ;;  %v2498_v21 = vadd.f32 %v911_v19, %v698_v51  ;;  %v941_v22 = vadd.f32 %v933_v11, %v2475_v61  ;;  %v947_v23 = vmul.f32 0.7978846, %v939_v14 }
 0x1d9   : > { %1858 = vtanh.f32 %v946_v15  ;;  %v948_v24 = vmul.f32 0.7978846, %v940_v16  ;;  %v926_v25 = vmul.f32 %v918_v17, %v2486_v9  ;;  %v920_v26 = vmul.f32 %v2494_v18, %v2494_v18 }
 0x1da   : > { %v927_v27 = vmul.f32 %v919_v20, %v2488_v12  ;;  %v921_v28 = vmul.f32 %v2498_v21, %v2498_v21  ;;  %v949_v29 = vmul.f32 0.7978846, %v941_v22  ;;  %1860 = vtanh.f32 %v947_v23  ;;  %v986_v22 = vld [vmem:[#allocation2] sm:$0xff]  ;;  %v987_v23 = vld [vmem:[#allocation2 + $0x8] sm:$0xff] }
 0x1db   : > { %1862 = vtanh.f32 %v948_v24  ;;  %v934_v30 = vmul.f32 0.044715, %v926_v25  ;;  %v928_v31 = vmul.f32 %v920_v26, %v2494_v18  ;;  %v988_v25 = vld [vmem:[#allocation2 + $0x10] sm:$0xff] }
 0x1dc   : > { %v935_v32 = vmul.f32 0.044715, %v927_v27  ;;  %v929_v33 = vmul.f32 %v921_v28, %v2498_v21  ;;  %1864 = vtanh.f32 %v949_v29  ;;  %v989_v28 = vld [vmem:[#allocation2 + $0x18] sm:$0xff] }
 0x1dd   : > { %v942_v34 = vadd.f32 %v934_v30, %v2486_v9  ;;  %v936_v35 = vmul.f32 0.044715, %v928_v31  ;;  %v991_v31 = vld [vmem:[#allocation2 + $0x28] sm:$0xff] }
 0x1de   : > { %v943_v36 = vadd.f32 %v935_v32, %v2488_v12  ;;  %v937_v37 = vmul.f32 0.044715, %v929_v33  ;;  %v992_v33 = vld [vmem:[#allocation2 + $0x30] sm:$0xff] }
 0x1df   : > { %v950_v38 = vmul.f32 0.7978846, %v942_v34  ;;  %v944_v39 = vadd.f32 %v936_v35, %v2494_v18 }
 0x1e0   : > { %v951_v40 = vmul.f32 0.7978846, %v943_v36  ;;  %v945_v41 = vadd.f32 %v937_v37, %v2498_v21  ;;  %v993_v36 = vld [vmem:[#allocation2 + $0x38] sm:$0xff] }
 0x1e1   : > { %1866 = vtanh.f32 %v950_v38  ;;  %v952_v42 = vmul.f32 0.7978846, %v944_v39 }
 0x1e2   : > { %1868 = vtanh.f32 %v951_v40  ;;  %v953_v43 = vmul.f32 0.7978846, %v945_v41 }
 0x1e3   : > { %v1859_v44 = vpop.eup %1858  ;;  %1870 = vtanh.f32 %v952_v42 }
 0x1e4   : > { %v1861_v45 = vpop.eup %1860  ;;  %1872 = vtanh.f32 %v953_v43  ;;  %v962_v46 = vadd.f32 1.0, %v1859_v44  ;;  %v1271_v44 = vld [vmem:[#allocation6] sm:$0x3] (!%p1672_p6) }
 0x1e5   : > { %v1863_v48 = vpop.eup %1862  ;;  %v963_v50 = vadd.f32 1.0, %v1861_v45  ;;  %v1276_v45 = vrot.slane (!%p1672_p6), %v1271_v44, %v2458_v47 }
 0x1e6   : > { %v1865_v51 = vpop.eup %1864  ;;  %v964_v52 = vadd.f32 1.0, %v1863_v48  ;;  %v970_v54 = vmul.f32 0.5, %v962_v46  ;;  %v1280_v46 = vrot.slane (!%p1672_p6), %v1271_v44, %v2461_v49  ;;  %v1291_v48 = vld [vmem:[%s2599_s5] sm:$0xff] (!%p1672_p6) }
 0x1e7   : > { %v965_v56 = vadd.f32 1.0, %v1865_v51  ;;  %v971_v57 = vmul.f32 0.5, %v963_v50  ;;  %v1292_v50 = vld [vmem:[%s2599_s5 + $0x8] sm:$0xff] (!%p1672_p6) }
 0x1e8   : > { %v972_v59 = vmul.f32 0.5, %v964_v52  ;;  %v978_v62 = vmul.f32 %v970_v54, %v2465_v53  ;;  %v1295_v54 = vld [vmem:[%s2599_s5 + $0x20] sm:$0xff] (!%p1672_p6) }
 0x1e9   : > { %v973_v60 = vmul.f32 0.5, %v965_v56  ;;  %v979_v1 = vmul.f32 %v971_v57, %v2467_v55  ;;  %v1296_v56 = vld [vmem:[%s2599_s5 + $0x28] sm:$0xff] (!%p1672_p6) }
 0x1ea   : > { %v980_v63 = vmul.f32 %v972_v59, %v2471_v58 }
 0x1eb   : > { %v1867_v0 = vpop.eup %1866  ;;  %v981_v2 = vmul.f32 %v973_v60, %v2475_v61 }
 0x1ec   : > { %v1869_v3 = vpop.eup %1868  ;;  %v994_v4 = vpack.c.bf16 %v980_v63, %v978_v62  ;;  %v966_v5 = vadd.f32 1.0, %v1867_v0 }
 0x1ed   : > { %v1871_v6 = vpop.eup %1870  ;;  %v995_v7 = vpack.c.bf16 %v981_v2, %v979_v1  ;;  %v967_v8 = vadd.f32 1.0, %v1869_v3  ;;  %v1293_v1 = vld [vmem:[%s2599_s5 + $0x10] sm:$0xff] (!%p1672_p6) }
 0x1ee   : > { %v1873_v10 = vpop.eup %1872  ;;  %v968_v11 = vadd.f32 1.0, %v1871_v6  ;;  %v974_v13 = vmul.f32 0.5, %v966_v5 }
 0x1ef   : > { %1222 = vmatprep.mubr.bf16.mxu1 %v995_v7  ;;  %v969_v14 = vadd.f32 1.0, %v1873_v10  ;;  %v975_v15 = vmul.f32 0.5, %v967_v8 }
 0x1f0   : > { %1223 = vmatmul.mubr.bf16.vlgmr.msra.gmra.mrb[0].mxu1 %v994_v4  ;;  %v976_v53 = vmul.f32 0.5, %v968_v11  ;;  %v982_v16 = vmul.f32 %v974_v13, %v2486_v9  ;;  %v1294_v4 = vld [vmem:[%s2599_s5 + $0x18] sm:$0xff] (!%p1672_p6)  ;;  %v1297_v13 = vld [vmem:[%s2599_s5 + $0x30] sm:$0xff] (!%p1672_p6) }
 0x1f1   : > { %v977_v58 = vmul.f32 0.5, %v969_v14  ;;  %v983_v61 = vmul.f32 %v975_v15, %v2488_v12  ;;  %v1298_v14 = vld [vmem:[%s2599_s5 + $0x38] sm:$0xff] (!%p1672_p6) }
 0x1f2   : > { %v984_v55 = vmul.f32 %v976_v53, %v2494_v18 }
 0x1f3   : > { %v985_v17 = vmul.f32 %v977_v58, %v2498_v21  ;;  %v990_v21 = vld [vmem:[#allocation2 + $0x20] sm:$0xff] }
 0x1f4   : > { %v996_v19 = vpack.c.bf16 %v984_v55, %v982_v16 }
 0x1f5   : > { %v997_v20 = vpack.c.bf16 %v985_v17, %v983_v61 }
 0x1f7   : > { %1232 = vmatprep.mubr.bf16.mxu1 %v997_v20 }
 0x1f8   : > { %1233 = vmatmul.mubr.bf16.gmra.mrb[4].mxu1 %v996_v19 }
 0x2c3   : > { %v1224_v24 = vpop.f32.mrb[0].mxu1 }
 0x2c4   : > { %v1243_v26 = vadd.f32 %v1224_v24, %v986_v22  ;;  %v1226_v27 = vpop.f32.mrb[1].mxu1 }
 0x2c5   : > { %v1244_v29 = vadd.f32 %v1226_v27, %v987_v23  ;;  %v1228_v30 = vpop.f32.mrb[2].mxu1 }
 0x2c6   : > { %1251 = vst [vmem:[#allocation2] sm:$0xff] %v1243_v26  ;;  %v1245_v9 = vadd.f32 %v1228_v30, %v988_v25  ;;  %v1230_v18 = vpop.f32.mrb[3].mxu1 }
 0x2c7   : > { %1252 = vst [vmem:[#allocation2 + $0x8] sm:$0xff] %v1244_v29  ;;  %v1246_v12 = vadd.f32 %v1230_v18, %v989_v28 }
 0x2c8   : > { %1253 = vst [vmem:[#allocation2 + $0x10] sm:$0xff] %v1245_v9 }
 0x2c9   : > { %1254 = vst [vmem:[#allocation2 + $0x18] sm:$0xff] %v1246_v12 }
 0x2cb   : > { %v1234_v32 = vpop.f32.mrb[4].mxu1  ;;  %1262 = sbr.rel (%p1672_p6) target bundleno = 1051 (0x41b), region = 114 }
 0x2cc   : > { %v1247_v34 = vadd.f32 %v1234_v32, %v990_v21  ;;  %v1236_v35 = vpop.f32.mrb[5].mxu1 }
 0x2cd   : > { %v1248_v37 = vadd.f32 %v1236_v35, %v991_v31  ;;  %v1238_v38 = vpop.f32.mrb[6].mxu1  ;;  %v1263_v42 = vld [vmem:[#allocation2] sm:$0xff] (!%p1672_p6) }
 0x2ce   : > { %1255 = vst [vmem:[#allocation2 + $0x20] sm:$0xff] %v1247_v34  ;;  %v1249_v39 = vadd.f32 %v1238_v38, %v992_v33  ;;  %v1240_v40 = vpop.f32.mrb[7].mxu1  ;;  %v1264_v43 = vld [vmem:[#allocation2 + $0x8] sm:$0xff] (!%p1672_p6)  ;;  %v1283_v57 = vadd.f32 (!%p1672_p6), %v1276_v45, %v1263_v42 }
 0x2cf   : > { %1256 = vst [vmem:[#allocation2 + $0x28] sm:$0xff] %v1248_v37  ;;  %v1250_v41 = vadd.f32 %v1240_v40, %v993_v36  ;;  %v1284_v59 = vadd.f32 (!%p1672_p6), %v1280_v46, %v1264_v43  ;;  %v1265_v63 = vld [vmem:[#allocation2 + $0x10] sm:$0xff] (!%p1672_p6) }
 0x2d0   : > { %1257 = vst [vmem:[#allocation2 + $0x30] sm:$0xff] %v1249_v39  ;;  %v1266_v0 = vld [vmem:[#allocation2 + $0x18] sm:$0xff] (!%p1672_p6)  ;;  %v1285_v2 = vadd.f32 (!%p1672_p6), %v1276_v45, %v1265_v63  ;;  %v1299_v7 = vadd.f32 (!%p1672_p6), %v1291_v48, %v1283_v57 }
 0x2d1   : > { %1258 = vst [vmem:[#allocation2 + $0x38] sm:$0xff] %v1250_v41  ;;  %v1286_v3 = vadd.f32 (!%p1672_p6), %v1280_v46, %v1266_v0  ;;  %v1300_v8 = vadd.f32 (!%p1672_p6), %v1292_v50, %v1284_v59 }
 0x2d2   : > { %v1301_v15 = vadd.f32 %v1293_v1, %v1285_v2  ;;  %v1307_v1 = vld [vmem:[#allocation8] sm:$0x3]  ;;  %v1308_v2 = vld [vmem:[#allocation9] sm:$0x3] }
 0x2d3   : > { %v1302_v53 = vadd.f32 %v1294_v4, %v1286_v3  ;;  %v1309_v55 = vadd.f32 %v1300_v8, %v1299_v7  ;;  %v1378_v3 = vrot.slane %v1307_v1, %v2458_v47  ;;  %v1382_v4 = vrot.slane %v1307_v1, %v2461_v49 }
 0x2d5   : > { %v1267_v51 = vld [vmem:[#allocation2 + $0x20] sm:$0xff]  ;;  %1310 = vadd.xlane.f32.xlu0 %v1309_v55  ;;  %v1312_v20 = vadd.f32 %v1302_v53, %v1301_v15 }
 0x2d6   : > { %v1268_v52 = vld [vmem:[#allocation2 + $0x28] sm:$0xff]  ;;  %v1287_v60 = vadd.f32 %v1276_v45, %v1267_v51 }
 0x2d7   : > { %v1288_v62 = vadd.f32 %v1280_v46, %v1268_v52  ;;  %v1269_v5 = vld [vmem:[#allocation2 + $0x30] sm:$0xff] }
 0x2d8   : > { %v1270_v6 = vld [vmem:[#allocation2 + $0x38] sm:$0xff]  ;;  %v1303_v10 = vadd.f32 %v1295_v54, %v1287_v60  ;;  %v1289_v58 = vadd.f32 %v1276_v45, %v1269_v5 }
 0x2d9   : > { %v1304_v11 = vadd.f32 %v1296_v56, %v1288_v62  ;;  %v1290_v16 = vadd.f32 %v1280_v46, %v1270_v6  ;;  %1313 = vadd.xlane.f32.xlu0 %v1312_v20  ;;  %v1397_v6 = vrot.slane %v1308_v2, %v2458_v47 }
 0x2da   : > { %v1305_v17 = vadd.f32 %v1297_v13, %v1289_v58 }
 0x2db   : > { %v1315_v61 = vadd.f32 %v1304_v11, %v1303_v10  ;;  %v1306_v19 = vadd.f32 %v1298_v14, %v1290_v16 }
 0x2dd   : > { %1316 = vadd.xlane.f32.xlu1 %v1315_v61  ;;  %v1318_v22 = vadd.f32 %v1306_v19, %v1305_v17 }
 0x2e1   : > { %1319 = vadd.xlane.f32.xlu1 %v1318_v22 }
 0x362   : > { %v1311_v23 = vpop.xlane.xlu0 %1310 }
 0x363   : > { %v1322_v25 = vmul.f32 0.00390625, %v1311_v23 }
 0x365   : > { %v1326_v27 = vsub.f32 %v1299_v7, %v1322_v25  ;;  %v1327_v28 = vsub.f32 %v1300_v8, %v1322_v25  ;;  %v1401_v7 = vrot.slane %v1308_v2, %v2461_v49 }
 0x366   : > { %v1314_v9 = vpop.xlane.xlu0 %1313 }
 0x367   : > { %v1323_v12 = vmul.f32 0.00390625, %v1314_v9  ;;  %v1334_v31 = vmul.f32 %v1326_v27, %v1326_v27  ;;  %v1335_v32 = vmul.f32 %v1327_v28, %v1327_v28 }
 0x369   : > { %v1328_v35 = vsub.f32 %v1301_v15, %v1323_v12  ;;  %v1329_v36 = vsub.f32 %v1302_v53, %v1323_v12  ;;  %v1342_v39 = vadd.f32 %v1335_v32, %v1334_v31 }
 0x36a   : > { %v1317_v24 = vpop.xlane.xlu1 %1316 }
 0x36b   : > { %v1324_v26 = vmul.f32 0.00390625, %v1317_v24  ;;  %v1336_v40 = vmul.f32 %v1328_v35, %v1328_v35  ;;  %v1337_v41 = vmul.f32 %v1329_v36, %v1329_v36  ;;  %1343 = vadd.xlane.f32.xlu0 %v1342_v39 }
 0x36d   : > { %v1330_v29 = vsub.f32 %v1303_v10, %v1324_v26  ;;  %v1331_v30 = vsub.f32 %v1304_v11, %v1324_v26  ;;  %v1345_v45 = vadd.f32 %v1337_v41, %v1336_v40 }
 0x36e   : > { %v1320_v18 = vpop.xlane.xlu1 %1319 }
 0x36f   : > { %v1325_v21 = vmul.f32 0.00390625, %v1320_v18  ;;  %v1338_v33 = vmul.f32 %v1330_v29, %v1330_v29  ;;  %v1339_v34 = vmul.f32 %v1331_v30, %v1331_v30  ;;  %1346 = vadd.xlane.f32.xlu1 %v1345_v45 }
 0x371   : > { %v1332_v37 = vsub.f32 %v1305_v17, %v1325_v21  ;;  %v1333_v38 = vsub.f32 %v1306_v19, %v1325_v21  ;;  %v1348_v44 = vadd.f32 %v1339_v34, %v1338_v33 }
 0x373   : > { %v1340_v42 = vmul.f32 %v1332_v37, %v1332_v37  ;;  %v1341_v43 = vmul.f32 %v1333_v38, %v1333_v38  ;;  %1349 = vadd.xlane.f32.xlu0 %v1348_v44 }
 0x375   : > { %v1351_v46 = vadd.f32 %v1341_v43, %v1340_v42 }
 0x377   : > { %1352 = vadd.xlane.f32.xlu1 %v1351_v46 }
 0x3f8   : > { %v1344_v48 = vpop.xlane.xlu0 %1343 }
 0x3f9   : > { %v1354_v50 = vmul.f32 0.00390625, %v1344_v48 }
 0x3fb   : > { %v1358_v51 = vadd.f32 1e-12, %v1354_v50 }
 0x3fc   : > { %v1347_v52 = vpop.xlane.xlu1 %1346 }
 0x3fd   : > { %v1355_v54 = vmul.f32 0.00390625, %v1347_v52  ;;  %1874 = vrsqrt.f32 %v1358_v51 }
 0x3ff   : > { %v1359_v59 = vadd.f32 1e-12, %v1355_v54 }
 0x400   : > { %v1350_v56 = vpop.xlane.xlu0 %1349 }
 0x401   : > { %v1356_v57 = vmul.f32 0.00390625, %v1350_v56  ;;  %1876 = vrsqrt.f32 %v1359_v59 }
 0x403   : > { %v1360_v60 = vadd.f32 1e-12, %v1356_v57 }
 0x404   : > { %v1353_v62 = vpop.xlane.xlu1 %1352 }
 0x405   : > { %v1357_v63 = vmul.f32 0.00390625, %v1353_v62  ;;  %1878 = vrsqrt.f32 %v1360_v60 }
 0x407   : > { %v1361_v0 = vadd.f32 1e-12, %v1357_v63  ;;  %v1875_v5 = vpop.eup %1874 }
 0x408   : > { %v1366_v8 = vmul.f32 %v1875_v5, %v1326_v27  ;;  %v1367_v10 = vmul.f32 %v1875_v5, %v1327_v28 }
 0x409   : > { %1880 = vrsqrt.f32 %v1361_v0 }
 0x40a   : > { %v1385_v13 = vmul.f32 %v1378_v3, %v1366_v8  ;;  %v1386_v14 = vmul.f32 %v1382_v4, %v1367_v10 }
 0x40b   : > { %v1877_v11 = vpop.eup %1876 }
 0x40c   : > { %v1368_v53 = vmul.f32 %v1877_v11, %v1328_v35  ;;  %v1369_v58 = vmul.f32 %v1877_v11, %v1329_v36  ;;  %v1404_v16 = vadd.f32 %v1397_v6, %v1385_v13  ;;  %v1405_v55 = vadd.f32 %v1401_v7, %v1386_v14 }
 0x40e   : > { %v1387_v19 = vmul.f32 %v1378_v3, %v1368_v53  ;;  %v1388_v20 = vmul.f32 %v1382_v4, %v1369_v58  ;;  %1412 = vst [vmem:[%s2624_s17] sm:$0xff] %v1404_v16  ;;  %1413 = vst [vmem:[%s2624_s17 + $0x8] sm:$0xff] %v1405_v55 }
 0x40f   : > { %v1879_v15 = vpop.eup %1878 }
 0x410   : > { %v1370_v61 = vmul.f32 %v1879_v15, %v1330_v29  ;;  %v1371_v17 = vmul.f32 %v1879_v15, %v1331_v30  ;;  %v1406_v23 = vadd.f32 %v1397_v6, %v1387_v19  ;;  %v1407_v24 = vadd.f32 %v1401_v7, %v1388_v20 }
 0x412   : > { %v1389_v47 = vmul.f32 %v1378_v3, %v1370_v61  ;;  %v1390_v49 = vmul.f32 %v1382_v4, %v1371_v17  ;;  %1414 = vst [vmem:[%s2624_s17 + $0x10] sm:$0xff] %v1406_v23  ;;  %1415 = vst [vmem:[%s2624_s17 + $0x18] sm:$0xff] %v1407_v24 }
 0x413   : > { %v1881_v22 = vpop.eup %1880 }
 0x414   : > { %v1372_v25 = vmul.f32 %v1881_v22, %v1332_v37  ;;  %v1373_v26 = vmul.f32 %v1881_v22, %v1333_v38  ;;  %v1408_v27 = vadd.f32 %v1397_v6, %v1389_v47  ;;  %v1409_v28 = vadd.f32 %v1401_v7, %v1390_v49 }
 0x416   : > { %v1391_v29 = vmul.f32 %v1378_v3, %v1372_v25  ;;  %v1392_v30 = vmul.f32 %v1382_v4, %v1373_v26  ;;  %1416 = vst [vmem:[%s2624_s17 + $0x20] sm:$0xff] %v1408_v27  ;;  %1417 = vst [vmem:[%s2624_s17 + $0x28] sm:$0xff] %v1409_v28 }
 0x418   : > { %v1410_v9 = vadd.f32 %v1397_v6, %v1391_v29  ;;  %v1411_v18 = vadd.f32 %v1401_v7, %v1392_v30 }
 0x41a   : > { %1418 = vst [vmem:[%s2624_s17 + $0x30] sm:$0xff] %v1410_v9  ;;  %1419 = vst [vmem:[%s2624_s17 + $0x38] sm:$0xff] %v1411_v18 }
 0x41b PF: > { %s23_s10 = sadd.s32 1, %s2052_s10   ;;  %s2625_s14 = sld [smem:[#allocation15_spill]] }
 0x41c   : > { %p20_p7 = scmp.ge.s32.totalorder %s23_s10, 6   ;;  %s2626_s12 = sld [smem:[#allocation14_spill]] }
 0x41d   : > { %s2627_s27 = smov %s2036_s28  ;;  %s2628_s28 = smov %s2040_s29 }
 0x41e   : > { %s2630_s30 = smov %s2048_s9  ;;  %22 = sbr.rel (!%p20_p7) target bundleno = 8 (0x8), region = 167 }
 0x421   : > { %s2629_s29 = smov %s2625_s14 }
 0x422   : > { %s2631_s9 = smov %s2626_s12 }
 0x425   :  { %1444 = vsyncpa [#allocation5], 1 }
 0x426   :  { %1446 = vsyncpa [#allocation5 + $0x1], 1 }
 0x427   :  { %1447 = vsyncpa [#allocation7], 1 }
 0x428   :  { %1448 = vsyncpa [#allocation10], 1 }

// kernel: _lambda_.20
= control target key start
LH: loop header
LB: loop body
LE: loop exit
PB: predicated region body
PF: predicated region fallthrough
CT: control target
= control target key end

     0   :  { %v329_v44 = vlaneseq  ;;  %s832_s1 = inlined_call_operand.vmem [shape: bf16[256,256], index: 1, kind: input, shape index: {}]   ;;  %s833_s0 = inlined_call_operand.vmem [shape: f32[32,256], index: 0, kind: input, shape index: {}]   ;;  %s834_s2 = inlined_call_operand.vmem [shape: f32[1,256], index: 2, kind: input, shape index: {}]   ;;  %s835_s3 = inlined_call_operand.vmem [shape: f32[32,256], index: 3, kind: input, shape index: {}]   ;;  %s836_s4 = inlined_call_operand.vmem [shape: f32[1,256], index: 4, kind: input, shape index: {}]   ;;  %s837_s5 = inlined_call_operand.vmem [shape: f32[1,256], index: 5, kind: input, shape index: {}]   ;;  %s838_s6 = inlined_call_operand.vmem [shape: f32[32,256], index: 6, kind: output, shape index: {}]  }
   0x1   :  { %v544_v0 = vld [vmem:[%s832_s1 + $0x4] ss:$8 sps:$4 sm:$0xff]   ;;  %v546_v1 = vld [vmem:[%s832_s1] ss:$8 sps:$4 sm:$0xff]   ;;  %v547_v2 = vld [vmem:[%s832_s1 + $0x14] ss:$8 sps:$4 sm:$0xff]  }
   0x2   :  { %247 = vmatprep.subr.bf16.mxu0 %v544_v0  ;;  %512 = vmatprep.subr.bf16.mxu1 %v544_v0  ;;  %v549_v3 = vld [vmem:[%s832_s1 + $0x10] ss:$8 sps:$4 sm:$0xff]   ;;  %v550_v4 = vld [vmem:[%s832_s1 + $0x24] ss:$8 sps:$4 sm:$0xff]   ;;  %v552_v5 = vld [vmem:[%s832_s1 + $0x20] ss:$8 sps:$4 sm:$0xff]  }
   0x3   :  { %248 = vmatpush1.bf16.msra.mxu0 %v546_v1  ;;  %528 = vmatpush1.bf16.msra.mxu1 %v546_v1  ;;  %v553_v6 = vld [vmem:[%s832_s1 + $0x34] ss:$8 sps:$4 sm:$0xff]   ;;  %v555_v7 = vld [vmem:[%s832_s1 + $0x30] ss:$8 sps:$4 sm:$0xff]   ;;  %v556_v8 = vld [vmem:[%s832_s1 + $0x44] ss:$8 sps:$4 sm:$0xff]  }
   0x4   :  { %249 = vmatprep.subr.bf16.mxu0 %v547_v2  ;;  %513 = vmatprep.subr.bf16.mxu1 %v547_v2  ;;  %v558_v9 = vld [vmem:[%s832_s1 + $0x40] ss:$8 sps:$4 sm:$0xff]   ;;  %v559_v10 = vld [vmem:[%s832_s1 + $0x54] ss:$8 sps:$4 sm:$0xff]   ;;  %v561_v11 = vld [vmem:[%s832_s1 + $0x50] ss:$8 sps:$4 sm:$0xff]  }
   0x5   :  { %v562_v12 = vld [vmem:[%s832_s1 + $0x64] ss:$8 sps:$4 sm:$0xff]   ;;  %v46_v14 = vld [vmem:[%s833_s0 + $0x18] sm:$0xff]  ;;  %v564_v18 = vld [vmem:[%s832_s1 + $0x60] ss:$8 sps:$4 sm:$0xff]   ;;  %v330_v45 = vshrl.u32 %v329_v44, 7 }
   0x6   :  { %v44_v13 = vld [vmem:[%s833_s0 + $0x8] sm:$0xff]  ;;  %v50_v17 = vld [vmem:[%s833_s0 + $0x38] sm:$0xff]  ;;  %v43_v38 = vld [vmem:[%s833_s0] sm:$0xff] }
   0x7   :  { %250 = vmatpush1.bf16.msra.mxu0 %v549_v3  ;;  %529 = vmatpush1.bf16.msra.mxu1 %v549_v3  ;;  %v52_v15 = vpack.c.bf16 %v46_v14, %v44_v13  ;;  %v48_v16 = vld [vmem:[%s833_s0 + $0x28] sm:$0xff]  ;;  %v565_v20 = vld [vmem:[%s832_s1 + $0x74] ss:$8 sps:$4 sm:$0xff]   ;;  %v567_v21 = vld [vmem:[%s832_s1 + $0x70] ss:$8 sps:$4 sm:$0xff]   ;;  %v755_v46 = vsub.s32 0, %v330_v45 }
   0x8   :  { %251 = vmatprep.subr.bf16.mxu0 %v550_v4  ;;  %514 = vmatprep.subr.bf16.mxu1 %v550_v4  ;;  %v54_v19 = vpack.c.bf16 %v50_v17, %v48_v16  ;;  %v568_v22 = vld [vmem:[%s832_s1 + $0x84] ss:$8 sps:$4 sm:$0xff]   ;;  %v570_v23 = vld [vmem:[%s832_s1 + $0x80] ss:$8 sps:$4 sm:$0xff]   ;;  %v571_v24 = vld [vmem:[%s832_s1 + $0x94] ss:$8 sps:$4 sm:$0xff]  }
   0x9   :  { %279 = vmatprep.mubr.bf16.mxu0 %v52_v15  ;;  %v573_v25 = vld [vmem:[%s832_s1 + $0x90] ss:$8 sps:$4 sm:$0xff]   ;;  %v574_v26 = vld [vmem:[%s832_s1 + $0xa4] ss:$8 sps:$4 sm:$0xff]   ;;  %v576_v27 = vld [vmem:[%s832_s1 + $0xa0] ss:$8 sps:$4 sm:$0xff]  }
   0xa   :  { %289 = vmatprep.mubr.bf16.mxu1 %v54_v19  ;;  %v577_v28 = vld [vmem:[%s832_s1 + $0xb4] ss:$8 sps:$4 sm:$0xff]   ;;  %v579_v29 = vld [vmem:[%s832_s1 + $0xb0] ss:$8 sps:$4 sm:$0xff]   ;;  %v580_v30 = vld [vmem:[%s832_s1 + $0xc4] ss:$8 sps:$4 sm:$0xff]  }
   0xb   :  { %252 = vmatpush1.bf16.msra.mxu0 %v552_v5  ;;  %530 = vmatpush1.bf16.msra.mxu1 %v552_v5  ;;  %v582_v31 = vld [vmem:[%s832_s1 + $0xc0] ss:$8 sps:$4 sm:$0xff]   ;;  %v583_v32 = vld [vmem:[%s832_s1 + $0xd4] ss:$8 sps:$4 sm:$0xff]   ;;  %v585_v33 = vld [vmem:[%s832_s1 + $0xd0] ss:$8 sps:$4 sm:$0xff]  }
   0xc   :  { %253 = vmatprep.subr.bf16.mxu0 %v553_v6  ;;  %515 = vmatprep.subr.bf16.mxu1 %v553_v6  ;;  %v586_v34 = vld [vmem:[%s832_s1 + $0xe4] ss:$8 sps:$4 sm:$0xff]   ;;  %v588_v35 = vld [vmem:[%s832_s1 + $0xe0] ss:$8 sps:$4 sm:$0xff]   ;;  %v589_v36 = vld [vmem:[%s832_s1 + $0xf4] ss:$8 sps:$4 sm:$0xff]  }
   0xd   :  { %v591_v37 = vld [vmem:[%s832_s1 + $0xf0] ss:$8 sps:$4 sm:$0xff]   ;;  %v47_v40 = vld [vmem:[%s833_s0 + $0x20] sm:$0xff]  ;;  %v760_v48 = vsub.s32 1, %v330_v45  ;;  %v352_v59 = vld [vmem:[%s835_s3 + $0x28] sm:$0xff] }
   0xe   :  { %v45_v39 = vld [vmem:[%s833_s0 + $0x10] sm:$0xff]  ;;  %v327_v47 = vld [vmem:[%s834_s2] sm:$0x3]  ;;  %v348_v60 = vld [vmem:[%s835_s3 + $0x8] sm:$0xff] }
   0xf   :  { %254 = vmatpush1.bf16.msra.mxu0 %v555_v7  ;;  %531 = vmatpush1.bf16.msra.mxu1 %v555_v7  ;;  %v49_v41 = vld [vmem:[%s833_s0 + $0x30] sm:$0xff]  ;;  %v51_v42 = vpack.c.bf16 %v45_v39, %v43_v38  ;;  %v332_v49 = vrot.slane %v327_v47, %v755_v46  ;;  %v336_v50 = vrot.slane %v327_v47, %v760_v48  ;;  %v351_v53 = vld [vmem:[%s835_s3 + $0x20] sm:$0xff]  ;;  %v350_v5 = vld [vmem:[%s835_s3 + $0x18] sm:$0xff] }
  0x10   :  { %255 = vmatprep.subr.bf16.mxu0 %v556_v8  ;;  %516 = vmatprep.subr.bf16.mxu1 %v556_v8  ;;  %v53_v43 = vpack.c.bf16 %v49_v41, %v47_v40  ;;  %v347_v54 = vld [vmem:[%s835_s3] sm:$0xff]  ;;  %v349_v0 = vld [vmem:[%s835_s3 + $0x10] sm:$0xff]  ;;  %v354_v8 = vld [vmem:[%s835_s3 + $0x38] sm:$0xff] }
  0x11   :  { %v353_v2 = vld [vmem:[%s835_s3 + $0x30] sm:$0xff] }
  0x13   :  { %256 = vmatpush1.bf16.msra.mxu0 %v558_v9  ;;  %532 = vmatpush1.bf16.msra.mxu1 %v558_v9 }
  0x14   :  { %257 = vmatprep.subr.bf16.mxu0 %v559_v10  ;;  %517 = vmatprep.subr.bf16.mxu1 %v559_v10 }
  0x17   :  { %258 = vmatpush1.bf16.msra.mxu0 %v561_v11  ;;  %533 = vmatpush1.bf16.msra.mxu1 %v561_v11 }
  0x18   :  { %259 = vmatprep.subr.bf16.mxu0 %v562_v12  ;;  %518 = vmatprep.subr.bf16.mxu1 %v562_v12 }
  0x1b   :  { %260 = vmatpush1.bf16.msra.mxu0 %v564_v18  ;;  %534 = vmatpush1.bf16.msra.mxu1 %v564_v18 }
  0x1c   :  { %261 = vmatprep.subr.bf16.mxu0 %v565_v20  ;;  %519 = vmatprep.subr.bf16.mxu1 %v565_v20 }
  0x1f   :  { %262 = vmatpush1.bf16.msra.mxu0 %v567_v21  ;;  %535 = vmatpush1.bf16.msra.mxu1 %v567_v21 }
  0x20   :  { %263 = vmatprep.subr.bf16.mxu0 %v568_v22  ;;  %520 = vmatprep.subr.bf16.mxu1 %v568_v22 }
  0x23   :  { %264 = vmatpush1.bf16.msra.mxu0 %v570_v23  ;;  %536 = vmatpush1.bf16.msra.mxu1 %v570_v23 }
  0x24   :  { %265 = vmatprep.subr.bf16.mxu0 %v571_v24  ;;  %521 = vmatprep.subr.bf16.mxu1 %v571_v24 }
  0x27   :  { %266 = vmatpush1.bf16.msra.mxu0 %v573_v25  ;;  %537 = vmatpush1.bf16.msra.mxu1 %v573_v25 }
  0x28   :  { %267 = vmatprep.subr.bf16.mxu0 %v574_v26  ;;  %522 = vmatprep.subr.bf16.mxu1 %v574_v26 }
  0x2b   :  { %268 = vmatpush1.bf16.msra.mxu0 %v576_v27  ;;  %538 = vmatpush1.bf16.msra.mxu1 %v576_v27 }
  0x2c   :  { %269 = vmatprep.subr.bf16.mxu0 %v577_v28  ;;  %523 = vmatprep.subr.bf16.mxu1 %v577_v28 }
  0x2f   :  { %270 = vmatpush1.bf16.msra.mxu0 %v579_v29  ;;  %539 = vmatpush1.bf16.msra.mxu1 %v579_v29 }
  0x30   :  { %271 = vmatprep.subr.bf16.mxu0 %v580_v30  ;;  %524 = vmatprep.subr.bf16.mxu1 %v580_v30 }
  0x33   :  { %272 = vmatpush1.bf16.msra.mxu0 %v582_v31  ;;  %540 = vmatpush1.bf16.msra.mxu1 %v582_v31 }
  0x34   :  { %273 = vmatprep.subr.bf16.mxu0 %v583_v32  ;;  %525 = vmatprep.subr.bf16.mxu1 %v583_v32 }
  0x37   :  { %274 = vmatpush1.bf16.msra.mxu0 %v585_v33  ;;  %541 = vmatpush1.bf16.msra.mxu1 %v585_v33 }
  0x38   :  { %275 = vmatprep.subr.bf16.mxu0 %v586_v34  ;;  %526 = vmatprep.subr.bf16.mxu1 %v586_v34 }
  0x3b   :  { %276 = vmatpush1.bf16.msra.mxu0 %v588_v35  ;;  %542 = vmatpush1.bf16.msra.mxu1 %v588_v35 }
  0x3c   :  { %277 = vmatprep.subr.bf16.mxu0 %v589_v36  ;;  %527 = vmatprep.subr.bf16.mxu1 %v589_v36 }
  0x3f   :  { %278 = vmatpush1.bf16.msra.mxu0 %v591_v37  ;;  %543 = vmatpush1.bf16.msra.mxu1 %v591_v37 }
  0x42   :  { %280 = vmatmul.mubr.bf16.vlgmr.msra.gmra.mrb[0].mxu0 %v51_v42  ;;  %290 = vmatmul.mubr.bf16.vlgmr.msra.gmra.mrb[0].mxu1 %v53_v43 }
 0x115   :  { %v281_v51 = vpop.f32.mrb[0].mxu0  ;;  %v291_v52 = vpop.f32.mrb[0].mxu1 }
 0x116   :  { %v339_v55 = vadd.f32 %v332_v49, %v281_v51  ;;  %v343_v56 = vadd.f32 %v332_v49, %v291_v52  ;;  %v283_v57 = vpop.f32.mrb[1].mxu0  ;;  %v293_v58 = vpop.f32.mrb[1].mxu1 }
 0x117   :  { %v340_v61 = vadd.f32 %v336_v50, %v283_v57  ;;  %v344_v62 = vadd.f32 %v336_v50, %v293_v58  ;;  %v285_v63 = vpop.f32.mrb[2].mxu0  ;;  %v295_v1 = vpop.f32.mrb[2].mxu1 }
 0x118   :  { %v341_v3 = vadd.f32 %v332_v49, %v285_v63  ;;  %v287_v4 = vpop.f32.mrb[3].mxu0  ;;  %v345_v6 = vadd.f32 %v332_v49, %v295_v1  ;;  %v297_v7 = vpop.f32.mrb[3].mxu1  ;;  %v359_v9 = vadd.f32 %v351_v53, %v343_v56  ;;  %v355_v10 = vadd.f32 %v347_v54, %v339_v55  ;;  %v363_v1 = vld [vmem:[%s836_s4] sm:$0x3] }
 0x119   :  { %v342_v11 = vadd.f32 %v336_v50, %v287_v4  ;;  %v346_v12 = vadd.f32 %v336_v50, %v297_v7  ;;  %v360_v13 = vadd.f32 %v352_v59, %v344_v62  ;;  %v356_v14 = vadd.f32 %v348_v60, %v340_v61 }
 0x11a   :  { %v357_v15 = vadd.f32 %v349_v0, %v341_v3  ;;  %v361_v16 = vadd.f32 %v353_v2, %v345_v6  ;;  %v364_v2 = vld [vmem:[%s837_s5] sm:$0x3]  ;;  %v434_v3 = vrot.slane %v363_v1, %v755_v46  ;;  %v438_v4 = vrot.slane %v363_v1, %v760_v48 }
 0x11b   :  { %v358_v17 = vadd.f32 %v350_v5, %v342_v11  ;;  %v362_v18 = vadd.f32 %v354_v8, %v346_v12  ;;  %v371_v19 = vadd.f32 %v360_v13, %v359_v9  ;;  %v365_v20 = vadd.f32 %v356_v14, %v355_v10 }
 0x11c   :  { %v453_v6 = vrot.slane %v364_v2, %v755_v46  ;;  %v457_v7 = vrot.slane %v364_v2, %v760_v48 }
 0x11d   :  { %372 = vadd.xlane.f32.xlu1 %v371_v19  ;;  %366 = vadd.xlane.f32.xlu0 %v365_v20  ;;  %v374_v21 = vadd.f32 %v362_v18, %v361_v16  ;;  %v368_v22 = vadd.f32 %v358_v17, %v357_v15 }
 0x121   :  { %375 = vadd.xlane.f32.xlu1 %v374_v21  ;;  %369 = vadd.xlane.f32.xlu0 %v368_v22 }
 0x1aa   :  { %v373_v23 = vpop.xlane.xlu1 %372  ;;  %v367_v24 = vpop.xlane.xlu0 %366 }
 0x1ab   :  { %v380_v25 = vmul.f32 0.00390625, %v373_v23  ;;  %v378_v26 = vmul.f32 0.00390625, %v367_v24 }
 0x1ad   :  { %v382_v27 = vsub.f32 %v355_v10, %v378_v26  ;;  %v383_v28 = vsub.f32 %v356_v14, %v378_v26  ;;  %v386_v29 = vsub.f32 %v359_v9, %v380_v25  ;;  %v387_v30 = vsub.f32 %v360_v13, %v380_v25 }
 0x1ae   :  { %v376_v31 = vpop.xlane.xlu1 %375  ;;  %v370_v32 = vpop.xlane.xlu0 %369 }
 0x1af   :  { %v381_v33 = vmul.f32 0.00390625, %v376_v31  ;;  %v379_v34 = vmul.f32 0.00390625, %v370_v32  ;;  %v390_v35 = vmul.f32 %v382_v27, %v382_v27  ;;  %v391_v36 = vmul.f32 %v383_v28, %v383_v28 }
 0x1b0   :  { %v394_v42 = vmul.f32 %v386_v29, %v386_v29  ;;  %v395_v43 = vmul.f32 %v387_v30, %v387_v30 }
 0x1b1   :  { %v788_v37 = vsub.f32 %v361_v16, %v381_v33  ;;  %v790_v38 = vsub.f32 %v362_v18, %v381_v33  ;;  %v384_v39 = vsub.f32 %v357_v15, %v379_v34  ;;  %v385_v40 = vsub.f32 %v358_v17, %v379_v34 }
 0x1b2   :  { %v398_v41 = vadd.f32 %v391_v36, %v390_v35  ;;  %v404_v51 = vadd.f32 %v395_v43, %v394_v42 }
 0x1b3   :  { %v392_v44 = vmul.f32 %v384_v39, %v384_v39  ;;  %v393_v45 = vmul.f32 %v385_v40, %v385_v40  ;;  %v396_v49 = vmul.f32 %v788_v37, %v788_v37  ;;  %v397_v50 = vmul.f32 %v790_v38, %v790_v38 }
 0x1b4   :  { %399 = vadd.xlane.f32.xlu0 %v398_v41 }
 0x1b5   :  { %v401_v47 = vadd.f32 %v393_v45, %v392_v44  ;;  %v407_v52 = vadd.f32 %v397_v50, %v396_v49 }
 0x1b7   :  { %402 = vadd.xlane.f32.xlu1 %v401_v47 }
 0x1b8   :  { %405 = vadd.xlane.f32.xlu0 %v404_v51 }
 0x1bb   :  { %408 = vadd.xlane.f32.xlu1 %v407_v52 }
 0x241   :  { %v400_v53 = vpop.xlane.xlu0 %399 }
 0x242   :  { %v410_v54 = vmul.f32 0.00390625, %v400_v53 }
 0x244   :  { %v414_v55 = vadd.f32 1e-12, %v410_v54  ;;  %v403_v56 = vpop.xlane.xlu1 %402 }
 0x245   :  { %v411_v57 = vmul.f32 0.00390625, %v403_v56  ;;  %v406_v58 = vpop.xlane.xlu0 %405 }
 0x246   :  { %592 = vrsqrt.f32 %v414_v55  ;;  %v412_v59 = vmul.f32 0.00390625, %v406_v58 }
 0x247   :  { %v415_v60 = vadd.f32 1e-12, %v411_v57 }
 0x248   :  { %v416_v61 = vadd.f32 1e-12, %v412_v59  ;;  %v409_v62 = vpop.xlane.xlu1 %408 }
 0x249   :  { %594 = vrsqrt.f32 %v415_v60  ;;  %v413_v63 = vmul.f32 0.00390625, %v409_v62 }
 0x24a   :  { %596 = vrsqrt.f32 %v416_v61 }
 0x24b   :  { %v417_v0 = vadd.f32 1e-12, %v413_v63 }
 0x24d   :  { %598 = vrsqrt.f32 %v417_v0 }
 0x250   :  { %v593_v5 = vpop.eup %592 }
 0x251   :  { %v422_v8 = vmul.f32 %v593_v5, %v382_v27  ;;  %v423_v9 = vmul.f32 %v593_v5, %v383_v28 }
 0x253   :  { %v595_v10 = vpop.eup %594  ;;  %v441_v11 = vmul.f32 %v434_v3, %v422_v8  ;;  %v442_v12 = vmul.f32 %v438_v4, %v423_v9 }
 0x254   :  { %v597_v13 = vpop.eup %596  ;;  %v424_v14 = vmul.f32 %v595_v10, %v384_v39  ;;  %v425_v15 = vmul.f32 %v595_v10, %v385_v40 }
 0x255   :  { %v460_v16 = vadd.f32 %v453_v6, %v441_v11  ;;  %v461_v17 = vadd.f32 %v457_v7, %v442_v12  ;;  %v426_v18 = vmul.f32 %v597_v13, %v386_v29  ;;  %v427_v19 = vmul.f32 %v597_v13, %v387_v30 }
 0x256   :  { %v443_v20 = vmul.f32 %v434_v3, %v424_v14  ;;  %v444_v21 = vmul.f32 %v438_v4, %v425_v15 }
 0x257   :  { %v599_v22 = vpop.eup %598  ;;  %468 = vst [vmem:[%s838_s6] sm:$0xff] %v460_v16  ;;  %469 = vst [vmem:[%s838_s6 + $0x8] sm:$0xff] %v461_v17  ;;  %v445_v46 = vmul.f32 %v434_v3, %v426_v18  ;;  %v446_v48 = vmul.f32 %v438_v4, %v427_v19 }
 0x258   :  { %v462_v23 = vadd.f32 %v453_v6, %v443_v20  ;;  %v463_v24 = vadd.f32 %v457_v7, %v444_v21  ;;  %v428_v25 = vmul.f32 %v599_v22, %v788_v37  ;;  %v429_v26 = vmul.f32 %v599_v22, %v790_v38 }
 0x259   :  { %v464_v27 = vadd.f32 %v453_v6, %v445_v46  ;;  %v465_v28 = vadd.f32 %v457_v7, %v446_v48 }
 0x25a   :  { %470 = vst [vmem:[%s838_s6 + $0x10] sm:$0xff] %v462_v23  ;;  %471 = vst [vmem:[%s838_s6 + $0x18] sm:$0xff] %v463_v24  ;;  %v447_v29 = vmul.f32 %v434_v3, %v428_v25  ;;  %v448_v30 = vmul.f32 %v438_v4, %v429_v26 }
 0x25b   :  { %472 = vst [vmem:[%s838_s6 + $0x20] sm:$0xff] %v464_v27  ;;  %473 = vst [vmem:[%s838_s6 + $0x28] sm:$0xff] %v465_v28 }
 0x25c   :  { %v466_v31 = vadd.f32 %v453_v6, %v447_v29  ;;  %v467_v32 = vadd.f32 %v457_v7, %v448_v30 }
 0x25e   :  { %474 = vst [vmem:[%s838_s6 + $0x30] sm:$0xff] %v466_v31  ;;  %475 = vst [vmem:[%s838_s6 + $0x38] sm:$0xff] %v467_v32 }

// kernel: _lambda_.21
= control target key start
LH: loop header
LB: loop body
LE: loop exit
PB: predicated region body
PF: predicated region fallthrough
CT: control target
= control target key end

     0   :  { %s1816_s27 = smov 0   ;;  %s1818_s28 = smov 0   ;;  %s2180_s0 = inlined_call_operand.vmem [shape: f32[32,256], index: 0, kind: input, shape index: {}, may-alias: {0,5}]   ;;  %s2181_s1 = inlined_call_operand.vmem [shape: bf16[256,1024], index: 1, kind: input, shape index: {}]   ;;  %s2182_s2 = inlined_call_operand.vmem [shape: f32[1,1024], index: 2, kind: input, shape index: {}]   ;;  %s2183_s3 = inlined_call_operand.vmem [shape: bf16[1024,256], index: 3, kind: input, shape index: {}]   ;;  %s2184_s4 = inlined_call_operand.vmem [shape: f32[1,256], index: 4, kind: input, shape index: {}]   ;;  %s2185_s5 = inlined_call_operand.vmem [shape: f32[32,256], index: 5, kind: input, shape index: {}, may-alias: {0,5}]   ;;  %s2186_s6 = inlined_call_operand.vmem [shape: f32[1,256], index: 6, kind: input, shape index: {}]   ;;  %s2187_s7 = inlined_call_operand.vmem [shape: f32[1,256], index: 7, kind: input, shape index: {}]   ;;  %s2188_s8 = inlined_call_operand.vmem [shape: f32[32,256], index: 8, kind: output, shape index: {}]  }
   0x1   :  { %s1820_s29 = smov 0   ;;  %s1822_s30 = smov 0  }
   0x2   :  { %s1824_s9 = smov 0  }
   0x3 LB: > { %s27_s10 = sadd.s32 1, %s1764_s30  ;;  %p70_p1 = scmp.ne.s32.totalorder %s1756_s28, %s1752_s27  ;;  %s1768_s9 = sphi %s1824_s9, %s18_s9   ;;  %s1764_s30 = sphi %s1822_s30, %s2192_s30   ;;  %s1760_s29 = sphi %s1820_s29, %s2191_s29   ;;  %s1756_s28 = sphi %s1818_s28, %s2190_s28   ;;  %s1752_s27 = sphi %s1816_s27, %s2189_s27  }
   0x4   : > { %p28_p0 = scmp.ge.s32.totalorder %s27_s10, 4  ;;  %p71_p2 = scmp.eq.s32.totalorder %s1768_s9, 0 }
   0x5   : > { %s63_s12 = sadd.s32 1, %s1756_s28  ;;  %p1487_p5 = scmp.ge.s32.totalorder %s1768_s9, 4 }
   0x6   : > { %s2194_s10 = smov (%p28_p0, %s27_s10), 0  ;;  %p72_p3 = por %p71_p2, %p70_p1 }
   0x7   : > { %s60_s11 = ssub.s32 %s1764_s30, %s2194_s10  ;;  %292 = sbr.rel (%p1487_p5) target bundleno = 50 (0x32), region = 36 }
   0x8   : > { %p61_p4 = scmp.eq.s32.totalorder %s60_s11, 0 }
   0xa   : > { %s1851_s13 = scalar_select %p61_p4, %s1756_s28, %s63_s12  }
   0xe   : > { %295 = sbr.rel (!%p72_p3) target bundleno = 50 (0x32), region = 40  ;;  %s297_s14 = sand.u32 (%p72_p3), 1, %s1756_s28  }
   0xf   : > { %s1567_s15 = sshll.u32 (%p72_p3), %s1764_s30, 3  ;;  %s1488_s16 = sshll.u32 (%p72_p3), %s297_s14, 8 }
  0x10   : > { %s1859_s19 = scalar_lea.vmem (%p72_p3), %s2181_s1, %s1567_s15  ;;  %s1864_s20 = scalar_lea.vmem (%p72_p3), [#allocation3], %s1488_s16 }
  0x11   : > { %v392_v0 = vld [vmem:[%s1859_s19] sm:$0xff] (%p72_p3) }
  0x12   : > { %v394_v1 = vld [vmem:[%s1859_s19 + $0x20] sm:$0xff] (%p72_p3)  ;;  %393 = vst [vmem:[%s1864_s20] sm:$0xff] (%p72_p3), %v392_v0 }
  0x13   : > { %v396_v2 = vld [vmem:[%s1859_s19 + $0x40] sm:$0xff] (%p72_p3)  ;;  %395 = vst [vmem:[%s1864_s20 + $0x8] sm:$0xff] (%p72_p3), %v394_v1 }
  0x14   : > { %397 = vst [vmem:[%s1864_s20 + $0x10] sm:$0xff] (%p72_p3), %v396_v2  ;;  %v398_v3 = vld [vmem:[%s1859_s19 + $0x60] sm:$0xff] (%p72_p3) }
  0x15   : > { %v400_v4 = vld [vmem:[%s1859_s19 + $0x80] sm:$0xff]  ;;  %399 = vst [vmem:[%s1864_s20 + $0x18] sm:$0xff] %v398_v3 }
  0x16   : > { %v402_v5 = vld [vmem:[%s1859_s19 + $0xa0] sm:$0xff]  ;;  %401 = vst [vmem:[%s1864_s20 + $0x20] sm:$0xff] %v400_v4 }
  0x17   : > { %403 = vst [vmem:[%s1864_s20 + $0x28] sm:$0xff] %v402_v5  ;;  %v404_v6 = vld [vmem:[%s1859_s19 + $0xc0] sm:$0xff] }
  0x18   : > { %v406_v7 = vld [vmem:[%s1859_s19 + $0xe0] sm:$0xff]  ;;  %405 = vst [vmem:[%s1864_s20 + $0x30] sm:$0xff] %v404_v6 }
  0x19   : > { %v408_v8 = vld [vmem:[%s1859_s19 + $0x100] sm:$0xff]  ;;  %407 = vst [vmem:[%s1864_s20 + $0x38] sm:$0xff] %v406_v7 }
  0x1a   : > { %409 = vst [vmem:[%s1864_s20 + $0x40] sm:$0xff] %v408_v8  ;;  %v410_v9 = vld [vmem:[%s1859_s19 + $0x120] sm:$0xff] }
  0x1b   : > { %v412_v10 = vld [vmem:[%s1859_s19 + $0x140] sm:$0xff]  ;;  %411 = vst [vmem:[%s1864_s20 + $0x48] sm:$0xff] %v410_v9 }
  0x1c   : > { %v414_v11 = vld [vmem:[%s1859_s19 + $0x160] sm:$0xff]  ;;  %413 = vst [vmem:[%s1864_s20 + $0x50] sm:$0xff] %v412_v10 }
  0x1d   : > { %415 = vst [vmem:[%s1864_s20 + $0x58] sm:$0xff] %v414_v11  ;;  %v416_v12 = vld [vmem:[%s1859_s19 + $0x180] sm:$0xff] }
  0x1e   : > { %v418_v13 = vld [vmem:[%s1859_s19 + $0x1a0] sm:$0xff]  ;;  %417 = vst [vmem:[%s1864_s20 + $0x60] sm:$0xff] %v416_v12 }
  0x1f   : > { %v420_v14 = vld [vmem:[%s1859_s19 + $0x1c0] sm:$0xff]  ;;  %419 = vst [vmem:[%s1864_s20 + $0x68] sm:$0xff] %v418_v13 }
  0x20   : > { %421 = vst [vmem:[%s1864_s20 + $0x70] sm:$0xff] %v420_v14  ;;  %v422_v15 = vld [vmem:[%s1859_s19 + $0x1e0] sm:$0xff] }
  0x21   : > { %v424_v16 = vld [vmem:[%s1859_s19 + $0x200] sm:$0xff]  ;;  %423 = vst [vmem:[%s1864_s20 + $0x78] sm:$0xff] %v422_v15 }
  0x22   : > { %v426_v17 = vld [vmem:[%s1859_s19 + $0x220] sm:$0xff]  ;;  %425 = vst [vmem:[%s1864_s20 + $0x80] sm:$0xff] %v424_v16 }
  0x23   : > { %427 = vst [vmem:[%s1864_s20 + $0x88] sm:$0xff] %v426_v17  ;;  %v428_v18 = vld [vmem:[%s1859_s19 + $0x240] sm:$0xff] }
  0x24   : > { %v430_v19 = vld [vmem:[%s1859_s19 + $0x260] sm:$0xff]  ;;  %429 = vst [vmem:[%s1864_s20 + $0x90] sm:$0xff] %v428_v18 }
  0x25   : > { %v432_v20 = vld [vmem:[%s1859_s19 + $0x280] sm:$0xff]  ;;  %431 = vst [vmem:[%s1864_s20 + $0x98] sm:$0xff] %v430_v19 }
  0x26   : > { %433 = vst [vmem:[%s1864_s20 + $0xa0] sm:$0xff] %v432_v20  ;;  %v434_v21 = vld [vmem:[%s1859_s19 + $0x2a0] sm:$0xff] }
  0x27   : > { %v436_v22 = vld [vmem:[%s1859_s19 + $0x2c0] sm:$0xff]  ;;  %435 = vst [vmem:[%s1864_s20 + $0xa8] sm:$0xff] %v434_v21 }
  0x28   : > { %v438_v23 = vld [vmem:[%s1859_s19 + $0x2e0] sm:$0xff]  ;;  %437 = vst [vmem:[%s1864_s20 + $0xb0] sm:$0xff] %v436_v22 }
  0x29   : > { %439 = vst [vmem:[%s1864_s20 + $0xb8] sm:$0xff] %v438_v23  ;;  %v440_v24 = vld [vmem:[%s1859_s19 + $0x300] sm:$0xff] }
  0x2a   : > { %v442_v25 = vld [vmem:[%s1859_s19 + $0x320] sm:$0xff]  ;;  %441 = vst [vmem:[%s1864_s20 + $0xc0] sm:$0xff] %v440_v24 }
  0x2b   : > { %v444_v26 = vld [vmem:[%s1859_s19 + $0x340] sm:$0xff]  ;;  %443 = vst [vmem:[%s1864_s20 + $0xc8] sm:$0xff] %v442_v25 }
  0x2c   : > { %445 = vst [vmem:[%s1864_s20 + $0xd0] sm:$0xff] %v444_v26  ;;  %v446_v27 = vld [vmem:[%s1859_s19 + $0x360] sm:$0xff] }
  0x2d   : > { %v448_v28 = vld [vmem:[%s1859_s19 + $0x380] sm:$0xff]  ;;  %447 = vst [vmem:[%s1864_s20 + $0xd8] sm:$0xff] %v446_v27 }
  0x2e   : > { %v450_v29 = vld [vmem:[%s1859_s19 + $0x3a0] sm:$0xff]  ;;  %449 = vst [vmem:[%s1864_s20 + $0xe0] sm:$0xff] %v448_v28 }
  0x2f   : > { %451 = vst [vmem:[%s1864_s20 + $0xe8] sm:$0xff] %v450_v29  ;;  %v452_v30 = vld [vmem:[%s1859_s19 + $0x3c0] sm:$0xff] }
  0x30   : > { %v454_v31 = vld [vmem:[%s1859_s19 + $0x3e0] sm:$0xff]  ;;  %453 = vst [vmem:[%s1864_s20 + $0xf0] sm:$0xff] %v452_v30 }
  0x31   : > { %455 = vst [vmem:[%s1864_s20 + $0xf8] sm:$0xff] %v454_v31 }
  0x32 PF: > { %p1491_p6 = scmp.ge.s32.totalorder %s1768_s9, 1  ;;  %p478_p7 = scmp.lt.s32.totalorder %s1768_s9, 5 }
  0x34   : > { %p479_p8 = pnand %p1491_p6, %p478_p7 }
  0x35   : > { %s485_s21 = sand.u32 (!%p479_p8), 1, %s1752_s27   ;;  %s1493_s22 = sshll.u32 (!%p479_p8), %s1760_s29, 1 }
  0x36   : > { %482 = sbr.rel (%p479_p8) target bundleno = 937 (0x3a9), region = 86  ;;  %s1492_s23 = sshll.u32 (!%p479_p8), %s485_s21, 8 }
  0x37   : > { %p550_p9 = scmp.lt.s32.totalorder (!%p479_p8), %s1493_s22, 7  ;;  %s1494_s24 = sshll.u32 (!%p479_p8), %s1760_s29, 5 }
  0x38   : > { %p555_p10 = scmp.lt.s32.totalorder (!%p479_p8), %s1494_s24, 127  ;;  %s1943_s27 = scalar_lea.vmem (!%p479_p8), [#allocation3], %s1492_s23 }
  0x39   : > { %p1497_p11 = scmp.ne.s32.totalorder (!%p479_p8), %s1760_s29, 0 }
  0x3d   : > { %s2196_s22 = smov (!%p550_p9, %s1493_s22), 7  ;;  %s2198_s24 = smov (!%p555_p10, %s1494_s24), 127 }
  0x3e   : > { %s552_s11 = scalar_lea.vmem %s2182_s2, %s2196_s22  ;;  %s1568_s12 = sshll.u32 %s2198_s24, 3  ;;  %v1770_v32 = vmov (!%p1497_p11), 0.0  }
  0x3f   : > { %s1941_s16 = scalar_lea.vmem %s2183_s3, %s1568_s12  ;;  %578 = sbr.rel (%p1497_p11) target bundleno = 70 (0x46), region = 94  ;;  %579 = vst [vmem:[#allocation2] sm:$0xff] (!%p1497_p11), %v1770_v32  ;;  %580 = vst [vmem:[#allocation2 + $0x8] sm:$0xff] (!%p1497_p11), %v1770_v32 }
  0x40   : > { %581 = vst [vmem:[#allocation2 + $0x10] sm:$0xff] (!%p1497_p11), %v1770_v32  ;;  %582 = vst [vmem:[#allocation2 + $0x18] sm:$0xff] (!%p1497_p11), %v1770_v32 }
  0x41   : > { %583 = vst [vmem:[#allocation2 + $0x20] sm:$0xff] (!%p1497_p11), %v1770_v32  ;;  %584 = vst [vmem:[#allocation2 + $0x28] sm:$0xff] (!%p1497_p11), %v1770_v32 }
  0x42   : > { %585 = vst [vmem:[#allocation2 + $0x30] sm:$0xff] (!%p1497_p11), %v1770_v32  ;;  %586 = vst [vmem:[#allocation2 + $0x38] sm:$0xff] (!%p1497_p11), %v1770_v32 }
  0x46 PF: > { %v1610_v33 = vld [vmem:[%s1943_s27 + $0x4] ss:$8 sps:$4 sm:$0xff]   ;;  %v1612_v34 = vld [vmem:[%s1943_s27] ss:$8 sps:$4 sm:$0xff]   ;;  %v1613_v35 = vld [vmem:[%s1943_s27 + $0x14] ss:$8 sps:$4 sm:$0xff]  }
  0x47   : > { %803 = vmatprep.subr.bf16.mxu0 %v1610_v33  ;;  %v1615_v36 = vld [vmem:[%s1943_s27 + $0x10] ss:$8 sps:$4 sm:$0xff]   ;;  %v1616_v37 = vld [vmem:[%s1943_s27 + $0x24] ss:$8 sps:$4 sm:$0xff]   ;;  %v1618_v38 = vld [vmem:[%s1943_s27 + $0x20] ss:$8 sps:$4 sm:$0xff]  }
  0x48   : > { %804 = vmatpush1.bf16.msra.mxu0 %v1612_v34  ;;  %v1619_v39 = vld [vmem:[%s1943_s27 + $0x34] ss:$8 sps:$4 sm:$0xff]   ;;  %v1621_v40 = vld [vmem:[%s1943_s27 + $0x30] ss:$8 sps:$4 sm:$0xff]   ;;  %v1622_v41 = vld [vmem:[%s1943_s27 + $0x44] ss:$8 sps:$4 sm:$0xff]  }
  0x49   : > { %805 = vmatprep.subr.bf16.mxu0 %v1613_v35  ;;  %v1624_v42 = vld [vmem:[%s1943_s27 + $0x40] ss:$8 sps:$4 sm:$0xff]   ;;  %v1625_v43 = vld [vmem:[%s1943_s27 + $0x54] ss:$8 sps:$4 sm:$0xff]   ;;  %v1627_v44 = vld [vmem:[%s1943_s27 + $0x50] ss:$8 sps:$4 sm:$0xff]  }
  0x4a   : > { %v1628_v45 = vld [vmem:[%s1943_s27 + $0x64] ss:$8 sps:$4 sm:$0xff]   ;;  %v590_v47 = vld [vmem:[%s2180_s0 + $0x18] sm:$0xff]  ;;  %v1630_v49 = vld [vmem:[%s1943_s27 + $0x60] ss:$8 sps:$4 sm:$0xff]   ;;  %p1562_p12 = scmp.ne.s32.totalorder %s1760_s29, 3 }
  0x4b   : > { %v588_v46 = vld [vmem:[%s2180_s0 + $0x8] sm:$0xff]  ;;  %v1631_v50 = vld [vmem:[%s1943_s27 + $0x74] ss:$8 sps:$4 sm:$0xff]   ;;  %v1633_v53 = vld [vmem:[%s1943_s27 + $0x70] ss:$8 sps:$4 sm:$0xff]  }
  0x4c   : > { %806 = vmatpush1.bf16.msra.mxu0 %v1615_v36  ;;  %v596_v48 = vpack.c.bf16 %v590_v47, %v588_v46  ;;  %v1658_v51 = vld [vmem:[%s1941_s16 + $0x4] ss:$8 sps:$4 sm:$0xff]   ;;  %v1660_v52 = vld [vmem:[%s1941_s16] ss:$8 sps:$4 sm:$0xff]   ;;  %v1661_v54 = vld [vmem:[%s1941_s16 + $0x14] ss:$8 sps:$4 sm:$0xff]  }
  0x4d   : > { %807 = vmatprep.subr.bf16.mxu0 %v1616_v37  ;;  %1132 = vmatprep.subr.bf16.mxu1 %v1658_v51  ;;  %v1634_v55 = vld [vmem:[%s1943_s27 + $0x84] ss:$8 sps:$4 sm:$0xff]   ;;  %v1663_v56 = vld [vmem:[%s1941_s16 + $0x10] ss:$8 sps:$4 sm:$0xff]   ;;  %v1636_v58 = vld [vmem:[%s1943_s27 + $0x80] ss:$8 sps:$4 sm:$0xff]  }
  0x4e   : > { %835 = vmatprep.mubr.bf16.mxu0 %v596_v48  ;;  %1133 = vmatpush1.bf16.msra.mxu1 %v1660_v52  ;;  %v1664_v57 = vld [vmem:[%s1941_s16 + $0x24] ss:$8 sps:$4 sm:$0xff]   ;;  %v1637_v59 = vld [vmem:[%s1943_s27 + $0x94] ss:$8 sps:$4 sm:$0xff]   ;;  %v1666_v60 = vld [vmem:[%s1941_s16 + $0x20] ss:$8 sps:$4 sm:$0xff]  }
  0x4f   : > { %1134 = vmatprep.subr.bf16.mxu1 %v1661_v54  ;;  %v1667_v61 = vld [vmem:[%s1941_s16 + $0x34] ss:$8 sps:$4 sm:$0xff]   ;;  %v1639_v62 = vld [vmem:[%s1943_s27 + $0x90] ss:$8 sps:$4 sm:$0xff]   ;;  %v1640_v0 = vld [vmem:[%s1943_s27 + $0xa4] ss:$8 sps:$4 sm:$0xff]  }
  0x50   : > { %808 = vmatpush1.bf16.msra.mxu0 %v1618_v38  ;;  %v1669_v63 = vld [vmem:[%s1941_s16 + $0x30] ss:$8 sps:$4 sm:$0xff]   ;;  %v1670_v1 = vld [vmem:[%s1941_s16 + $0x44] ss:$8 sps:$4 sm:$0xff]   ;;  %v1642_v2 = vld [vmem:[%s1943_s27 + $0xa0] ss:$8 sps:$4 sm:$0xff]  }
  0x51   : > { %809 = vmatprep.subr.bf16.mxu0 %v1619_v39  ;;  %v1672_v3 = vld [vmem:[%s1941_s16 + $0x40] ss:$8 sps:$4 sm:$0xff]   ;;  %v1643_v4 = vld [vmem:[%s1943_s27 + $0xb4] ss:$8 sps:$4 sm:$0xff]   ;;  %v1645_v6 = vld [vmem:[%s1943_s27 + $0xb0] ss:$8 sps:$4 sm:$0xff]  }
  0x52   : > { %1135 = vmatpush1.bf16.msra.mxu1 %v1663_v56  ;;  %v1673_v5 = vld [vmem:[%s1941_s16 + $0x54] ss:$8 sps:$4 sm:$0xff]   ;;  %v1675_v7 = vld [vmem:[%s1941_s16 + $0x50] ss:$8 sps:$4 sm:$0xff]   ;;  %v1646_v8 = vld [vmem:[%s1943_s27 + $0xc4] ss:$8 sps:$4 sm:$0xff]  }
  0x53   : > { %1136 = vmatprep.subr.bf16.mxu1 %v1664_v57  ;;  %v1676_v9 = vld [vmem:[%s1941_s16 + $0x64] ss:$8 sps:$4 sm:$0xff]   ;;  %v1648_v10 = vld [vmem:[%s1943_s27 + $0xc0] ss:$8 sps:$4 sm:$0xff]   ;;  %v1649_v12 = vld [vmem:[%s1943_s27 + $0xd4] ss:$8 sps:$4 sm:$0xff]  }
  0x54   : > { %810 = vmatpush1.bf16.msra.mxu0 %v1621_v40  ;;  %v1678_v11 = vld [vmem:[%s1941_s16 + $0x60] ss:$8 sps:$4 sm:$0xff]   ;;  %v1651_v13 = vld [vmem:[%s1943_s27 + $0xd0] ss:$8 sps:$4 sm:$0xff]   ;;  %v1652_v14 = vld [vmem:[%s1943_s27 + $0xe4] ss:$8 sps:$4 sm:$0xff]  }
  0x55   : > { %811 = vmatprep.subr.bf16.mxu0 %v1622_v41  ;;  %v1654_v15 = vld [vmem:[%s1943_s27 + $0xe0] ss:$8 sps:$4 sm:$0xff]   ;;  %v1655_v16 = vld [vmem:[%s1943_s27 + $0xf4] ss:$8 sps:$4 sm:$0xff]   ;;  %v1657_v17 = vld [vmem:[%s1943_s27 + $0xf0] ss:$8 sps:$4 sm:$0xff]  }
  0x56   : > { %1137 = vmatpush1.bf16.msra.mxu1 %v1666_v60  ;;  %v587_v18 = vld [vmem:[%s2180_s0] sm:$0xff]  ;;  %v589_v19 = vld [vmem:[%s2180_s0 + $0x10] sm:$0xff]  ;;  %v592_v20 = vld [vmem:[%s2180_s0 + $0x28] sm:$0xff] }
  0x57   : > { %1138 = vmatprep.subr.bf16.mxu1 %v1667_v61  ;;  %v594_v21 = vld [vmem:[%s2180_s0 + $0x38] sm:$0xff]  ;;  %v595_v22 = vpack.c.bf16 %v589_v19, %v587_v18  ;;  %v591_v24 = vld [vmem:[%s2180_s0 + $0x20] sm:$0xff]  ;;  %v593_v25 = vld [vmem:[%s2180_s0 + $0x30] sm:$0xff] }
  0x58   : > { %812 = vmatpush1.bf16.msra.mxu0 %v1624_v42  ;;  %v598_v23 = vpack.c.bf16 %v594_v21, %v592_v20  ;;  %v597_v26 = vpack.c.bf16 %v593_v25, %v591_v24  ;;  %v1679_v27 = vld [vmem:[%s1941_s16 + $0x74] ss:$8 sps:$4 sm:$0xff]   ;;  %v1681_v28 = vld [vmem:[%s1941_s16 + $0x70] ss:$8 sps:$4 sm:$0xff]   ;;  %v1682_v29 = vld [vmem:[%s1941_s16 + $0x84] ss:$8 sps:$4 sm:$0xff]  }
  0x59   : > { %813 = vmatprep.subr.bf16.mxu0 %v1625_v43  ;;  %v1684_v30 = vld [vmem:[%s1941_s16 + $0x80] ss:$8 sps:$4 sm:$0xff]   ;;  %v1685_v31 = vld [vmem:[%s1941_s16 + $0x94] ss:$8 sps:$4 sm:$0xff]   ;;  %v1687_v32 = vld [vmem:[%s1941_s16 + $0x90] ss:$8 sps:$4 sm:$0xff]  }
  0x5a   : > { %1139 = vmatpush1.bf16.msra.mxu1 %v1669_v63  ;;  %v1688_v33 = vld [vmem:[%s1941_s16 + $0xa4] ss:$8 sps:$4 sm:$0xff]   ;;  %v1690_v34 = vld [vmem:[%s1941_s16 + $0xa0] ss:$8 sps:$4 sm:$0xff]   ;;  %v1691_v35 = vld [vmem:[%s1941_s16 + $0xb4] ss:$8 sps:$4 sm:$0xff]  }
  0x5b   : > { %1140 = vmatprep.subr.bf16.mxu1 %v1670_v1  ;;  %v1693_v36 = vld [vmem:[%s1941_s16 + $0xb0] ss:$8 sps:$4 sm:$0xff]   ;;  %v1694_v37 = vld [vmem:[%s1941_s16 + $0xc4] ss:$8 sps:$4 sm:$0xff]   ;;  %v1696_v38 = vld [vmem:[%s1941_s16 + $0xc0] ss:$8 sps:$4 sm:$0xff]  }
  0x5c   : > { %814 = vmatpush1.bf16.msra.mxu0 %v1627_v44  ;;  %v1697_v39 = vld [vmem:[%s1941_s16 + $0xd4] ss:$8 sps:$4 sm:$0xff]   ;;  %v1699_v40 = vld [vmem:[%s1941_s16 + $0xd0] ss:$8 sps:$4 sm:$0xff]   ;;  %v1700_v41 = vld [vmem:[%s1941_s16 + $0xe4] ss:$8 sps:$4 sm:$0xff]  }
  0x5d   : > { %815 = vmatprep.subr.bf16.mxu0 %v1628_v45  ;;  %v1702_v42 = vld [vmem:[%s1941_s16 + $0xe0] ss:$8 sps:$4 sm:$0xff]   ;;  %v1703_v43 = vld [vmem:[%s1941_s16 + $0xf4] ss:$8 sps:$4 sm:$0xff]   ;;  %v1705_v44 = vld [vmem:[%s1941_s16 + $0xf0] ss:$8 sps:$4 sm:$0xff]   ;;  %v633_v45 = vlaneseq }
  0x5e   : > { %1141 = vmatpush1.bf16.msra.mxu1 %v1672_v3  ;;  %v631_v48 = vld [vmem:[%s552_s11] sm:$0x3] }
  0x5f   : > { %1142 = vmatprep.subr.bf16.mxu1 %v1673_v5  ;;  %v634_v46 = vshrl.u32 %v633_v45, 7 }
  0x60   : > { %816 = vmatpush1.bf16.msra.mxu0 %v1630_v49 }
  0x61   : > { %817 = vmatprep.subr.bf16.mxu0 %v1631_v50  ;;  %v2034_v47 = vsub.s32 0, %v634_v46  ;;  %v2041_v49 = vsub.s32 1, %v634_v46 }
  0x62   : > { %1143 = vmatpush1.bf16.msra.mxu1 %v1675_v7 }
  0x63   : > { %1144 = vmatprep.subr.bf16.mxu1 %v1676_v9  ;;  %v636_v50 = vrot.slane %v631_v48, %v2034_v47  ;;  %v640_v51 = vrot.slane %v631_v48, %v2041_v49 }
  0x64   : > { %818 = vmatpush1.bf16.msra.mxu0 %v1633_v53 }
  0x65   : > { %819 = vmatprep.subr.bf16.mxu0 %v1634_v55 }
  0x66   : > { %1145 = vmatpush1.bf16.msra.mxu1 %v1678_v11 }
  0x67   : > { %1146 = vmatprep.subr.bf16.mxu1 %v1679_v27 }
  0x68   : > { %820 = vmatpush1.bf16.msra.mxu0 %v1636_v58 }
  0x69   : > { %821 = vmatprep.subr.bf16.mxu0 %v1637_v59 }
  0x6a   : > { %1147 = vmatpush1.bf16.msra.mxu1 %v1681_v28 }
  0x6b   : > { %1148 = vmatprep.subr.bf16.mxu1 %v1682_v29 }
  0x6c   : > { %822 = vmatpush1.bf16.msra.mxu0 %v1639_v62 }
  0x6d   : > { %823 = vmatprep.subr.bf16.mxu0 %v1640_v0 }
  0x6e   : > { %1149 = vmatpush1.bf16.msra.mxu1 %v1684_v30 }
  0x6f   : > { %1150 = vmatprep.subr.bf16.mxu1 %v1685_v31 }
  0x70   : > { %824 = vmatpush1.bf16.msra.mxu0 %v1642_v2 }
  0x71   : > { %825 = vmatprep.subr.bf16.mxu0 %v1643_v4 }
  0x72   : > { %1151 = vmatpush1.bf16.msra.mxu1 %v1687_v32 }
  0x73   : > { %1152 = vmatprep.subr.bf16.mxu1 %v1688_v33 }
  0x74   : > { %826 = vmatpush1.bf16.msra.mxu0 %v1645_v6 }
  0x75   : > { %827 = vmatprep.subr.bf16.mxu0 %v1646_v8 }
  0x76   : > { %1153 = vmatpush1.bf16.msra.mxu1 %v1690_v34 }
  0x77   : > { %1154 = vmatprep.subr.bf16.mxu1 %v1691_v35 }
  0x78   : > { %828 = vmatpush1.bf16.msra.mxu0 %v1648_v10 }
  0x79   : > { %829 = vmatprep.subr.bf16.mxu0 %v1649_v12 }
  0x7a   : > { %1155 = vmatpush1.bf16.msra.mxu1 %v1693_v36 }
  0x7b   : > { %1156 = vmatprep.subr.bf16.mxu1 %v1694_v37 }
  0x7c   : > { %830 = vmatpush1.bf16.msra.mxu0 %v1651_v13 }
  0x7d   : > { %831 = vmatprep.subr.bf16.mxu0 %v1652_v14 }
  0x7e   : > { %1157 = vmatpush1.bf16.msra.mxu1 %v1696_v38 }
  0x7f   : > { %1158 = vmatprep.subr.bf16.mxu1 %v1697_v39 }
  0x80   : > { %832 = vmatpush1.bf16.msra.mxu0 %v1654_v15 }
  0x81   : > { %833 = vmatprep.subr.bf16.mxu0 %v1655_v16 }
  0x82   : > { %1159 = vmatpush1.bf16.msra.mxu1 %v1699_v40 }
  0x83   : > { %1160 = vmatprep.subr.bf16.mxu1 %v1700_v41 }
  0x84   : > { %834 = vmatpush1.bf16.msra.mxu0 %v1657_v17 }
  0x86   : > { %1161 = vmatpush1.bf16.msra.mxu1 %v1702_v42 }
  0x87   : > { %836 = vmatmul.mubr.bf16.vlgmr.msra.gmra.mrb[0].mxu0 %v595_v22  ;;  %1162 = vmatprep.subr.bf16.mxu1 %v1703_v43 }
  0x88   : > { %845 = vmatprep.mubr.bf16.mxu0 %v598_v23 }
  0x8a   : > { %1163 = vmatpush1.bf16.msra.mxu1 %v1705_v44 }
  0x8f   : > { %846 = vmatmul.mubr.bf16.gmra.mrb[4].mxu0 %v597_v26 }
 0x15a   : > { %v837_v52 = vpop.f32.mrb[0].mxu0 }
 0x15b   : > { %v2045_v53 = vadd.f32 %v837_v52, %v636_v50  ;;  %v839_v54 = vpop.f32.mrb[1].mxu0 }
 0x15c   : > { %v2047_v55 = vadd.f32 %v839_v54, %v640_v51  ;;  %v841_v56 = vpop.f32.mrb[2].mxu0 }
 0x15d   : > { %v856_v57 = vmul.f32 %v2045_v53, %v2045_v53  ;;  %v2051_v58 = vadd.f32 %v841_v56, %v636_v50  ;;  %v843_v59 = vpop.f32.mrb[3].mxu0 }
 0x15e   : > { %v857_v60 = vmul.f32 %v2047_v55, %v2047_v55  ;;  %v2055_v61 = vadd.f32 %v843_v59, %v640_v51 }
 0x15f   : > { %v864_v62 = vmul.f32 %v856_v57, %v2045_v53  ;;  %v858_v63 = vmul.f32 %v2051_v58, %v2051_v58 }
 0x160   : > { %v865_v0 = vmul.f32 %v857_v60, %v2047_v55  ;;  %v859_v1 = vmul.f32 %v2055_v61, %v2055_v61 }
 0x161   : > { %v872_v2 = vmul.f32 0.044715, %v864_v62  ;;  %v866_v3 = vmul.f32 %v858_v63, %v2051_v58 }
 0x162   : > { %v873_v4 = vmul.f32 0.044715, %v865_v0  ;;  %v867_v5 = vmul.f32 %v859_v1, %v2055_v61  ;;  %v847_v6 = vpop.f32.mrb[4].mxu0 }
 0x163   : > { %v880_v7 = vadd.f32 %v872_v2, %v2045_v53  ;;  %v874_v8 = vmul.f32 0.044715, %v866_v3  ;;  %v2066_v9 = vadd.f32 %v847_v6, %v636_v50  ;;  %v849_v10 = vpop.f32.mrb[5].mxu0 }
 0x164   : > { %v875_v11 = vmul.f32 0.044715, %v867_v5  ;;  %v2068_v12 = vadd.f32 %v849_v10, %v640_v51  ;;  %v851_v13 = vpop.f32.mrb[6].mxu0  ;;  %v881_v14 = vadd.f32 %v873_v4, %v2047_v55 }
 0x165   : > { %v888_v15 = vmul.f32 0.7978846, %v880_v7  ;;  %v882_v16 = vadd.f32 %v874_v8, %v2051_v58  ;;  %v860_v17 = vmul.f32 %v2066_v9, %v2066_v9  ;;  %v2074_v18 = vadd.f32 %v851_v13, %v636_v50  ;;  %v853_v19 = vpop.f32.mrb[7].mxu0 }
 0x166   : > { %v861_v20 = vmul.f32 %v2068_v12, %v2068_v12  ;;  %v2078_v21 = vadd.f32 %v853_v19, %v640_v51  ;;  %v883_v22 = vadd.f32 %v875_v11, %v2055_v61  ;;  %v889_v23 = vmul.f32 0.7978846, %v881_v14 }
 0x167   : > { %1706 = vtanh.f32 %v888_v15  ;;  %v890_v24 = vmul.f32 0.7978846, %v882_v16  ;;  %v868_v25 = vmul.f32 %v860_v17, %v2066_v9  ;;  %v862_v26 = vmul.f32 %v2074_v18, %v2074_v18 }
 0x168   : > { %v869_v27 = vmul.f32 %v861_v20, %v2068_v12  ;;  %v863_v28 = vmul.f32 %v2078_v21, %v2078_v21  ;;  %v891_v29 = vmul.f32 0.7978846, %v883_v22  ;;  %1708 = vtanh.f32 %v889_v23  ;;  %v928_v22 = vld [vmem:[#allocation2] sm:$0xff]  ;;  %v929_v23 = vld [vmem:[#allocation2 + $0x8] sm:$0xff] }
 0x169   : > { %1710 = vtanh.f32 %v890_v24  ;;  %v876_v30 = vmul.f32 0.044715, %v868_v25  ;;  %v870_v31 = vmul.f32 %v862_v26, %v2074_v18  ;;  %v930_v25 = vld [vmem:[#allocation2 + $0x10] sm:$0xff] }
 0x16a   : > { %v877_v32 = vmul.f32 0.044715, %v869_v27  ;;  %v871_v33 = vmul.f32 %v863_v28, %v2078_v21  ;;  %1712 = vtanh.f32 %v891_v29  ;;  %v931_v28 = vld [vmem:[#allocation2 + $0x18] sm:$0xff] }
 0x16b   : > { %v884_v34 = vadd.f32 %v876_v30, %v2066_v9  ;;  %v878_v35 = vmul.f32 0.044715, %v870_v31  ;;  %v933_v31 = vld [vmem:[#allocation2 + $0x28] sm:$0xff] }
 0x16c   : > { %v885_v36 = vadd.f32 %v877_v32, %v2068_v12  ;;  %v879_v37 = vmul.f32 0.044715, %v871_v33  ;;  %v934_v33 = vld [vmem:[#allocation2 + $0x30] sm:$0xff] }
 0x16d   : > { %v892_v38 = vmul.f32 0.7978846, %v884_v34  ;;  %v886_v39 = vadd.f32 %v878_v35, %v2074_v18 }
 0x16e   : > { %v893_v40 = vmul.f32 0.7978846, %v885_v36  ;;  %v887_v41 = vadd.f32 %v879_v37, %v2078_v21  ;;  %v935_v36 = vld [vmem:[#allocation2 + $0x38] sm:$0xff] }
 0x16f   : > { %1714 = vtanh.f32 %v892_v38  ;;  %v894_v42 = vmul.f32 0.7978846, %v886_v39 }
 0x170   : > { %1716 = vtanh.f32 %v893_v40  ;;  %v895_v43 = vmul.f32 0.7978846, %v887_v41 }
 0x171   : > { %v1707_v44 = vpop.eup %1706  ;;  %1718 = vtanh.f32 %v894_v42 }
 0x172   : > { %v1709_v45 = vpop.eup %1708  ;;  %1720 = vtanh.f32 %v895_v43  ;;  %v904_v46 = vadd.f32 1.0, %v1707_v44  ;;  %v1213_v44 = vld [vmem:[%s2184_s4] sm:$0x3] (!%p1562_p12) }
 0x173   : > { %v1711_v48 = vpop.eup %1710  ;;  %v905_v50 = vadd.f32 1.0, %v1709_v45  ;;  %v1218_v45 = vrot.slane (!%p1562_p12), %v1213_v44, %v2034_v47 }
 0x174   : > { %v1713_v51 = vpop.eup %1712  ;;  %v906_v52 = vadd.f32 1.0, %v1711_v48  ;;  %v912_v54 = vmul.f32 0.5, %v904_v46  ;;  %v1222_v46 = vrot.slane (!%p1562_p12), %v1213_v44, %v2041_v49  ;;  %v1233_v48 = vld [vmem:[%s2185_s5] sm:$0xff] (!%p1562_p12) }
 0x175   : > { %v907_v56 = vadd.f32 1.0, %v1713_v51  ;;  %v913_v57 = vmul.f32 0.5, %v905_v50  ;;  %v1234_v50 = vld [vmem:[%s2185_s5 + $0x8] sm:$0xff] (!%p1562_p12) }
 0x176   : > { %v914_v59 = vmul.f32 0.5, %v906_v52  ;;  %v920_v62 = vmul.f32 %v912_v54, %v2045_v53  ;;  %v1237_v54 = vld [vmem:[%s2185_s5 + $0x20] sm:$0xff] (!%p1562_p12) }
 0x177   : > { %v915_v60 = vmul.f32 0.5, %v907_v56  ;;  %v921_v1 = vmul.f32 %v913_v57, %v2047_v55  ;;  %v1238_v56 = vld [vmem:[%s2185_s5 + $0x28] sm:$0xff] (!%p1562_p12) }
 0x178   : > { %v922_v63 = vmul.f32 %v914_v59, %v2051_v58 }
 0x179   : > { %v1715_v0 = vpop.eup %1714  ;;  %v923_v2 = vmul.f32 %v915_v60, %v2055_v61 }
 0x17a   : > { %v1717_v3 = vpop.eup %1716  ;;  %v936_v4 = vpack.c.bf16 %v922_v63, %v920_v62  ;;  %v908_v5 = vadd.f32 1.0, %v1715_v0 }
 0x17b   : > { %v1719_v6 = vpop.eup %1718  ;;  %v937_v7 = vpack.c.bf16 %v923_v2, %v921_v1  ;;  %v909_v8 = vadd.f32 1.0, %v1717_v3  ;;  %v1235_v1 = vld [vmem:[%s2185_s5 + $0x10] sm:$0xff] (!%p1562_p12) }
 0x17c   : > { %v1721_v10 = vpop.eup %1720  ;;  %v910_v11 = vadd.f32 1.0, %v1719_v6  ;;  %v916_v13 = vmul.f32 0.5, %v908_v5 }
 0x17d   : > { %1164 = vmatprep.mubr.bf16.mxu1 %v937_v7  ;;  %v911_v14 = vadd.f32 1.0, %v1721_v10  ;;  %v917_v15 = vmul.f32 0.5, %v909_v8 }
 0x17e   : > { %1165 = vmatmul.mubr.bf16.vlgmr.msra.gmra.mrb[0].mxu1 %v936_v4  ;;  %v918_v53 = vmul.f32 0.5, %v910_v11  ;;  %v924_v16 = vmul.f32 %v916_v13, %v2066_v9  ;;  %v1236_v4 = vld [vmem:[%s2185_s5 + $0x18] sm:$0xff] (!%p1562_p12)  ;;  %v1239_v13 = vld [vmem:[%s2185_s5 + $0x30] sm:$0xff] (!%p1562_p12) }
 0x17f   : > { %v919_v58 = vmul.f32 0.5, %v911_v14  ;;  %v925_v61 = vmul.f32 %v917_v15, %v2068_v12  ;;  %v1240_v14 = vld [vmem:[%s2185_s5 + $0x38] sm:$0xff] (!%p1562_p12) }
 0x180   : > { %v926_v55 = vmul.f32 %v918_v53, %v2074_v18 }
 0x181   : > { %v927_v17 = vmul.f32 %v919_v58, %v2078_v21  ;;  %v932_v21 = vld [vmem:[#allocation2 + $0x20] sm:$0xff] }
 0x182   : > { %v938_v19 = vpack.c.bf16 %v926_v55, %v924_v16 }
 0x183   : > { %v939_v20 = vpack.c.bf16 %v927_v17, %v925_v61 }
 0x185   : > { %1174 = vmatprep.mubr.bf16.mxu1 %v939_v20 }
 0x186   : > { %1175 = vmatmul.mubr.bf16.gmra.mrb[4].mxu1 %v938_v19 }
 0x251   : > { %v1166_v24 = vpop.f32.mrb[0].mxu1 }
 0x252   : > { %v1185_v26 = vadd.f32 %v1166_v24, %v928_v22  ;;  %v1168_v27 = vpop.f32.mrb[1].mxu1 }
 0x253   : > { %v1186_v29 = vadd.f32 %v1168_v27, %v929_v23  ;;  %v1170_v30 = vpop.f32.mrb[2].mxu1 }
 0x254   : > { %1193 = vst [vmem:[#allocation2] sm:$0xff] %v1185_v26  ;;  %v1187_v9 = vadd.f32 %v1170_v30, %v930_v25  ;;  %v1172_v18 = vpop.f32.mrb[3].mxu1 }
 0x255   : > { %1194 = vst [vmem:[#allocation2 + $0x8] sm:$0xff] %v1186_v29  ;;  %v1188_v12 = vadd.f32 %v1172_v18, %v931_v28 }
 0x256   : > { %1195 = vst [vmem:[#allocation2 + $0x10] sm:$0xff] %v1187_v9 }
 0x257   : > { %1196 = vst [vmem:[#allocation2 + $0x18] sm:$0xff] %v1188_v12 }
 0x259   : > { %v1176_v32 = vpop.f32.mrb[4].mxu1  ;;  %1204 = sbr.rel (%p1562_p12) target bundleno = 937 (0x3a9), region = 98 }
 0x25a   : > { %v1189_v34 = vadd.f32 %v1176_v32, %v932_v21  ;;  %v1178_v35 = vpop.f32.mrb[5].mxu1 }
 0x25b   : > { %v1190_v37 = vadd.f32 %v1178_v35, %v933_v31  ;;  %v1180_v38 = vpop.f32.mrb[6].mxu1  ;;  %v1205_v42 = vld [vmem:[#allocation2] sm:$0xff] (!%p1562_p12) }
 0x25c   : > { %1197 = vst [vmem:[#allocation2 + $0x20] sm:$0xff] %v1189_v34  ;;  %v1191_v39 = vadd.f32 %v1180_v38, %v934_v33  ;;  %v1182_v40 = vpop.f32.mrb[7].mxu1  ;;  %v1206_v43 = vld [vmem:[#allocation2 + $0x8] sm:$0xff] (!%p1562_p12)  ;;  %v1225_v57 = vadd.f32 (!%p1562_p12), %v1218_v45, %v1205_v42 }
 0x25d   : > { %1198 = vst [vmem:[#allocation2 + $0x28] sm:$0xff] %v1190_v37  ;;  %v1192_v41 = vadd.f32 %v1182_v40, %v935_v36  ;;  %v1226_v59 = vadd.f32 (!%p1562_p12), %v1222_v46, %v1206_v43  ;;  %v1207_v63 = vld [vmem:[#allocation2 + $0x10] sm:$0xff] (!%p1562_p12) }
 0x25e   : > { %1199 = vst [vmem:[#allocation2 + $0x30] sm:$0xff] %v1191_v39  ;;  %v1208_v0 = vld [vmem:[#allocation2 + $0x18] sm:$0xff] (!%p1562_p12)  ;;  %v1227_v2 = vadd.f32 (!%p1562_p12), %v1218_v45, %v1207_v63  ;;  %v1241_v7 = vadd.f32 (!%p1562_p12), %v1233_v48, %v1225_v57 }
 0x25f   : > { %1200 = vst [vmem:[#allocation2 + $0x38] sm:$0xff] %v1192_v41  ;;  %v1228_v3 = vadd.f32 (!%p1562_p12), %v1222_v46, %v1208_v0  ;;  %v1242_v8 = vadd.f32 (!%p1562_p12), %v1234_v50, %v1226_v59 }
 0x260   : > { %v1243_v15 = vadd.f32 %v1235_v1, %v1227_v2  ;;  %v1249_v1 = vld [vmem:[%s2186_s6] sm:$0x3] }
 0x261   : > { %v1244_v53 = vadd.f32 %v1236_v4, %v1228_v3  ;;  %v1251_v55 = vadd.f32 %v1242_v8, %v1241_v7  ;;  %v1250_v2 = vld [vmem:[%s2187_s7] sm:$0x3]  ;;  %v1320_v3 = vrot.slane %v1249_v1, %v2034_v47  ;;  %v1324_v4 = vrot.slane %v1249_v1, %v2041_v49 }
 0x263   : > { %v1209_v51 = vld [vmem:[#allocation2 + $0x20] sm:$0xff]  ;;  %1252 = vadd.xlane.f32.xlu0 %v1251_v55  ;;  %v1254_v20 = vadd.f32 %v1244_v53, %v1243_v15 }
 0x264   : > { %v1210_v52 = vld [vmem:[#allocation2 + $0x28] sm:$0xff]  ;;  %v1229_v60 = vadd.f32 %v1218_v45, %v1209_v51 }
 0x265   : > { %v1230_v62 = vadd.f32 %v1222_v46, %v1210_v52  ;;  %v1211_v5 = vld [vmem:[#allocation2 + $0x30] sm:$0xff] }
 0x266   : > { %v1212_v6 = vld [vmem:[#allocation2 + $0x38] sm:$0xff]  ;;  %v1245_v10 = vadd.f32 %v1237_v54, %v1229_v60  ;;  %v1231_v58 = vadd.f32 %v1218_v45, %v1211_v5 }
 0x267   : > { %v1246_v11 = vadd.f32 %v1238_v56, %v1230_v62  ;;  %v1232_v16 = vadd.f32 %v1222_v46, %v1212_v6  ;;  %1255 = vadd.xlane.f32.xlu0 %v1254_v20  ;;  %v1339_v6 = vrot.slane %v1250_v2, %v2034_v47 }
 0x268   : > { %v1247_v17 = vadd.f32 %v1239_v13, %v1231_v58 }
 0x269   : > { %v1257_v61 = vadd.f32 %v1246_v11, %v1245_v10  ;;  %v1248_v19 = vadd.f32 %v1240_v14, %v1232_v16 }
 0x26b   : > { %1258 = vadd.xlane.f32.xlu1 %v1257_v61  ;;  %v1260_v22 = vadd.f32 %v1248_v19, %v1247_v17 }
 0x26f   : > { %1261 = vadd.xlane.f32.xlu1 %v1260_v22 }
 0x2f0   : > { %v1253_v23 = vpop.xlane.xlu0 %1252 }
 0x2f1   : > { %v1264_v25 = vmul.f32 0.00390625, %v1253_v23 }
 0x2f3   : > { %v1268_v27 = vsub.f32 %v1241_v7, %v1264_v25  ;;  %v1269_v28 = vsub.f32 %v1242_v8, %v1264_v25  ;;  %v1343_v7 = vrot.slane %v1250_v2, %v2041_v49 }
 0x2f4   : > { %v1256_v9 = vpop.xlane.xlu0 %1255 }
 0x2f5   : > { %v1265_v12 = vmul.f32 0.00390625, %v1256_v9  ;;  %v1276_v31 = vmul.f32 %v1268_v27, %v1268_v27  ;;  %v1277_v32 = vmul.f32 %v1269_v28, %v1269_v28 }
 0x2f7   : > { %v1270_v35 = vsub.f32 %v1243_v15, %v1265_v12  ;;  %v1271_v36 = vsub.f32 %v1244_v53, %v1265_v12  ;;  %v1284_v39 = vadd.f32 %v1277_v32, %v1276_v31 }
 0x2f8   : > { %v1259_v24 = vpop.xlane.xlu1 %1258 }
 0x2f9   : > { %v1266_v26 = vmul.f32 0.00390625, %v1259_v24  ;;  %v1278_v40 = vmul.f32 %v1270_v35, %v1270_v35  ;;  %v1279_v41 = vmul.f32 %v1271_v36, %v1271_v36  ;;  %1285 = vadd.xlane.f32.xlu0 %v1284_v39 }
 0x2fb   : > { %v1272_v29 = vsub.f32 %v1245_v10, %v1266_v26  ;;  %v1273_v30 = vsub.f32 %v1246_v11, %v1266_v26  ;;  %v1287_v45 = vadd.f32 %v1279_v41, %v1278_v40 }
 0x2fc   : > { %v1262_v18 = vpop.xlane.xlu1 %1261 }
 0x2fd   : > { %v1267_v21 = vmul.f32 0.00390625, %v1262_v18  ;;  %v1280_v33 = vmul.f32 %v1272_v29, %v1272_v29  ;;  %v1281_v34 = vmul.f32 %v1273_v30, %v1273_v30  ;;  %1288 = vadd.xlane.f32.xlu1 %v1287_v45 }
 0x2ff   : > { %v1274_v37 = vsub.f32 %v1247_v17, %v1267_v21  ;;  %v1275_v38 = vsub.f32 %v1248_v19, %v1267_v21  ;;  %v1290_v44 = vadd.f32 %v1281_v34, %v1280_v33 }
 0x301   : > { %v1282_v42 = vmul.f32 %v1274_v37, %v1274_v37  ;;  %v1283_v43 = vmul.f32 %v1275_v38, %v1275_v38  ;;  %1291 = vadd.xlane.f32.xlu0 %v1290_v44 }
 0x303   : > { %v1293_v46 = vadd.f32 %v1283_v43, %v1282_v42 }
 0x305   : > { %1294 = vadd.xlane.f32.xlu1 %v1293_v46 }
 0x386   : > { %v1286_v48 = vpop.xlane.xlu0 %1285 }
 0x387   : > { %v1296_v50 = vmul.f32 0.00390625, %v1286_v48 }
 0x389   : > { %v1300_v51 = vadd.f32 1e-12, %v1296_v50 }
 0x38a   : > { %v1289_v52 = vpop.xlane.xlu1 %1288 }
 0x38b   : > { %v1297_v54 = vmul.f32 0.00390625, %v1289_v52  ;;  %1722 = vrsqrt.f32 %v1300_v51 }
 0x38d   : > { %v1301_v59 = vadd.f32 1e-12, %v1297_v54 }
 0x38e   : > { %v1292_v56 = vpop.xlane.xlu0 %1291 }
 0x38f   : > { %v1298_v57 = vmul.f32 0.00390625, %v1292_v56  ;;  %1724 = vrsqrt.f32 %v1301_v59 }
 0x391   : > { %v1302_v60 = vadd.f32 1e-12, %v1298_v57 }
 0x392   : > { %v1295_v62 = vpop.xlane.xlu1 %1294 }
 0x393   : > { %v1299_v63 = vmul.f32 0.00390625, %v1295_v62  ;;  %1726 = vrsqrt.f32 %v1302_v60 }
 0x395   : > { %v1303_v0 = vadd.f32 1e-12, %v1299_v63  ;;  %v1723_v5 = vpop.eup %1722 }
 0x396   : > { %v1308_v8 = vmul.f32 %v1723_v5, %v1268_v27  ;;  %v1309_v10 = vmul.f32 %v1723_v5, %v1269_v28 }
 0x397   : > { %1728 = vrsqrt.f32 %v1303_v0 }
 0x398   : > { %v1327_v13 = vmul.f32 %v1320_v3, %v1308_v8  ;;  %v1328_v14 = vmul.f32 %v1324_v4, %v1309_v10 }
 0x399   : > { %v1725_v11 = vpop.eup %1724 }
 0x39a   : > { %v1310_v53 = vmul.f32 %v1725_v11, %v1270_v35  ;;  %v1311_v58 = vmul.f32 %v1725_v11, %v1271_v36  ;;  %v1346_v16 = vadd.f32 %v1339_v6, %v1327_v13  ;;  %v1347_v55 = vadd.f32 %v1343_v7, %v1328_v14 }
 0x39c   : > { %v1329_v19 = vmul.f32 %v1320_v3, %v1310_v53  ;;  %v1330_v20 = vmul.f32 %v1324_v4, %v1311_v58  ;;  %1354 = vst [vmem:[%s2188_s8] sm:$0xff] %v1346_v16  ;;  %1355 = vst [vmem:[%s2188_s8 + $0x8] sm:$0xff] %v1347_v55 }
 0x39d   : > { %v1727_v15 = vpop.eup %1726 }
 0x39e   : > { %v1312_v61 = vmul.f32 %v1727_v15, %v1272_v29  ;;  %v1313_v17 = vmul.f32 %v1727_v15, %v1273_v30  ;;  %v1348_v23 = vadd.f32 %v1339_v6, %v1329_v19  ;;  %v1349_v24 = vadd.f32 %v1343_v7, %v1330_v20 }
 0x3a0   : > { %v1331_v47 = vmul.f32 %v1320_v3, %v1312_v61  ;;  %v1332_v49 = vmul.f32 %v1324_v4, %v1313_v17  ;;  %1356 = vst [vmem:[%s2188_s8 + $0x10] sm:$0xff] %v1348_v23  ;;  %1357 = vst [vmem:[%s2188_s8 + $0x18] sm:$0xff] %v1349_v24 }
 0x3a1   : > { %v1729_v22 = vpop.eup %1728 }
 0x3a2   : > { %v1314_v25 = vmul.f32 %v1729_v22, %v1274_v37  ;;  %v1315_v26 = vmul.f32 %v1729_v22, %v1275_v38  ;;  %v1350_v27 = vadd.f32 %v1339_v6, %v1331_v47  ;;  %v1351_v28 = vadd.f32 %v1343_v7, %v1332_v49 }
 0x3a4   : > { %v1333_v29 = vmul.f32 %v1320_v3, %v1314_v25  ;;  %v1334_v30 = vmul.f32 %v1324_v4, %v1315_v26  ;;  %1358 = vst [vmem:[%s2188_s8 + $0x20] sm:$0xff] %v1350_v27  ;;  %1359 = vst [vmem:[%s2188_s8 + $0x28] sm:$0xff] %v1351_v28 }
 0x3a6   : > { %v1352_v9 = vadd.f32 %v1339_v6, %v1333_v29  ;;  %v1353_v18 = vadd.f32 %v1343_v7, %v1334_v30 }
 0x3a8   : > { %1360 = vst [vmem:[%s2188_s8 + $0x30] sm:$0xff] %v1352_v9  ;;  %1361 = vst [vmem:[%s2188_s8 + $0x38] sm:$0xff] %v1353_v18 }
 0x3a9 PF: > { %s18_s9 = sadd.s32 1, %s1768_s9   ;;  %s2189_s27 = smov %s1756_s28 }
 0x3aa   : > { %p15_p13 = scmp.ge.s32.totalorder %s18_s9, 6   ;;  %s2190_s28 = smov %s1851_s13 }
 0x3ab   : > { %s2191_s29 = smov %s1764_s30  ;;  %s2192_s30 = smov %s2194_s10 }
 0x3ac   :  { %17 = sbr.rel (!%p15_p13) target bundleno = 3 (0x3), region = 145 }

// kernel: _lambda_.22
= control target key start
LH: loop header
LB: loop body
LE: loop exit
PB: predicated region body
PF: predicated region fallthrough
CT: control target
= control target key end

     0   :  { %v326_v44 = vlaneseq  ;;  %s928_s1 = inlined_call_operand.vmem [shape: bf16[256,256], index: 1, kind: input, shape index: {}]   ;;  %s929_s0 = inlined_call_operand.vmem [shape: f32[32,256], index: 0, kind: input, shape index: {}]   ;;  %s930_s2 = inlined_call_operand.vmem [shape: f32[1,256], index: 2, kind: input, shape index: {}]   ;;  %s931_s3 = inlined_call_operand.vmem [shape: f32[1,256], index: 3, kind: input, shape index: {}]   ;;  %s932_s4 = inlined_call_operand.vmem [shape: f32[1,256], index: 4, kind: input, shape index: {}]   ;;  %s933_s5 = inlined_call_operand.vmem [shape: f32[32,256], index: 5, kind: output, shape index: {}]  }
   0x1   :  { %v597_v0 = vld [vmem:[%s928_s1 + $0x4] ss:$8 sps:$4 sm:$0xff]   ;;  %v599_v1 = vld [vmem:[%s928_s1] ss:$8 sps:$4 sm:$0xff]   ;;  %v600_v2 = vld [vmem:[%s928_s1 + $0x14] ss:$8 sps:$4 sm:$0xff]  }
   0x2   :  { %244 = vmatprep.subr.bf16.mxu0 %v597_v0  ;;  %565 = vmatprep.subr.bf16.mxu1 %v597_v0  ;;  %v602_v3 = vld [vmem:[%s928_s1 + $0x10] ss:$8 sps:$4 sm:$0xff]   ;;  %v603_v4 = vld [vmem:[%s928_s1 + $0x24] ss:$8 sps:$4 sm:$0xff]   ;;  %v605_v5 = vld [vmem:[%s928_s1 + $0x20] ss:$8 sps:$4 sm:$0xff]  }
   0x3   :  { %245 = vmatpush1.bf16.msra.mxu0 %v599_v1  ;;  %581 = vmatpush1.bf16.msra.mxu1 %v599_v1  ;;  %v606_v6 = vld [vmem:[%s928_s1 + $0x34] ss:$8 sps:$4 sm:$0xff]   ;;  %v608_v7 = vld [vmem:[%s928_s1 + $0x30] ss:$8 sps:$4 sm:$0xff]   ;;  %v609_v8 = vld [vmem:[%s928_s1 + $0x44] ss:$8 sps:$4 sm:$0xff]  }
   0x4   :  { %246 = vmatprep.subr.bf16.mxu0 %v600_v2  ;;  %566 = vmatprep.subr.bf16.mxu1 %v600_v2  ;;  %v611_v9 = vld [vmem:[%s928_s1 + $0x40] ss:$8 sps:$4 sm:$0xff]   ;;  %v612_v10 = vld [vmem:[%s928_s1 + $0x54] ss:$8 sps:$4 sm:$0xff]   ;;  %v614_v11 = vld [vmem:[%s928_s1 + $0x50] ss:$8 sps:$4 sm:$0xff]  }
   0x5   :  { %v615_v12 = vld [vmem:[%s928_s1 + $0x64] ss:$8 sps:$4 sm:$0xff]   ;;  %v43_v14 = vld [vmem:[%s929_s0 + $0x18] sm:$0xff]  ;;  %v617_v18 = vld [vmem:[%s928_s1 + $0x60] ss:$8 sps:$4 sm:$0xff]   ;;  %v327_v45 = vshrl.u32 %v326_v44, 7 }
   0x6   :  { %v41_v13 = vld [vmem:[%s929_s0 + $0x8] sm:$0xff]  ;;  %v47_v17 = vld [vmem:[%s929_s0 + $0x38] sm:$0xff]  ;;  %v40_v38 = vld [vmem:[%s929_s0] sm:$0xff] }
   0x7   :  { %247 = vmatpush1.bf16.msra.mxu0 %v602_v3  ;;  %582 = vmatpush1.bf16.msra.mxu1 %v602_v3  ;;  %v49_v15 = vpack.c.bf16 %v43_v14, %v41_v13  ;;  %v45_v16 = vld [vmem:[%s929_s0 + $0x28] sm:$0xff]  ;;  %v618_v20 = vld [vmem:[%s928_s1 + $0x74] ss:$8 sps:$4 sm:$0xff]   ;;  %v620_v21 = vld [vmem:[%s928_s1 + $0x70] ss:$8 sps:$4 sm:$0xff]   ;;  %v819_v46 = vsub.s32 0, %v327_v45 }
   0x8   :  { %248 = vmatprep.subr.bf16.mxu0 %v603_v4  ;;  %567 = vmatprep.subr.bf16.mxu1 %v603_v4  ;;  %v51_v19 = vpack.c.bf16 %v47_v17, %v45_v16  ;;  %v621_v22 = vld [vmem:[%s928_s1 + $0x84] ss:$8 sps:$4 sm:$0xff]   ;;  %v623_v23 = vld [vmem:[%s928_s1 + $0x80] ss:$8 sps:$4 sm:$0xff]   ;;  %v624_v24 = vld [vmem:[%s928_s1 + $0x94] ss:$8 sps:$4 sm:$0xff]  }
   0x9   :  { %276 = vmatprep.mubr.bf16.mxu0 %v49_v15  ;;  %v626_v25 = vld [vmem:[%s928_s1 + $0x90] ss:$8 sps:$4 sm:$0xff]   ;;  %v627_v26 = vld [vmem:[%s928_s1 + $0xa4] ss:$8 sps:$4 sm:$0xff]   ;;  %v629_v27 = vld [vmem:[%s928_s1 + $0xa0] ss:$8 sps:$4 sm:$0xff]  }
   0xa   :  { %286 = vmatprep.mubr.bf16.mxu1 %v51_v19  ;;  %v630_v28 = vld [vmem:[%s928_s1 + $0xb4] ss:$8 sps:$4 sm:$0xff]   ;;  %v632_v29 = vld [vmem:[%s928_s1 + $0xb0] ss:$8 sps:$4 sm:$0xff]   ;;  %v633_v30 = vld [vmem:[%s928_s1 + $0xc4] ss:$8 sps:$4 sm:$0xff]  }
   0xb   :  { %249 = vmatpush1.bf16.msra.mxu0 %v605_v5  ;;  %583 = vmatpush1.bf16.msra.mxu1 %v605_v5  ;;  %v635_v31 = vld [vmem:[%s928_s1 + $0xc0] ss:$8 sps:$4 sm:$0xff]   ;;  %v636_v32 = vld [vmem:[%s928_s1 + $0xd4] ss:$8 sps:$4 sm:$0xff]   ;;  %v638_v33 = vld [vmem:[%s928_s1 + $0xd0] ss:$8 sps:$4 sm:$0xff]  }
   0xc   :  { %250 = vmatprep.subr.bf16.mxu0 %v606_v6  ;;  %568 = vmatprep.subr.bf16.mxu1 %v606_v6  ;;  %v639_v34 = vld [vmem:[%s928_s1 + $0xe4] ss:$8 sps:$4 sm:$0xff]   ;;  %v641_v35 = vld [vmem:[%s928_s1 + $0xe0] ss:$8 sps:$4 sm:$0xff]   ;;  %v642_v36 = vld [vmem:[%s928_s1 + $0xf4] ss:$8 sps:$4 sm:$0xff]  }
   0xd   :  { %v644_v37 = vld [vmem:[%s928_s1 + $0xf0] ss:$8 sps:$4 sm:$0xff]   ;;  %v44_v40 = vld [vmem:[%s929_s0 + $0x20] sm:$0xff]  ;;  %v824_v48 = vsub.s32 1, %v327_v45 }
   0xe   :  { %v42_v39 = vld [vmem:[%s929_s0 + $0x10] sm:$0xff]  ;;  %v324_v47 = vld [vmem:[%s930_s2] sm:$0x3] }
   0xf   :  { %251 = vmatpush1.bf16.msra.mxu0 %v608_v7  ;;  %584 = vmatpush1.bf16.msra.mxu1 %v608_v7  ;;  %v46_v41 = vld [vmem:[%s929_s0 + $0x30] sm:$0xff]  ;;  %v48_v42 = vpack.c.bf16 %v42_v39, %v40_v38  ;;  %v329_v49 = vrot.slane %v324_v47, %v819_v46  ;;  %v333_v50 = vrot.slane %v324_v47, %v824_v48 }
  0x10   :  { %252 = vmatprep.subr.bf16.mxu0 %v609_v8  ;;  %569 = vmatprep.subr.bf16.mxu1 %v609_v8  ;;  %v50_v43 = vpack.c.bf16 %v46_v41, %v44_v40 }
  0x13   :  { %253 = vmatpush1.bf16.msra.mxu0 %v611_v9  ;;  %585 = vmatpush1.bf16.msra.mxu1 %v611_v9 }
  0x14   :  { %254 = vmatprep.subr.bf16.mxu0 %v612_v10  ;;  %570 = vmatprep.subr.bf16.mxu1 %v612_v10 }
  0x17   :  { %255 = vmatpush1.bf16.msra.mxu0 %v614_v11  ;;  %586 = vmatpush1.bf16.msra.mxu1 %v614_v11 }
  0x18   :  { %256 = vmatprep.subr.bf16.mxu0 %v615_v12  ;;  %571 = vmatprep.subr.bf16.mxu1 %v615_v12 }
  0x1b   :  { %257 = vmatpush1.bf16.msra.mxu0 %v617_v18  ;;  %587 = vmatpush1.bf16.msra.mxu1 %v617_v18 }
  0x1c   :  { %258 = vmatprep.subr.bf16.mxu0 %v618_v20  ;;  %572 = vmatprep.subr.bf16.mxu1 %v618_v20 }
  0x1f   :  { %259 = vmatpush1.bf16.msra.mxu0 %v620_v21  ;;  %588 = vmatpush1.bf16.msra.mxu1 %v620_v21 }
  0x20   :  { %260 = vmatprep.subr.bf16.mxu0 %v621_v22  ;;  %573 = vmatprep.subr.bf16.mxu1 %v621_v22 }
  0x23   :  { %261 = vmatpush1.bf16.msra.mxu0 %v623_v23  ;;  %589 = vmatpush1.bf16.msra.mxu1 %v623_v23 }
  0x24   :  { %262 = vmatprep.subr.bf16.mxu0 %v624_v24  ;;  %574 = vmatprep.subr.bf16.mxu1 %v624_v24 }
  0x27   :  { %263 = vmatpush1.bf16.msra.mxu0 %v626_v25  ;;  %590 = vmatpush1.bf16.msra.mxu1 %v626_v25 }
  0x28   :  { %264 = vmatprep.subr.bf16.mxu0 %v627_v26  ;;  %575 = vmatprep.subr.bf16.mxu1 %v627_v26 }
  0x2b   :  { %265 = vmatpush1.bf16.msra.mxu0 %v629_v27  ;;  %591 = vmatpush1.bf16.msra.mxu1 %v629_v27 }
  0x2c   :  { %266 = vmatprep.subr.bf16.mxu0 %v630_v28  ;;  %576 = vmatprep.subr.bf16.mxu1 %v630_v28 }
  0x2f   :  { %267 = vmatpush1.bf16.msra.mxu0 %v632_v29  ;;  %592 = vmatpush1.bf16.msra.mxu1 %v632_v29 }
  0x30   :  { %268 = vmatprep.subr.bf16.mxu0 %v633_v30  ;;  %577 = vmatprep.subr.bf16.mxu1 %v633_v30 }
  0x33   :  { %269 = vmatpush1.bf16.msra.mxu0 %v635_v31  ;;  %593 = vmatpush1.bf16.msra.mxu1 %v635_v31 }
  0x34   :  { %270 = vmatprep.subr.bf16.mxu0 %v636_v32  ;;  %578 = vmatprep.subr.bf16.mxu1 %v636_v32 }
  0x37   :  { %271 = vmatpush1.bf16.msra.mxu0 %v638_v33  ;;  %594 = vmatpush1.bf16.msra.mxu1 %v638_v33 }
  0x38   :  { %272 = vmatprep.subr.bf16.mxu0 %v639_v34  ;;  %579 = vmatprep.subr.bf16.mxu1 %v639_v34 }
  0x3b   :  { %273 = vmatpush1.bf16.msra.mxu0 %v641_v35  ;;  %595 = vmatpush1.bf16.msra.mxu1 %v641_v35 }
  0x3c   :  { %274 = vmatprep.subr.bf16.mxu0 %v642_v36  ;;  %580 = vmatprep.subr.bf16.mxu1 %v642_v36 }
  0x3f   :  { %275 = vmatpush1.bf16.msra.mxu0 %v644_v37  ;;  %596 = vmatpush1.bf16.msra.mxu1 %v644_v37 }
  0x42   :  { %277 = vmatmul.mubr.bf16.vlgmr.msra.gmra.mrb[0].mxu0 %v48_v42  ;;  %287 = vmatmul.mubr.bf16.vlgmr.msra.gmra.mrb[0].mxu1 %v50_v43 }
 0x115   :  { %v278_v51 = vpop.f32.mrb[0].mxu0  ;;  %v288_v52 = vpop.f32.mrb[0].mxu1 }
 0x116   :  { %v828_v53 = vadd.f32 %v329_v49, %v278_v51  ;;  %v830_v54 = vadd.f32 %v329_v49, %v288_v52  ;;  %v280_v55 = vpop.f32.mrb[1].mxu0  ;;  %v290_v56 = vpop.f32.mrb[1].mxu1 }
 0x117   :  { %v832_v57 = vadd.f32 %v333_v50, %v280_v55  ;;  %v834_v58 = vadd.f32 %v333_v50, %v290_v56  ;;  %v282_v59 = vpop.f32.mrb[2].mxu0  ;;  %v292_v60 = vpop.f32.mrb[2].mxu1 }
 0x118   :  { %v344_v61 = vmul.f32 %v828_v53, %v828_v53  ;;  %v348_v62 = vmul.f32 %v830_v54, %v830_v54  ;;  %v840_v63 = vadd.f32 %v329_v49, %v282_v59  ;;  %v842_v0 = vadd.f32 %v329_v49, %v292_v60  ;;  %v284_v1 = vpop.f32.mrb[3].mxu0  ;;  %v294_v2 = vpop.f32.mrb[3].mxu1 }
 0x119   :  { %v345_v3 = vmul.f32 %v832_v57, %v832_v57  ;;  %v349_v4 = vmul.f32 %v834_v58, %v834_v58  ;;  %v848_v5 = vadd.f32 %v333_v50, %v284_v1  ;;  %v850_v6 = vadd.f32 %v333_v50, %v294_v2 }
 0x11a   :  { %v352_v7 = vmul.f32 %v344_v61, %v828_v53  ;;  %v356_v8 = vmul.f32 %v348_v62, %v830_v54  ;;  %v346_v9 = vmul.f32 %v840_v63, %v840_v63  ;;  %v350_v10 = vmul.f32 %v842_v0, %v842_v0 }
 0x11b   :  { %v353_v11 = vmul.f32 %v345_v3, %v832_v57  ;;  %v357_v12 = vmul.f32 %v349_v4, %v834_v58  ;;  %v347_v13 = vmul.f32 %v848_v5, %v848_v5  ;;  %v351_v14 = vmul.f32 %v850_v6, %v850_v6 }
 0x11c   :  { %v360_v15 = vmul.f32 0.044715, %v352_v7  ;;  %v364_v16 = vmul.f32 0.044715, %v356_v8  ;;  %v354_v17 = vmul.f32 %v346_v9, %v840_v63  ;;  %v358_v18 = vmul.f32 %v350_v10, %v842_v0 }
 0x11d   :  { %v361_v19 = vmul.f32 0.044715, %v353_v11  ;;  %v365_v20 = vmul.f32 0.044715, %v357_v12  ;;  %v355_v21 = vmul.f32 %v347_v13, %v848_v5  ;;  %v359_v22 = vmul.f32 %v351_v14, %v850_v6 }
 0x11e   :  { %v362_v23 = vmul.f32 0.044715, %v354_v17  ;;  %v366_v24 = vmul.f32 0.044715, %v358_v18  ;;  %v372_v25 = vadd.f32 %v364_v16, %v830_v54  ;;  %v368_v26 = vadd.f32 %v360_v15, %v828_v53 }
 0x11f   :  { %v363_v27 = vmul.f32 0.044715, %v355_v21  ;;  %v367_v28 = vmul.f32 0.044715, %v359_v22  ;;  %v373_v29 = vadd.f32 %v365_v20, %v834_v58  ;;  %v369_v30 = vadd.f32 %v361_v19, %v832_v57 }
 0x120   :  { %v370_v31 = vadd.f32 %v362_v23, %v840_v63  ;;  %v374_v32 = vadd.f32 %v366_v24, %v842_v0  ;;  %v380_v33 = vmul.f32 0.7978846, %v372_v25  ;;  %v376_v34 = vmul.f32 0.7978846, %v368_v26 }
 0x121   :  { %v371_v35 = vadd.f32 %v363_v27, %v848_v5  ;;  %v375_v36 = vadd.f32 %v367_v28, %v850_v6  ;;  %v381_v37 = vmul.f32 0.7978846, %v373_v29  ;;  %v377_v38 = vmul.f32 0.7978846, %v369_v30 }
 0x122   :  { %v382_v39 = vmul.f32 0.7978846, %v374_v32  ;;  %645 = vtanh.f32 %v380_v33  ;;  %v378_v41 = vmul.f32 0.7978846, %v370_v31 }
 0x123   :  { %v383_v40 = vmul.f32 0.7978846, %v375_v36  ;;  %647 = vtanh.f32 %v381_v37  ;;  %v379_v42 = vmul.f32 0.7978846, %v371_v35 }
 0x124   :  { %649 = vtanh.f32 %v376_v34 }
 0x125   :  { %651 = vtanh.f32 %v377_v38 }
 0x126   :  { %653 = vtanh.f32 %v382_v39 }
 0x127   :  { %655 = vtanh.f32 %v383_v40 }
 0x128   :  { %657 = vtanh.f32 %v378_v41 }
 0x129   :  { %659 = vtanh.f32 %v379_v42 }
 0x12c   :  { %v646_v43 = vpop.eup %645 }
 0x12d   :  { %v648_v44 = vpop.eup %647  ;;  %v396_v45 = vadd.f32 1.0, %v646_v43 }
 0x12e   :  { %v650_v47 = vpop.eup %649  ;;  %v397_v49 = vadd.f32 1.0, %v648_v44 }
 0x12f   :  { %v652_v50 = vpop.eup %651  ;;  %v404_v51 = vmul.f32 0.5, %v396_v45  ;;  %v392_v52 = vadd.f32 1.0, %v650_v47 }
 0x130   :  { %v654_v55 = vpop.eup %653  ;;  %v405_v56 = vmul.f32 0.5, %v397_v49  ;;  %v393_v59 = vadd.f32 1.0, %v652_v50 }
 0x131   :  { %v656_v60 = vpop.eup %655  ;;  %v412_v61 = vmul.f32 %v404_v51, %v830_v54  ;;  %v400_v62 = vmul.f32 0.5, %v392_v52  ;;  %v398_v1 = vadd.f32 1.0, %v654_v55 }
 0x132   :  { %v658_v2 = vpop.eup %657  ;;  %v413_v3 = vmul.f32 %v405_v56, %v834_v58  ;;  %v401_v4 = vmul.f32 0.5, %v393_v59  ;;  %v399_v7 = vadd.f32 1.0, %v656_v60 }
 0x133   :  { %v660_v8 = vpop.eup %659  ;;  %v408_v9 = vmul.f32 %v400_v62, %v828_v53  ;;  %v406_v10 = vmul.f32 0.5, %v398_v1  ;;  %v394_v11 = vadd.f32 1.0, %v658_v2  ;;  %v416_v1 = vld [vmem:[%s931_s3] sm:$0x3] }
 0x134   :  { %v424_v12 = vadd.f32 %v413_v3, %v412_v61  ;;  %v409_v13 = vmul.f32 %v401_v4, %v832_v57  ;;  %v407_v14 = vmul.f32 0.5, %v399_v7  ;;  %v395_v15 = vadd.f32 1.0, %v660_v8  ;;  %v417_v2 = vld [vmem:[%s932_s4] sm:$0x3] }
 0x135   :  { %v414_v16 = vmul.f32 %v406_v10, %v842_v0  ;;  %v402_v54 = vmul.f32 0.5, %v394_v11  ;;  %v491_v4 = vrot.slane %v416_v1, %v824_v48  ;;  %v506_v8 = vrot.slane %v417_v2, %v819_v46 }
 0x136   :  { %425 = vadd.xlane.f32.xlu1 %v424_v12  ;;  %v418_v17 = vadd.f32 %v409_v13, %v408_v9  ;;  %v415_v18 = vmul.f32 %v407_v14, %v850_v6  ;;  %v403_v58 = vmul.f32 0.5, %v395_v15 }
 0x137   :  { %v410_v19 = vmul.f32 %v402_v54, %v840_v63 }
 0x138   :  { %419 = vadd.xlane.f32.xlu0 %v418_v17  ;;  %v427_v20 = vadd.f32 %v415_v18, %v414_v16  ;;  %v411_v53 = vmul.f32 %v403_v58, %v848_v5 }
 0x13a   :  { %428 = vadd.xlane.f32.xlu1 %v427_v20  ;;  %v421_v21 = vadd.f32 %v411_v53, %v410_v19 }
 0x13c   :  { %422 = vadd.xlane.f32.xlu0 %v421_v21 }
 0x1c3   :  { %v426_v57 = vpop.xlane.xlu1 %425 }
 0x1c4   :  { %v433_v22 = vmul.f32 0.00390625, %v426_v57 }
 0x1c5   :  { %v420_v23 = vpop.xlane.xlu0 %419 }
 0x1c6   :  { %v431_v24 = vmul.f32 0.00390625, %v420_v23  ;;  %v439_v28 = vsub.f32 %v412_v61, %v433_v22  ;;  %v440_v6 = vsub.f32 %v413_v3, %v433_v22  ;;  %v487_v3 = vrot.slane %v416_v1, %v819_v46 }
 0x1c7   :  { %v429_v0 = vpop.xlane.xlu1 %428 }
 0x1c8   :  { %v435_v25 = vsub.f32 %v408_v9, %v431_v24  ;;  %v436_v26 = vsub.f32 %v409_v13, %v431_v24  ;;  %v434_v27 = vmul.f32 0.00390625, %v429_v0  ;;  %v447_v36 = vmul.f32 %v439_v28, %v439_v28 }
 0x1c9   :  { %v423_v29 = vpop.xlane.xlu0 %422  ;;  %v448_v37 = vmul.f32 %v440_v6, %v440_v6  ;;  %v510_v9 = vrot.slane %v417_v2, %v824_v48 }
 0x1ca   :  { %v432_v30 = vmul.f32 0.00390625, %v423_v29  ;;  %v443_v63 = vmul.f32 %v435_v25, %v435_v25  ;;  %v444_v31 = vmul.f32 %v436_v26, %v436_v26  ;;  %v884_v32 = vsub.f32 %v414_v16, %v434_v27 }
 0x1cb   :  { %v886_v5 = vsub.f32 %v415_v18, %v434_v27  ;;  %v457_v43 = vadd.f32 %v448_v37, %v447_v36 }
 0x1cc   :  { %v437_v33 = vsub.f32 %v410_v19, %v432_v30  ;;  %v438_v34 = vsub.f32 %v411_v53, %v432_v30  ;;  %v451_v35 = vadd.f32 %v444_v31, %v443_v63  ;;  %v449_v41 = vmul.f32 %v884_v32, %v884_v32 }
 0x1cd   :  { %v450_v42 = vmul.f32 %v886_v5, %v886_v5 }
 0x1ce   :  { %v445_v38 = vmul.f32 %v437_v33, %v437_v33  ;;  %v446_v39 = vmul.f32 %v438_v34, %v438_v34  ;;  %452 = vadd.xlane.f32.xlu0 %v451_v35 }
 0x1cf   :  { %v460_v44 = vadd.f32 %v450_v42, %v449_v41 }
 0x1d0   :  { %v454_v40 = vadd.f32 %v446_v39, %v445_v38 }
 0x1d2   :  { %455 = vadd.xlane.f32.xlu1 %v454_v40  ;;  %458 = vadd.xlane.f32.xlu0 %v457_v43 }
 0x1d6   :  { %461 = vadd.xlane.f32.xlu1 %v460_v44 }
 0x25b   :  { %v453_v45 = vpop.xlane.xlu0 %452 }
 0x25c   :  { %v463_v47 = vmul.f32 0.00390625, %v453_v45 }
 0x25e   :  { %v467_v49 = vadd.f32 1e-12, %v463_v47 }
 0x25f   :  { %v456_v50 = vpop.xlane.xlu1 %455  ;;  %v459_v52 = vpop.xlane.xlu0 %458 }
 0x260   :  { %v464_v51 = vmul.f32 0.00390625, %v456_v50  ;;  %661 = vrsqrt.f32 %v467_v49  ;;  %v465_v55 = vmul.f32 0.00390625, %v459_v52 }
 0x262   :  { %v468_v56 = vadd.f32 1e-12, %v464_v51  ;;  %v469_v59 = vadd.f32 1e-12, %v465_v55 }
 0x263   :  { %v462_v60 = vpop.xlane.xlu1 %461 }
 0x264   :  { %663 = vrsqrt.f32 %v468_v56  ;;  %v466_v61 = vmul.f32 0.00390625, %v462_v60 }
 0x265   :  { %665 = vrsqrt.f32 %v469_v59 }
 0x266   :  { %v470_v62 = vadd.f32 1e-12, %v466_v61 }
 0x268   :  { %667 = vrsqrt.f32 %v470_v62 }
 0x26a   :  { %v662_v7 = vpop.eup %661 }
 0x26b   :  { %v475_v10 = vmul.f32 %v662_v7, %v435_v25  ;;  %v476_v11 = vmul.f32 %v662_v7, %v436_v26 }
 0x26d   :  { %v494_v13 = vmul.f32 %v487_v3, %v475_v10  ;;  %v495_v14 = vmul.f32 %v491_v4, %v476_v11 }
 0x26e   :  { %v664_v12 = vpop.eup %663 }
 0x26f   :  { %v666_v15 = vpop.eup %665  ;;  %v477_v16 = vmul.f32 %v664_v12, %v437_v33  ;;  %v478_v54 = vmul.f32 %v664_v12, %v438_v34  ;;  %v513_v17 = vadd.f32 %v506_v8, %v494_v13  ;;  %v514_v18 = vadd.f32 %v510_v9, %v495_v14 }
 0x270   :  { %v479_v58 = vmul.f32 %v666_v15, %v439_v28  ;;  %v480_v19 = vmul.f32 %v666_v15, %v440_v6 }
 0x271   :  { %v496_v20 = vmul.f32 %v487_v3, %v477_v16  ;;  %v497_v53 = vmul.f32 %v491_v4, %v478_v54  ;;  %521 = vst [vmem:[%s933_s5] sm:$0xff] %v513_v17  ;;  %522 = vst [vmem:[%s933_s5 + $0x8] sm:$0xff] %v514_v18 }
 0x272   :  { %v668_v21 = vpop.eup %667  ;;  %v498_v46 = vmul.f32 %v487_v3, %v479_v58  ;;  %v499_v48 = vmul.f32 %v491_v4, %v480_v19 }
 0x273   :  { %v515_v57 = vadd.f32 %v506_v8, %v496_v20  ;;  %v516_v22 = vadd.f32 %v510_v9, %v497_v53  ;;  %v481_v23 = vmul.f32 %v668_v21, %v884_v32  ;;  %v482_v24 = vmul.f32 %v668_v21, %v886_v5 }
 0x274   :  { %v517_v0 = vadd.f32 %v506_v8, %v498_v46  ;;  %v518_v25 = vadd.f32 %v510_v9, %v499_v48 }
 0x275   :  { %523 = vst [vmem:[%s933_s5 + $0x10] sm:$0xff] %v515_v57  ;;  %524 = vst [vmem:[%s933_s5 + $0x18] sm:$0xff] %v516_v22  ;;  %v500_v26 = vmul.f32 %v487_v3, %v481_v23  ;;  %v501_v27 = vmul.f32 %v491_v4, %v482_v24 }
 0x276   :  { %525 = vst [vmem:[%s933_s5 + $0x20] sm:$0xff] %v517_v0  ;;  %526 = vst [vmem:[%s933_s5 + $0x28] sm:$0xff] %v518_v25 }
 0x277   :  { %v519_v28 = vadd.f32 %v506_v8, %v500_v26  ;;  %v520_v6 = vadd.f32 %v510_v9, %v501_v27 }
 0x279   :  { %527 = vst [vmem:[%s933_s5 + $0x30] sm:$0xff] %v519_v28  ;;  %528 = vst [vmem:[%s933_s5 + $0x38] sm:$0xff] %v520_v6 }

// kernel: _lambda_.23
= control target key start
LH: loop header
LB: loop body
LE: loop exit
PB: predicated region body
PF: predicated region fallthrough
CT: control target
= control target key end

     0   :  { %8 = vsyncpa [#allocation5], 0  ;;  %s1429_s0 = inlined_call_operand.vmem [shape: f32[32,256], index: 0, kind: input, shape index: {}]   ;;  %s1430_s1 = inlined_call_operand.vmem [shape: bf16[256,512], index: 1, kind: input, shape index: {}]   ;;  %s1431_s2 = inlined_call_operand.vmem [shape: f32[1,512], index: 2, kind: input, shape index: {}]   ;;  %s1432_s3 = inlined_call_operand.hbm [shape: f32[32,512], index: 3, kind: output, shape index: {}]  }
   0x1   :  { %10 = vsyncpa [#allocation5 + $0x1], 0  ;;  %s1175_s12 = smov 0   ;;  %s1177_s13 = smov 0  }
   0x2   :  { %s1179_s14 = smov 0   ;;  %s1181_s15 = smov 0  }
   0x3   :  { %s1183_s16 = smov 0   ;;  %s1185_s17 = smov 0  }
   0x4 LB: > { %s882_s18 = sadd.s32 4294967295, %s1149_s17   ;;  %s883_s19 = sadd.s32 4294967294, %s1149_s17   ;;  %s1149_s17 = sphi %s1185_s17, %s16_s17   ;;  %s1145_s16 = sphi %s1183_s16, %s1439_s16   ;;  %s1141_s15 = sphi %s1181_s15, %s1438_s15   ;;  %s1137_s14 = sphi %s1179_s14, %s1437_s14   ;;  %s1133_s13 = sphi %s1177_s13, %s1436_s13   ;;  %s1129_s12 = sphi %s1175_s12, %s1435_s12  }
   0x5   : > { %s31_s20 = sadd.s32 1, %s1145_s16  ;;  %s72_s21 = sadd.s32 1, %s1137_s14 }
   0x6   : > { %p33_p0 = scmp.ge.s32.totalorder %s31_s20, 2  ;;  %p79_p1 = scmp.ne.s32.totalorder %s1137_s14, %s1133_s13 }
   0x7   : > { %p80_p2 = scmp.eq.s32.totalorder %s1149_s17, 0  ;;  %p137_p3 = scmp.eq.s32.totalorder %s882_s18, 1 }
   0x8   : > { %s1441_s20 = smov (%p33_p0, %s31_s20), 0  ;;  %p142_p6 = scmp.ne.s32.totalorder %s1133_s13, %s1129_s12 }
   0x9   : > { %p81_p4 = por %p80_p2, %p79_p1  ;;  %p1214_p5 = por %p137_p3, %p79_p1 }
   0xa   : > { %s68_s23 = ssub.s32 %s1145_s16, %s1441_s20  ;;  %p143_p8 = scmp.eq.s32.totalorder %s883_s19, 1 }
   0xb   : > { %p70_p7 = scmp.eq.s32.totalorder %s68_s23, 0  ;;  %p886_p10 = scmp.ge.s32.totalorder %s1149_s17, 2 }
   0xc   : > { %p1225_p9 = por %p143_p8, %p142_p6 }
   0xd   : > { %s1223_s24 = scalar_select %p70_p7, %s1137_s14, %s72_s21  }
   0xe   : > { %174 = sbr.rel (%p886_p10) target bundleno = 41 (0x29), region = 20 }
  0x15   : > { %177 = sbr.rel (!%p81_p4) target bundleno = 41 (0x29), region = 24  ;;  %s179_s26 = sand.u32 (%p81_p4), 1, %s1137_s14  }
  0x16   : > { %s931_s27 = sshll.u32 (%p81_p4), %s1145_s16, 3  ;;  %s887_s28 = sshll.u32 (%p81_p4), %s179_s26, 8 }
  0x17   : > { %s1237_s4 = scalar_lea.vmem (%p81_p4), %s1430_s1, %s931_s27  ;;  %s1242_s5 = scalar_lea.vmem (%p81_p4), [#allocation3], %s887_s28 }
  0x18   : > { %v277_v0 = vld [vmem:[%s1237_s4] sm:$0xff] (%p81_p4)  ;;  %v279_v1 = vld [vmem:[%s1237_s4 + $0x10] sm:$0xff] (%p81_p4) }
  0x19   : > { %v281_v2 = vld [vmem:[%s1237_s4 + $0x20] sm:$0xff] (%p81_p4)  ;;  %278 = vst [vmem:[%s1242_s5] sm:$0xff] (%p81_p4), %v277_v0  ;;  %280 = vst [vmem:[%s1242_s5 + $0x8] sm:$0xff] (%p81_p4), %v279_v1  ;;  %v283_v3 = vld [vmem:[%s1237_s4 + $0x30] sm:$0xff] (%p81_p4) }
  0x1a   : > { %282 = vst [vmem:[%s1242_s5 + $0x10] sm:$0xff] (%p81_p4), %v281_v2  ;;  %v285_v4 = vld [vmem:[%s1237_s4 + $0x40] sm:$0xff] (%p81_p4)  ;;  %v287_v5 = vld [vmem:[%s1237_s4 + $0x50] sm:$0xff] (%p81_p4)  ;;  %284 = vst [vmem:[%s1242_s5 + $0x18] sm:$0xff] (%p81_p4), %v283_v3 }
  0x1b   : > { %286 = vst [vmem:[%s1242_s5 + $0x20] sm:$0xff] (%p81_p4), %v285_v4  ;;  %288 = vst [vmem:[%s1242_s5 + $0x28] sm:$0xff] (%p81_p4), %v287_v5  ;;  %v289_v6 = vld [vmem:[%s1237_s4 + $0x60] sm:$0xff] (%p81_p4)  ;;  %v291_v7 = vld [vmem:[%s1237_s4 + $0x70] sm:$0xff] (%p81_p4) }
  0x1c   : > { %v293_v8 = vld [vmem:[%s1237_s4 + $0x80] sm:$0xff]  ;;  %290 = vst [vmem:[%s1242_s5 + $0x30] sm:$0xff] %v289_v6  ;;  %292 = vst [vmem:[%s1242_s5 + $0x38] sm:$0xff] %v291_v7  ;;  %v295_v9 = vld [vmem:[%s1237_s4 + $0x90] sm:$0xff] }
  0x1d   : > { %294 = vst [vmem:[%s1242_s5 + $0x40] sm:$0xff] %v293_v8  ;;  %v297_v10 = vld [vmem:[%s1237_s4 + $0xa0] sm:$0xff]  ;;  %v299_v11 = vld [vmem:[%s1237_s4 + $0xb0] sm:$0xff]  ;;  %296 = vst [vmem:[%s1242_s5 + $0x48] sm:$0xff] %v295_v9 }
  0x1e   : > { %298 = vst [vmem:[%s1242_s5 + $0x50] sm:$0xff] %v297_v10  ;;  %300 = vst [vmem:[%s1242_s5 + $0x58] sm:$0xff] %v299_v11  ;;  %v301_v12 = vld [vmem:[%s1237_s4 + $0xc0] sm:$0xff]  ;;  %v303_v13 = vld [vmem:[%s1237_s4 + $0xd0] sm:$0xff] }
  0x1f   : > { %v305_v14 = vld [vmem:[%s1237_s4 + $0xe0] sm:$0xff]  ;;  %302 = vst [vmem:[%s1242_s5 + $0x60] sm:$0xff] %v301_v12  ;;  %304 = vst [vmem:[%s1242_s5 + $0x68] sm:$0xff] %v303_v13  ;;  %v307_v15 = vld [vmem:[%s1237_s4 + $0xf0] sm:$0xff] }
  0x20   : > { %306 = vst [vmem:[%s1242_s5 + $0x70] sm:$0xff] %v305_v14  ;;  %v309_v16 = vld [vmem:[%s1237_s4 + $0x100] sm:$0xff]  ;;  %v311_v17 = vld [vmem:[%s1237_s4 + $0x110] sm:$0xff]  ;;  %308 = vst [vmem:[%s1242_s5 + $0x78] sm:$0xff] %v307_v15 }
  0x21   : > { %310 = vst [vmem:[%s1242_s5 + $0x80] sm:$0xff] %v309_v16  ;;  %312 = vst [vmem:[%s1242_s5 + $0x88] sm:$0xff] %v311_v17  ;;  %v313_v18 = vld [vmem:[%s1237_s4 + $0x120] sm:$0xff]  ;;  %v315_v19 = vld [vmem:[%s1237_s4 + $0x130] sm:$0xff] }
  0x22   : > { %v317_v20 = vld [vmem:[%s1237_s4 + $0x140] sm:$0xff]  ;;  %314 = vst [vmem:[%s1242_s5 + $0x90] sm:$0xff] %v313_v18  ;;  %316 = vst [vmem:[%s1242_s5 + $0x98] sm:$0xff] %v315_v19  ;;  %v319_v21 = vld [vmem:[%s1237_s4 + $0x150] sm:$0xff] }
  0x23   : > { %318 = vst [vmem:[%s1242_s5 + $0xa0] sm:$0xff] %v317_v20  ;;  %v321_v22 = vld [vmem:[%s1237_s4 + $0x160] sm:$0xff]  ;;  %v323_v23 = vld [vmem:[%s1237_s4 + $0x170] sm:$0xff]  ;;  %320 = vst [vmem:[%s1242_s5 + $0xa8] sm:$0xff] %v319_v21 }
  0x24   : > { %322 = vst [vmem:[%s1242_s5 + $0xb0] sm:$0xff] %v321_v22  ;;  %324 = vst [vmem:[%s1242_s5 + $0xb8] sm:$0xff] %v323_v23  ;;  %v325_v24 = vld [vmem:[%s1237_s4 + $0x180] sm:$0xff]  ;;  %v327_v25 = vld [vmem:[%s1237_s4 + $0x190] sm:$0xff] }
  0x25   : > { %v329_v26 = vld [vmem:[%s1237_s4 + $0x1a0] sm:$0xff]  ;;  %326 = vst [vmem:[%s1242_s5 + $0xc0] sm:$0xff] %v325_v24  ;;  %328 = vst [vmem:[%s1242_s5 + $0xc8] sm:$0xff] %v327_v25  ;;  %v331_v27 = vld [vmem:[%s1237_s4 + $0x1b0] sm:$0xff] }
  0x26   : > { %330 = vst [vmem:[%s1242_s5 + $0xd0] sm:$0xff] %v329_v26  ;;  %v333_v28 = vld [vmem:[%s1237_s4 + $0x1c0] sm:$0xff]  ;;  %v335_v29 = vld [vmem:[%s1237_s4 + $0x1d0] sm:$0xff]  ;;  %332 = vst [vmem:[%s1242_s5 + $0xd8] sm:$0xff] %v331_v27 }
  0x27   : > { %334 = vst [vmem:[%s1242_s5 + $0xe0] sm:$0xff] %v333_v28  ;;  %336 = vst [vmem:[%s1242_s5 + $0xe8] sm:$0xff] %v335_v29  ;;  %v337_v30 = vld [vmem:[%s1237_s4 + $0x1e0] sm:$0xff]  ;;  %v339_v31 = vld [vmem:[%s1237_s4 + $0x1f0] sm:$0xff] }
  0x28   : > { %338 = vst [vmem:[%s1242_s5 + $0xf0] sm:$0xff] %v337_v30  ;;  %340 = vst [vmem:[%s1242_s5 + $0xf8] sm:$0xff] %v339_v31 }
  0x29 PF: > { %p890_p11 = scmp.ge.s32.totalorder %s1149_s17, 1  ;;  %p353_p12 = scmp.lt.s32.totalorder %s1149_s17, 3 }
  0x2b   : > { %p354_p13 = pnand %p890_p11, %p353_p12 }
  0x2c   : > { %s1308_s6 = sand.u32 (!%p354_p13), 1, %s1133_s13   ;;  %v439_v32 = vld [vmem:[%s1429_s0 + $0x8] sm:$0xff] (!%p354_p13)  ;;  %v441_v33 = vld [vmem:[%s1429_s0 + $0x18] sm:$0xff] (!%p354_p13)  ;;  %v438_v5 = vld [vmem:[%s1429_s0] sm:$0xff] (!%p354_p13)  ;;  %s893_s9 = sshll.u32 (!%p354_p13), %s1141_s15, 1  ;;  %v724_v12 = vlaneseq (!%p354_p13) }
  0x2d   : > { %357 = sbr.rel (%p354_p13) target bundleno = 346 (0x15a), region = 66  ;;  %v443_v34 = vld [vmem:[%s1429_s0 + $0x28] sm:$0xff] (!%p354_p13)  ;;  %s891_s19 = sshll.u32 (!%p354_p13), %s1308_s6, 8  ;;  %v447_v35 = vpack.c.bf16 (!%p354_p13), %v441_v33, %v439_v32  ;;  %v445_v36 = vld [vmem:[%s1429_s0 + $0x38] sm:$0xff] (!%p354_p13)  ;;  %v440_v6 = vld [vmem:[%s1429_s0 + $0x10] sm:$0xff] (!%p354_p13) }
  0x2e   : > { %v449_v37 = vpack.c.bf16 (!%p354_p13), %v445_v36, %v443_v34  ;;  %s1323_s26 = scalar_lea.vmem (!%p354_p13), [#allocation3], %s891_s19  ;;  %v442_v8 = vld [vmem:[%s1429_s0 + $0x20] sm:$0xff] (!%p354_p13)  ;;  %v444_v9 = vld [vmem:[%s1429_s0 + $0x30] sm:$0xff] (!%p354_p13)  ;;  %v446_v10 = vpack.c.bf16 (!%p354_p13), %v440_v6, %v438_v5  ;;  %p412_p0 = scmp.lt.s32.totalorder (!%p354_p13), %s893_s9, 3  ;;  %v725_v13 = vshrl.u32 (!%p354_p13), %v724_v12, 7 }
  0x2f   : > { %v1023_v38 = vld [vmem:[%s1323_s26 + $0x4] ss:$8 sps:$4 sm:$0xff] (!%p354_p13)   ;;  %674 = vmatprep.mubr.bf16.mxu0 (!%p354_p13), %v447_v35  ;;  %v1025_v39 = vld [vmem:[%s1323_s26] ss:$8 sps:$4 sm:$0xff] (!%p354_p13)   ;;  %v1026_v40 = vld [vmem:[%s1323_s26 + $0x14] ss:$8 sps:$4 sm:$0xff] (!%p354_p13)   ;;  %v448_v11 = vpack.c.bf16 (!%p354_p13), %v444_v9, %v442_v8 }
  0x30   : > { %684 = vmatprep.mubr.bf16.mxu1 (!%p354_p13), %v449_v37  ;;  %642 = vmatprep.subr.bf16.mxu0 (!%p354_p13), %v1023_v38  ;;  %v1028_v41 = vld [vmem:[%s1323_s26 + $0x10] ss:$8 sps:$4 sm:$0xff] (!%p354_p13)   ;;  %v1029_v42 = vld [vmem:[%s1323_s26 + $0x24] ss:$8 sps:$4 sm:$0xff] (!%p354_p13)   ;;  %v1031_v43 = vld [vmem:[%s1323_s26 + $0x20] ss:$8 sps:$4 sm:$0xff] (!%p354_p13)  }
  0x31   : > { %933 = vmatprep.subr.bf16.mxu1 (!%p354_p13), %v1023_v38  ;;  %643 = vmatpush1.bf16.msra.mxu0 (!%p354_p13), %v1025_v39  ;;  %v1032_v44 = vld [vmem:[%s1323_s26 + $0x34] ss:$8 sps:$4 sm:$0xff] (!%p354_p13)   ;;  %v1034_v45 = vld [vmem:[%s1323_s26 + $0x30] ss:$8 sps:$4 sm:$0xff] (!%p354_p13)   ;;  %v1035_v46 = vld [vmem:[%s1323_s26 + $0x44] ss:$8 sps:$4 sm:$0xff] (!%p354_p13)  }
  0x32   : > { %949 = vmatpush1.bf16.msra.mxu1 (!%p354_p13), %v1025_v39  ;;  %644 = vmatprep.subr.bf16.mxu0 (!%p354_p13), %v1026_v40  ;;  %v1037_v47 = vld [vmem:[%s1323_s26 + $0x40] ss:$8 sps:$4 sm:$0xff] (!%p354_p13)   ;;  %v1038_v48 = vld [vmem:[%s1323_s26 + $0x54] ss:$8 sps:$4 sm:$0xff] (!%p354_p13)   ;;  %v1040_v49 = vld [vmem:[%s1323_s26 + $0x50] ss:$8 sps:$4 sm:$0xff] (!%p354_p13)  }
  0x33   : > { %934 = vmatprep.subr.bf16.mxu1 (!%p354_p13), %v1026_v40  ;;  %v1041_v50 = vld [vmem:[%s1323_s26 + $0x64] ss:$8 sps:$4 sm:$0xff] (!%p354_p13)   ;;  %v1043_v51 = vld [vmem:[%s1323_s26 + $0x60] ss:$8 sps:$4 sm:$0xff] (!%p354_p13)   ;;  %v1044_v52 = vld [vmem:[%s1323_s26 + $0x74] ss:$8 sps:$4 sm:$0xff] (!%p354_p13)  }
  0x34   : > { %v1046_v53 = vld [vmem:[%s1323_s26 + $0x70] ss:$8 sps:$4 sm:$0xff]   ;;  %v1047_v54 = vld [vmem:[%s1323_s26 + $0x84] ss:$8 sps:$4 sm:$0xff]   ;;  %v1049_v55 = vld [vmem:[%s1323_s26 + $0x80] ss:$8 sps:$4 sm:$0xff]  }
  0x35   : > { %645 = vmatpush1.bf16.msra.mxu0 %v1028_v41  ;;  %v1050_v56 = vld [vmem:[%s1323_s26 + $0x94] ss:$8 sps:$4 sm:$0xff]   ;;  %v1052_v57 = vld [vmem:[%s1323_s26 + $0x90] ss:$8 sps:$4 sm:$0xff]   ;;  %v1053_v58 = vld [vmem:[%s1323_s26 + $0xa4] ss:$8 sps:$4 sm:$0xff]  }
  0x36   : > { %950 = vmatpush1.bf16.msra.mxu1 %v1028_v41  ;;  %646 = vmatprep.subr.bf16.mxu0 %v1029_v42  ;;  %v1055_v59 = vld [vmem:[%s1323_s26 + $0xa0] ss:$8 sps:$4 sm:$0xff]   ;;  %v1056_v60 = vld [vmem:[%s1323_s26 + $0xb4] ss:$8 sps:$4 sm:$0xff]   ;;  %v1058_v61 = vld [vmem:[%s1323_s26 + $0xb0] ss:$8 sps:$4 sm:$0xff]  }
  0x37   : > { %935 = vmatprep.subr.bf16.mxu1 %v1029_v42  ;;  %v1059_v62 = vld [vmem:[%s1323_s26 + $0xc4] ss:$8 sps:$4 sm:$0xff]   ;;  %v1061_v63 = vld [vmem:[%s1323_s26 + $0xc0] ss:$8 sps:$4 sm:$0xff]   ;;  %v1062_v0 = vld [vmem:[%s1323_s26 + $0xd4] ss:$8 sps:$4 sm:$0xff]  }
  0x38   : > { %v1064_v1 = vld [vmem:[%s1323_s26 + $0xd0] ss:$8 sps:$4 sm:$0xff]   ;;  %v1065_v2 = vld [vmem:[%s1323_s26 + $0xe4] ss:$8 sps:$4 sm:$0xff]   ;;  %v1067_v3 = vld [vmem:[%s1323_s26 + $0xe0] ss:$8 sps:$4 sm:$0xff]  }
  0x39   : > { %647 = vmatpush1.bf16.msra.mxu0 %v1031_v43  ;;  %v1068_v4 = vld [vmem:[%s1323_s26 + $0xf4] ss:$8 sps:$4 sm:$0xff]   ;;  %v1070_v7 = vld [vmem:[%s1323_s26 + $0xf0] ss:$8 sps:$4 sm:$0xff]   ;;  %s1443_s9 = smov (!%p412_p0, %s893_s9), 3  ;;  %v726_v14 = vsub.s32 0, %v725_v13 }
  0x3a   : > { %951 = vmatpush1.bf16.msra.mxu1 %v1031_v43  ;;  %648 = vmatprep.subr.bf16.mxu0 %v1032_v44  ;;  %s414_s18 = scalar_lea.vmem %s1431_s2, %s1443_s9  ;;  %v730_v16 = vsub.s32 1, %v725_v13  ;;  %s892_s19 = sshll.u32 %s1308_s6, 6 }
  0x3b   : > { %936 = vmatprep.subr.bf16.mxu1 %v1032_v44  ;;  %v722_v15 = vld [vmem:[%s414_s18] sm:$0x3]  ;;  %s396_s21 = scalar_lea.vmem [#allocation4], %s892_s19  ;;  %s932_s26 = sshll.u32 %s1141_s15, 8 }
  0x3c   : > { %v727_v17 = vrot.slane %v722_v15, %v726_v14  ;;  %v731_v18 = vrot.slane %v722_v15, %v730_v16  ;;  %s767_s23 = sshll.u32 %s396_s21, 4  ;;  %s1380_s28 = scalar_lea.hbm %s1432_s3, %s932_s26  ;;  %s1375_s23 = int_to_ptr.vmem [resolvable:$true] %s767_s23 }
  0x3d   : > { %649 = vmatpush1.bf16.msra.mxu0 %v1034_v45  ;;  %s751_s29 = scalar_lea.sflag [#allocation5], %s1308_s6  ;;  %s1071_s30 = scalar_lea.vmem %s1375_s23, 1024 }
  0x3e   : > { %952 = vmatpush1.bf16.msra.mxu1 %v1034_v45  ;;  %650 = vmatprep.subr.bf16.mxu0 %v1035_v46  ;;  %p1072_p1 = scmp.ne.s32.totalorder %s1375_s23, %s1071_s30  ;;  %s1151_s4 = smov [#allocation4]  }
  0x3f   : > { %937 = vmatprep.subr.bf16.mxu1 %v1035_v46  ;;  %s1075_s5 = sshll.u32 %s1151_s4, 4  ;;  %s1076_s5 = int_to_ptr.vmem [resolvable:$false] %s1075_s5 }
  0x40   : > { %p1073_p2 = pnand %p1072_p1, %p1214_p5  ;;  %s1077_s7 = scalar_lea.vmem %s1076_s5, 2048 }
  0x41   : > { %651 = vmatpush1.bf16.msra.mxu0 %v1037_v47  ;;  %p1078_p4 = scmp.lt.s32.totalorder %s1375_s23, %s1076_s5  ;;  %p1079_p6 = scmp.lt.s32.totalorder %s1077_s7, %s1071_s30 }
  0x42   : > { %953 = vmatpush1.bf16.msra.mxu1 %v1037_v47  ;;  %652 = vmatprep.subr.bf16.mxu0 %v1038_v48  ;;  %p1074_p3 = pneg %p1073_p2 }
  0x43   : > { %938 = vmatprep.subr.bf16.mxu1 %v1038_v48  ;;  %p1080_p7 = por %p1079_p6, %p1078_p4 }
  0x45   : > { %653 = vmatpush1.bf16.msra.mxu0 %v1040_v49  ;;  %p1081_p8 = pnand %p1080_p7, %p1074_p3 }
  0x46   : > { %954 = vmatpush1.bf16.msra.mxu1 %v1040_v49  ;;  %654 = vmatprep.subr.bf16.mxu0 %v1041_v50 }
  0x47   : > { %939 = vmatprep.subr.bf16.mxu1 %v1041_v50 }
  0x49   : > { %655 = vmatpush1.bf16.msra.mxu0 %v1043_v51 }
  0x4a   : > { %955 = vmatpush1.bf16.msra.mxu1 %v1043_v51  ;;  %656 = vmatprep.subr.bf16.mxu0 %v1044_v52 }
  0x4b   : > { %940 = vmatprep.subr.bf16.mxu1 %v1044_v52 }
  0x4d   : > { %657 = vmatpush1.bf16.msra.mxu0 %v1046_v53 }
  0x4e   : > { %956 = vmatpush1.bf16.msra.mxu1 %v1046_v53  ;;  %658 = vmatprep.subr.bf16.mxu0 %v1047_v54 }
  0x4f   : > { %941 = vmatprep.subr.bf16.mxu1 %v1047_v54 }
  0x51   : > { %659 = vmatpush1.bf16.msra.mxu0 %v1049_v55 }
  0x52   : > { %957 = vmatpush1.bf16.msra.mxu1 %v1049_v55  ;;  %660 = vmatprep.subr.bf16.mxu0 %v1050_v56 }
  0x53   : > { %942 = vmatprep.subr.bf16.mxu1 %v1050_v56 }
  0x55   : > { %661 = vmatpush1.bf16.msra.mxu0 %v1052_v57 }
  0x56   : > { %958 = vmatpush1.bf16.msra.mxu1 %v1052_v57  ;;  %662 = vmatprep.subr.bf16.mxu0 %v1053_v58 }
  0x57   : > { %943 = vmatprep.subr.bf16.mxu1 %v1053_v58 }
  0x59   : > { %663 = vmatpush1.bf16.msra.mxu0 %v1055_v59 }
  0x5a   : > { %959 = vmatpush1.bf16.msra.mxu1 %v1055_v59  ;;  %664 = vmatprep.subr.bf16.mxu0 %v1056_v60 }
  0x5b   : > { %944 = vmatprep.subr.bf16.mxu1 %v1056_v60 }
  0x5d   : > { %665 = vmatpush1.bf16.msra.mxu0 %v1058_v61 }
  0x5e   : > { %960 = vmatpush1.bf16.msra.mxu1 %v1058_v61  ;;  %666 = vmatprep.subr.bf16.mxu0 %v1059_v62 }
  0x5f   : > { %945 = vmatprep.subr.bf16.mxu1 %v1059_v62 }
  0x61   : > { %667 = vmatpush1.bf16.msra.mxu0 %v1061_v63 }
  0x62   : > { %961 = vmatpush1.bf16.msra.mxu1 %v1061_v63  ;;  %668 = vmatprep.subr.bf16.mxu0 %v1062_v0 }
  0x63   : > { %946 = vmatprep.subr.bf16.mxu1 %v1062_v0 }
  0x65   : > { %669 = vmatpush1.bf16.msra.mxu0 %v1064_v1 }
  0x66   : > { %962 = vmatpush1.bf16.msra.mxu1 %v1064_v1  ;;  %670 = vmatprep.subr.bf16.mxu0 %v1065_v2 }
  0x67   : > { %947 = vmatprep.subr.bf16.mxu1 %v1065_v2 }
  0x69   : > { %671 = vmatpush1.bf16.msra.mxu0 %v1067_v3 }
  0x6a   : > { %963 = vmatpush1.bf16.msra.mxu1 %v1067_v3  ;;  %672 = vmatprep.subr.bf16.mxu0 %v1068_v4 }
  0x6b   : > { %948 = vmatprep.subr.bf16.mxu1 %v1068_v4 }
  0x6d   : > { %673 = vmatpush1.bf16.msra.mxu0 %v1070_v7 }
  0x6e   : > { %964 = vmatpush1.bf16.msra.mxu1 %v1070_v7 }
  0x70   : > { %675 = vmatmul.mubr.bf16.vlgmr.msra.gmra.mrb[0].mxu0 %v446_v10 }
  0x71   : > { %685 = vmatmul.mubr.bf16.vlgmr.msra.gmra.mrb[0].mxu1 %v448_v11 }
 0x143   : > { %v676_v19 = vpop.f32.mrb[0].mxu0 }
 0x144   : > { %v686_v20 = vpop.f32.mrb[0].mxu1  ;;  %v734_v21 = vadd.f32 %v727_v17, %v676_v19  ;;  %v678_v23 = vpop.f32.mrb[1].mxu0 }
 0x145   : > { %v738_v22 = vadd.f32 %v727_v17, %v686_v20  ;;  %v688_v24 = vpop.f32.mrb[1].mxu1  ;;  %v735_v25 = vadd.f32 %v731_v18, %v678_v23  ;;  %v680_v27 = vpop.f32.mrb[2].mxu0 }
 0x146   : > { %v739_v26 = vadd.f32 %v731_v18, %v688_v24  ;;  %v690_v28 = vpop.f32.mrb[2].mxu1  ;;  %742 = vst [vmem:[%s396_s21] sm:$0xff] %v734_v21  ;;  %v736_v29 = vadd.f32 %v727_v17, %v680_v27  ;;  %v682_v31 = vpop.f32.mrb[3].mxu0 }
 0x147   : > { %746 = vst [vmem:[%s396_s21 + $0x20] sm:$0xff] %v738_v22  ;;  %v740_v30 = vadd.f32 %v727_v17, %v690_v28  ;;  %v692_v32 = vpop.f32.mrb[3].mxu1  ;;  %743 = vst [vmem:[%s396_s21 + $0x8] sm:$0xff] %v735_v25  ;;  %v737_v33 = vadd.f32 %v731_v18, %v682_v31 }
 0x148   : > { %747 = vst [vmem:[%s396_s21 + $0x28] sm:$0xff] %v739_v26  ;;  %v741_v34 = vadd.f32 %v731_v18, %v692_v32  ;;  %744 = vst [vmem:[%s396_s21 + $0x10] sm:$0xff] %v736_v29 }
 0x149   : > { %748 = vst [vmem:[%s396_s21 + $0x30] sm:$0xff] %v740_v30  ;;  %745 = vst [vmem:[%s396_s21 + $0x18] sm:$0xff] %v737_v33 }
 0x14a   : > { %749 = vst [vmem:[%s396_s21 + $0x38] sm:$0xff] %v741_v34 }
 0x14b   : > { %1084 = shalt.err (!%p1081_p8)
}
 0x14c   : > { %s1085_s8 = scalar_lea.hbm %s1380_s28, 1024  ;;  %s1089_s11 = scalar_lea.hbm %s1432_s3, 2048 }
 0x14d   : > { %p1086_p11 = scmp.ne.s32.totalorder %s1380_s28, %s1085_s8  ;;  %p1090_p0 = scmp.lt.u32.totalorder %s1380_s28, %s1432_s3 }
 0x14e   : > { %p1091_p1 = scmp.lt.u32.totalorder %s1089_s11, %s1085_s8  ;;  %p1093_p3 = scmp.lt.u32.totalorder %s1085_s8, %s1380_s28 }
 0x14f   : > { %p1087_p12 = pnand %p1086_p11, %p1214_p5 }
 0x150   : > { %p1092_p2 = por %p1091_p1, %p1090_p0 }
 0x151   : > { %p1088_p13 = pneg %p1087_p12 }
 0x152   : > { %p1094_p4 = por %p1093_p3, %p1092_p2 }
 0x154   : > { %p1095_p6 = pnand %p1094_p4, %p1088_p13 }
 0x156   : > { %1098 = shalt.err (!%p1095_p6)
}
 0x157   : > { %s1152_s21 = smov 256   ;;  %s1153_s26 = smov 512  }
 0x158   : > { %s1154_s15 = smov 16  }
 0x159   : > { %965 = dma.vmem_to_hbm [thread:$0]  (%p1214_p5), %s1375_s23, 1024, %s1380_s28, %s751_s29, %s1152_s21, %s1153_s26, %s1154_s15  }
 0x15a PF: > { %s782_s27 = sand.u32 1, %s1129_s12   ;;  %p968_p7 = pnand %p886_p10, %p1225_p9 }
 0x15b   : > { %s783_s30 = scalar_lea.sflag [#allocation5], %s782_s27 }
 0x15c   : > { %1124 = dma.done.wait (!%p968_p7), %s783_s30, 1024  }
 0x15d   : > { %1126 = vsyncadd (!%p968_p7), %s783_s30, 4294966272  ;;  %s16_s17 = sadd.s32 1, %s1149_s17   ;;  %s1435_s12 = smov %s1133_s13 }
 0x15e   : > { %p13_p8 = scmp.ge.s32.totalorder %s16_s17, 4   ;;  %s1436_s13 = smov %s1137_s14 }
 0x15f   : > { %s1437_s14 = smov %s1223_s24  ;;  %s1438_s15 = smov %s1145_s16 }
 0x160   : > { %s1439_s16 = smov %s1441_s20  ;;  %15 = sbr.rel (!%p13_p8) target bundleno = 4 (0x4), region = 124 }
 0x167   :  { %788 = vsyncpa [#allocation5], 1 }
 0x168   :  { %790 = vsyncpa [#allocation5 + $0x1], 1 }

</bundles_post_ra>
